<compile_context>
chip_gen: v6e
topology: v6e:2x2x1
jax: 0.10.0
libtpu: 0.0.40
codegen_flags: <defaults>
</compile_context>

<pallas_src>
import jax
import jax.numpy as jnp
from jax.experimental import pallas as pl
from jax.experimental.pallas import tpu as pltpu

C_IN = 56      # conv2d180 in channels
C_MID = 1344   # conv2d180 out / conv2d181 in channels
C_OUT = 224    # conv2d181 out channels
H = W = 14
HW = H * W


def _se_fused_kernel(s_ref, w1t_ref, b1_ref, x_hbm, w2_hbm, o_ref,
                     x_vmem, w2_vmem, dma_sems):
    # s_ref   : [C_IN, 1]      f32   squeeze vector (x566) as a column
    # w1t_ref : [C_IN, C_MID]  bf16  conv2d180 weight, pre-transposed
    # b1_ref  : [1, C_MID]     f32   conv2d180 bias as a row
    # x_hbm   : [C_MID, HW]    f32   x563, left in HBM (pl.ANY)
    # w2_hbm  : [C_OUT, C_MID] bf16  conv2d181 weight, left in HBM (pl.ANY)
    # o_ref   : [C_OUT, HW]    f32
    # x_vmem  : VMEM scratch [C_MID, HW]     f32
    # w2_vmem : VMEM scratch [C_OUT, C_MID]  bf16
    # dma_sems: DMA semaphores, shape (2,)

    # Kick off the big DMAs immediately; the gate math below hides behind them.
    cp_w2 = pltpu.make_async_copy(w2_hbm, w2_vmem, dma_sems.at[0])
    cp_x = pltpu.make_async_copy(x_hbm, x_vmem, dma_sems.at[1])
    cp_w2.start()
    cp_x.start()

    # ---- SE gate (lane-dense, f32 math, hidden behind the DMAs) ----------
    # logits[0, m] = sum_c s[c] * w1[m, c] + b1[m]
    w1f = w1t_ref[...].astype(jnp.float32)                       # [C_IN, C_MID]
    logits = jnp.sum(w1f * s_ref[...], axis=0, keepdims=True) + b1_ref[...]
    gate = jax.nn.sigmoid(logits)                                # [1, C_MID] f32

    # ---- fold the gate into w2's columns (== scaling the activation) -----
    cp_w2.wait()
    w2g = (w2_vmem[...] * gate).astype(jnp.bfloat16)             # [C_OUT, C_MID]

    cp_x.wait()
    y = x_vmem[...].astype(jnp.bfloat16)                         # [C_MID, HW]

    # 1x1 conv == channel matmul: bf16 MXU feed, f32 accumulation.
    o_ref[...] = jnp.dot(w2g, y, preferred_element_type=jnp.float32)


def prepare_params(w1, b1, w2):
    """One-time weight prep (run at load time, not per step): PyTorch
    layouts -> kernel layouts + bf16 storage."""
    w1t = jnp.asarray(w1.reshape(C_MID, C_IN).T, dtype=jnp.bfloat16)   # [C_IN, C_MID]
    b1r = jnp.asarray(b1.reshape(1, C_MID), dtype=jnp.float32)         # [1, C_MID]
    w2m = jnp.asarray(w2.reshape(C_OUT, C_MID), dtype=jnp.bfloat16)    # [C_OUT, C_MID]
    return w1t, b1r, w2m


def se_block_pallas(x566, x563, params):
    """x566: [1, C_IN, 1, 1], x563: [1, C_MID, H, W], params from
    prepare_params().  Returns [1, C_OUT, H, W] float32 (NCHW)."""
    w1t, b1r, w2m = params
    # Free reshapes only (N=1, contiguous NCHW) — no per-call casts/transposes.
    s_col = x566.reshape(C_IN, 1)                  # [56, 1]    f32
    x_cm = x563.reshape(C_MID, HW)                 # [1344, 196] f32 (cast in-kernel)

    flops = 2 * C_OUT * C_MID * HW + 2 * C_MID * C_IN + C_OUT * C_MID
    bytes_accessed = (x_cm.size * 4 + w2m.size * 2 + w1t.size * 2
                      + b1r.size * 4 + s_col.size * 4 + C_OUT * HW * 4)

    out_cm = pl.pallas_call(
        _se_fused_kernel,
        out_shape=jax.ShapeDtypeStruct((C_OUT, HW), jnp.float32),
        in_specs=[
            pl.BlockSpec(memory_space=pltpu.VMEM),   # s (tiny, auto DMA)
            pl.BlockSpec(memory_space=pltpu.VMEM),   # w1t (150 KB, auto DMA)
            pl.BlockSpec(memory_space=pltpu.VMEM),   # b1 (auto DMA)
            pl.BlockSpec(memory_space=pl.ANY),       # x563 (manual DMA)
            pl.BlockSpec(memory_space=pl.ANY),       # w2 (manual DMA)
        ],
        out_specs=pl.BlockSpec(memory_space=pltpu.VMEM),
        scratch_shapes=[
            pltpu.VMEM((C_MID, HW), jnp.float32),
            pltpu.VMEM((C_OUT, C_MID), jnp.bfloat16),
            pltpu.SemaphoreType.DMA((2,)),
        ],
        cost_estimate=pl.CostEstimate(flops=flops, transcendentals=C_MID,
                                      bytes_accessed=bytes_accessed),
    )(s_col, w1t, b1r, x_cm, w2m)

    # [C_OUT, HW] -> [1, C_OUT, H, W]: free reshape, no transpose.
    return out_cm.reshape(1, C_OUT, H, W)


if __name__ == "__main__":
    key = jax.random.PRNGKey(0)
    k1, k2, k3, k4, k5 = jax.random.split(key, 5)

    # Inputs (shapes the PyTorch module's forward expects)
    x563 = jax.random.normal(k1, (1, C_MID, H, W), dtype=jnp.float32)
    x566 = jax.random.normal(k2, (1, C_IN, 1, 1), dtype=jnp.float32)

    # Deterministic synthetic parameters (shapes from the module's __init__)
    w1 = jax.random.normal(k3, (C_MID, C_IN, 1, 1), dtype=jnp.float32) * 0.05
    b1 = jax.random.normal(k4, (C_MID,), dtype=jnp.float32) * 0.05
    w2 = jax.random.normal(k5, (C_OUT, C_MID, 1, 1), dtype=jnp.float32) * 0.02

    params = prepare_params(w1, b1, w2)   # one-time weight conversion

    out = se_block_pallas(x566, x563, params)
    out = jax.block_until_ready(out)

    # Correctness check against plain-JAX fp32 reference (bf16 MXU path ->
    # relaxed tolerance).
    gate_ref = jax.nn.sigmoid(
        jnp.einsum("oc,bcij->boij", w1.reshape(C_MID, C_IN), x566)
        + b1.reshape(1, C_MID, 1, 1))
    y_ref = gate_ref * x563
    out_ref = jnp.einsum("oc,bchw->bohw", w2.reshape(C_OUT, C_MID), y_ref)

    assert out.shape == (1, C_OUT, H, W)
    assert jnp.allclose(out, out_ref, atol=2e-2, rtol=2e-2)

    print("KERNEL_OK")
</pallas_src>

<mosaic_0001>
module attributes {stable_mosaic.version = 11 : i64} {
  func.func @_se_fused_kernel(%arg0: memref<56x1xf32, #tpu.memory_space<vmem>>, %arg1: memref<56x1344xbf16, #tpu.memory_space<vmem>>, %arg2: memref<1x1344xf32, #tpu.memory_space<vmem>>, %arg3: memref<1344x196xf32, #tpu.memory_space<any>>, %arg4: memref<224x1344xbf16, #tpu.memory_space<any>>, %arg5: memref<224x196xf32, #tpu.memory_space<vmem>>, %arg6: memref<1344x196xf32, #tpu.memory_space<vmem>>, %arg7: memref<224x1344xbf16, #tpu.memory_space<vmem>>, %arg8: memref<2x!tpu.dma_semaphore, #tpu.memory_space<semaphore_mem>>) attributes {dimension_semantics = [], scalar_prefetch = 0 : i64, scratch_operands = 3 : i64, tpu.core_type = #tpu.core_type<tc>} {
    %c0_i32 = arith.constant 0 : i32
    %0 = tpu.memref_slice %arg8[%c0_i32] : memref<2x!tpu.dma_semaphore, #tpu.memory_space<semaphore_mem>> -> memref<1x!tpu.dma_semaphore, #tpu.memory_space<semaphore_mem>>
    %1 = tpu.memref_squeeze %0 : memref<1x!tpu.dma_semaphore, #tpu.memory_space<semaphore_mem>> -> memref<!tpu.dma_semaphore, #tpu.memory_space<semaphore_mem>>
    tpu.enqueue_dma source(%arg4 : memref<224x1344xbf16, #tpu.memory_space<any>>) target(%arg7 : memref<224x1344xbf16, #tpu.memory_space<vmem>>) target_semaphore(%1 : memref<!tpu.dma_semaphore, #tpu.memory_space<semaphore_mem>>)
    %c1_i32 = arith.constant 1 : i32
    %2 = tpu.memref_slice %arg8[%c1_i32] : memref<2x!tpu.dma_semaphore, #tpu.memory_space<semaphore_mem>> -> memref<1x!tpu.dma_semaphore, #tpu.memory_space<semaphore_mem>>
    %3 = tpu.memref_squeeze %2 : memref<1x!tpu.dma_semaphore, #tpu.memory_space<semaphore_mem>> -> memref<!tpu.dma_semaphore, #tpu.memory_space<semaphore_mem>>
    tpu.enqueue_dma source(%arg3 : memref<1344x196xf32, #tpu.memory_space<any>>) target(%arg6 : memref<1344x196xf32, #tpu.memory_space<vmem>>) target_semaphore(%3 : memref<!tpu.dma_semaphore, #tpu.memory_space<semaphore_mem>>)
    %c0 = arith.constant 0 : index
    %c0_0 = arith.constant 0 : index
    %4 = vector.load %arg1[%c0, %c0_0] : memref<56x1344xbf16, #tpu.memory_space<vmem>>, vector<56x1344xbf16>
    %5 = arith.extf %4 : vector<56x1344xbf16> to vector<56x1344xf32>
    %c0_1 = arith.constant 0 : index
    %c0_2 = arith.constant 0 : index
    %6 = vector.load %arg0[%c0_1, %c0_2] : memref<56x1xf32, #tpu.memory_space<vmem>>, vector<56x1xf32>
    %7 = vector.broadcast %6 : vector<56x1xf32> to vector<56x1344xf32>
    %8 = arith.mulf %5, %7 : vector<56x1344xf32>
    %cst = arith.constant dense<0.000000e+00> : vector<1344xf32>
    %9 = vector.multi_reduction <add>, %8, %cst [0] : vector<56x1344xf32> to vector<1344xf32>
    %10 = vector.shape_cast %9 : vector<1344xf32> to vector<1x1344xf32>
    %c0_3 = arith.constant 0 : index
    %c0_4 = arith.constant 0 : index
    %11 = vector.load %arg2[%c0_3, %c0_4] : memref<1x1344xf32, #tpu.memory_space<vmem>>, vector<1x1344xf32>
    %12 = arith.addf %10, %11 : vector<1x1344xf32>
    %13 = arith.negf %12 : vector<1x1344xf32>
    %14 = math.exp %13 : vector<1x1344xf32>
    %cst_5 = arith.constant 1.000000e+00 : f32
    %15 = vector.broadcast %cst_5 : f32 to vector<1x1344xf32>
    %16 = arith.addf %15, %14 : vector<1x1344xf32>
    %17 = arith.divf %15, %16 : vector<1x1344xf32>
    %c0_i32_6 = arith.constant 0 : i32
    %18 = tpu.memref_slice %arg8[%c0_i32_6] : memref<2x!tpu.dma_semaphore, #tpu.memory_space<semaphore_mem>> -> memref<1x!tpu.dma_semaphore, #tpu.memory_space<semaphore_mem>>
    %19 = tpu.memref_squeeze %18 : memref<1x!tpu.dma_semaphore, #tpu.memory_space<semaphore_mem>> -> memref<!tpu.dma_semaphore, #tpu.memory_space<semaphore_mem>>
    tpu.wait_dma2 semaphore(%19 : memref<!tpu.dma_semaphore, #tpu.memory_space<semaphore_mem>>) src(%arg4 : memref<224x1344xbf16, #tpu.memory_space<any>>) dst(%arg7 : memref<224x1344xbf16, #tpu.memory_space<vmem>>)
    %c0_7 = arith.constant 0 : index
    %c0_8 = arith.constant 0 : index
    %20 = vector.load %arg7[%c0_7, %c0_8] : memref<224x1344xbf16, #tpu.memory_space<vmem>>, vector<224x1344xbf16>
    %21 = arith.extf %20 : vector<224x1344xbf16> to vector<224x1344xf32>
    %22 = vector.broadcast %17 : vector<1x1344xf32> to vector<224x1344xf32>
    %23 = arith.mulf %21, %22 : vector<224x1344xf32>
    %24 = arith.truncf %23 : vector<224x1344xf32> to vector<224x1344xbf16>
    %c1_i32_9 = arith.constant 1 : i32
    %25 = tpu.memref_slice %arg8[%c1_i32_9] : memref<2x!tpu.dma_semaphore, #tpu.memory_space<semaphore_mem>> -> memref<1x!tpu.dma_semaphore, #tpu.memory_space<semaphore_mem>>
    %26 = tpu.memref_squeeze %25 : memref<1x!tpu.dma_semaphore, #tpu.memory_space<semaphore_mem>> -> memref<!tpu.dma_semaphore, #tpu.memory_space<semaphore_mem>>
    tpu.wait_dma2 semaphore(%26 : memref<!tpu.dma_semaphore, #tpu.memory_space<semaphore_mem>>) src(%arg3 : memref<1344x196xf32, #tpu.memory_space<any>>) dst(%arg6 : memref<1344x196xf32, #tpu.memory_space<vmem>>)
    %c0_10 = arith.constant 0 : index
    %c0_11 = arith.constant 0 : index
    %27 = vector.load %arg6[%c0_10, %c0_11] : memref<1344x196xf32, #tpu.memory_space<vmem>>, vector<1344x196xf32>
    %28 = arith.truncf %27 : vector<1344x196xf32> to vector<1344x196xbf16>
    %cst_12 = arith.constant dense<0.000000e+00> : vector<224x196xf32>
    %29 = tpu.matmul %24, %28, %cst_12 {dimension_numbers = #tpu.dot_dimension_numbers<[1], [0], [0], [1], [0, 0, 1, 1], [], []>} : vector<224x1344xbf16>, vector<1344x196xbf16>, vector<224x196xf32> -> vector<224x196xf32>
    %c0_13 = arith.constant 0 : index
    %c0_14 = arith.constant 0 : index
    %30 = vector.load %arg5[%c0_13, %c0_14] : memref<224x196xf32, #tpu.memory_space<vmem>>, vector<224x196xf32>
    tpu.vector_store %arg5[%c0_13, %c0_14], %29 {strides = array<i32>} : memref<224x196xf32, #tpu.memory_space<vmem>>, vector<224x196xf32>,
    return
  }
}

</mosaic_0001>

<bundles_post_ra>
// kernel: tpu_custom_call.1
= control target key start
LH: loop header
LB: loop body
LE: loop exit
PB: predicated region body
PF: predicated region fallthrough
CT: control target
= control target key end

     0   :  { %s10970_s0 = inlined_call_operand.vmem [shape: f32[56,1], index: 0, kind: input, shape index: {}]   ;;  %s10971_s1 = inlined_call_operand.vmem [shape: bf16[56,1344], index: 1, kind: input, shape index: {}]   ;;  %s10972_s2 = inlined_call_operand.vmem [shape: f32[1,1344], index: 2, kind: input, shape index: {}]   ;;  %s10973_s3 = inlined_call_operand.vmem [shape: f32[1344,196], index: 3, kind: input, shape index: {}]   ;;  %s10974_s4 = inlined_call_operand.vmem [shape: bf16[224,1344], index: 4, kind: input, shape index: {}]   ;;  %s10975_s5 = inlined_call_operand.vmem [shape: f32[224,196], index: 5, kind: output, shape index: {}]  }
   0x1   :  { %v50_v0 = vld [vmem:[%s10974_s4] sm:$0xff]  ;;  %v52_v1 = vld [vmem:[%s10974_s4 + $0x8] sm:$0xff]  ;;  %v54_v2 = vld [vmem:[%s10974_s4 + $0x10] sm:$0xff] }
   0x2   :  { %51 = vst [vmem:[#allocation3] sm:$0xff] %v50_v0  ;;  %53 = vst [vmem:[#allocation3 + $0x8] sm:$0xff] %v52_v1  ;;  %v56_v3 = vld [vmem:[%s10974_s4 + $0x18] sm:$0xff]  ;;  %v58_v4 = vld [vmem:[%s10974_s4 + $0x20] sm:$0xff] }
   0x3   :  { %55 = vst [vmem:[#allocation3 + $0x10] sm:$0xff] %v54_v2  ;;  %v60_v5 = vld [vmem:[%s10974_s4 + $0x28] sm:$0xff]  ;;  %57 = vst [vmem:[#allocation3 + $0x18] sm:$0xff] %v56_v3  ;;  %v62_v6 = vld [vmem:[%s10974_s4 + $0x30] sm:$0xff] }
   0x4   :  { %59 = vst [vmem:[#allocation3 + $0x20] sm:$0xff] %v58_v4  ;;  %61 = vst [vmem:[#allocation3 + $0x28] sm:$0xff] %v60_v5  ;;  %v64_v7 = vld [vmem:[%s10974_s4 + $0x38] sm:$0xff]  ;;  %v66_v8 = vld [vmem:[%s10974_s4 + $0x40] sm:$0xff] }
   0x5   :  { %63 = vst [vmem:[#allocation3 + $0x30] sm:$0xff] %v62_v6  ;;  %65 = vst [vmem:[#allocation3 + $0x38] sm:$0xff] %v64_v7  ;;  %v68_v9 = vld [vmem:[%s10974_s4 + $0x48] sm:$0xff]  ;;  %v70_v10 = vld [vmem:[%s10974_s4 + $0x50] sm:$0xff] }
   0x6   :  { %67 = vst [vmem:[#allocation3 + $0x40] sm:$0xff] %v66_v8  ;;  %v72_v11 = vld [vmem:[%s10974_s4 + $0x58] sm:$0xff]  ;;  %69 = vst [vmem:[#allocation3 + $0x48] sm:$0xff] %v68_v9  ;;  %v74_v12 = vld [vmem:[%s10974_s4 + $0x60] sm:$0xff] }
   0x7   :  { %71 = vst [vmem:[#allocation3 + $0x50] sm:$0xff] %v70_v10  ;;  %73 = vst [vmem:[#allocation3 + $0x58] sm:$0xff] %v72_v11  ;;  %v76_v13 = vld [vmem:[%s10974_s4 + $0x68] sm:$0xff]  ;;  %v78_v14 = vld [vmem:[%s10974_s4 + $0x70] sm:$0xff] }
   0x8   :  { %75 = vst [vmem:[#allocation3 + $0x60] sm:$0xff] %v74_v12  ;;  %77 = vst [vmem:[#allocation3 + $0x68] sm:$0xff] %v76_v13  ;;  %v80_v15 = vld [vmem:[%s10974_s4 + $0x78] sm:$0xff]  ;;  %v82_v16 = vld [vmem:[%s10974_s4 + $0x80] sm:$0xff] }
   0x9   :  { %79 = vst [vmem:[#allocation3 + $0x70] sm:$0xff] %v78_v14  ;;  %v84_v17 = vld [vmem:[%s10974_s4 + $0x88] sm:$0xff]  ;;  %81 = vst [vmem:[#allocation3 + $0x78] sm:$0xff] %v80_v15  ;;  %v86_v18 = vld [vmem:[%s10974_s4 + $0x90] sm:$0xff] }
   0xa   :  { %83 = vst [vmem:[#allocation3 + $0x80] sm:$0xff] %v82_v16  ;;  %85 = vst [vmem:[#allocation3 + $0x88] sm:$0xff] %v84_v17  ;;  %v88_v19 = vld [vmem:[%s10974_s4 + $0x98] sm:$0xff]  ;;  %v90_v20 = vld [vmem:[%s10974_s4 + $0xa0] sm:$0xff] }
   0xb   :  { %87 = vst [vmem:[#allocation3 + $0x90] sm:$0xff] %v86_v18  ;;  %89 = vst [vmem:[#allocation3 + $0x98] sm:$0xff] %v88_v19  ;;  %v92_v21 = vld [vmem:[%s10974_s4 + $0xa8] sm:$0xff]  ;;  %v94_v22 = vld [vmem:[%s10974_s4 + $0xb0] sm:$0xff] }
   0xc   :  { %91 = vst [vmem:[#allocation3 + $0xa0] sm:$0xff] %v90_v20  ;;  %v96_v23 = vld [vmem:[%s10974_s4 + $0xb8] sm:$0xff]  ;;  %93 = vst [vmem:[#allocation3 + $0xa8] sm:$0xff] %v92_v21  ;;  %v98_v24 = vld [vmem:[%s10974_s4 + $0xc0] sm:$0xff] }
   0xd   :  { %95 = vst [vmem:[#allocation3 + $0xb0] sm:$0xff] %v94_v22  ;;  %97 = vst [vmem:[#allocation3 + $0xb8] sm:$0xff] %v96_v23  ;;  %v100_v25 = vld [vmem:[%s10974_s4 + $0xc8] sm:$0xff]  ;;  %v102_v26 = vld [vmem:[%s10974_s4 + $0xd0] sm:$0xff] }
   0xe   :  { %99 = vst [vmem:[#allocation3 + $0xc0] sm:$0xff] %v98_v24  ;;  %101 = vst [vmem:[#allocation3 + $0xc8] sm:$0xff] %v100_v25  ;;  %v104_v27 = vld [vmem:[%s10974_s4 + $0xd8] sm:$0xff]  ;;  %v106_v28 = vld [vmem:[%s10974_s4 + $0xe0] sm:$0xff] }
   0xf   :  { %103 = vst [vmem:[#allocation3 + $0xd0] sm:$0xff] %v102_v26  ;;  %v108_v29 = vld [vmem:[%s10974_s4 + $0xe8] sm:$0xff]  ;;  %105 = vst [vmem:[#allocation3 + $0xd8] sm:$0xff] %v104_v27  ;;  %v110_v30 = vld [vmem:[%s10974_s4 + $0xf0] sm:$0xff] }
  0x10   :  { %107 = vst [vmem:[#allocation3 + $0xe0] sm:$0xff] %v106_v28  ;;  %109 = vst [vmem:[#allocation3 + $0xe8] sm:$0xff] %v108_v29  ;;  %v112_v31 = vld [vmem:[%s10974_s4 + $0xf8] sm:$0xff]  ;;  %v114_v32 = vld [vmem:[%s10974_s4 + $0x100] sm:$0xff] }
  0x11   :  { %111 = vst [vmem:[#allocation3 + $0xf0] sm:$0xff] %v110_v30  ;;  %113 = vst [vmem:[#allocation3 + $0xf8] sm:$0xff] %v112_v31  ;;  %v116_v33 = vld [vmem:[%s10974_s4 + $0x108] sm:$0xff]  ;;  %v118_v34 = vld [vmem:[%s10974_s4 + $0x110] sm:$0xff] }
  0x12   :  { %115 = vst [vmem:[#allocation3 + $0x100] sm:$0xff] %v114_v32  ;;  %v120_v35 = vld [vmem:[%s10974_s4 + $0x118] sm:$0xff]  ;;  %117 = vst [vmem:[#allocation3 + $0x108] sm:$0xff] %v116_v33  ;;  %v122_v36 = vld [vmem:[%s10974_s4 + $0x120] sm:$0xff] }
  0x13   :  { %119 = vst [vmem:[#allocation3 + $0x110] sm:$0xff] %v118_v34  ;;  %121 = vst [vmem:[#allocation3 + $0x118] sm:$0xff] %v120_v35  ;;  %v124_v37 = vld [vmem:[%s10974_s4 + $0x128] sm:$0xff]  ;;  %v126_v38 = vld [vmem:[%s10974_s4 + $0x130] sm:$0xff] }
  0x14   :  { %123 = vst [vmem:[#allocation3 + $0x120] sm:$0xff] %v122_v36  ;;  %125 = vst [vmem:[#allocation3 + $0x128] sm:$0xff] %v124_v37  ;;  %v128_v39 = vld [vmem:[%s10974_s4 + $0x138] sm:$0xff]  ;;  %v130_v40 = vld [vmem:[%s10974_s4 + $0x140] sm:$0xff] }
  0x15   :  { %127 = vst [vmem:[#allocation3 + $0x130] sm:$0xff] %v126_v38  ;;  %v132_v41 = vld [vmem:[%s10974_s4 + $0x148] sm:$0xff]  ;;  %129 = vst [vmem:[#allocation3 + $0x138] sm:$0xff] %v128_v39  ;;  %v134_v42 = vld [vmem:[%s10974_s4 + $0x150] sm:$0xff] }
  0x16   :  { %131 = vst [vmem:[#allocation3 + $0x140] sm:$0xff] %v130_v40  ;;  %133 = vst [vmem:[#allocation3 + $0x148] sm:$0xff] %v132_v41  ;;  %v136_v43 = vld [vmem:[%s10974_s4 + $0x158] sm:$0xff]  ;;  %v138_v44 = vld [vmem:[%s10974_s4 + $0x160] sm:$0xff] }
  0x17   :  { %135 = vst [vmem:[#allocation3 + $0x150] sm:$0xff] %v134_v42  ;;  %137 = vst [vmem:[#allocation3 + $0x158] sm:$0xff] %v136_v43  ;;  %v140_v45 = vld [vmem:[%s10974_s4 + $0x168] sm:$0xff]  ;;  %v142_v46 = vld [vmem:[%s10974_s4 + $0x170] sm:$0xff] }
  0x18   :  { %139 = vst [vmem:[#allocation3 + $0x160] sm:$0xff] %v138_v44  ;;  %v144_v47 = vld [vmem:[%s10974_s4 + $0x178] sm:$0xff]  ;;  %141 = vst [vmem:[#allocation3 + $0x168] sm:$0xff] %v140_v45  ;;  %v146_v48 = vld [vmem:[%s10974_s4 + $0x180] sm:$0xff] }
  0x19   :  { %143 = vst [vmem:[#allocation3 + $0x170] sm:$0xff] %v142_v46  ;;  %145 = vst [vmem:[#allocation3 + $0x178] sm:$0xff] %v144_v47  ;;  %v148_v49 = vld [vmem:[%s10974_s4 + $0x188] sm:$0xff]  ;;  %v150_v50 = vld [vmem:[%s10974_s4 + $0x190] sm:$0xff] }
  0x1a   :  { %147 = vst [vmem:[#allocation3 + $0x180] sm:$0xff] %v146_v48  ;;  %149 = vst [vmem:[#allocation3 + $0x188] sm:$0xff] %v148_v49  ;;  %v152_v51 = vld [vmem:[%s10974_s4 + $0x198] sm:$0xff]  ;;  %v154_v52 = vld [vmem:[%s10974_s4 + $0x1a0] sm:$0xff] }
  0x1b   :  { %151 = vst [vmem:[#allocation3 + $0x190] sm:$0xff] %v150_v50  ;;  %v156_v53 = vld [vmem:[%s10974_s4 + $0x1a8] sm:$0xff]  ;;  %153 = vst [vmem:[#allocation3 + $0x198] sm:$0xff] %v152_v51  ;;  %v158_v54 = vld [vmem:[%s10974_s4 + $0x1b0] sm:$0xff] }
  0x1c   :  { %155 = vst [vmem:[#allocation3 + $0x1a0] sm:$0xff] %v154_v52  ;;  %157 = vst [vmem:[#allocation3 + $0x1a8] sm:$0xff] %v156_v53  ;;  %v160_v55 = vld [vmem:[%s10974_s4 + $0x1b8] sm:$0xff]  ;;  %v162_v56 = vld [vmem:[%s10974_s4 + $0x1c0] sm:$0xff] }
  0x1d   :  { %159 = vst [vmem:[#allocation3 + $0x1b0] sm:$0xff] %v158_v54  ;;  %161 = vst [vmem:[#allocation3 + $0x1b8] sm:$0xff] %v160_v55  ;;  %v164_v57 = vld [vmem:[%s10974_s4 + $0x1c8] sm:$0xff]  ;;  %v166_v58 = vld [vmem:[%s10974_s4 + $0x1d0] sm:$0xff] }
  0x1e   :  { %163 = vst [vmem:[#allocation3 + $0x1c0] sm:$0xff] %v162_v56  ;;  %v168_v59 = vld [vmem:[%s10974_s4 + $0x1d8] sm:$0xff]  ;;  %165 = vst [vmem:[#allocation3 + $0x1c8] sm:$0xff] %v164_v57  ;;  %v170_v60 = vld [vmem:[%s10974_s4 + $0x1e0] sm:$0xff] }
  0x1f   :  { %167 = vst [vmem:[#allocation3 + $0x1d0] sm:$0xff] %v166_v58  ;;  %169 = vst [vmem:[#allocation3 + $0x1d8] sm:$0xff] %v168_v59  ;;  %v172_v61 = vld [vmem:[%s10974_s4 + $0x1e8] sm:$0xff]  ;;  %v174_v62 = vld [vmem:[%s10974_s4 + $0x1f0] sm:$0xff] }
  0x20   :  { %171 = vst [vmem:[#allocation3 + $0x1e0] sm:$0xff] %v170_v60  ;;  %173 = vst [vmem:[#allocation3 + $0x1e8] sm:$0xff] %v172_v61  ;;  %v176_v63 = vld [vmem:[%s10974_s4 + $0x1f8] sm:$0xff]  ;;  %v178_v0 = vld [vmem:[%s10974_s4 + $0x200] sm:$0xff] }
  0x21   :  { %175 = vst [vmem:[#allocation3 + $0x1f0] sm:$0xff] %v174_v62  ;;  %v180_v1 = vld [vmem:[%s10974_s4 + $0x208] sm:$0xff]  ;;  %177 = vst [vmem:[#allocation3 + $0x1f8] sm:$0xff] %v176_v63  ;;  %v182_v2 = vld [vmem:[%s10974_s4 + $0x210] sm:$0xff] }
  0x22   :  { %179 = vst [vmem:[#allocation3 + $0x200] sm:$0xff] %v178_v0  ;;  %181 = vst [vmem:[#allocation3 + $0x208] sm:$0xff] %v180_v1  ;;  %v184_v3 = vld [vmem:[%s10974_s4 + $0x218] sm:$0xff]  ;;  %v186_v4 = vld [vmem:[%s10974_s4 + $0x220] sm:$0xff] }
  0x23   :  { %183 = vst [vmem:[#allocation3 + $0x210] sm:$0xff] %v182_v2  ;;  %185 = vst [vmem:[#allocation3 + $0x218] sm:$0xff] %v184_v3  ;;  %v188_v5 = vld [vmem:[%s10974_s4 + $0x228] sm:$0xff]  ;;  %v190_v6 = vld [vmem:[%s10974_s4 + $0x230] sm:$0xff] }
  0x24   :  { %187 = vst [vmem:[#allocation3 + $0x220] sm:$0xff] %v186_v4  ;;  %v192_v7 = vld [vmem:[%s10974_s4 + $0x238] sm:$0xff]  ;;  %189 = vst [vmem:[#allocation3 + $0x228] sm:$0xff] %v188_v5  ;;  %v194_v8 = vld [vmem:[%s10974_s4 + $0x240] sm:$0xff] }
  0x25   :  { %191 = vst [vmem:[#allocation3 + $0x230] sm:$0xff] %v190_v6  ;;  %193 = vst [vmem:[#allocation3 + $0x238] sm:$0xff] %v192_v7  ;;  %v196_v9 = vld [vmem:[%s10974_s4 + $0x248] sm:$0xff]  ;;  %v198_v10 = vld [vmem:[%s10974_s4 + $0x250] sm:$0xff] }
  0x26   :  { %195 = vst [vmem:[#allocation3 + $0x240] sm:$0xff] %v194_v8  ;;  %197 = vst [vmem:[#allocation3 + $0x248] sm:$0xff] %v196_v9  ;;  %v200_v11 = vld [vmem:[%s10974_s4 + $0x258] sm:$0xff]  ;;  %v202_v12 = vld [vmem:[%s10974_s4 + $0x260] sm:$0xff] }
  0x27   :  { %199 = vst [vmem:[#allocation3 + $0x250] sm:$0xff] %v198_v10  ;;  %v204_v13 = vld [vmem:[%s10974_s4 + $0x268] sm:$0xff]  ;;  %201 = vst [vmem:[#allocation3 + $0x258] sm:$0xff] %v200_v11  ;;  %v206_v14 = vld [vmem:[%s10974_s4 + $0x270] sm:$0xff] }
  0x28   :  { %203 = vst [vmem:[#allocation3 + $0x260] sm:$0xff] %v202_v12  ;;  %205 = vst [vmem:[#allocation3 + $0x268] sm:$0xff] %v204_v13  ;;  %v208_v15 = vld [vmem:[%s10974_s4 + $0x278] sm:$0xff]  ;;  %v210_v16 = vld [vmem:[%s10974_s4 + $0x280] sm:$0xff] }
  0x29   :  { %207 = vst [vmem:[#allocation3 + $0x270] sm:$0xff] %v206_v14  ;;  %209 = vst [vmem:[#allocation3 + $0x278] sm:$0xff] %v208_v15  ;;  %v212_v17 = vld [vmem:[%s10974_s4 + $0x288] sm:$0xff]  ;;  %v214_v18 = vld [vmem:[%s10974_s4 + $0x290] sm:$0xff] }
  0x2a   :  { %211 = vst [vmem:[#allocation3 + $0x280] sm:$0xff] %v210_v16  ;;  %v216_v19 = vld [vmem:[%s10974_s4 + $0x298] sm:$0xff]  ;;  %213 = vst [vmem:[#allocation3 + $0x288] sm:$0xff] %v212_v17  ;;  %v218_v20 = vld [vmem:[%s10974_s4 + $0x2a0] sm:$0xff] }
  0x2b   :  { %215 = vst [vmem:[#allocation3 + $0x290] sm:$0xff] %v214_v18  ;;  %217 = vst [vmem:[#allocation3 + $0x298] sm:$0xff] %v216_v19  ;;  %v220_v21 = vld [vmem:[%s10974_s4 + $0x2a8] sm:$0xff]  ;;  %v222_v22 = vld [vmem:[%s10974_s4 + $0x2b0] sm:$0xff] }
  0x2c   :  { %219 = vst [vmem:[#allocation3 + $0x2a0] sm:$0xff] %v218_v20  ;;  %221 = vst [vmem:[#allocation3 + $0x2a8] sm:$0xff] %v220_v21  ;;  %v224_v23 = vld [vmem:[%s10974_s4 + $0x2b8] sm:$0xff]  ;;  %v226_v24 = vld [vmem:[%s10974_s4 + $0x2c0] sm:$0xff] }
  0x2d   :  { %223 = vst [vmem:[#allocation3 + $0x2b0] sm:$0xff] %v222_v22  ;;  %v228_v25 = vld [vmem:[%s10974_s4 + $0x2c8] sm:$0xff]  ;;  %225 = vst [vmem:[#allocation3 + $0x2b8] sm:$0xff] %v224_v23  ;;  %v230_v26 = vld [vmem:[%s10974_s4 + $0x2d0] sm:$0xff] }
  0x2e   :  { %227 = vst [vmem:[#allocation3 + $0x2c0] sm:$0xff] %v226_v24  ;;  %229 = vst [vmem:[#allocation3 + $0x2c8] sm:$0xff] %v228_v25  ;;  %v232_v27 = vld [vmem:[%s10974_s4 + $0x2d8] sm:$0xff]  ;;  %v234_v28 = vld [vmem:[%s10974_s4 + $0x2e0] sm:$0xff] }
  0x2f   :  { %231 = vst [vmem:[#allocation3 + $0x2d0] sm:$0xff] %v230_v26  ;;  %233 = vst [vmem:[#allocation3 + $0x2d8] sm:$0xff] %v232_v27  ;;  %v236_v29 = vld [vmem:[%s10974_s4 + $0x2e8] sm:$0xff]  ;;  %v238_v30 = vld [vmem:[%s10974_s4 + $0x2f0] sm:$0xff] }
  0x30   :  { %235 = vst [vmem:[#allocation3 + $0x2e0] sm:$0xff] %v234_v28  ;;  %v240_v31 = vld [vmem:[%s10974_s4 + $0x2f8] sm:$0xff]  ;;  %237 = vst [vmem:[#allocation3 + $0x2e8] sm:$0xff] %v236_v29  ;;  %v242_v32 = vld [vmem:[%s10974_s4 + $0x300] sm:$0xff] }
  0x31   :  { %239 = vst [vmem:[#allocation3 + $0x2f0] sm:$0xff] %v238_v30  ;;  %241 = vst [vmem:[#allocation3 + $0x2f8] sm:$0xff] %v240_v31  ;;  %v244_v33 = vld [vmem:[%s10974_s4 + $0x308] sm:$0xff]  ;;  %v246_v34 = vld [vmem:[%s10974_s4 + $0x310] sm:$0xff] }
  0x32   :  { %243 = vst [vmem:[#allocation3 + $0x300] sm:$0xff] %v242_v32  ;;  %245 = vst [vmem:[#allocation3 + $0x308] sm:$0xff] %v244_v33  ;;  %v248_v35 = vld [vmem:[%s10974_s4 + $0x318] sm:$0xff]  ;;  %v250_v36 = vld [vmem:[%s10974_s4 + $0x320] sm:$0xff] }
  0x33   :  { %247 = vst [vmem:[#allocation3 + $0x310] sm:$0xff] %v246_v34  ;;  %v252_v37 = vld [vmem:[%s10974_s4 + $0x328] sm:$0xff]  ;;  %249 = vst [vmem:[#allocation3 + $0x318] sm:$0xff] %v248_v35  ;;  %v254_v38 = vld [vmem:[%s10974_s4 + $0x330] sm:$0xff] }
  0x34   :  { %251 = vst [vmem:[#allocation3 + $0x320] sm:$0xff] %v250_v36  ;;  %253 = vst [vmem:[#allocation3 + $0x328] sm:$0xff] %v252_v37  ;;  %v256_v39 = vld [vmem:[%s10974_s4 + $0x338] sm:$0xff]  ;;  %v258_v40 = vld [vmem:[%s10974_s4 + $0x340] sm:$0xff] }
  0x35   :  { %255 = vst [vmem:[#allocation3 + $0x330] sm:$0xff] %v254_v38  ;;  %257 = vst [vmem:[#allocation3 + $0x338] sm:$0xff] %v256_v39  ;;  %v260_v41 = vld [vmem:[%s10974_s4 + $0x348] sm:$0xff]  ;;  %v262_v42 = vld [vmem:[%s10974_s4 + $0x350] sm:$0xff] }
  0x36   :  { %259 = vst [vmem:[#allocation3 + $0x340] sm:$0xff] %v258_v40  ;;  %v264_v43 = vld [vmem:[%s10974_s4 + $0x358] sm:$0xff]  ;;  %261 = vst [vmem:[#allocation3 + $0x348] sm:$0xff] %v260_v41  ;;  %v266_v44 = vld [vmem:[%s10974_s4 + $0x360] sm:$0xff] }
  0x37   :  { %263 = vst [vmem:[#allocation3 + $0x350] sm:$0xff] %v262_v42  ;;  %265 = vst [vmem:[#allocation3 + $0x358] sm:$0xff] %v264_v43  ;;  %v268_v45 = vld [vmem:[%s10974_s4 + $0x368] sm:$0xff]  ;;  %v270_v46 = vld [vmem:[%s10974_s4 + $0x370] sm:$0xff] }
  0x38   :  { %267 = vst [vmem:[#allocation3 + $0x360] sm:$0xff] %v266_v44  ;;  %269 = vst [vmem:[#allocation3 + $0x368] sm:$0xff] %v268_v45  ;;  %v272_v47 = vld [vmem:[%s10974_s4 + $0x378] sm:$0xff]  ;;  %v274_v48 = vld [vmem:[%s10974_s4 + $0x380] sm:$0xff] }
  0x39   :  { %271 = vst [vmem:[#allocation3 + $0x370] sm:$0xff] %v270_v46  ;;  %v276_v49 = vld [vmem:[%s10974_s4 + $0x388] sm:$0xff]  ;;  %273 = vst [vmem:[#allocation3 + $0x378] sm:$0xff] %v272_v47  ;;  %v278_v50 = vld [vmem:[%s10974_s4 + $0x390] sm:$0xff] }
  0x3a   :  { %275 = vst [vmem:[#allocation3 + $0x380] sm:$0xff] %v274_v48  ;;  %277 = vst [vmem:[#allocation3 + $0x388] sm:$0xff] %v276_v49  ;;  %v280_v51 = vld [vmem:[%s10974_s4 + $0x398] sm:$0xff]  ;;  %v282_v52 = vld [vmem:[%s10974_s4 + $0x3a0] sm:$0xff] }
  0x3b   :  { %279 = vst [vmem:[#allocation3 + $0x390] sm:$0xff] %v278_v50  ;;  %281 = vst [vmem:[#allocation3 + $0x398] sm:$0xff] %v280_v51  ;;  %v284_v53 = vld [vmem:[%s10974_s4 + $0x3a8] sm:$0xff]  ;;  %v286_v54 = vld [vmem:[%s10974_s4 + $0x3b0] sm:$0xff] }
  0x3c   :  { %283 = vst [vmem:[#allocation3 + $0x3a0] sm:$0xff] %v282_v52  ;;  %v288_v55 = vld [vmem:[%s10974_s4 + $0x3b8] sm:$0xff]  ;;  %285 = vst [vmem:[#allocation3 + $0x3a8] sm:$0xff] %v284_v53  ;;  %v290_v56 = vld [vmem:[%s10974_s4 + $0x3c0] sm:$0xff] }
  0x3d   :  { %287 = vst [vmem:[#allocation3 + $0x3b0] sm:$0xff] %v286_v54  ;;  %289 = vst [vmem:[#allocation3 + $0x3b8] sm:$0xff] %v288_v55  ;;  %v292_v57 = vld [vmem:[%s10974_s4 + $0x3c8] sm:$0xff]  ;;  %v294_v58 = vld [vmem:[%s10974_s4 + $0x3d0] sm:$0xff] }
  0x3e   :  { %291 = vst [vmem:[#allocation3 + $0x3c0] sm:$0xff] %v290_v56  ;;  %293 = vst [vmem:[#allocation3 + $0x3c8] sm:$0xff] %v292_v57  ;;  %v296_v59 = vld [vmem:[%s10974_s4 + $0x3d8] sm:$0xff]  ;;  %v298_v60 = vld [vmem:[%s10974_s4 + $0x3e0] sm:$0xff] }
  0x3f   :  { %295 = vst [vmem:[#allocation3 + $0x3d0] sm:$0xff] %v294_v58  ;;  %v300_v61 = vld [vmem:[%s10974_s4 + $0x3e8] sm:$0xff]  ;;  %297 = vst [vmem:[#allocation3 + $0x3d8] sm:$0xff] %v296_v59  ;;  %v302_v62 = vld [vmem:[%s10974_s4 + $0x3f0] sm:$0xff] }
  0x40   :  { %299 = vst [vmem:[#allocation3 + $0x3e0] sm:$0xff] %v298_v60  ;;  %301 = vst [vmem:[#allocation3 + $0x3e8] sm:$0xff] %v300_v61  ;;  %v304_v63 = vld [vmem:[%s10974_s4 + $0x3f8] sm:$0xff]  ;;  %v306_v0 = vld [vmem:[%s10974_s4 + $0x400] sm:$0xff] }
  0x41   :  { %303 = vst [vmem:[#allocation3 + $0x3f0] sm:$0xff] %v302_v62  ;;  %305 = vst [vmem:[#allocation3 + $0x3f8] sm:$0xff] %v304_v63  ;;  %v308_v1 = vld [vmem:[%s10974_s4 + $0x408] sm:$0xff]  ;;  %v310_v2 = vld [vmem:[%s10974_s4 + $0x410] sm:$0xff] }
  0x42   :  { %307 = vst [vmem:[#allocation3 + $0x400] sm:$0xff] %v306_v0  ;;  %v312_v3 = vld [vmem:[%s10974_s4 + $0x418] sm:$0xff]  ;;  %309 = vst [vmem:[#allocation3 + $0x408] sm:$0xff] %v308_v1  ;;  %v314_v4 = vld [vmem:[%s10974_s4 + $0x420] sm:$0xff] }
  0x43   :  { %311 = vst [vmem:[#allocation3 + $0x410] sm:$0xff] %v310_v2  ;;  %313 = vst [vmem:[#allocation3 + $0x418] sm:$0xff] %v312_v3  ;;  %v316_v5 = vld [vmem:[%s10974_s4 + $0x428] sm:$0xff]  ;;  %v318_v6 = vld [vmem:[%s10974_s4 + $0x430] sm:$0xff] }
  0x44   :  { %315 = vst [vmem:[#allocation3 + $0x420] sm:$0xff] %v314_v4  ;;  %317 = vst [vmem:[#allocation3 + $0x428] sm:$0xff] %v316_v5  ;;  %v320_v7 = vld [vmem:[%s10974_s4 + $0x438] sm:$0xff]  ;;  %v322_v8 = vld [vmem:[%s10974_s4 + $0x440] sm:$0xff] }
  0x45   :  { %319 = vst [vmem:[#allocation3 + $0x430] sm:$0xff] %v318_v6  ;;  %v324_v9 = vld [vmem:[%s10974_s4 + $0x448] sm:$0xff]  ;;  %321 = vst [vmem:[#allocation3 + $0x438] sm:$0xff] %v320_v7  ;;  %v326_v10 = vld [vmem:[%s10974_s4 + $0x450] sm:$0xff] }
  0x46   :  { %323 = vst [vmem:[#allocation3 + $0x440] sm:$0xff] %v322_v8  ;;  %325 = vst [vmem:[#allocation3 + $0x448] sm:$0xff] %v324_v9  ;;  %v328_v11 = vld [vmem:[%s10974_s4 + $0x458] sm:$0xff]  ;;  %v330_v12 = vld [vmem:[%s10974_s4 + $0x460] sm:$0xff] }
  0x47   :  { %327 = vst [vmem:[#allocation3 + $0x450] sm:$0xff] %v326_v10  ;;  %329 = vst [vmem:[#allocation3 + $0x458] sm:$0xff] %v328_v11  ;;  %v332_v13 = vld [vmem:[%s10974_s4 + $0x468] sm:$0xff]  ;;  %v334_v14 = vld [vmem:[%s10974_s4 + $0x470] sm:$0xff] }
  0x48   :  { %331 = vst [vmem:[#allocation3 + $0x460] sm:$0xff] %v330_v12  ;;  %v336_v15 = vld [vmem:[%s10974_s4 + $0x478] sm:$0xff]  ;;  %333 = vst [vmem:[#allocation3 + $0x468] sm:$0xff] %v332_v13  ;;  %v338_v16 = vld [vmem:[%s10974_s4 + $0x480] sm:$0xff] }
  0x49   :  { %335 = vst [vmem:[#allocation3 + $0x470] sm:$0xff] %v334_v14  ;;  %337 = vst [vmem:[#allocation3 + $0x478] sm:$0xff] %v336_v15  ;;  %v340_v17 = vld [vmem:[%s10974_s4 + $0x488] sm:$0xff]  ;;  %v342_v18 = vld [vmem:[%s10974_s4 + $0x490] sm:$0xff] }
  0x4a   :  { %339 = vst [vmem:[#allocation3 + $0x480] sm:$0xff] %v338_v16  ;;  %341 = vst [vmem:[#allocation3 + $0x488] sm:$0xff] %v340_v17  ;;  %v344_v19 = vld [vmem:[%s10974_s4 + $0x498] sm:$0xff]  ;;  %v346_v20 = vld [vmem:[%s10974_s4 + $0x4a0] sm:$0xff] }
  0x4b   :  { %343 = vst [vmem:[#allocation3 + $0x490] sm:$0xff] %v342_v18  ;;  %v348_v21 = vld [vmem:[%s10974_s4 + $0x4a8] sm:$0xff]  ;;  %345 = vst [vmem:[#allocation3 + $0x498] sm:$0xff] %v344_v19  ;;  %v350_v22 = vld [vmem:[%s10974_s4 + $0x4b0] sm:$0xff] }
  0x4c   :  { %347 = vst [vmem:[#allocation3 + $0x4a0] sm:$0xff] %v346_v20  ;;  %349 = vst [vmem:[#allocation3 + $0x4a8] sm:$0xff] %v348_v21  ;;  %v352_v23 = vld [vmem:[%s10974_s4 + $0x4b8] sm:$0xff]  ;;  %v354_v24 = vld [vmem:[%s10974_s4 + $0x4c0] sm:$0xff] }
  0x4d   :  { %351 = vst [vmem:[#allocation3 + $0x4b0] sm:$0xff] %v350_v22  ;;  %353 = vst [vmem:[#allocation3 + $0x4b8] sm:$0xff] %v352_v23  ;;  %v356_v25 = vld [vmem:[%s10974_s4 + $0x4c8] sm:$0xff] }
  0x4e   :  { %355 = vst [vmem:[#allocation3 + $0x4c0] sm:$0xff] %v354_v24  ;;  %357 = vst [vmem:[#allocation3 + $0x4c8] sm:$0xff] %v356_v25 }
  0x4f   :  { %365 = vsyncadd [#allocation4], 19712  ;;  %v4832_v26 = vld [vmem:[%s10973_s3] sm:$0xff]  ;;  %v4837_v27 = vld [vmem:[%s10973_s3 + $0x8] sm:$0xff] }
  0x50   :  { %11495 = vst [vmem:[#allocation9_spill] sm:$0xff] %v4832_v26  ;;  %11496 = vst [vmem:[#allocation10_spill] sm:$0xff] %v4837_v27  ;;  %v4842_v28 = vld [vmem:[%s10973_s3 + $0x10] sm:$0xff]  ;;  %v4847_v29 = vld [vmem:[%s10973_s3 + $0x18] sm:$0xff] }
  0x51   :  { %11497 = vst [vmem:[#allocation11_spill] sm:$0xff] %v4842_v28  ;;  %11498 = vst [vmem:[#allocation12_spill] sm:$0xff] %v4847_v29  ;;  %v4852_v30 = vld [vmem:[%s10973_s3 + $0x20] sm:$0xff]  ;;  %v4857_v31 = vld [vmem:[%s10973_s3 + $0x28] sm:$0xff] }
  0x52   :  { %11499 = vst [vmem:[#allocation13_spill] sm:$0xff] %v4852_v30  ;;  %11500 = vst [vmem:[#allocation14_spill] sm:$0xff] %v4857_v31  ;;  %v4862_v32 = vld [vmem:[%s10973_s3 + $0x30] sm:$0xff]  ;;  %v4867_v33 = vld [vmem:[%s10973_s3 + $0x38] sm:$0xff] }
  0x53   :  { %11501 = vst [vmem:[#allocation15_spill] sm:$0xff] %v4862_v32  ;;  %11502 = vst [vmem:[#allocation16_spill] sm:$0xff] %v4867_v33  ;;  %v4872_v34 = vld [vmem:[%s10973_s3 + $0x40] sm:$0xff]  ;;  %v4877_v35 = vld [vmem:[%s10973_s3 + $0x48] sm:$0xff] }
  0x54   :  { %11503 = vst [vmem:[#allocation17_spill] sm:$0xff] %v4872_v34  ;;  %11504 = vst [vmem:[#allocation18_spill] sm:$0xff] %v4877_v35  ;;  %v4882_v36 = vld [vmem:[%s10973_s3 + $0x50] sm:$0xff]  ;;  %v4887_v37 = vld [vmem:[%s10973_s3 + $0x58] sm:$0xff] }
  0x55   :  { %11505 = vst [vmem:[#allocation19_spill] sm:$0xff] %v4882_v36  ;;  %11506 = vst [vmem:[#allocation20_spill] sm:$0xff] %v4887_v37  ;;  %v4892_v38 = vld [vmem:[%s10973_s3 + $0x60] sm:$0xff]  ;;  %v4897_v39 = vld [vmem:[%s10973_s3 + $0x68] sm:$0xff] }
  0x56   :  { %11507 = vst [vmem:[#allocation21_spill] sm:$0xff] %v4892_v38  ;;  %11508 = vst [vmem:[#allocation22_spill] sm:$0xff] %v4897_v39  ;;  %v4902_v40 = vld [vmem:[%s10973_s3 + $0x70] sm:$0xff]  ;;  %v4907_v41 = vld [vmem:[%s10973_s3 + $0x78] sm:$0xff] }
  0x57   :  { %11509 = vst [vmem:[#allocation23_spill] sm:$0xff] %v4902_v40  ;;  %11510 = vst [vmem:[#allocation24_spill] sm:$0xff] %v4907_v41  ;;  %v4912_v42 = vld [vmem:[%s10973_s3 + $0x80] sm:$0xff]  ;;  %v4917_v43 = vld [vmem:[%s10973_s3 + $0x88] sm:$0xff] }
  0x58   :  { %11511 = vst [vmem:[#allocation25_spill] sm:$0xff] %v4912_v42  ;;  %11512 = vst [vmem:[#allocation26_spill] sm:$0xff] %v4917_v43  ;;  %v4922_v44 = vld [vmem:[%s10973_s3 + $0x90] sm:$0xff]  ;;  %v4927_v45 = vld [vmem:[%s10973_s3 + $0x98] sm:$0xff] }
  0x59   :  { %11513 = vst [vmem:[#allocation27_spill] sm:$0xff] %v4922_v44  ;;  %11514 = vst [vmem:[#allocation28_spill] sm:$0xff] %v4927_v45  ;;  %v4932_v46 = vld [vmem:[%s10973_s3 + $0xa0] sm:$0xff]  ;;  %v4937_v47 = vld [vmem:[%s10973_s3 + $0xa8] sm:$0xff] }
  0x5a   :  { %11515 = vst [vmem:[#allocation29_spill] sm:$0xff] %v4932_v46  ;;  %11516 = vst [vmem:[#allocation30_spill] sm:$0xff] %v4937_v47  ;;  %v4942_v48 = vld [vmem:[%s10973_s3 + $0xb0] sm:$0xff]  ;;  %v4947_v49 = vld [vmem:[%s10973_s3 + $0xb8] sm:$0xff] }
  0x5b   :  { %11517 = vst [vmem:[#allocation31_spill] sm:$0xff] %v4942_v48  ;;  %11518 = vst [vmem:[#allocation32_spill] sm:$0xff] %v4947_v49  ;;  %v4952_v50 = vld [vmem:[%s10973_s3 + $0xc0] sm:$0xff]  ;;  %v4957_v51 = vld [vmem:[%s10973_s3 + $0xc8] sm:$0xff] }
  0x5c   :  { %11519 = vst [vmem:[#allocation33_spill] sm:$0xff] %v4952_v50  ;;  %11520 = vst [vmem:[#allocation34_spill] sm:$0xff] %v4957_v51  ;;  %v4962_v52 = vld [vmem:[%s10973_s3 + $0xd0] sm:$0xff]  ;;  %v4967_v53 = vld [vmem:[%s10973_s3 + $0xd8] sm:$0xff] }
  0x5d   :  { %11521 = vst [vmem:[#allocation35_spill] sm:$0xff] %v4962_v52  ;;  %11522 = vst [vmem:[#allocation36_spill] sm:$0xff] %v4967_v53  ;;  %v4972_v54 = vld [vmem:[%s10973_s3 + $0xe0] sm:$0xff]  ;;  %v4977_v55 = vld [vmem:[%s10973_s3 + $0xe8] sm:$0xff] }
  0x5e   :  { %11523 = vst [vmem:[#allocation37_spill] sm:$0xff] %v4972_v54  ;;  %11524 = vst [vmem:[#allocation38_spill] sm:$0xff] %v4977_v55  ;;  %v4982_v56 = vld [vmem:[%s10973_s3 + $0xf0] sm:$0xff]  ;;  %v4987_v57 = vld [vmem:[%s10973_s3 + $0xf8] sm:$0xff] }
  0x5f   :  { %11525 = vst [vmem:[#allocation39_spill] sm:$0xff] %v4982_v56  ;;  %11526 = vst [vmem:[#allocation40_spill] sm:$0xff] %v4987_v57  ;;  %v4992_v58 = vld [vmem:[%s10973_s3 + $0x100] sm:$0xff]  ;;  %v4997_v59 = vld [vmem:[%s10973_s3 + $0x108] sm:$0xff] }
  0x60   :  { %11527 = vst [vmem:[#allocation41_spill] sm:$0xff] %v4992_v58  ;;  %11528 = vst [vmem:[#allocation42_spill] sm:$0xff] %v4997_v59  ;;  %v5002_v60 = vld [vmem:[%s10973_s3 + $0x110] sm:$0xff]  ;;  %v5007_v61 = vld [vmem:[%s10973_s3 + $0x118] sm:$0xff] }
  0x61   :  { %11529 = vst [vmem:[#allocation43_spill] sm:$0xff] %v5002_v60  ;;  %11530 = vst [vmem:[#allocation44_spill] sm:$0xff] %v5007_v61  ;;  %v5012_v62 = vld [vmem:[%s10973_s3 + $0x120] sm:$0xff]  ;;  %v5017_v63 = vld [vmem:[%s10973_s3 + $0x128] sm:$0xff] }
  0x62   :  { %11531 = vst [vmem:[#allocation45_spill] sm:$0xff] %v5012_v62  ;;  %11532 = vst [vmem:[#allocation46_spill] sm:$0xff] %v5017_v63  ;;  %v5022_v0 = vld [vmem:[%s10973_s3 + $0x130] sm:$0xff]  ;;  %v5027_v1 = vld [vmem:[%s10973_s3 + $0x138] sm:$0xff] }
  0x63   :  { %11533 = vst [vmem:[#allocation47_spill] sm:$0xff] %v5022_v0  ;;  %11534 = vst [vmem:[#allocation48_spill] sm:$0xff] %v5027_v1  ;;  %v5032_v2 = vld [vmem:[%s10973_s3 + $0x140] sm:$0xff]  ;;  %v5037_v3 = vld [vmem:[%s10973_s3 + $0x148] sm:$0xff] }
  0x64   :  { %11535 = vst [vmem:[#allocation49_spill] sm:$0xff] %v5032_v2  ;;  %11536 = vst [vmem:[#allocation50_spill] sm:$0xff] %v5037_v3  ;;  %v5042_v4 = vld [vmem:[%s10973_s3 + $0x150] sm:$0xff]  ;;  %v5047_v5 = vld [vmem:[%s10973_s3 + $0x158] sm:$0xff] }
  0x65   :  { %11537 = vst [vmem:[#allocation51_spill] sm:$0xff] %v5042_v4  ;;  %11538 = vst [vmem:[#allocation52_spill] sm:$0xff] %v5047_v5  ;;  %v5052_v6 = vld [vmem:[%s10973_s3 + $0x160] sm:$0xff]  ;;  %v5057_v7 = vld [vmem:[%s10973_s3 + $0x168] sm:$0xff] }
  0x66   :  { %11539 = vst [vmem:[#allocation53_spill] sm:$0xff] %v5052_v6  ;;  %11540 = vst [vmem:[#allocation54_spill] sm:$0xff] %v5057_v7  ;;  %v5062_v8 = vld [vmem:[%s10973_s3 + $0x170] sm:$0xff]  ;;  %v5067_v9 = vld [vmem:[%s10973_s3 + $0x178] sm:$0xff] }
  0x67   :  { %11541 = vst [vmem:[#allocation55_spill] sm:$0xff] %v5062_v8  ;;  %11542 = vst [vmem:[#allocation56_spill] sm:$0xff] %v5067_v9  ;;  %v5072_v10 = vld [vmem:[%s10973_s3 + $0x180] sm:$0xff]  ;;  %v5077_v11 = vld [vmem:[%s10973_s3 + $0x188] sm:$0xff] }
  0x68   :  { %11543 = vst [vmem:[#allocation57_spill] sm:$0xff] %v5072_v10  ;;  %11544 = vst [vmem:[#allocation58_spill] sm:$0xff] %v5077_v11  ;;  %v5082_v12 = vld [vmem:[%s10973_s3 + $0x190] sm:$0xff]  ;;  %v5087_v13 = vld [vmem:[%s10973_s3 + $0x198] sm:$0xff] }
  0x69   :  { %11545 = vst [vmem:[#allocation59_spill] sm:$0xff] %v5082_v12  ;;  %11546 = vst [vmem:[#allocation60_spill] sm:$0xff] %v5087_v13  ;;  %v5092_v14 = vld [vmem:[%s10973_s3 + $0x1a0] sm:$0xff]  ;;  %v5097_v15 = vld [vmem:[%s10973_s3 + $0x1a8] sm:$0xff] }
  0x6a   :  { %11547 = vst [vmem:[#allocation61_spill] sm:$0xff] %v5092_v14  ;;  %11548 = vst [vmem:[#allocation62_spill] sm:$0xff] %v5097_v15  ;;  %v5102_v16 = vld [vmem:[%s10973_s3 + $0x1b0] sm:$0xff]  ;;  %v5107_v17 = vld [vmem:[%s10973_s3 + $0x1b8] sm:$0xff] }
  0x6b   :  { %11549 = vst [vmem:[#allocation63_spill] sm:$0xff] %v5102_v16  ;;  %11550 = vst [vmem:[#allocation64_spill] sm:$0xff] %v5107_v17  ;;  %v5112_v18 = vld [vmem:[%s10973_s3 + $0x1c0] sm:$0xff]  ;;  %v5117_v19 = vld [vmem:[%s10973_s3 + $0x1c8] sm:$0xff] }
  0x6c   :  { %11551 = vst [vmem:[#allocation65_spill] sm:$0xff] %v5112_v18  ;;  %11552 = vst [vmem:[#allocation66_spill] sm:$0xff] %v5117_v19  ;;  %v5122_v20 = vld [vmem:[%s10973_s3 + $0x1d0] sm:$0xff]  ;;  %v5127_v21 = vld [vmem:[%s10973_s3 + $0x1d8] sm:$0xff] }
  0x6d   :  { %11553 = vst [vmem:[#allocation67_spill] sm:$0xff] %v5122_v20  ;;  %11554 = vst [vmem:[#allocation68_spill] sm:$0xff] %v5127_v21  ;;  %v5132_v22 = vld [vmem:[%s10973_s3 + $0x1e0] sm:$0xff]  ;;  %v5137_v23 = vld [vmem:[%s10973_s3 + $0x1e8] sm:$0xff] }
  0x6e   :  { %11555 = vst [vmem:[#allocation69_spill] sm:$0xff] %v5132_v22  ;;  %11556 = vst [vmem:[#allocation70_spill] sm:$0xff] %v5137_v23  ;;  %v5142_v24 = vld [vmem:[%s10973_s3 + $0x1f0] sm:$0xff]  ;;  %v5147_v25 = vld [vmem:[%s10973_s3 + $0x1f8] sm:$0xff] }
  0x6f   :  { %11557 = vst [vmem:[#allocation71_spill] sm:$0xff] %v5142_v24  ;;  %11558 = vst [vmem:[#allocation72_spill] sm:$0xff] %v5147_v25  ;;  %v5152_v60 = vld [vmem:[%s10973_s3 + $0x200] sm:$0xff]  ;;  %v5157_v58 = vld [vmem:[%s10973_s3 + $0x208] sm:$0xff] }
  0x70   :  { %11559 = vst [vmem:[#allocation73_spill] sm:$0xff] %v5152_v60  ;;  %11560 = vst [vmem:[#allocation74_spill] sm:$0xff] %v5157_v58  ;;  %v5162_v61 = vld [vmem:[%s10973_s3 + $0x210] sm:$0xff]  ;;  %v5167_v59 = vld [vmem:[%s10973_s3 + $0x218] sm:$0xff]  ;;  %v10976_v58 = vmov 0  }
  0x71   :  { %11561 = vst [vmem:[#allocation75_spill] sm:$0xff] %v5162_v61  ;;  %11562 = vst [vmem:[#allocation76_spill] sm:$0xff] %v5167_v59  ;;  %v5172_v0 = vld [vmem:[%s10973_s3 + $0x220] sm:$0xff]  ;;  %v5177_v62 = vld [vmem:[%s10973_s3 + $0x228] sm:$0xff]  ;;  %4287 = vset.pattern.permute.xlu1 %v10976_v58  ;;  %4286 = vset.pattern.permute.xlu0 %v10976_v58 }
  0x72   :  { %11563 = vst [vmem:[#allocation77_spill] sm:$0xff] %v5172_v0  ;;  %11564 = vst [vmem:[#allocation78_spill] sm:$0xff] %v5177_v62  ;;  %v5182_v1 = vld [vmem:[%s10973_s3 + $0x230] sm:$0xff]  ;;  %v5187_v63 = vld [vmem:[%s10973_s3 + $0x238] sm:$0xff] }
  0x73   :  { %11565 = vst [vmem:[#allocation79_spill] sm:$0xff] %v5182_v1  ;;  %11566 = vst [vmem:[#allocation80_spill] sm:$0xff] %v5187_v63  ;;  %v5192_v4 = vld [vmem:[%s10973_s3 + $0x240] sm:$0xff]  ;;  %v5197_v2 = vld [vmem:[%s10973_s3 + $0x248] sm:$0xff] }
  0x74   :  { %11567 = vst [vmem:[#allocation81_spill] sm:$0xff] %v5192_v4  ;;  %11568 = vst [vmem:[#allocation82_spill] sm:$0xff] %v5197_v2  ;;  %v5202_v5 = vld [vmem:[%s10973_s3 + $0x250] sm:$0xff]  ;;  %v5207_v3 = vld [vmem:[%s10973_s3 + $0x258] sm:$0xff] }
  0x75   :  { %11569 = vst [vmem:[#allocation83_spill] sm:$0xff] %v5202_v5  ;;  %11570 = vst [vmem:[#allocation84_spill] sm:$0xff] %v5207_v3  ;;  %v5212_v8 = vld [vmem:[%s10973_s3 + $0x260] sm:$0xff]  ;;  %v5217_v6 = vld [vmem:[%s10973_s3 + $0x268] sm:$0xff] }
  0x76   :  { %11571 = vst [vmem:[#allocation85_spill] sm:$0xff] %v5212_v8  ;;  %11572 = vst [vmem:[#allocation86_spill] sm:$0xff] %v5217_v6  ;;  %v5222_v9 = vld [vmem:[%s10973_s3 + $0x270] sm:$0xff]  ;;  %v5227_v7 = vld [vmem:[%s10973_s3 + $0x278] sm:$0xff] }
  0x77   :  { %11573 = vst [vmem:[#allocation87_spill] sm:$0xff] %v5222_v9  ;;  %11574 = vst [vmem:[#allocation88_spill] sm:$0xff] %v5227_v7  ;;  %v5232_v12 = vld [vmem:[%s10973_s3 + $0x280] sm:$0xff]  ;;  %v5237_v10 = vld [vmem:[%s10973_s3 + $0x288] sm:$0xff] }
  0x78   :  { %11575 = vst [vmem:[#allocation89_spill] sm:$0xff] %v5232_v12  ;;  %11576 = vst [vmem:[#allocation90_spill] sm:$0xff] %v5237_v10  ;;  %v5242_v13 = vld [vmem:[%s10973_s3 + $0x290] sm:$0xff]  ;;  %v5247_v11 = vld [vmem:[%s10973_s3 + $0x298] sm:$0xff] }
  0x79   :  { %11577 = vst [vmem:[#allocation91_spill] sm:$0xff] %v5242_v13  ;;  %11578 = vst [vmem:[#allocation92_spill] sm:$0xff] %v5247_v11  ;;  %v5252_v16 = vld [vmem:[%s10973_s3 + $0x2a0] sm:$0xff]  ;;  %v5257_v14 = vld [vmem:[%s10973_s3 + $0x2a8] sm:$0xff] }
  0x7a   :  { %11579 = vst [vmem:[#allocation93_spill] sm:$0xff] %v5252_v16  ;;  %11580 = vst [vmem:[#allocation94_spill] sm:$0xff] %v5257_v14  ;;  %v5262_v17 = vld [vmem:[%s10973_s3 + $0x2b0] sm:$0xff]  ;;  %v5267_v15 = vld [vmem:[%s10973_s3 + $0x2b8] sm:$0xff] }
  0x7b   :  { %11581 = vst [vmem:[#allocation95_spill] sm:$0xff] %v5262_v17  ;;  %11582 = vst [vmem:[#allocation96_spill] sm:$0xff] %v5267_v15  ;;  %v5272_v20 = vld [vmem:[%s10973_s3 + $0x2c0] sm:$0xff]  ;;  %v5277_v18 = vld [vmem:[%s10973_s3 + $0x2c8] sm:$0xff] }
  0x7c   :  { %11583 = vst [vmem:[#allocation97_spill] sm:$0xff] %v5272_v20  ;;  %11584 = vst [vmem:[#allocation98_spill] sm:$0xff] %v5277_v18  ;;  %v5282_v21 = vld [vmem:[%s10973_s3 + $0x2d0] sm:$0xff]  ;;  %v5287_v19 = vld [vmem:[%s10973_s3 + $0x2d8] sm:$0xff] }
  0x7d   :  { %11585 = vst [vmem:[#allocation99_spill] sm:$0xff] %v5282_v21  ;;  %11586 = vst [vmem:[#allocation100_spill] sm:$0xff] %v5287_v19  ;;  %v5292_v24 = vld [vmem:[%s10973_s3 + $0x2e0] sm:$0xff]  ;;  %v5297_v22 = vld [vmem:[%s10973_s3 + $0x2e8] sm:$0xff] }
  0x7e   :  { %11587 = vst [vmem:[#allocation101_spill] sm:$0xff] %v5292_v24  ;;  %11588 = vst [vmem:[#allocation102_spill] sm:$0xff] %v5297_v22  ;;  %v5302_v25 = vld [vmem:[%s10973_s3 + $0x2f0] sm:$0xff]  ;;  %v5307_v23 = vld [vmem:[%s10973_s3 + $0x2f8] sm:$0xff] }
  0x7f   :  { %11589 = vst [vmem:[#allocation103_spill] sm:$0xff] %v5302_v25  ;;  %11590 = vst [vmem:[#allocation104_spill] sm:$0xff] %v5307_v23  ;;  %v5312_v61 = vld [vmem:[%s10973_s3 + $0x300] sm:$0xff]  ;;  %v5317_v60 = vld [vmem:[%s10973_s3 + $0x308] sm:$0xff] }
  0x80   :  { %11591 = vst [vmem:[#allocation105_spill] sm:$0xff] %v5312_v61  ;;  %11592 = vst [vmem:[#allocation106_spill] sm:$0xff] %v5317_v60  ;;  %v5322_v28 = vld [vmem:[%s10973_s3 + $0x310] sm:$0xff]  ;;  %v5327_v26 = vld [vmem:[%s10973_s3 + $0x318] sm:$0xff] }
  0x81   :  { %11593 = vst [vmem:[#allocation107_spill] sm:$0xff] %v5322_v28  ;;  %11594 = vst [vmem:[#allocation108_spill] sm:$0xff] %v5327_v26  ;;  %v5332_v59 = vld [vmem:[%s10973_s3 + $0x320] sm:$0xff]  ;;  %v5337_v61 = vld [vmem:[%s10973_s3 + $0x328] sm:$0xff] }
  0x82   :  { %11595 = vst [vmem:[#allocation109_spill] sm:$0xff] %v5332_v59  ;;  %11596 = vst [vmem:[#allocation110_spill] sm:$0xff] %v5337_v61  ;;  %v5342_v60 = vld [vmem:[%s10973_s3 + $0x330] sm:$0xff]  ;;  %v5347_v28 = vld [vmem:[%s10973_s3 + $0x338] sm:$0xff] }
  0x83   :  { %11597 = vst [vmem:[#allocation111_spill] sm:$0xff] %v5342_v60  ;;  %11598 = vst [vmem:[#allocation112_spill] sm:$0xff] %v5347_v28  ;;  %v5352_v26 = vld [vmem:[%s10973_s3 + $0x340] sm:$0xff]  ;;  %v5357_v59 = vld [vmem:[%s10973_s3 + $0x348] sm:$0xff] }
  0x84   :  { %11599 = vst [vmem:[#allocation113_spill] sm:$0xff] %v5352_v26  ;;  %11600 = vst [vmem:[#allocation114_spill] sm:$0xff] %v5357_v59  ;;  %v5362_v61 = vld [vmem:[%s10973_s3 + $0x350] sm:$0xff]  ;;  %v5367_v60 = vld [vmem:[%s10973_s3 + $0x358] sm:$0xff] }
  0x85   :  { %11601 = vst [vmem:[#allocation115_spill] sm:$0xff] %v5362_v61  ;;  %11602 = vst [vmem:[#allocation116_spill] sm:$0xff] %v5367_v60  ;;  %v5372_v28 = vld [vmem:[%s10973_s3 + $0x360] sm:$0xff]  ;;  %v5377_v26 = vld [vmem:[%s10973_s3 + $0x368] sm:$0xff] }
  0x86   :  { %11603 = vst [vmem:[#allocation117_spill] sm:$0xff] %v5372_v28  ;;  %11604 = vst [vmem:[#allocation118_spill] sm:$0xff] %v5377_v26  ;;  %v5382_v59 = vld [vmem:[%s10973_s3 + $0x370] sm:$0xff]  ;;  %v5387_v61 = vld [vmem:[%s10973_s3 + $0x378] sm:$0xff] }
  0x87   :  { %11605 = vst [vmem:[#allocation119_spill] sm:$0xff] %v5382_v59  ;;  %11606 = vst [vmem:[#allocation120_spill] sm:$0xff] %v5387_v61  ;;  %v5392_v60 = vld [vmem:[%s10973_s3 + $0x380] sm:$0xff]  ;;  %v5397_v28 = vld [vmem:[%s10973_s3 + $0x388] sm:$0xff] }
  0x88   :  { %11607 = vst [vmem:[#allocation121_spill] sm:$0xff] %v5392_v60  ;;  %11608 = vst [vmem:[#allocation122_spill] sm:$0xff] %v5397_v28  ;;  %v5402_v26 = vld [vmem:[%s10973_s3 + $0x390] sm:$0xff]  ;;  %v5407_v59 = vld [vmem:[%s10973_s3 + $0x398] sm:$0xff] }
  0x89   :  { %11609 = vst [vmem:[#allocation123_spill] sm:$0xff] %v5402_v26  ;;  %11610 = vst [vmem:[#allocation124_spill] sm:$0xff] %v5407_v59  ;;  %v5412_v61 = vld [vmem:[%s10973_s3 + $0x3a0] sm:$0xff]  ;;  %v5417_v60 = vld [vmem:[%s10973_s3 + $0x3a8] sm:$0xff] }
  0x8a   :  { %11611 = vst [vmem:[#allocation125_spill] sm:$0xff] %v5412_v61  ;;  %11612 = vst [vmem:[#allocation126_spill] sm:$0xff] %v5417_v60  ;;  %v5422_v28 = vld [vmem:[%s10973_s3 + $0x3b0] sm:$0xff]  ;;  %v5427_v26 = vld [vmem:[%s10973_s3 + $0x3b8] sm:$0xff] }
  0x8b   :  { %11613 = vst [vmem:[#allocation127_spill] sm:$0xff] %v5422_v28  ;;  %11614 = vst [vmem:[#allocation128_spill] sm:$0xff] %v5427_v26  ;;  %v5432_v59 = vld [vmem:[%s10973_s3 + $0x3c0] sm:$0xff]  ;;  %v5437_v61 = vld [vmem:[%s10973_s3 + $0x3c8] sm:$0xff] }
  0x8c   :  { %11615 = vst [vmem:[#allocation129_spill] sm:$0xff] %v5432_v59  ;;  %11616 = vst [vmem:[#allocation130_spill] sm:$0xff] %v5437_v61  ;;  %v5442_v60 = vld [vmem:[%s10973_s3 + $0x3d0] sm:$0xff]  ;;  %v5447_v28 = vld [vmem:[%s10973_s3 + $0x3d8] sm:$0xff] }
  0x8d   :  { %11617 = vst [vmem:[#allocation131_spill] sm:$0xff] %v5442_v60  ;;  %11618 = vst [vmem:[#allocation132_spill] sm:$0xff] %v5447_v28  ;;  %v5452_v26 = vld [vmem:[%s10973_s3 + $0x3e0] sm:$0xff]  ;;  %v5457_v59 = vld [vmem:[%s10973_s3 + $0x3e8] sm:$0xff] }
  0x8e   :  { %11619 = vst [vmem:[#allocation133_spill] sm:$0xff] %v5452_v26  ;;  %11620 = vst [vmem:[#allocation134_spill] sm:$0xff] %v5457_v59  ;;  %v5462_v61 = vld [vmem:[%s10973_s3 + $0x3f0] sm:$0xff]  ;;  %v5467_v60 = vld [vmem:[%s10973_s3 + $0x3f8] sm:$0xff] }
  0x8f   :  { %11621 = vst [vmem:[#allocation135_spill] sm:$0xff] %v5462_v61  ;;  %11622 = vst [vmem:[#allocation136_spill] sm:$0xff] %v5467_v60  ;;  %v5472_v28 = vld [vmem:[%s10973_s3 + $0x400] sm:$0xff]  ;;  %v5477_v26 = vld [vmem:[%s10973_s3 + $0x408] sm:$0xff] }
  0x90   :  { %11623 = vst [vmem:[#allocation137_spill] sm:$0xff] %v5472_v28  ;;  %11624 = vst [vmem:[#allocation138_spill] sm:$0xff] %v5477_v26  ;;  %v5482_v59 = vld [vmem:[%s10973_s3 + $0x410] sm:$0xff]  ;;  %v5487_v61 = vld [vmem:[%s10973_s3 + $0x418] sm:$0xff] }
  0x91   :  { %11625 = vst [vmem:[#allocation139_spill] sm:$0xff] %v5482_v59  ;;  %11626 = vst [vmem:[#allocation140_spill] sm:$0xff] %v5487_v61  ;;  %v5492_v60 = vld [vmem:[%s10973_s3 + $0x420] sm:$0xff]  ;;  %v5497_v28 = vld [vmem:[%s10973_s3 + $0x428] sm:$0xff] }
  0x92   :  { %11627 = vst [vmem:[#allocation141_spill] sm:$0xff] %v5492_v60  ;;  %11628 = vst [vmem:[#allocation142_spill] sm:$0xff] %v5497_v28  ;;  %v5502_v26 = vld [vmem:[%s10973_s3 + $0x430] sm:$0xff]  ;;  %v5507_v59 = vld [vmem:[%s10973_s3 + $0x438] sm:$0xff] }
  0x93   :  { %11629 = vst [vmem:[#allocation143_spill] sm:$0xff] %v5502_v26  ;;  %11630 = vst [vmem:[#allocation144_spill] sm:$0xff] %v5507_v59  ;;  %v5512_v61 = vld [vmem:[%s10973_s3 + $0x440] sm:$0xff]  ;;  %v5517_v60 = vld [vmem:[%s10973_s3 + $0x448] sm:$0xff] }
  0x94   :  { %11631 = vst [vmem:[#allocation145_spill] sm:$0xff] %v5512_v61  ;;  %11632 = vst [vmem:[#allocation146_spill] sm:$0xff] %v5517_v60  ;;  %v5522_v28 = vld [vmem:[%s10973_s3 + $0x450] sm:$0xff]  ;;  %v5527_v26 = vld [vmem:[%s10973_s3 + $0x458] sm:$0xff] }
  0x95   :  { %11633 = vst [vmem:[#allocation147_spill] sm:$0xff] %v5522_v28  ;;  %11634 = vst [vmem:[#allocation148_spill] sm:$0xff] %v5527_v26  ;;  %v5532_v59 = vld [vmem:[%s10973_s3 + $0x460] sm:$0xff]  ;;  %v5537_v61 = vld [vmem:[%s10973_s3 + $0x468] sm:$0xff] }
  0x96   :  { %11635 = vst [vmem:[#allocation149_spill] sm:$0xff] %v5532_v59  ;;  %11636 = vst [vmem:[#allocation150_spill] sm:$0xff] %v5537_v61  ;;  %v5542_v60 = vld [vmem:[%s10973_s3 + $0x470] sm:$0xff]  ;;  %v5547_v28 = vld [vmem:[%s10973_s3 + $0x478] sm:$0xff] }
  0x97   :  { %11637 = vst [vmem:[#allocation151_spill] sm:$0xff] %v5542_v60  ;;  %11638 = vst [vmem:[#allocation152_spill] sm:$0xff] %v5547_v28  ;;  %v5552_v26 = vld [vmem:[%s10973_s3 + $0x480] sm:$0xff]  ;;  %v5557_v59 = vld [vmem:[%s10973_s3 + $0x488] sm:$0xff] }
  0x98   :  { %11639 = vst [vmem:[#allocation153_spill] sm:$0xff] %v5552_v26  ;;  %11640 = vst [vmem:[#allocation154_spill] sm:$0xff] %v5557_v59  ;;  %v5562_v61 = vld [vmem:[%s10973_s3 + $0x490] sm:$0xff]  ;;  %v5567_v60 = vld [vmem:[%s10973_s3 + $0x498] sm:$0xff] }
  0x99   :  { %11641 = vst [vmem:[#allocation155_spill] sm:$0xff] %v5562_v61  ;;  %11642 = vst [vmem:[#allocation156_spill] sm:$0xff] %v5567_v60  ;;  %v5572_v28 = vld [vmem:[%s10973_s3 + $0x4a0] sm:$0xff]  ;;  %v5577_v26 = vld [vmem:[%s10973_s3 + $0x4a8] sm:$0xff] }
  0x9a   :  { %11643 = vst [vmem:[#allocation157_spill] sm:$0xff] %v5572_v28  ;;  %11644 = vst [vmem:[#allocation158_spill] sm:$0xff] %v5577_v26  ;;  %v5582_v59 = vld [vmem:[%s10973_s3 + $0x4b0] sm:$0xff]  ;;  %v5587_v61 = vld [vmem:[%s10973_s3 + $0x4b8] sm:$0xff] }
  0x9b   :  { %11645 = vst [vmem:[#allocation159_spill] sm:$0xff] %v5582_v59  ;;  %11646 = vst [vmem:[#allocation160_spill] sm:$0xff] %v5587_v61  ;;  %v5592_v60 = vld [vmem:[%s10973_s3 + $0x4c0] sm:$0xff]  ;;  %v5597_v28 = vld [vmem:[%s10973_s3 + $0x4c8] sm:$0xff] }
  0x9c   :  { %11647 = vst [vmem:[#allocation161_spill] sm:$0xff] %v5592_v60  ;;  %11648 = vst [vmem:[#allocation162_spill] sm:$0xff] %v5597_v28  ;;  %v5602_v26 = vld [vmem:[%s10973_s3 + $0x4d0] sm:$0xff]  ;;  %v5607_v59 = vld [vmem:[%s10973_s3 + $0x4d8] sm:$0xff] }
  0x9d   :  { %11649 = vst [vmem:[#allocation163_spill] sm:$0xff] %v5602_v26  ;;  %11650 = vst [vmem:[#allocation164_spill] sm:$0xff] %v5607_v59  ;;  %v5612_v61 = vld [vmem:[%s10973_s3 + $0x4e0] sm:$0xff]  ;;  %v5617_v60 = vld [vmem:[%s10973_s3 + $0x4e8] sm:$0xff] }
  0x9e   :  { %11651 = vst [vmem:[#allocation165_spill] sm:$0xff] %v5612_v61  ;;  %11652 = vst [vmem:[#allocation166_spill] sm:$0xff] %v5617_v60  ;;  %v5622_v28 = vld [vmem:[%s10973_s3 + $0x4f0] sm:$0xff]  ;;  %v5627_v26 = vld [vmem:[%s10973_s3 + $0x4f8] sm:$0xff] }
  0x9f   :  { %11653 = vst [vmem:[#allocation167_spill] sm:$0xff] %v5622_v28  ;;  %11654 = vst [vmem:[#allocation168_spill] sm:$0xff] %v5627_v26  ;;  %v5632_v59 = vld [vmem:[%s10973_s3 + $0x500] sm:$0xff]  ;;  %v5637_v61 = vld [vmem:[%s10973_s3 + $0x508] sm:$0xff] }
  0xa0   :  { %11655 = vst [vmem:[#allocation169_spill] sm:$0xff] %v5632_v59  ;;  %11656 = vst [vmem:[#allocation170_spill] sm:$0xff] %v5637_v61  ;;  %v5642_v60 = vld [vmem:[%s10973_s3 + $0x510] sm:$0xff]  ;;  %v5647_v28 = vld [vmem:[%s10973_s3 + $0x518] sm:$0xff] }
  0xa1   :  { %11657 = vst [vmem:[#allocation171_spill] sm:$0xff] %v5642_v60  ;;  %11658 = vst [vmem:[#allocation172_spill] sm:$0xff] %v5647_v28  ;;  %v5652_v26 = vld [vmem:[%s10973_s3 + $0x520] sm:$0xff]  ;;  %v5657_v59 = vld [vmem:[%s10973_s3 + $0x528] sm:$0xff] }
  0xa2   :  { %11659 = vst [vmem:[#allocation173_spill] sm:$0xff] %v5652_v26  ;;  %11660 = vst [vmem:[#allocation174_spill] sm:$0xff] %v5657_v59  ;;  %v5662_v61 = vld [vmem:[%s10973_s3 + $0x530] sm:$0xff]  ;;  %v5667_v60 = vld [vmem:[%s10973_s3 + $0x538] sm:$0xff] }
  0xa3   :  { %11661 = vst [vmem:[#allocation175_spill] sm:$0xff] %v5662_v61  ;;  %11662 = vst [vmem:[#allocation176_spill] sm:$0xff] %v5667_v60  ;;  %v5672_v28 = vld [vmem:[%s10973_s3 + $0x540] sm:$0xff]  ;;  %v5677_v26 = vld [vmem:[%s10973_s3 + $0x548] sm:$0xff] }
  0xa4   :  { %11663 = vst [vmem:[#allocation177_spill] sm:$0xff] %v5672_v28  ;;  %11664 = vst [vmem:[#allocation178_spill] sm:$0xff] %v5677_v26  ;;  %v5682_v59 = vld [vmem:[%s10973_s3 + $0x550] sm:$0xff]  ;;  %v5687_v61 = vld [vmem:[%s10973_s3 + $0x558] sm:$0xff] }
  0xa5   :  { %11665 = vst [vmem:[#allocation179_spill] sm:$0xff] %v5682_v59  ;;  %11666 = vst [vmem:[#allocation180_spill] sm:$0xff] %v5687_v61  ;;  %v5692_v60 = vld [vmem:[%s10973_s3 + $0x560] sm:$0xff]  ;;  %v5697_v28 = vld [vmem:[%s10973_s3 + $0x568] sm:$0xff] }
  0xa6   :  { %11667 = vst [vmem:[#allocation181_spill] sm:$0xff] %v5692_v60  ;;  %11668 = vst [vmem:[#allocation182_spill] sm:$0xff] %v5697_v28  ;;  %v5702_v26 = vld [vmem:[%s10973_s3 + $0x570] sm:$0xff]  ;;  %v5707_v59 = vld [vmem:[%s10973_s3 + $0x578] sm:$0xff] }
  0xa7   :  { %11669 = vst [vmem:[#allocation183_spill] sm:$0xff] %v5702_v26  ;;  %11670 = vst [vmem:[#allocation184_spill] sm:$0xff] %v5707_v59  ;;  %v5712_v61 = vld [vmem:[%s10973_s3 + $0x580] sm:$0xff]  ;;  %v5717_v60 = vld [vmem:[%s10973_s3 + $0x588] sm:$0xff] }
  0xa8   :  { %11671 = vst [vmem:[#allocation185_spill] sm:$0xff] %v5712_v61  ;;  %11672 = vst [vmem:[#allocation186_spill] sm:$0xff] %v5717_v60  ;;  %v5722_v28 = vld [vmem:[%s10973_s3 + $0x590] sm:$0xff]  ;;  %v5727_v26 = vld [vmem:[%s10973_s3 + $0x598] sm:$0xff] }
  0xa9   :  { %11673 = vst [vmem:[#allocation187_spill] sm:$0xff] %v5722_v28  ;;  %11674 = vst [vmem:[#allocation188_spill] sm:$0xff] %v5727_v26  ;;  %v5732_v59 = vld [vmem:[%s10973_s3 + $0x5a0] sm:$0xff]  ;;  %v5737_v61 = vld [vmem:[%s10973_s3 + $0x5a8] sm:$0xff] }
  0xaa   :  { %11675 = vst [vmem:[#allocation189_spill] sm:$0xff] %v5732_v59  ;;  %11676 = vst [vmem:[#allocation190_spill] sm:$0xff] %v5737_v61  ;;  %v5742_v60 = vld [vmem:[%s10973_s3 + $0x5b0] sm:$0xff]  ;;  %v5747_v28 = vld [vmem:[%s10973_s3 + $0x5b8] sm:$0xff] }
  0xab   :  { %11677 = vst [vmem:[#allocation191_spill] sm:$0xff] %v5742_v60  ;;  %11678 = vst [vmem:[#allocation192_spill] sm:$0xff] %v5747_v28  ;;  %v5752_v26 = vld [vmem:[%s10973_s3 + $0x5c0] sm:$0xff]  ;;  %v5757_v59 = vld [vmem:[%s10973_s3 + $0x5c8] sm:$0xff] }
  0xac   :  { %11679 = vst [vmem:[#allocation193_spill] sm:$0xff] %v5752_v26  ;;  %11680 = vst [vmem:[#allocation194_spill] sm:$0xff] %v5757_v59  ;;  %v5762_v61 = vld [vmem:[%s10973_s3 + $0x5d0] sm:$0xff]  ;;  %v5767_v60 = vld [vmem:[%s10973_s3 + $0x5d8] sm:$0xff] }
  0xad   :  { %11681 = vst [vmem:[#allocation195_spill] sm:$0xff] %v5762_v61  ;;  %11682 = vst [vmem:[#allocation196_spill] sm:$0xff] %v5767_v60  ;;  %v5772_v28 = vld [vmem:[%s10973_s3 + $0x5e0] sm:$0xff]  ;;  %v5777_v26 = vld [vmem:[%s10973_s3 + $0x5e8] sm:$0xff] }
  0xae   :  { %11683 = vst [vmem:[#allocation197_spill] sm:$0xff] %v5772_v28  ;;  %11684 = vst [vmem:[#allocation198_spill] sm:$0xff] %v5777_v26  ;;  %v5782_v59 = vld [vmem:[%s10973_s3 + $0x5f0] sm:$0xff]  ;;  %v5787_v61 = vld [vmem:[%s10973_s3 + $0x5f8] sm:$0xff] }
  0xaf   :  { %11685 = vst [vmem:[#allocation199_spill] sm:$0xff] %v5782_v59  ;;  %11686 = vst [vmem:[#allocation200_spill] sm:$0xff] %v5787_v61  ;;  %v5792_v60 = vld [vmem:[%s10973_s3 + $0x600] sm:$0xff]  ;;  %v5797_v28 = vld [vmem:[%s10973_s3 + $0x608] sm:$0xff] }
  0xb0   :  { %11687 = vst [vmem:[#allocation201_spill] sm:$0xff] %v5792_v60  ;;  %11688 = vst [vmem:[#allocation202_spill] sm:$0xff] %v5797_v28  ;;  %v5802_v26 = vld [vmem:[%s10973_s3 + $0x610] sm:$0xff]  ;;  %v5807_v59 = vld [vmem:[%s10973_s3 + $0x618] sm:$0xff] }
  0xb1   :  { %11689 = vst [vmem:[#allocation203_spill] sm:$0xff] %v5802_v26  ;;  %11690 = vst [vmem:[#allocation204_spill] sm:$0xff] %v5807_v59  ;;  %v5812_v61 = vld [vmem:[%s10973_s3 + $0x620] sm:$0xff]  ;;  %v5817_v60 = vld [vmem:[%s10973_s3 + $0x628] sm:$0xff] }
  0xb2   :  { %11691 = vst [vmem:[#allocation205_spill] sm:$0xff] %v5812_v61  ;;  %11692 = vst [vmem:[#allocation206_spill] sm:$0xff] %v5817_v60  ;;  %v5822_v28 = vld [vmem:[%s10973_s3 + $0x630] sm:$0xff]  ;;  %v5827_v26 = vld [vmem:[%s10973_s3 + $0x638] sm:$0xff] }
  0xb3   :  { %11693 = vst [vmem:[#allocation207_spill] sm:$0xff] %v5822_v28  ;;  %11694 = vst [vmem:[#allocation208_spill] sm:$0xff] %v5827_v26  ;;  %v5832_v59 = vld [vmem:[%s10973_s3 + $0x640] sm:$0xff]  ;;  %v5837_v61 = vld [vmem:[%s10973_s3 + $0x648] sm:$0xff] }
  0xb4   :  { %11695 = vst [vmem:[#allocation209_spill] sm:$0xff] %v5832_v59  ;;  %11696 = vst [vmem:[#allocation210_spill] sm:$0xff] %v5837_v61  ;;  %v5842_v60 = vld [vmem:[%s10973_s3 + $0x650] sm:$0xff]  ;;  %v5847_v28 = vld [vmem:[%s10973_s3 + $0x658] sm:$0xff] }
  0xb5   :  { %11697 = vst [vmem:[#allocation211_spill] sm:$0xff] %v5842_v60  ;;  %11698 = vst [vmem:[#allocation212_spill] sm:$0xff] %v5847_v28  ;;  %v5852_v26 = vld [vmem:[%s10973_s3 + $0x660] sm:$0xff]  ;;  %v5857_v59 = vld [vmem:[%s10973_s3 + $0x668] sm:$0xff] }
  0xb6   :  { %11699 = vst [vmem:[#allocation213_spill] sm:$0xff] %v5852_v26  ;;  %11700 = vst [vmem:[#allocation214_spill] sm:$0xff] %v5857_v59  ;;  %v5862_v61 = vld [vmem:[%s10973_s3 + $0x670] sm:$0xff]  ;;  %v5867_v60 = vld [vmem:[%s10973_s3 + $0x678] sm:$0xff] }
  0xb7   :  { %11701 = vst [vmem:[#allocation215_spill] sm:$0xff] %v5862_v61  ;;  %11702 = vst [vmem:[#allocation216_spill] sm:$0xff] %v5867_v60  ;;  %v5872_v28 = vld [vmem:[%s10973_s3 + $0x680] sm:$0xff]  ;;  %v5877_v26 = vld [vmem:[%s10973_s3 + $0x688] sm:$0xff] }
  0xb8   :  { %11703 = vst [vmem:[#allocation217_spill] sm:$0xff] %v5872_v28  ;;  %11704 = vst [vmem:[#allocation218_spill] sm:$0xff] %v5877_v26  ;;  %v5882_v59 = vld [vmem:[%s10973_s3 + $0x690] sm:$0xff]  ;;  %v5887_v61 = vld [vmem:[%s10973_s3 + $0x698] sm:$0xff] }
  0xb9   :  { %11705 = vst [vmem:[#allocation219_spill] sm:$0xff] %v5882_v59  ;;  %11706 = vst [vmem:[#allocation220_spill] sm:$0xff] %v5887_v61  ;;  %v5892_v60 = vld [vmem:[%s10973_s3 + $0x6a0] sm:$0xff]  ;;  %v5897_v28 = vld [vmem:[%s10973_s3 + $0x6a8] sm:$0xff] }
  0xba   :  { %11707 = vst [vmem:[#allocation221_spill] sm:$0xff] %v5892_v60  ;;  %11708 = vst [vmem:[#allocation222_spill] sm:$0xff] %v5897_v28  ;;  %v5902_v26 = vld [vmem:[%s10973_s3 + $0x6b0] sm:$0xff]  ;;  %v5907_v59 = vld [vmem:[%s10973_s3 + $0x6b8] sm:$0xff] }
  0xbb   :  { %11709 = vst [vmem:[#allocation223_spill] sm:$0xff] %v5902_v26  ;;  %11710 = vst [vmem:[#allocation224_spill] sm:$0xff] %v5907_v59  ;;  %v5912_v61 = vld [vmem:[%s10973_s3 + $0x6c0] sm:$0xff]  ;;  %v5917_v60 = vld [vmem:[%s10973_s3 + $0x6c8] sm:$0xff] }
  0xbc   :  { %11711 = vst [vmem:[#allocation225_spill] sm:$0xff] %v5912_v61  ;;  %11712 = vst [vmem:[#allocation226_spill] sm:$0xff] %v5917_v60  ;;  %v5922_v28 = vld [vmem:[%s10973_s3 + $0x6d0] sm:$0xff]  ;;  %v5927_v26 = vld [vmem:[%s10973_s3 + $0x6d8] sm:$0xff] }
  0xbd   :  { %11713 = vst [vmem:[#allocation227_spill] sm:$0xff] %v5922_v28  ;;  %11714 = vst [vmem:[#allocation228_spill] sm:$0xff] %v5927_v26  ;;  %v5932_v59 = vld [vmem:[%s10973_s3 + $0x6e0] sm:$0xff]  ;;  %v5937_v61 = vld [vmem:[%s10973_s3 + $0x6e8] sm:$0xff] }
  0xbe   :  { %11715 = vst [vmem:[#allocation229_spill] sm:$0xff] %v5932_v59  ;;  %11716 = vst [vmem:[#allocation230_spill] sm:$0xff] %v5937_v61  ;;  %v5942_v60 = vld [vmem:[%s10973_s3 + $0x6f0] sm:$0xff]  ;;  %v5947_v28 = vld [vmem:[%s10973_s3 + $0x6f8] sm:$0xff] }
  0xbf   :  { %11717 = vst [vmem:[#allocation231_spill] sm:$0xff] %v5942_v60  ;;  %11718 = vst [vmem:[#allocation232_spill] sm:$0xff] %v5947_v28  ;;  %v5952_v26 = vld [vmem:[%s10973_s3 + $0x700] sm:$0xff]  ;;  %v5957_v59 = vld [vmem:[%s10973_s3 + $0x708] sm:$0xff] }
  0xc0   :  { %11719 = vst [vmem:[#allocation233_spill] sm:$0xff] %v5952_v26  ;;  %11720 = vst [vmem:[#allocation234_spill] sm:$0xff] %v5957_v59  ;;  %v5962_v61 = vld [vmem:[%s10973_s3 + $0x710] sm:$0xff]  ;;  %v5967_v60 = vld [vmem:[%s10973_s3 + $0x718] sm:$0xff] }
  0xc1   :  { %11721 = vst [vmem:[#allocation235_spill] sm:$0xff] %v5962_v61  ;;  %11722 = vst [vmem:[#allocation236_spill] sm:$0xff] %v5967_v60  ;;  %v5972_v28 = vld [vmem:[%s10973_s3 + $0x720] sm:$0xff]  ;;  %v5977_v26 = vld [vmem:[%s10973_s3 + $0x728] sm:$0xff] }
  0xc2   :  { %11723 = vst [vmem:[#allocation237_spill] sm:$0xff] %v5972_v28  ;;  %11724 = vst [vmem:[#allocation238_spill] sm:$0xff] %v5977_v26  ;;  %v5982_v59 = vld [vmem:[%s10973_s3 + $0x730] sm:$0xff]  ;;  %v5987_v61 = vld [vmem:[%s10973_s3 + $0x738] sm:$0xff] }
  0xc3   :  { %11725 = vst [vmem:[#allocation239_spill] sm:$0xff] %v5982_v59  ;;  %11726 = vst [vmem:[#allocation240_spill] sm:$0xff] %v5987_v61  ;;  %v5992_v60 = vld [vmem:[%s10973_s3 + $0x740] sm:$0xff]  ;;  %v5997_v28 = vld [vmem:[%s10973_s3 + $0x748] sm:$0xff] }
  0xc4   :  { %11727 = vst [vmem:[#allocation241_spill] sm:$0xff] %v5992_v60  ;;  %11728 = vst [vmem:[#allocation242_spill] sm:$0xff] %v5997_v28  ;;  %v6002_v26 = vld [vmem:[%s10973_s3 + $0x750] sm:$0xff]  ;;  %v6007_v59 = vld [vmem:[%s10973_s3 + $0x758] sm:$0xff] }
  0xc5   :  { %11729 = vst [vmem:[#allocation243_spill] sm:$0xff] %v6002_v26  ;;  %11730 = vst [vmem:[#allocation244_spill] sm:$0xff] %v6007_v59  ;;  %v6012_v61 = vld [vmem:[%s10973_s3 + $0x760] sm:$0xff]  ;;  %v6017_v60 = vld [vmem:[%s10973_s3 + $0x768] sm:$0xff] }
  0xc6   :  { %11731 = vst [vmem:[#allocation245_spill] sm:$0xff] %v6012_v61  ;;  %11732 = vst [vmem:[#allocation246_spill] sm:$0xff] %v6017_v60  ;;  %v6022_v28 = vld [vmem:[%s10973_s3 + $0x770] sm:$0xff]  ;;  %v6027_v26 = vld [vmem:[%s10973_s3 + $0x778] sm:$0xff] }
  0xc7   :  { %11733 = vst [vmem:[#allocation247_spill] sm:$0xff] %v6022_v28  ;;  %11734 = vst [vmem:[#allocation248_spill] sm:$0xff] %v6027_v26  ;;  %v6032_v59 = vld [vmem:[%s10973_s3 + $0x780] sm:$0xff]  ;;  %v6037_v61 = vld [vmem:[%s10973_s3 + $0x788] sm:$0xff] }
  0xc8   :  { %11735 = vst [vmem:[#allocation249_spill] sm:$0xff] %v6032_v59  ;;  %11736 = vst [vmem:[#allocation250_spill] sm:$0xff] %v6037_v61  ;;  %v6042_v60 = vld [vmem:[%s10973_s3 + $0x790] sm:$0xff]  ;;  %v6047_v28 = vld [vmem:[%s10973_s3 + $0x798] sm:$0xff] }
  0xc9   :  { %11737 = vst [vmem:[#allocation251_spill] sm:$0xff] %v6042_v60  ;;  %11738 = vst [vmem:[#allocation252_spill] sm:$0xff] %v6047_v28  ;;  %v6052_v26 = vld [vmem:[%s10973_s3 + $0x7a0] sm:$0xff]  ;;  %v6057_v59 = vld [vmem:[%s10973_s3 + $0x7a8] sm:$0xff] }
  0xca   :  { %11739 = vst [vmem:[#allocation253_spill] sm:$0xff] %v6052_v26  ;;  %11740 = vst [vmem:[#allocation254_spill] sm:$0xff] %v6057_v59  ;;  %v6062_v61 = vld [vmem:[%s10973_s3 + $0x7b0] sm:$0xff]  ;;  %v6067_v60 = vld [vmem:[%s10973_s3 + $0x7b8] sm:$0xff] }
  0xcb   :  { %11741 = vst [vmem:[#allocation255_spill] sm:$0xff] %v6062_v61  ;;  %11742 = vst [vmem:[#allocation256_spill] sm:$0xff] %v6067_v60  ;;  %v6072_v28 = vld [vmem:[%s10973_s3 + $0x7c0] sm:$0xff]  ;;  %v6077_v26 = vld [vmem:[%s10973_s3 + $0x7c8] sm:$0xff] }
  0xcc   :  { %11743 = vst [vmem:[#allocation257_spill] sm:$0xff] %v6072_v28  ;;  %11744 = vst [vmem:[#allocation258_spill] sm:$0xff] %v6077_v26  ;;  %v6082_v59 = vld [vmem:[%s10973_s3 + $0x7d0] sm:$0xff]  ;;  %v6087_v61 = vld [vmem:[%s10973_s3 + $0x7d8] sm:$0xff] }
  0xcd   :  { %11745 = vst [vmem:[#allocation259_spill] sm:$0xff] %v6082_v59  ;;  %11746 = vst [vmem:[#allocation260_spill] sm:$0xff] %v6087_v61  ;;  %v6092_v60 = vld [vmem:[%s10973_s3 + $0x7e0] sm:$0xff]  ;;  %v6097_v28 = vld [vmem:[%s10973_s3 + $0x7e8] sm:$0xff] }
  0xce   :  { %11747 = vst [vmem:[#allocation261_spill] sm:$0xff] %v6092_v60  ;;  %11748 = vst [vmem:[#allocation262_spill] sm:$0xff] %v6097_v28  ;;  %v6102_v26 = vld [vmem:[%s10973_s3 + $0x7f0] sm:$0xff]  ;;  %v6107_v59 = vld [vmem:[%s10973_s3 + $0x7f8] sm:$0xff] }
  0xcf   :  { %11749 = vst [vmem:[#allocation263_spill] sm:$0xff] %v6102_v26  ;;  %11750 = vst [vmem:[#allocation264_spill] sm:$0xff] %v6107_v59  ;;  %v6112_v61 = vld [vmem:[%s10973_s3 + $0x800] sm:$0xff]  ;;  %v6117_v60 = vld [vmem:[%s10973_s3 + $0x808] sm:$0xff] }
  0xd0   :  { %11751 = vst [vmem:[#allocation265_spill] sm:$0xff] %v6112_v61  ;;  %11752 = vst [vmem:[#allocation266_spill] sm:$0xff] %v6117_v60  ;;  %v6122_v28 = vld [vmem:[%s10973_s3 + $0x810] sm:$0xff]  ;;  %v6127_v26 = vld [vmem:[%s10973_s3 + $0x818] sm:$0xff] }
  0xd1   :  { %11753 = vst [vmem:[#allocation267_spill] sm:$0xff] %v6122_v28  ;;  %11754 = vst [vmem:[#allocation268_spill] sm:$0xff] %v6127_v26  ;;  %v6132_v59 = vld [vmem:[%s10973_s3 + $0x820] sm:$0xff]  ;;  %v6137_v61 = vld [vmem:[%s10973_s3 + $0x828] sm:$0xff] }
  0xd2   :  { %11755 = vst [vmem:[#allocation269_spill] sm:$0xff] %v6132_v59  ;;  %11756 = vst [vmem:[#allocation270_spill] sm:$0xff] %v6137_v61  ;;  %v6142_v60 = vld [vmem:[%s10973_s3 + $0x830] sm:$0xff]  ;;  %v6147_v28 = vld [vmem:[%s10973_s3 + $0x838] sm:$0xff] }
  0xd3   :  { %11757 = vst [vmem:[#allocation271_spill] sm:$0xff] %v6142_v60  ;;  %11758 = vst [vmem:[#allocation272_spill] sm:$0xff] %v6147_v28  ;;  %v6152_v26 = vld [vmem:[%s10973_s3 + $0x840] sm:$0xff]  ;;  %v6157_v59 = vld [vmem:[%s10973_s3 + $0x848] sm:$0xff] }
  0xd4   :  { %11759 = vst [vmem:[#allocation273_spill] sm:$0xff] %v6152_v26  ;;  %11760 = vst [vmem:[#allocation274_spill] sm:$0xff] %v6157_v59  ;;  %v6162_v61 = vld [vmem:[%s10973_s3 + $0x850] sm:$0xff]  ;;  %v6167_v60 = vld [vmem:[%s10973_s3 + $0x858] sm:$0xff] }
  0xd5   :  { %11761 = vst [vmem:[#allocation275_spill] sm:$0xff] %v6162_v61  ;;  %11762 = vst [vmem:[#allocation276_spill] sm:$0xff] %v6167_v60  ;;  %v6172_v28 = vld [vmem:[%s10973_s3 + $0x860] sm:$0xff]  ;;  %v6177_v26 = vld [vmem:[%s10973_s3 + $0x868] sm:$0xff] }
  0xd6   :  { %11763 = vst [vmem:[#allocation277_spill] sm:$0xff] %v6172_v28  ;;  %11764 = vst [vmem:[#allocation278_spill] sm:$0xff] %v6177_v26  ;;  %v6182_v59 = vld [vmem:[%s10973_s3 + $0x870] sm:$0xff]  ;;  %v6187_v61 = vld [vmem:[%s10973_s3 + $0x878] sm:$0xff] }
  0xd7   :  { %11765 = vst [vmem:[#allocation279_spill] sm:$0xff] %v6182_v59  ;;  %11766 = vst [vmem:[#allocation280_spill] sm:$0xff] %v6187_v61  ;;  %v6192_v60 = vld [vmem:[%s10973_s3 + $0x880] sm:$0xff]  ;;  %v6197_v28 = vld [vmem:[%s10973_s3 + $0x888] sm:$0xff] }
  0xd8   :  { %11767 = vst [vmem:[#allocation281_spill] sm:$0xff] %v6192_v60  ;;  %11768 = vst [vmem:[#allocation282_spill] sm:$0xff] %v6197_v28  ;;  %v6202_v26 = vld [vmem:[%s10973_s3 + $0x890] sm:$0xff]  ;;  %v6207_v59 = vld [vmem:[%s10973_s3 + $0x898] sm:$0xff] }
  0xd9   :  { %11769 = vst [vmem:[#allocation283_spill] sm:$0xff] %v6202_v26  ;;  %11770 = vst [vmem:[#allocation284_spill] sm:$0xff] %v6207_v59  ;;  %v6212_v61 = vld [vmem:[%s10973_s3 + $0x8a0] sm:$0xff]  ;;  %v6217_v60 = vld [vmem:[%s10973_s3 + $0x8a8] sm:$0xff] }
  0xda   :  { %11771 = vst [vmem:[#allocation285_spill] sm:$0xff] %v6212_v61  ;;  %11772 = vst [vmem:[#allocation286_spill] sm:$0xff] %v6217_v60  ;;  %v6222_v28 = vld [vmem:[%s10973_s3 + $0x8b0] sm:$0xff]  ;;  %v6227_v26 = vld [vmem:[%s10973_s3 + $0x8b8] sm:$0xff] }
  0xdb   :  { %11773 = vst [vmem:[#allocation287_spill] sm:$0xff] %v6222_v28  ;;  %11774 = vst [vmem:[#allocation288_spill] sm:$0xff] %v6227_v26  ;;  %v6232_v59 = vld [vmem:[%s10973_s3 + $0x8c0] sm:$0xff]  ;;  %v6237_v61 = vld [vmem:[%s10973_s3 + $0x8c8] sm:$0xff] }
  0xdc   :  { %11775 = vst [vmem:[#allocation289_spill] sm:$0xff] %v6232_v59  ;;  %11776 = vst [vmem:[#allocation290_spill] sm:$0xff] %v6237_v61  ;;  %v6242_v60 = vld [vmem:[%s10973_s3 + $0x8d0] sm:$0xff]  ;;  %v6247_v28 = vld [vmem:[%s10973_s3 + $0x8d8] sm:$0xff] }
  0xdd   :  { %11777 = vst [vmem:[#allocation291_spill] sm:$0xff] %v6242_v60  ;;  %11778 = vst [vmem:[#allocation292_spill] sm:$0xff] %v6247_v28  ;;  %v6252_v26 = vld [vmem:[%s10973_s3 + $0x8e0] sm:$0xff]  ;;  %v6257_v59 = vld [vmem:[%s10973_s3 + $0x8e8] sm:$0xff] }
  0xde   :  { %11779 = vst [vmem:[#allocation293_spill] sm:$0xff] %v6252_v26  ;;  %11780 = vst [vmem:[#allocation294_spill] sm:$0xff] %v6257_v59  ;;  %v6262_v61 = vld [vmem:[%s10973_s3 + $0x8f0] sm:$0xff]  ;;  %v6267_v60 = vld [vmem:[%s10973_s3 + $0x8f8] sm:$0xff] }
  0xdf   :  { %11781 = vst [vmem:[#allocation295_spill] sm:$0xff] %v6262_v61  ;;  %11782 = vst [vmem:[#allocation296_spill] sm:$0xff] %v6267_v60  ;;  %v6272_v28 = vld [vmem:[%s10973_s3 + $0x900] sm:$0xff]  ;;  %v6277_v26 = vld [vmem:[%s10973_s3 + $0x908] sm:$0xff] }
  0xe0   :  { %11783 = vst [vmem:[#allocation297_spill] sm:$0xff] %v6272_v28  ;;  %11784 = vst [vmem:[#allocation298_spill] sm:$0xff] %v6277_v26  ;;  %v6282_v59 = vld [vmem:[%s10973_s3 + $0x910] sm:$0xff]  ;;  %v6287_v61 = vld [vmem:[%s10973_s3 + $0x918] sm:$0xff] }
  0xe1   :  { %11785 = vst [vmem:[#allocation299_spill] sm:$0xff] %v6282_v59  ;;  %11786 = vst [vmem:[#allocation300_spill] sm:$0xff] %v6287_v61  ;;  %v6292_v60 = vld [vmem:[%s10973_s3 + $0x920] sm:$0xff]  ;;  %v6297_v28 = vld [vmem:[%s10973_s3 + $0x928] sm:$0xff] }
  0xe2   :  { %11787 = vst [vmem:[#allocation301_spill] sm:$0xff] %v6292_v60  ;;  %11788 = vst [vmem:[#allocation302_spill] sm:$0xff] %v6297_v28  ;;  %v6302_v26 = vld [vmem:[%s10973_s3 + $0x930] sm:$0xff]  ;;  %v6307_v59 = vld [vmem:[%s10973_s3 + $0x938] sm:$0xff] }
  0xe3   :  { %11789 = vst [vmem:[#allocation303_spill] sm:$0xff] %v6302_v26  ;;  %11790 = vst [vmem:[#allocation304_spill] sm:$0xff] %v6307_v59  ;;  %v6312_v61 = vld [vmem:[%s10973_s3 + $0x940] sm:$0xff]  ;;  %v6317_v60 = vld [vmem:[%s10973_s3 + $0x948] sm:$0xff] }
  0xe4   :  { %11791 = vst [vmem:[#allocation305_spill] sm:$0xff] %v6312_v61  ;;  %11792 = vst [vmem:[#allocation306_spill] sm:$0xff] %v6317_v60  ;;  %v6322_v28 = vld [vmem:[%s10973_s3 + $0x950] sm:$0xff]  ;;  %v6327_v26 = vld [vmem:[%s10973_s3 + $0x958] sm:$0xff] }
  0xe5   :  { %11793 = vst [vmem:[#allocation307_spill] sm:$0xff] %v6322_v28  ;;  %11794 = vst [vmem:[#allocation308_spill] sm:$0xff] %v6327_v26  ;;  %v6332_v59 = vld [vmem:[%s10973_s3 + $0x960] sm:$0xff]  ;;  %v6337_v61 = vld [vmem:[%s10973_s3 + $0x968] sm:$0xff] }
  0xe6   :  { %11795 = vst [vmem:[#allocation309_spill] sm:$0xff] %v6332_v59  ;;  %11796 = vst [vmem:[#allocation310_spill] sm:$0xff] %v6337_v61  ;;  %v6342_v60 = vld [vmem:[%s10973_s3 + $0x970] sm:$0xff]  ;;  %v6347_v28 = vld [vmem:[%s10973_s3 + $0x978] sm:$0xff] }
  0xe7   :  { %11797 = vst [vmem:[#allocation311_spill] sm:$0xff] %v6342_v60  ;;  %11798 = vst [vmem:[#allocation312_spill] sm:$0xff] %v6347_v28  ;;  %v6352_v26 = vld [vmem:[%s10973_s3 + $0x980] sm:$0xff]  ;;  %v6357_v59 = vld [vmem:[%s10973_s3 + $0x988] sm:$0xff] }
  0xe8   :  { %11799 = vst [vmem:[#allocation313_spill] sm:$0xff] %v6352_v26  ;;  %11800 = vst [vmem:[#allocation314_spill] sm:$0xff] %v6357_v59  ;;  %v6362_v61 = vld [vmem:[%s10973_s3 + $0x990] sm:$0xff]  ;;  %v6367_v60 = vld [vmem:[%s10973_s3 + $0x998] sm:$0xff] }
  0xe9   :  { %11801 = vst [vmem:[#allocation315_spill] sm:$0xff] %v6362_v61  ;;  %11802 = vst [vmem:[#allocation316_spill] sm:$0xff] %v6367_v60  ;;  %v6372_v28 = vld [vmem:[%s10973_s3 + $0x9a0] sm:$0xff]  ;;  %v6377_v26 = vld [vmem:[%s10973_s3 + $0x9a8] sm:$0xff] }
  0xea   :  { %11803 = vst [vmem:[#allocation317_spill] sm:$0xff] %v6372_v28  ;;  %11804 = vst [vmem:[#allocation318_spill] sm:$0xff] %v6377_v26  ;;  %v6382_v59 = vld [vmem:[%s10973_s3 + $0x9b0] sm:$0xff]  ;;  %v6387_v61 = vld [vmem:[%s10973_s3 + $0x9b8] sm:$0xff] }
  0xeb   :  { %11805 = vst [vmem:[#allocation319_spill] sm:$0xff] %v6382_v59  ;;  %11806 = vst [vmem:[#allocation320_spill] sm:$0xff] %v6387_v61  ;;  %v6392_v60 = vld [vmem:[%s10973_s3 + $0x9c0] sm:$0xff]  ;;  %v6397_v28 = vld [vmem:[%s10973_s3 + $0x9c8] sm:$0xff] }
  0xec   :  { %11807 = vst [vmem:[#allocation321_spill] sm:$0xff] %v6392_v60  ;;  %11808 = vst [vmem:[#allocation322_spill] sm:$0xff] %v6397_v28  ;;  %v6402_v26 = vld [vmem:[%s10973_s3 + $0x9d0] sm:$0xff]  ;;  %v6407_v59 = vld [vmem:[%s10973_s3 + $0x9d8] sm:$0xff] }
  0xed   :  { %11809 = vst [vmem:[#allocation323_spill] sm:$0xff] %v6402_v26  ;;  %11810 = vst [vmem:[#allocation324_spill] sm:$0xff] %v6407_v59  ;;  %v6412_v61 = vld [vmem:[%s10973_s3 + $0x9e0] sm:$0xff]  ;;  %v6417_v60 = vld [vmem:[%s10973_s3 + $0x9e8] sm:$0xff] }
  0xee   :  { %11811 = vst [vmem:[#allocation325_spill] sm:$0xff] %v6412_v61  ;;  %11812 = vst [vmem:[#allocation326_spill] sm:$0xff] %v6417_v60  ;;  %v6422_v28 = vld [vmem:[%s10973_s3 + $0x9f0] sm:$0xff]  ;;  %v6427_v26 = vld [vmem:[%s10973_s3 + $0x9f8] sm:$0xff] }
  0xef   :  { %11813 = vst [vmem:[#allocation327_spill] sm:$0xff] %v6422_v28  ;;  %11814 = vst [vmem:[#allocation328_spill] sm:$0xff] %v6427_v26  ;;  %v6432_v59 = vld [vmem:[%s10973_s3 + $0xa00] sm:$0xff]  ;;  %v6437_v61 = vld [vmem:[%s10973_s3 + $0xa08] sm:$0xff] }
  0xf0   :  { %11815 = vst [vmem:[#allocation329_spill] sm:$0xff] %v6432_v59  ;;  %11816 = vst [vmem:[#allocation330_spill] sm:$0xff] %v6437_v61  ;;  %v6442_v60 = vld [vmem:[%s10973_s3 + $0xa10] sm:$0xff]  ;;  %v6447_v28 = vld [vmem:[%s10973_s3 + $0xa18] sm:$0xff] }
  0xf1   :  { %11817 = vst [vmem:[#allocation331_spill] sm:$0xff] %v6442_v60  ;;  %11818 = vst [vmem:[#allocation332_spill] sm:$0xff] %v6447_v28  ;;  %v6452_v26 = vld [vmem:[%s10973_s3 + $0xa20] sm:$0xff]  ;;  %v6457_v59 = vld [vmem:[%s10973_s3 + $0xa28] sm:$0xff] }
  0xf2   :  { %11819 = vst [vmem:[#allocation333_spill] sm:$0xff] %v6452_v26  ;;  %11820 = vst [vmem:[#allocation334_spill] sm:$0xff] %v6457_v59  ;;  %v6462_v61 = vld [vmem:[%s10973_s3 + $0xa30] sm:$0xff]  ;;  %v6467_v60 = vld [vmem:[%s10973_s3 + $0xa38] sm:$0xff] }
  0xf3   :  { %11821 = vst [vmem:[#allocation335_spill] sm:$0xff] %v6462_v61  ;;  %11822 = vst [vmem:[#allocation336_spill] sm:$0xff] %v6467_v60  ;;  %v6472_v28 = vld [vmem:[%s10973_s3 + $0xa40] sm:$0xff]  ;;  %v6477_v26 = vld [vmem:[%s10973_s3 + $0xa48] sm:$0xff] }
  0xf4   :  { %11823 = vst [vmem:[#allocation337_spill] sm:$0xff] %v6472_v28  ;;  %11824 = vst [vmem:[#allocation338_spill] sm:$0xff] %v6477_v26  ;;  %v6482_v59 = vld [vmem:[%s10973_s3 + $0xa50] sm:$0xff]  ;;  %v6487_v61 = vld [vmem:[%s10973_s3 + $0xa58] sm:$0xff] }
  0xf5   :  { %11825 = vst [vmem:[#allocation339_spill] sm:$0xff] %v6482_v59  ;;  %11826 = vst [vmem:[#allocation340_spill] sm:$0xff] %v6487_v61  ;;  %v6492_v60 = vld [vmem:[%s10973_s3 + $0xa60] sm:$0xff]  ;;  %v6497_v28 = vld [vmem:[%s10973_s3 + $0xa68] sm:$0xff] }
  0xf6   :  { %11827 = vst [vmem:[#allocation341_spill] sm:$0xff] %v6492_v60  ;;  %11828 = vst [vmem:[#allocation342_spill] sm:$0xff] %v6497_v28  ;;  %v6502_v26 = vld [vmem:[%s10973_s3 + $0xa70] sm:$0xff]  ;;  %v6507_v59 = vld [vmem:[%s10973_s3 + $0xa78] sm:$0xff] }
  0xf7   :  { %11829 = vst [vmem:[#allocation343_spill] sm:$0xff] %v6502_v26  ;;  %11830 = vst [vmem:[#allocation344_spill] sm:$0xff] %v6507_v59  ;;  %v1201_v61 = vld [vmem:[%s10970_s0 + $0x10] sm:$0xff]  ;;  %v1199_v60 = vld [vmem:[%s10970_s0] sm:$0xff] }
  0xf8   :  { %1218 = vperm.xlu1 %4287, %v1201_v61   ;;  %1208 = vperm.xlu0 %4286, %v1199_v60   ;;  %v1202_v26 = vld [vmem:[%s10970_s0 + $0x18] sm:$0xff]  ;;  %v1200_v59 = vld [vmem:[%s10970_s0 + $0x8] sm:$0xff]  ;;  %v1203_v58 = vld [vmem:[%s10970_s0 + $0x20] sm:$0xff] }
  0xf9   :  { %v1204_v28 = vld [vmem:[%s10970_s0 + $0x28] sm:$0xff] }
  0xfc   :  { %1223 = vperm.xlu1 %4287, %v1202_v26   ;;  %1213 = vperm.xlu0 %4286, %v1200_v59  }
  0xfd   :  { %1079 = vsyncadd [#allocation4 + $0x1], 43008  ;;  %v1205_v60 = vld [vmem:[%s10970_s0 + $0x30] sm:$0xff]  ;;  %v6535_v26 = vld [vmem:[%s10971_s1 + $0x58] sm:$0xff]  ;;  %v1462_v41 = vlaneseq  ;;  %vm1438_vm0 = vcmask 523264  }
  0xfe   :  { %v6540_v59 = vld [vmem:[%s10971_s1 + $0x60] sm:$0xff]  ;;  %v6555_v61 = vld [vmem:[%s10971_s1 + $0x78] sm:$0xff]  ;;  %v6567_v1 = vld [vmem:[%s10971_s1 + $0x8] sm:$0xff]  ;;  %v11848_v24 = vunpack.c.l.bf16 %v6535_v26  ;;  %v11849_v56 = vunpack.c.h.bf16 %v6535_v26 }
  0xff   :  { %v6562_v27 = vld [vmem:[%s10971_s1] sm:$0xff]  ;;  %v6576_v29 = vld [vmem:[%s10971_s1 + $0x10] sm:$0xff]  ;;  %v6581_v63 = vld [vmem:[%s10971_s1 + $0x18] sm:$0xff]  ;;  %v6753_v43 = vshrl.u32 %v1462_v41, 7  ;;  %v11850_v54 = vunpack.c.l.bf16 %v6540_v59 }
 0x100   :  { %1233 = vperm.xlu1 %4287, %v1204_v28   ;;  %1228 = vperm.xlu0 %4286, %v1203_v58   ;;  %v6545_v28 = vld [vmem:[%s10971_s1 + $0x68] sm:$0xff]  ;;  %v6550_v58 = vld [vmem:[%s10971_s1 + $0x70] sm:$0xff]  ;;  %v6595_v33 = vld [vmem:[%s10971_s1 + $0x20] sm:$0xff] }
 0x101   :  { %v6586_v0 = vld [vmem:[%s10971_s1 + $0x28] ss:$88 sps:$4 sm:$0xff]   ;;  %v6609_v62 = vld [vmem:[%s10971_s1 + $0x8c] sm:$0xff]  ;;  %v6618_v36 = vld [vmem:[%s10971_s1 + $0x94] sm:$0xff]  ;;  %11831 = vst [vmem:[#allocation345_spill] sm:$0xff] %v6753_v43  ;;  %v6788_v46 = vsub.s32 0, %v6753_v43 }
 0x102   :  { %v6604_v30 = vld [vmem:[%s10971_s1 + $0x84] sm:$0xff]  ;;  %v6623_v32 = vld [vmem:[%s10971_s1 + $0x9c] sm:$0xff]  ;;  %v6637_v3 = vld [vmem:[%s10971_s1 + $0x54] ss:$88 sps:$4 sm:$0xff]   ;;  %v1476_v41 = vsub.s32 3, %v6753_v43  ;;  %v1480_v14 = vsub.s32 4, %v6753_v43 }
 0x103   :  { %v6632_v4 = vld [vmem:[%s10971_s1 + $0xa4] sm:$0xff]  ;;  %v6642_v34 = vld [vmem:[%s10971_s1 + $0x2c] sm:$0xff]  ;;  %v6651_v37 = vld [vmem:[%s10971_s1 + $0x34] sm:$0xff]  ;;  %11836 = vst [vmem:[#allocation350_spill] sm:$0xff] %v6788_v46  ;;  %v1484_v39 = vsub.s32 5, %v6753_v43  ;;  %v1488_v17 = vsub.s32 6, %v6753_v43 }
 0x104   :  { %1238 = vperm.xlu0 %4286, %v1205_v60   ;;  %v6656_v35 = vld [vmem:[%s10971_s1 + $0x3c] sm:$0xff]  ;;  %v6665_v2 = vld [vmem:[%s10971_s1 + $0x44] sm:$0xff]  ;;  %v6673_v9 = vld [vmem:[%s10971_s1 + $0x4c] sm:$0xff]  ;;  %v1492_v47 = vsub.s32 7, %v6753_v43  ;;  %v11840_v51 = vsub.s32 1, %v6753_v43  ;;  %v11842_v16 = vsub.s32 2, %v6753_v43 }
 0x105   :  { %v6679_v5 = vld [vmem:[%s10971_s1 + $0xdc] sm:$0xff]  ;;  %v6688_v7 = vld [vmem:[%s10971_s1 + $0xe4] sm:$0xff]  ;;  %v6693_v31 = vld [vmem:[%s10971_s1 + $0xec] sm:$0xff] }
 0x106   :  { %v6701_v38 = vld [vmem:[%s10971_s1 + $0xf4] sm:$0xff]  ;;  %v6706_v40 = vld [vmem:[%s10971_s1 + $0xfc] sm:$0xff]  ;;  %v6743_v6 = vld [vmem:[%s10971_s1 + $0xc8] sm:$0xff] }
 0x107   :  { %v6714_v8 = vld [vmem:[%s10971_s1 + $0xd8] ss:$44 sps:$4 sm:$0xff]   ;;  %v6720_v12 = vld [vmem:[%s10971_s1 + $0xb0] sm:$0xff]  ;;  %v6758_v13 = vld [vmem:[%s10971_s1 + $0x108] sm:$0xff] }
 0x108   :  { %v6729_v42 = vld [vmem:[%s10971_s1 + $0xb8] sm:$0xff]  ;;  %v6734_v60 = vld [vmem:[%s10971_s1 + $0xc0] sm:$0xff]  ;;  %v6748_v10 = vld [vmem:[%s10971_s1 + $0xd0] sm:$0xff]  ;;  %11832 = vst [vmem:[#allocation346_spill] sm:$0xff] %v6758_v13 }
 0x109   :  { %v6767_v11 = vld [vmem:[%s10971_s1 + $0x110] sm:$0xff]  ;;  %v6778_v48 = vld [vmem:[%s10971_s1 + $0x118] sm:$0xff]  ;;  %v6785_v44 = vld [vmem:[%s10972_s2] sm:$0xff] }
 0x10a   :  { %11833 = vst [vmem:[#allocation347_spill] sm:$0xff] %v6767_v11  ;;  %11834 = vst [vmem:[#allocation348_spill] sm:$0xff] %v6778_v48  ;;  %v6795_v45 = vld [vmem:[%s10971_s1 + $0x120] sm:$0xff]  ;;  %v6800_v15 = vld [vmem:[%s10971_s1 + $0x128] sm:$0xff]  ;;  %v6825_v25 = vrot.slane %v6785_v44, %v11840_v51  ;;  %v6830_v20 = vrot.slane %v6785_v44, %v11842_v16  ;;  %v6834_v19 = vrot.slane %v6785_v44, %v1476_v41 }
 0x10b   :  { %11835 = vst [vmem:[#allocation349_spill] sm:$0xff] %v6785_v44  ;;  %11837 = vst [vmem:[#allocation351_spill] sm:$0xff] %v6795_v45  ;;  %v6810_v49 = vld [vmem:[%s10971_s1 + $0x130] sm:$0xf]  ;;  %v6837_v18 = vrot.slane %v6785_v44, %v1480_v14  ;;  %v6840_v53 = vrot.slane %v6785_v44, %v1484_v39  ;;  %v6843_v51 = vrot.slane %v6785_v44, %v1488_v17  ;;  %v11852_v14 = vunpack.c.h.bf16 %v6540_v59 }
 0x10c   :  { %11838 = vst [vmem:[#allocation352_spill] sm:$0xff] %v6800_v15  ;;  %11839 = vst [vmem:[#allocation353_spill] sm:$0xff] %v6810_v49  ;;  %v6852_v41 = vrot.slane %v6785_v44, %v1492_v47  ;;  %v11853_v39 = vunpack.c.l.bf16 %v6545_v28  ;;  %v11854_v17 = vunpack.c.h.bf16 %v6545_v28  ;;  %v11858_v47 = vunpack.c.h.bf16 %v6555_v61 }
 0x10d   :  { %11841 = vst [vmem:[#allocation354_spill] sm:$0xff] %v6825_v25  ;;  %11843 = vst [vmem:[#allocation355_spill] sm:$0xff] %v6830_v20  ;;  %v11860_v28 = vunpack.c.l.bf16 %v6562_v27 }
 0x10e   :  { %11844 = vst [vmem:[#allocation356_spill] sm:$0xff] %v6834_v19  ;;  %11845 = vst [vmem:[#allocation357_spill] sm:$0xff] %v6837_v18 }
 0x10f   :  { %11846 = vst [vmem:[#allocation358_spill] sm:$0xff] %v6840_v53  ;;  %11847 = vst [vmem:[#allocation359_spill] sm:$0xff] %v6843_v51  ;;  %v11863_v53 = vunpack.c.h.bf16 %v6567_v1 }
 0x110   :  { %11851 = vst [vmem:[#allocation360_spill] sm:$0xff] %v6852_v41  ;;  %v11861_v41 = vunpack.c.h.bf16 %v6562_v27 }
 0x173   :  { %v1219_v50 = vpop.permute.xlu1 %1218  ;;  %v1209_v21 = vpop.permute.xlu0 %1208 }
 0x174   :  { %v1263_v16 = vmul.f32 %v1219_v50, %v11848_v24  ;;  %v1264_v52 = vmul.f32 %v1219_v50, %v11849_v56  ;;  %v1265_v23 = vmul.f32 %v1219_v50, %v11850_v54  ;;  %v1266_v22 = vmul.f32 %v1219_v50, %v11852_v14 }
 0x175   :  { %v1267_v57 = vmul.f32 %v1219_v50, %v11853_v39  ;;  %v1268_v55 = vmul.f32 %v1219_v50, %v11854_v17  ;;  %v11855_v24 = vunpack.c.l.bf16 %v6550_v58  ;;  %v11856_v56 = vunpack.c.h.bf16 %v6550_v58 }
 0x176   :  { %v11857_v54 = vunpack.c.l.bf16 %v6555_v61  ;;  %v6870_v59 = vmul.f32 %v1219_v50, %v11858_v47  ;;  %v11859_v14 = vunpack.c.h.bf16 %v6586_v0  ;;  %v1241_v17 = vmul.f32 %v1209_v21, %v11860_v28 }
 0x177   :  { %v1269_v43 = vmul.f32 %v1219_v50, %v11855_v24  ;;  %v1270_v26 = vmul.f32 %v1219_v50, %v11856_v56  ;;  %v1242_v24 = vmul.f32 %v1209_v21, %v11861_v41  ;;  %v11862_v58 = vunpack.c.l.bf16 %v6567_v1  ;;  %v1224_v18 = vpop.permute.xlu1 %1223  ;;  %v1214_v44 = vpop.permute.xlu0 %1213 }
 0x178   :  { %v6866_v51 = vmul.f32 %v1219_v50, %v11857_v54  ;;  %v1273_v39 = vmul.f32 %v1219_v50, %v11859_v14  ;;  %v1244_v54 = vmul.f32 %v1209_v21, %v11863_v53  ;;  %v11864_v47 = vunpack.c.l.bf16 %v6576_v29 }
 0x179   :  { %v1243_v56 = vmul.f32 %v1209_v21, %v11862_v58  ;;  %v11865_v50 = vunpack.c.h.bf16 %v6576_v29  ;;  %v11866_v28 = vunpack.c.l.bf16 %v6581_v63  ;;  %v11867_v41 = vunpack.c.h.bf16 %v6581_v63 }
 0x17a   :  { %v6883_v61 = vsel %vm1438_vm0, %v1273_v39, 0.0  ;;  %v1245_v19 = vmul.f32 %v1209_v21, %v11864_v47  ;;  %v11868_v58 = vunpack.c.l.bf16 %v6595_v33  ;;  %v11869_v53 = vunpack.c.h.bf16 %v6595_v33 }
 0x17b   :  { %v1246_v14 = vmul.f32 %v1209_v21, %v11865_v50  ;;  %v1247_v27 = vmul.f32 %v1209_v21, %v11866_v28  ;;  %v1248_v20 = vmul.f32 %v1209_v21, %v11867_v41  ;;  %v11870_v39 = vunpack.c.l.bf16 %v6586_v0  ;;  %v1234_v45 = vpop.permute.xlu1 %1233 }
 0x17c   :  { %v1249_v1 = vmul.f32 %v1209_v21, %v11868_v58  ;;  %v1250_v25 = vmul.f32 %v1209_v21, %v11869_v53  ;;  %v11871_v47 = vunpack.c.l.bf16 %v6604_v30  ;;  %v11873_v50 = vunpack.c.h.bf16 %v6604_v30 }
 0x17d   :  { %v1251_v46 = vmul.f32 %v1209_v21, %v11870_v39  ;;  %v11875_v63 = vunpack.c.l.bf16 %v6609_v62  ;;  %v11877_v58 = vunpack.c.h.bf16 %v6609_v62  ;;  %v11879_v21 = vunpack.c.l.bf16 %v6618_v36 }
 0x17e   :  { %v6901_v29 = vmul.f32 %v1224_v18, %v11871_v47  ;;  %v6905_v28 = vmul.f32 %v1224_v18, %v11873_v50  ;;  %v11881_v39 = vunpack.c.h.bf16 %v6618_v36  ;;  %v11883_v30 = vunpack.c.l.bf16 %v6623_v32 }
 0x17f   :  { %v6909_v41 = vmul.f32 %v1224_v18, %v11875_v63  ;;  %v6913_v33 = vmul.f32 %v1224_v18, %v11877_v58  ;;  %v1439_v0 = vsel %vm1438_vm0, %v1251_v46, 0.0  ;;  %v6918_v53 = vmul.f32 %v1224_v18, %v11879_v21 }
 0x180   :  { %11872 = vst [vmem:[#allocation361_spill] sm:$0xff] %v6901_v29  ;;  %11874 = vst [vmem:[#allocation362_spill] sm:$0xff] %v6905_v28  ;;  %v6922_v47 = vmul.f32 %v1224_v18, %v11881_v39  ;;  %v6926_v50 = vmul.f32 %v1224_v18, %v11883_v30  ;;  %v11885_v63 = vunpack.c.h.bf16 %v6623_v32  ;;  %v11887_v62 = vunpack.c.l.bf16 %v6632_v4 }
 0x181   :  { %11876 = vst [vmem:[#allocation363_spill] sm:$0xff] %v6909_v41  ;;  %11878 = vst [vmem:[#allocation364_spill] sm:$0xff] %v6913_v33  ;;  %v11889_v46 = vunpack.c.h.bf16 %v6637_v3  ;;  %v11891_v39 = vunpack.c.h.bf16 %v6642_v34  ;;  %v11892_v30 = vunpack.c.l.bf16 %v6651_v37  ;;  %v11893_v32 = vunpack.c.h.bf16 %v6651_v37 }
 0x182   :  { %11880 = vst [vmem:[#allocation365_spill] sm:$0xff] %v6918_v53  ;;  %11882 = vst [vmem:[#allocation366_spill] sm:$0xff] %v6922_v47  ;;  %v6930_v41 = vmul.f32 %v1224_v18, %v11885_v63  ;;  %v6934_v58 = vmul.f32 %v1224_v18, %v11887_v62  ;;  %v11890_v53 = vunpack.c.l.bf16 %v6642_v34  ;;  %v11895_v62 = vunpack.c.h.bf16 %v6632_v4 }
 0x183   :  { %11884 = vst [vmem:[#allocation367_spill] sm:$0xff] %v6926_v50  ;;  %v1284_v21 = vmul.f32 %v1224_v18, %v11889_v46  ;;  %v1253_v47 = vmul.f32 %v1214_v44, %v11891_v39  ;;  %v1254_v50 = vmul.f32 %v1214_v44, %v11892_v30  ;;  %v1255_v63 = vmul.f32 %v1214_v44, %v11893_v32 }
 0x184   :  { %11886 = vst [vmem:[#allocation368_spill] sm:$0xff] %v6930_v41  ;;  %11888 = vst [vmem:[#allocation369_spill] sm:$0xff] %v6934_v58  ;;  %v1252_v36 = vmul.f32 %v1214_v44, %v11890_v53  ;;  %v11894_v41 = vunpack.c.l.bf16 %v6656_v35  ;;  %v6950_v58 = vmul.f32 %v1224_v18, %v11895_v62  ;;  %v11897_v46 = vunpack.c.h.bf16 %v6656_v35 }
 0x185   :  { %v11898_v53 = vunpack.c.l.bf16 %v6665_v2  ;;  %v11899_v39 = vunpack.c.h.bf16 %v6665_v2  ;;  %v11900_v30 = vunpack.c.l.bf16 %v6673_v9  ;;  %v11901_v32 = vunpack.c.h.bf16 %v6673_v9 }
 0x186   :  { %v1256_v33 = vmul.f32 %v1214_v44, %v11894_v41  ;;  %11896 = vst [vmem:[#allocation370_spill] sm:$0xff] %v6950_v58  ;;  %v1257_v28 = vmul.f32 %v1214_v44, %v11897_v46  ;;  %v11902_v41 = vunpack.c.l.bf16 %v6637_v3  ;;  %v1318_v18 = vadd.f32 %v1252_v36, %v1241_v17 }
 0x187   :  { %v1258_v34 = vmul.f32 %v1214_v44, %v11898_v53  ;;  %v1259_v29 = vmul.f32 %v1214_v44, %v11899_v39  ;;  %v1260_v37 = vmul.f32 %v1214_v44, %v11900_v30  ;;  %v1261_v49 = vmul.f32 %v1214_v44, %v11901_v32  ;;  %v1229_v32 = vpop.permute.xlu0 %1228 }
 0x188   :  { %v1262_v4 = vmul.f32 %v1214_v44, %v11902_v41  ;;  %v1330_v62 = vadd.f32 %v1253_v47, %v1242_v24  ;;  %v1342_v58 = vadd.f32 %v1254_v50, %v1243_v56  ;;  %v1354_v35 = vadd.f32 %v1255_v63, %v1244_v54 }
 0x189   :  { %v1366_v46 = vadd.f32 %v1256_v33, %v1245_v19  ;;  %v6965_v15 = vsel %vm1438_vm0, %v1284_v21, 0.0  ;;  %v1378_v53 = vadd.f32 %v1257_v28, %v1246_v14  ;;  %v1390_v2 = vadd.f32 %v1258_v34, %v1247_v27 }
 0x18a   :  { %v1402_v39 = vadd.f32 %v1259_v29, %v1248_v20  ;;  %v1319_v48 = vadd.f32 %v1318_v18, %v1263_v16  ;;  %v1331_v30 = vadd.f32 %v1330_v62, %v1264_v52  ;;  %v1343_v11 = vadd.f32 %v1342_v58, %v1265_v23 }
 0x18b   :  { %v1355_v9 = vadd.f32 %v1354_v35, %v1266_v22  ;;  %v1367_v13 = vadd.f32 %v1366_v46, %v1267_v57  ;;  %v1379_v3 = vadd.f32 %v1378_v53, %v1268_v55  ;;  %v1391_v44 = vadd.f32 %v1390_v2, %v1269_v43  ;;  %v7007_v63 = vpop.permute.xlu0 %1238 }
 0x18c   :  { %v1414_v17 = vadd.f32 %v1260_v37, %v1249_v1  ;;  %v1403_v24 = vadd.f32 %v1402_v39, %v1270_v26  ;;  %v1426_v56 = vadd.f32 %v1261_v49, %v1250_v25  ;;  %v1440_v19 = vsel %vm1438_vm0, %v1262_v4, 0.0 }
 0x18d   :  { %v11903_v54 = vunpack.c.l.bf16 %v6679_v5  ;;  %v1441_v20 = vadd.f32 %v1440_v19, %v1439_v0  ;;  %v11904_v52 = vunpack.c.h.bf16 %v6679_v5  ;;  %v11905_v22 = vunpack.c.l.bf16 %v6688_v7  ;;  %v11927_v19 = vld [vmem:[#allocation346_spill] sm:$0xff] }
 0x18e   :  { %v6971_v14 = vadd.f32 %v1414_v17, %v6866_v51  ;;  %v6978_v43 = vadd.f32 %v1426_v56, %v6870_v59  ;;  %v11906_v49 = vunpack.c.h.bf16 %v6688_v7  ;;  %v11907_v25 = vunpack.c.l.bf16 %v6693_v31 }
 0x18f   :  { %v1296_v33 = vmul.f32 %v1234_v45, %v11903_v54  ;;  %v1297_v23 = vmul.f32 %v1234_v45, %v11904_v52  ;;  %v1298_v57 = vmul.f32 %v1234_v45, %v11905_v22  ;;  %v11908_v26 = vunpack.c.h.bf16 %v6693_v31  ;;  %v11930_v22 = vld [vmem:[#allocation347_spill] sm:$0xff] }
 0x190   :  { %v1299_v55 = vmul.f32 %v1234_v45, %v11906_v49  ;;  %v1300_v16 = vmul.f32 %v1234_v45, %v11907_v25  ;;  %v6987_v27 = vadd.f32 %v6883_v61, %v1441_v20  ;;  %v11909_v5 = vunpack.c.l.bf16 %v6701_v38 }
 0x191   :  { %v1301_v51 = vmul.f32 %v1234_v45, %v11908_v26  ;;  %v11910_v29 = vunpack.c.h.bf16 %v6701_v38  ;;  %v11911_v59 = vunpack.c.l.bf16 %v6706_v40  ;;  %v11912_v7 = vunpack.c.h.bf16 %v6706_v40 }
 0x192   :  { %v1302_v1 = vmul.f32 %v1234_v45, %v11909_v5  ;;  %v11914_v31 = vunpack.c.h.bf16 %v6714_v8  ;;  %v11915_v61 = vunpack.c.l.bf16 %v6720_v12  ;;  %v11916_v21 = vunpack.c.h.bf16 %v6720_v12  ;;  %v11933_v5 = vld [vmem:[#allocation348_spill] sm:$0xff] }
 0x193   :  { %v1303_v28 = vmul.f32 %v1234_v45, %v11910_v29  ;;  %v6995_v0 = vmul.f32 %v1234_v45, %v11911_v59  ;;  %v6999_v47 = vmul.f32 %v1234_v45, %v11912_v7  ;;  %v11917_v38 = vunpack.c.l.bf16 %v6729_v42 }
 0x194   :  { %v1306_v50 = vmul.f32 %v1234_v45, %v11914_v31  ;;  %v1285_v58 = vmul.f32 %v1229_v32, %v11915_v61  ;;  %v1286_v36 = vmul.f32 %v1229_v32, %v11916_v21  ;;  %v11918_v37 = vunpack.c.h.bf16 %v6729_v42  ;;  %v11936_v31 = vld [vmem:[#allocation351_spill] sm:$0xff] }
 0x195   :  { %11913 = vst [vmem:[#allocation371_spill] sm:$0xff] %v6999_v47  ;;  %v1287_v34 = vmul.f32 %v1229_v32, %v11917_v38  ;;  %v11919_v40 = vunpack.c.l.bf16 %v6734_v60  ;;  %v11920_v18 = vunpack.c.h.bf16 %v6734_v60  ;;  %v11922_v12 = vunpack.c.l.bf16 %v6743_v6 }
 0x196   :  { %v1288_v41 = vmul.f32 %v1229_v32, %v11918_v37  ;;  %v7018_v62 = vsel %vm1438_vm0, %v1306_v50, 0.0  ;;  %v11923_v46 = vunpack.c.h.bf16 %v6743_v6  ;;  %v11924_v2 = vunpack.c.l.bf16 %v6748_v10  ;;  %v11939_v37 = vld [vmem:[#allocation352_spill] sm:$0xff] }
 0x197   :  { %v1289_v4 = vmul.f32 %v1229_v32, %v11919_v40  ;;  %v1290_v45 = vmul.f32 %v1229_v32, %v11920_v18  ;;  %11921 = vst [vmem:[#allocation372_spill] sm:$0xff] %v7018_v62  ;;  %v1291_v35 = vmul.f32 %v1229_v32, %v11922_v12  ;;  %v11925_v42 = vunpack.c.h.bf16 %v6748_v10  ;;  %v11942_v12 = vld [vmem:[#allocation353_spill] sm:$0xff] }
 0x198   :  { %v1292_v53 = vmul.f32 %v1229_v32, %v11923_v46  ;;  %v7026_v39 = vmul.f32 %v1229_v32, %v11924_v2  ;;  %v11926_v60 = vunpack.c.l.bf16 %v6714_v8  ;;  %v11928_v54 = vunpack.c.l.bf16 %v11927_v19 }
 0x199   :  { %v7030_v17 = vmul.f32 %v1229_v32, %v11925_v42  ;;  %v11929_v52 = vunpack.c.h.bf16 %v11927_v19  ;;  %v11931_v49 = vunpack.c.l.bf16 %v11930_v22  ;;  %v11932_v26 = vunpack.c.h.bf16 %v11930_v22  ;;  %v11944_v42 = vld [vmem:[#allocation361_spill] sm:$0xff]  ;;  %v11947_v22 = vld [vmem:[#allocation364_spill] sm:$0xff] }
 0x19a   :  { %v1295_v56 = vmul.f32 %v1229_v32, %v11926_v60  ;;  %v1307_v20 = vmul.f32 %v7007_v63, %v11928_v54  ;;  %v11934_v29 = vunpack.c.l.bf16 %v11933_v5  ;;  %v11935_v32 = vunpack.c.h.bf16 %v11933_v5  ;;  %v11946_v54 = vld [vmem:[#allocation363_spill] sm:$0xff] }
 0x19b   :  { %v1308_v6 = vmul.f32 %v7007_v63, %v11929_v52  ;;  %v1309_v25 = vmul.f32 %v7007_v63, %v11931_v49  ;;  %v1310_v10 = vmul.f32 %v7007_v63, %v11932_v26  ;;  %v11937_v50 = vunpack.c.l.bf16 %v11936_v31  ;;  %v11948_v26 = vld [vmem:[#allocation365_spill] sm:$0xff] }
 0x19c   :  { %v1311_v8 = vmul.f32 %v7007_v63, %v11934_v29  ;;  %v1312_v59 = vmul.f32 %v7007_v63, %v11935_v32  ;;  %v7053_v7 = vsel %vm1438_vm0, %v1295_v56, 0.0  ;;  %v11938_v21 = vunpack.c.h.bf16 %v11936_v31  ;;  %v11945_v56 = vld [vmem:[#allocation362_spill] sm:$0xff]  ;;  %v11950_v31 = vld [vmem:[#allocation367_spill] sm:$0xff] }
 0x19d   :  { %v1313_v61 = vmul.f32 %v7007_v63, %v11937_v50  ;;  %v11940_v40 = vunpack.c.l.bf16 %v11939_v37  ;;  %v11943_v46 = vunpack.c.l.bf16 %v11942_v12  ;;  %v1320_v60 = vadd.f32 %v1319_v48, %v11944_v42  ;;  %v11949_v29 = vld [vmem:[#allocation366_spill] sm:$0xff] }
 0x19e   :  { %v1314_v38 = vmul.f32 %v7007_v63, %v11938_v21  ;;  %v1332_v19 = vadd.f32 %v1331_v30, %v11945_v56  ;;  %v1344_v52 = vadd.f32 %v1343_v11, %v11946_v54  ;;  %v1356_v49 = vadd.f32 %v1355_v9, %v11947_v22 }
 0x19f   :  { %v7064_v18 = vmul.f32 %v7007_v63, %v11940_v40  ;;  %v7069_v2 = vmul.f32 %v7007_v63, %v11943_v46  ;;  %v1368_v5 = vadd.f32 %v1367_v13, %v11948_v26  ;;  %v1380_v32 = vadd.f32 %v1379_v3, %v11949_v29 }
 0x1a0   :  { %v1392_v50 = vadd.f32 %v1391_v44, %v11950_v31  ;;  %v1321_v21 = vadd.f32 %v1320_v60, %v1285_v58  ;;  %v1333_v40 = vadd.f32 %v1332_v19, %v1286_v36  ;;  %v1345_v12 = vadd.f32 %v1344_v52, %v1287_v34 }
 0x1a1   :  { %11941 = vst [vmem:[#allocation346_spill] sm:$0xff] %v7064_v18  ;;  %v11951_v18 = vld [vmem:[#allocation368_spill] sm:$0xff]  ;;  %v1357_v62 = vadd.f32 %v1356_v49, %v1288_v41  ;;  %v1369_v47 = vadd.f32 %v1368_v5, %v1289_v4  ;;  %v1381_v48 = vadd.f32 %v1380_v32, %v1290_v45 }
 0x1a2   :  { %v1404_v46 = vadd.f32 %v1403_v24, %v11951_v18  ;;  %v1393_v42 = vadd.f32 %v1392_v50, %v1291_v35  ;;  %v1322_v30 = vadd.f32 %v1321_v21, %v1296_v33  ;;  %v1334_v56 = vadd.f32 %v1333_v40, %v1297_v23 }
 0x1a3   :  { %v1346_v11 = vadd.f32 %v1345_v12, %v1298_v57  ;;  %v1358_v9 = vadd.f32 %v1357_v62, %v1299_v55  ;;  %v1370_v22 = vadd.f32 %v1369_v47, %v1300_v16  ;;  %v1382_v13 = vadd.f32 %v1381_v48, %v1301_v51 }
 0x1a4   :  { %v1405_v54 = vadd.f32 %v1404_v46, %v1292_v53  ;;  %v1394_v26 = vadd.f32 %v1393_v42, %v1302_v1  ;;  %v1323_v3 = vadd.f32 %v1322_v30, %v1307_v20  ;;  %v1335_v29 = vadd.f32 %v1334_v56, %v1308_v6 }
 0x1a5   :  { %v1347_v44 = vadd.f32 %v1346_v11, %v1309_v25  ;;  %v1359_v36 = vadd.f32 %v1358_v9, %v1310_v10  ;;  %v1371_v34 = vadd.f32 %v1370_v22, %v1311_v8  ;;  %v1383_v60 = vadd.f32 %v1382_v13, %v1312_v59 }
 0x1a6   :  { %v1406_v58 = vadd.f32 %v1405_v54, %v1303_v28  ;;  %v1395_v24 = vadd.f32 %v1394_v26, %v1313_v61  ;;  %v1324_v41 = vrot.slane %v1323_v3, 4  ;;  %v1336_v4 = vrot.slane %v1335_v29, 4 }
 0x1a7   :  { %v1348_v45 = vrot.slane %v1347_v44, 4  ;;  %v1360_v33 = vrot.slane %v1359_v36, 4  ;;  %v1372_v23 = vrot.slane %v1371_v34, 4  ;;  %v1384_v57 = vrot.slane %v1383_v60, 4 }
 0x1a8   :  { %v1407_v35 = vadd.f32 %v1406_v58, %v1314_v38  ;;  %v1396_v53 = vrot.slane %v1395_v24, 4  ;;  %v1325_v55 = vadd.f32 %v1324_v41, %v1323_v3  ;;  %v1337_v16 = vadd.f32 %v1336_v4, %v1335_v29 }
 0x1a9   :  { %v1349_v51 = vadd.f32 %v1348_v45, %v1347_v44  ;;  %v1361_v47 = vadd.f32 %v1360_v33, %v1359_v36  ;;  %v1373_v62 = vadd.f32 %v1372_v23, %v1371_v34  ;;  %v1385_v20 = vadd.f32 %v1384_v57, %v1383_v60  ;;  %v11953_v34 = vld [vmem:[#allocation369_spill] sm:$0xff]  ;;  %v11956_v33 = vld [vmem:[#allocation350_spill] sm:$0xff] }
 0x1aa   :  { %v1408_v1 = vrot.slane %v1407_v35, 4  ;;  %v1397_v28 = vadd.f32 %v1396_v53, %v1395_v24  ;;  %v1326_v6 = vrot.slane %v1325_v55, 2  ;;  %v1338_v25 = vrot.slane %v1337_v16, 2  ;;  %v11954_v24 = vld [vmem:[#allocation370_spill] sm:$0xff] }
 0x1ab   :  { %v1350_v10 = vrot.slane %v1349_v51, 2  ;;  %v1362_v59 = vrot.slane %v1361_v47, 2  ;;  %v1374_v61 = vrot.slane %v1373_v62, 2  ;;  %v1386_v18 = vrot.slane %v1385_v20, 2  ;;  %v11958_v53 = vld [vmem:[#allocation354_spill] sm:$0xff] }
 0x1ac   :  { %v1409_v8 = vadd.f32 %v1408_v1, %v1407_v35  ;;  %v1398_v38 = vrot.slane %v1397_v28, 2  ;;  %v1327_v19 = vadd.f32 %v1326_v6, %v1325_v55  ;;  %v1339_v52 = vadd.f32 %v1338_v25, %v1337_v16  ;;  %v11955_v35 = vld [vmem:[#allocation349_spill] sm:$0xff]  ;;  %v11959_v16 = vld [vmem:[#allocation355_spill] sm:$0xff]  ;;  %v11960_v1 = vld [vmem:[#allocation356_spill] sm:$0xff] }
 0x1ad   :  { %v1351_v49 = vadd.f32 %v1350_v10, %v1349_v51  ;;  %v1363_v32 = vadd.f32 %v1362_v59, %v1361_v47  ;;  %v1375_v31 = vadd.f32 %v1374_v61, %v1373_v62  ;;  %v1387_v50 = vadd.f32 %v1386_v18, %v1385_v20  ;;  %v11962_v62 = vld [vmem:[#allocation358_spill] sm:$0xff]  ;;  %v11964_v10 = vld [vmem:[#allocation371_spill] sm:$0xff]  ;;  %v11966_v61 = vld [vmem:[#allocation360_spill] sm:$0xff] }
 0x1ae   :  { %v1410_v5 = vrot.slane %v1409_v8, 2  ;;  %v1399_v21 = vadd.f32 %v1398_v38, %v1397_v28  ;;  %v1328_v40 = vrot.slane %v1327_v19, 1  ;;  %v1340_v12 = vrot.slane %v1339_v52, 1  ;;  %v11963_v28 = vld [vmem:[#allocation359_spill] sm:$0xff] }
 0x1af   :  { %v1352_v46 = vrot.slane %v1351_v49, 1  ;;  %v1364_v42 = vrot.slane %v1363_v32, 1  ;;  %v1376_v30 = vrot.slane %v1375_v31, 1  ;;  %v1388_v56 = vrot.slane %v1387_v50, 1 }
 0x1b0   :  { %v1411_v48 = vadd.f32 %v1410_v5, %v1409_v8  ;;  %v1400_v11 = vrot.slane %v1399_v21, 1  ;;  %v1329_v54 = vadd.f32 %v1328_v40, %v1327_v19  ;;  %v1341_v9 = vadd.f32 %v1340_v12, %v1339_v52  ;;  %v11967_v52 = vld [vmem:[#allocation346_spill] sm:$0xff] }
 0x1b1   :  { %v1353_v22 = vadd.f32 %v1352_v46, %v1351_v49  ;;  %v1365_v26 = vadd.f32 %v1364_v42, %v1363_v32  ;;  %v1377_v3 = vadd.f32 %v1376_v30, %v1375_v31  ;;  %v1389_v29 = vadd.f32 %v1388_v56, %v1387_v50  ;;  %v1459_v30 = vld [vmem:[%s10972_s2 + $0x8] sm:$0x7] }
 0x1b2   :  { %v1412_v13 = vrot.slane %v1411_v48, 1  ;;  %v1401_v44 = vadd.f32 %v1400_v11, %v1399_v21  ;;  %v11952_v58 = vunpack.c.h.bf16 %v11939_v37  ;;  %v1416_v60 = vadd.f32 %v6971_v14, %v11953_v34 }
 0x1b3   :  { %v1428_v41 = vadd.f32 %v6978_v43, %v11954_v24  ;;  %v1445_v4 = vadd.f32 %v6965_v15, %v6987_v27  ;;  %v11957_v23 = vrot.slane %v11955_v35, %v11956_v33  ;;  %v1518_v55 = vadd.f32 %v11958_v53, %v1341_v9  ;;  %v11961_v27 = vld [vmem:[#allocation357_spill] sm:$0xff] }
 0x1b4   :  { %v1316_v36 = vmul.f32 %v7007_v63, %v11952_v58  ;;  %v1413_v45 = vadd.f32 %v1412_v13, %v1411_v48  ;;  %v1519_v37 = vadd.f32 %v11959_v16, %v1353_v22  ;;  %v1417_v63 = vadd.f32 %v1416_v60, %v7026_v39  ;;  %v11965_v39 = vld [vmem:[#allocation372_spill] sm:$0xff] }
 0x1b5   :  { %v1517_v57 = vadd.f32 %v11957_v23, %v1329_v54  ;;  %v1429_v51 = vadd.f32 %v1428_v41, %v7030_v17  ;;  %v1447_v14 = vadd.f32 %v7053_v7, %v1445_v4  ;;  %v1520_v43 = vadd.f32 %v11960_v1, %v1365_v26 }
 0x1b6   :  { %v1450_v15 = vsel %vm1438_vm0, %v7069_v2, 0.0  ;;  %v1521_v47 = vadd.f32 %v11961_v27, %v1377_v3  ;;  %v1522_v20 = vadd.f32 %v11962_v62, %v1389_v29  ;;  %v1523_v6 = vadd.f32 %v11963_v28, %v1401_v44  ;;  %v11968_v3 = vld [vmem:[#allocation345_spill] sm:$0xff] }
 0x1b7   :  { %v1418_v25 = vadd.f32 %v1417_v63, %v6995_v0  ;;  %v1430_v8 = vadd.f32 %v1429_v51, %v11964_v10  ;;  %v1449_v59 = vadd.f32 %v11965_v39, %v1447_v14  ;;  %v4258_v17 = vmul.f32 -1.442695, %v1517_v57 }
 0x1b8   :  { %v1524_v7 = vadd.f32 %v11966_v61, %v1413_v45  ;;  %v4259_v18 = vmul.f32 -1.442695, %v1518_v55  ;;  %v4260_v38 = vmul.f32 -1.442695, %v1519_v37  ;;  %v4261_v19 = vmul.f32 -1.442695, %v1520_v43 }
 0x1b9   :  { %v1419_v2 = vadd.f32 %v1418_v25, %v11967_v52  ;;  %v1431_v49 = vadd.f32 %v1430_v8, %v1316_v36  ;;  %v1451_v5 = vadd.f32 %v1450_v15, %v1449_v59  ;;  %4288 = vpow2.f32 %v4258_v17 }
 0x1ba   :  { %4290 = vpow2.f32 %v4259_v18  ;;  %v4262_v32 = vmul.f32 -1.442695, %v1521_v47  ;;  %v4263_v31 = vmul.f32 -1.442695, %v1522_v20  ;;  %v4264_v50 = vmul.f32 -1.442695, %v1523_v6 }
 0x1bb   :  { %v1420_v0 = vrot.slane %v1419_v2, 4  ;;  %v1432_v21 = vrot.slane %v1431_v49, 4  ;;  %v1452_v40 = vrot.slane %v1451_v5, 4  ;;  %4292 = vpow2.f32 %v4260_v38 }
 0x1bc   :  { %4294 = vpow2.f32 %v4261_v19  ;;  %v4265_v12 = vmul.f32 -1.442695, %v1524_v7  ;;  %v1497_v26 = vrot.slane %v1459_v30, %v11956_v33  ;;  %v11969_v29 = vsub.s32 1, %v11968_v3 }
 0x1bd   :  { %v1421_v46 = vadd.f32 %v1420_v0, %v1419_v2  ;;  %v1433_v48 = vadd.f32 %v1432_v21, %v1431_v49  ;;  %v1453_v42 = vadd.f32 %v1452_v40, %v1451_v5  ;;  %4296 = vpow2.f32 %v4262_v32 }
 0x1be   :  { %4298 = vpow2.f32 %v4263_v31  ;;  %v1501_v44 = vrot.slane %v1459_v30, %v11969_v29  ;;  %v11970_v58 = vsub.s32 2, %v11968_v3 }
 0x1bf   :  { %v1422_v56 = vrot.slane %v1421_v46, 2  ;;  %v1434_v11 = vrot.slane %v1433_v48, 2  ;;  %v1454_v54 = vrot.slane %v1453_v42, 2  ;;  %4300 = vpow2.f32 %v4264_v50 }
 0x1c0   :  { %4302 = vpow2.f32 %v4265_v12  ;;  %v1505_v36 = vrot.slane %v1459_v30, %v11970_v58 }
 0x1c1   :  { %v1423_v9 = vadd.f32 %v1422_v56, %v1421_v46  ;;  %v1435_v22 = vadd.f32 %v1434_v11, %v1433_v48  ;;  %v1455_v13 = vadd.f32 %v1454_v54, %v1453_v42 }
 0x1c3   :  { %v1424_v34 = vrot.slane %v1423_v9, 1  ;;  %v1436_v60 = vrot.slane %v1435_v22, 1  ;;  %v1456_v24 = vrot.slane %v1455_v13, 1 }
 0x1c5   :  { %v1425_v41 = vadd.f32 %v1424_v34, %v1423_v9  ;;  %v1437_v4 = vadd.f32 %v1436_v60, %v1435_v22  ;;  %v1457_v45 = vadd.f32 %v1456_v24, %v1455_v13 }
 0x1c6   :  { %v4289_v35 = vpop.eup %4288 }
 0x1c7   :  { %v4291_v23 = vpop.eup %4290  ;;  %v1525_v57 = vadd.f32 %v1497_v26, %v1425_v41  ;;  %v1526_v53 = vadd.f32 %v1501_v44, %v1437_v4  ;;  %v1527_v55 = vadd.f32 %v1505_v36, %v1457_v45  ;;  %v1561_v16 = vadd.f32 1.0, %v4289_v35 }
 0x1c8   :  { %v4293_v37 = vpop.eup %4292  ;;  %v1562_v63 = vadd.f32 1.0, %v4291_v23 }
 0x1c9   :  { %v4295_v51 = vpop.eup %4294  ;;  %v4266_v14 = vmul.f32 -1.442695, %v1525_v57  ;;  %v4267_v1 = vmul.f32 -1.442695, %v1526_v53  ;;  %v4268_v43 = vmul.f32 -1.442695, %v1527_v55  ;;  %4304 = vrcp.f32 %v1561_v16 }
 0x1ca   :  { %v4297_v15 = vpop.eup %4296  ;;  %v1563_v27 = vadd.f32 1.0, %v4293_v37  ;;  %4306 = vrcp.f32 %v1562_v63  ;;  %v1564_v62 = vadd.f32 1.0, %v4295_v51 }
 0x1cb   :  { %v4299_v47 = vpop.eup %4298  ;;  %4308 = vpow2.f32 %v4266_v14  ;;  %v1565_v28 = vadd.f32 1.0, %v4297_v15 }
 0x1cc   :  { %v4301_v20 = vpop.eup %4300  ;;  %4310 = vpow2.f32 %v4267_v1  ;;  %v1566_v25 = vadd.f32 1.0, %v4299_v47 }
 0x1cd   :  { %v4303_v6 = vpop.eup %4302  ;;  %4312 = vpow2.f32 %v4268_v43  ;;  %v1567_v10 = vadd.f32 1.0, %v4301_v20 }
 0x1ce   :  { %4314 = vrcp.f32 %v1563_v27  ;;  %v1568_v8 = vadd.f32 1.0, %v4303_v6 }
 0x1cf   :  { %4316 = vrcp.f32 %v1564_v62 }
 0x1d0   :  { %4318 = vrcp.f32 %v1565_v28 }
 0x1d1   :  { %4320 = vrcp.f32 %v1566_v25 }
 0x1d2   :  { %4322 = vrcp.f32 %v1567_v10 }
 0x1d3   :  { %4324 = vrcp.f32 %v1568_v8 }
 0x1d6   :  { %v4305_v39 = vpop.eup %4304 }
 0x1d7   :  { %v4307_v59 = vpop.eup %4306 }
 0x1d8   :  { %v4309_v17 = vpop.eup %4308 }
 0x1d9   :  { %v4311_v61 = vpop.eup %4310  ;;  %v1569_v7 = vadd.f32 1.0, %v4309_v17 }
 0x1da   :  { %v4313_v18 = vpop.eup %4312  ;;  %v1570_v38 = vadd.f32 1.0, %v4311_v61 }
 0x1db   :  { %v4315_v19 = vpop.eup %4314  ;;  %v1571_v52 = vadd.f32 1.0, %v4313_v18  ;;  %4326 = vrcp.f32 %v1569_v7 }
 0x1dc   :  { %v4317_v2 = vpop.eup %4316  ;;  %4328 = vrcp.f32 %v1570_v38 }
 0x1dd   :  { %v4319_v49 = vpop.eup %4318  ;;  %4330 = vrcp.f32 %v1571_v52 }
 0x1de   :  { %v4321_v5 = vpop.eup %4320 }
 0x1df   :  { %v4323_v32 = vpop.eup %4322 }
 0x1e0   :  { %v4325_v31 = vpop.eup %4324 }
 0x1e8   :  { %v4327_v50 = vpop.eup %4326 }
 0x1e9   :  { %v4329_v0 = vpop.eup %4328 }
 0x1ea   :  { %v4331_v21 = vpop.eup %4330 }
 0x1eb   :  { %4332 = dma.done.wait [#allocation4], 19712 }
 0x1ec   :  { %4333 = vsyncadd [#allocation4], 4294947584  ;;  %v7116_v40 = vrot.slane %v4305_v39, %v11956_v33  ;;  %v7119_v12 = vrot.slane %v4307_v59, %v11956_v33  ;;  %v7122_v46 = vrot.slane %v4315_v19, %v11956_v33  ;;  %v7125_v48 = vrot.slane %v4317_v2, %v11956_v33  ;;  %v7136_v11 = vld [vmem:[#allocation3] sm:$0xff]  ;;  %v7138_v54 = vld [vmem:[#allocation3 + $0x8] sm:$0xff] }
 0x1ed   :  { %v7128_v42 = vrot.slane %v4319_v49, %v11956_v33  ;;  %v7131_v30 = vrot.slane %v4321_v5, %v11956_v33  ;;  %v7134_v56 = vrot.slane %v4323_v32, %v11956_v33  ;;  %v7140_v9 = vld [vmem:[#allocation3 + $0x10] sm:$0xff]  ;;  %v7143_v22 = vrot.slane %v4325_v31, %v11956_v33  ;;  %v7154_v29 = vld [vmem:[#allocation3 + $0x18] sm:$0xff]  ;;  %v7156_v44 = vld [vmem:[#allocation3 + $0x20] sm:$0xff] }
 0x1ee   :  { %v7146_v13 = vrot.slane %v4327_v50, %v11956_v33  ;;  %v7149_v26 = vrot.slane %v4329_v0, %v11956_v33  ;;  %v7152_v3 = vrot.slane %v4331_v21, %v11956_v33  ;;  %v7158_v58 = vld [vmem:[#allocation3 + $0x28] ss:$44 sps:$4 sm:$0xff]   ;;  %v7164_v41 = vld [vmem:[#allocation3 + $0x2c] sm:$0xff]  ;;  %v7168_v33 = vld [vmem:[#allocation3 + $0x3c] sm:$0xff] }
 0x1ef   :  { %v7166_v4 = vld [vmem:[#allocation3 + $0x34] sm:$0xff]  ;;  %v7174_v53 = vld [vmem:[#allocation3 + $0x44] sm:$0xff]  ;;  %v7176_v55 = vld [vmem:[#allocation3 + $0x4c] sm:$0xff] }
 0x1f0   :  { %v7178_v16 = vld [vmem:[#allocation3 + $0x58] sm:$0xff]  ;;  %v7184_v1 = vld [vmem:[#allocation3 + $0x60] sm:$0xff]  ;;  %v7186_v43 = vld [vmem:[#allocation3 + $0x68] sm:$0xff] }
 0x1f1   :  { %v7192_v20 = vld [vmem:[#allocation3 + $0x70] sm:$0xff]  ;;  %v7194_v28 = vld [vmem:[#allocation3 + $0x78] sm:$0xff]  ;;  %v7200_v39 = vld [vmem:[#allocation3 + $0x80] ss:$44 sps:$4 sm:$0xff]  }
 0x1f2   :  { %v7202_v59 = vld [vmem:[#allocation3 + $0x84] sm:$0xff]  ;;  %v7204_v17 = vld [vmem:[#allocation3 + $0x8c] sm:$0xff]  ;;  %v7210_v19 = vld [vmem:[#allocation3 + $0x94] sm:$0xff] }
 0x1f3   :  { %v7212_v52 = vld [vmem:[#allocation3 + $0x9c] sm:$0xff]  ;;  %v7218_v31 = vld [vmem:[#allocation3 + $0xa4] sm:$0xff]  ;;  %v7224_v18 = vld [vmem:[#allocation3 + $0xb0] sm:$0xff] }
 0x1f4   :  { %v7226_v7 = vld [vmem:[#allocation3 + $0xb8] sm:$0xff]  ;;  %v7232_v61 = vld [vmem:[#allocation3 + $0xc0] sm:$0xff]  ;;  %v7234_v50 = vld [vmem:[#allocation3 + $0xc8] sm:$0xff] }
 0x1f5   :  { %v7240_v10 = vld [vmem:[#allocation3 + $0xd0] sm:$0xff]  ;;  %v7242_v49 = vld [vmem:[#allocation3 + $0xd8] ss:$44 sps:$4 sm:$0xff]   ;;  %v7244_v5 = vld [vmem:[#allocation3 + $0xdc] sm:$0xff] }
 0x1f6   :  { %v7250_v6 = vld [vmem:[#allocation3 + $0xe4] sm:$0xff]  ;;  %v7252_v38 = vld [vmem:[#allocation3 + $0xec] sm:$0xff]  ;;  %v7258_v27 = vld [vmem:[#allocation3 + $0xf4] sm:$0xff] }
 0x1f7   :  { %v7260_v2 = vld [vmem:[#allocation3 + $0xfc] sm:$0xff]  ;;  %v7266_v14 = vld [vmem:[#allocation3 + $0x108] sm:$0xff]  ;;  %v7272_v51 = vld [vmem:[#allocation3 + $0x110] sm:$0xff] }
 0x1f8   :  { %11971 = vst [vmem:[#allocation347_spill] sm:$0xff] %v7260_v2  ;;  %11972 = vst [vmem:[#allocation348_spill] sm:$0xff] %v7266_v14  ;;  %v7274_v63 = vld [vmem:[#allocation3 + $0x118] sm:$0xff]  ;;  %v7280_v37 = vld [vmem:[#allocation3 + $0x120] sm:$0xff] }
 0x1f9   :  { %11973 = vst [vmem:[#allocation351_spill] sm:$0xff] %v7272_v51  ;;  %11974 = vst [vmem:[#allocation352_spill] sm:$0xff] %v7274_v63  ;;  %v7282_v0 = vld [vmem:[#allocation3 + $0x128] sm:$0xff]  ;;  %v7288_v23 = vld [vmem:[#allocation3 + $0x130] ss:$44 sps:$4 sm:$0xff]  }
 0x1fa   :  { %11975 = vst [vmem:[#allocation353_spill] sm:$0xff] %v7280_v37  ;;  %11976 = vst [vmem:[#allocation361_spill] sm:$0xff] %v7282_v0  ;;  %v7290_v21 = vld [vmem:[#allocation3 + $0x134] sm:$0xff]  ;;  %v7292_v32 = vld [vmem:[#allocation3 + $0x13c] sm:$0xff] }
 0x1fb   :  { %11977 = vst [vmem:[#allocation362_spill] sm:$0xff] %v7288_v23  ;;  %11978 = vst [vmem:[#allocation363_spill] sm:$0xff] %v7290_v21  ;;  %v7298_v45 = vld [vmem:[#allocation3 + $0x144] sm:$0xff]  ;;  %v7300_v8 = vld [vmem:[#allocation3 + $0x14c] sm:$0xff] }
 0x1fc   :  { %11979 = vst [vmem:[#allocation364_spill] sm:$0xff] %v7292_v32  ;;  %11980 = vst [vmem:[#allocation365_spill] sm:$0xff] %v7298_v45  ;;  %v7306_v34 = vld [vmem:[#allocation3 + $0x154] sm:$0xff]  ;;  %v7312_v36 = vld [vmem:[#allocation3 + $0x160] sm:$0xff] }
 0x1fd   :  { %11981 = vst [vmem:[#allocation366_spill] sm:$0xff] %v7300_v8  ;;  %11982 = vst [vmem:[#allocation367_spill] sm:$0xff] %v7306_v34  ;;  %v7314_v14 = vld [vmem:[#allocation3 + $0x168] sm:$0xff]  ;;  %v7320_v63 = vld [vmem:[#allocation3 + $0x170] sm:$0xff] }
 0x1fe   :  { %11983 = vst [vmem:[#allocation368_spill] sm:$0xff] %v7312_v36  ;;  %11984 = vst [vmem:[#allocation369_spill] sm:$0xff] %v7314_v14  ;;  %v7322_v15 = vld [vmem:[#allocation3 + $0x178] sm:$0xff]  ;;  %v7328_v37 = vld [vmem:[#allocation3 + $0x180] sm:$0xff] }
 0x1ff   :  { %11985 = vst [vmem:[#allocation370_spill] sm:$0xff] %v7320_v63  ;;  %11986 = vst [vmem:[#allocation349_spill] sm:$0xff] %v7322_v15  ;;  %v7330_v62 = vld [vmem:[#allocation3 + $0x188] ss:$44 sps:$4 sm:$0xff]   ;;  %v7332_v24 = vld [vmem:[#allocation3 + $0x18c] sm:$0xff] }
 0x200   :  { %11987 = vst [vmem:[#allocation350_spill] sm:$0xff] %v7328_v37  ;;  %11988 = vst [vmem:[#allocation354_spill] sm:$0xff] %v7330_v62  ;;  %v7338_v32 = vld [vmem:[#allocation3 + $0x194] sm:$0xff]  ;;  %v7340_v25 = vld [vmem:[#allocation3 + $0x19c] sm:$0xff] }
 0x201   :  { %11989 = vst [vmem:[#allocation355_spill] sm:$0xff] %v7332_v24  ;;  %11990 = vst [vmem:[#allocation356_spill] sm:$0xff] %v7338_v32  ;;  %v7346_v2 = vld [vmem:[#allocation3 + $0x1a4] sm:$0xff]  ;;  %v7348_v57 = vld [vmem:[#allocation3 + $0x1ac] sm:$0xff] }
 0x202   :  { %11991 = vst [vmem:[#allocation357_spill] sm:$0xff] %v7340_v25  ;;  %11992 = vst [vmem:[#allocation358_spill] sm:$0xff] %v7346_v2  ;;  %v7354_v8 = vld [vmem:[#allocation3 + $0x1b8] sm:$0xff]  ;;  %v7360_v14 = vld [vmem:[#allocation3 + $0x1c0] sm:$0xff] }
 0x203   :  { %11993 = vst [vmem:[#allocation359_spill] sm:$0xff] %v7348_v57  ;;  %11994 = vst [vmem:[#allocation371_spill] sm:$0xff] %v7354_v8  ;;  %v7362_v36 = vld [vmem:[#allocation3 + $0x1c8] sm:$0xff]  ;;  %v7368_v15 = vld [vmem:[#allocation3 + $0x1d0] sm:$0xff] }
 0x204   :  { %11995 = vst [vmem:[#allocation372_spill] sm:$0xff] %v7360_v14  ;;  %11996 = vst [vmem:[#allocation360_spill] sm:$0xff] %v7362_v36  ;;  %v7370_v35 = vld [vmem:[#allocation3 + $0x1d8] sm:$0xff]  ;;  %v7376_v63 = vld [vmem:[#allocation3 + $0x1e0] ss:$44 sps:$4 sm:$0xff]  }
 0x205   :  { %11997 = vst [vmem:[#allocation346_spill] sm:$0xff] %v7368_v15  ;;  %11998 = vst [vmem:[#allocation345_spill] sm:$0xff] %v7370_v35  ;;  %v7378_v47 = vld [vmem:[#allocation3 + $0x1e4] sm:$0xff]  ;;  %v7380_v60 = vld [vmem:[#allocation3 + $0x1ec] sm:$0xff] }
 0x206   :  { %11999 = vst [vmem:[#allocation373_spill] sm:$0xff] %v7376_v63  ;;  %12000 = vst [vmem:[#allocation374_spill] sm:$0xff] %v7378_v47  ;;  %v7386_v25 = vld [vmem:[#allocation3 + $0x1f4] sm:$0xff]  ;;  %v7388_v0 = vld [vmem:[#allocation3 + $0x1fc] sm:$0xff] }
 0x207   :  { %12001 = vst [vmem:[#allocation375_spill] sm:$0xff] %v7380_v60  ;;  %12002 = vst [vmem:[#allocation376_spill] sm:$0xff] %v7386_v25  ;;  %v7394_v23 = vld [vmem:[#allocation3 + $0x204] sm:$0xff]  ;;  %v7400_v8 = vld [vmem:[#allocation3 + $0x210] sm:$0xff] }
 0x208   :  { %12003 = vst [vmem:[#allocation377_spill] sm:$0xff] %v7388_v0  ;;  %12004 = vst [vmem:[#allocation378_spill] sm:$0xff] %v7394_v23  ;;  %v7402_v57 = vld [vmem:[#allocation3 + $0x218] sm:$0xff]  ;;  %v7408_v36 = vld [vmem:[#allocation3 + $0x220] sm:$0xff] }
 0x209   :  { %12005 = vst [vmem:[#allocation379_spill] sm:$0xff] %v7400_v8  ;;  %12006 = vst [vmem:[#allocation380_spill] sm:$0xff] %v7402_v57  ;;  %v7410_v34 = vld [vmem:[#allocation3 + $0x228] sm:$0xff]  ;;  %v7416_v15 = vld [vmem:[#allocation3 + $0x230] sm:$0xff] }
 0x20a   :  { %12007 = vst [vmem:[#allocation381_spill] sm:$0xff] %v7408_v36  ;;  %12008 = vst [vmem:[#allocation382_spill] sm:$0xff] %v7410_v34  ;;  %v7418_v45 = vld [vmem:[#allocation3 + $0x238] ss:$44 sps:$4 sm:$0xff]   ;;  %v7420_v2 = vld [vmem:[#allocation3 + $0x23c] sm:$0xff] }
 0x20b   :  { %12009 = vst [vmem:[#allocation383_spill] sm:$0xff] %v7416_v15  ;;  %12010 = vst [vmem:[#allocation384_spill] sm:$0xff] %v7418_v45  ;;  %v7426_v60 = vld [vmem:[#allocation3 + $0x244] sm:$0xff]  ;;  %v7428_v21 = vld [vmem:[#allocation3 + $0x24c] sm:$0xff] }
 0x20c   :  { %12011 = vst [vmem:[#allocation385_spill] sm:$0xff] %v7420_v2  ;;  %12012 = vst [vmem:[#allocation386_spill] sm:$0xff] %v7426_v60  ;;  %v7434_v62 = vld [vmem:[#allocation3 + $0x254] sm:$0xff]  ;;  %v7436_v37 = vld [vmem:[#allocation3 + $0x25c] sm:$0xff] }
 0x20d   :  { %12013 = vst [vmem:[#allocation387_spill] sm:$0xff] %v7428_v21  ;;  %12014 = vst [vmem:[#allocation388_spill] sm:$0xff] %v7434_v62  ;;  %v7442_v0 = vld [vmem:[#allocation3 + $0x268] sm:$0xff]  ;;  %v7448_v57 = vld [vmem:[#allocation3 + $0x270] sm:$0xff] }
 0x20e   :  { %12015 = vst [vmem:[#allocation389_spill] sm:$0xff] %v7436_v37  ;;  %12016 = vst [vmem:[#allocation390_spill] sm:$0xff] %v7442_v0  ;;  %v7450_v8 = vld [vmem:[#allocation3 + $0x278] sm:$0xff]  ;;  %v7456_v34 = vld [vmem:[#allocation3 + $0x280] sm:$0xff] }
 0x20f   :  { %12017 = vst [vmem:[#allocation391_spill] sm:$0xff] %v7448_v57  ;;  %12018 = vst [vmem:[#allocation392_spill] sm:$0xff] %v7450_v8  ;;  %v7458_v32 = vld [vmem:[#allocation3 + $0x288] sm:$0xff]  ;;  %v7464_v36 = vld [vmem:[#allocation3 + $0x290] ss:$44 sps:$4 sm:$0xff]  }
 0x210   :  { %12019 = vst [vmem:[#allocation393_spill] sm:$0xff] %v7456_v34  ;;  %12020 = vst [vmem:[#allocation394_spill] sm:$0xff] %v7458_v32  ;;  %v7466_v51 = vld [vmem:[#allocation3 + $0x294] sm:$0xff]  ;;  %v7468_v24 = vld [vmem:[#allocation3 + $0x29c] sm:$0xff] }
 0x211   :  { %12021 = vst [vmem:[#allocation395_spill] sm:$0xff] %v7464_v36  ;;  %12022 = vst [vmem:[#allocation396_spill] sm:$0xff] %v7466_v51  ;;  %v7474_v21 = vld [vmem:[#allocation3 + $0x2a4] sm:$0xff]  ;;  %v7476_v35 = vld [vmem:[#allocation3 + $0x2ac] sm:$0xff] }
 0x212   :  { %12023 = vst [vmem:[#allocation397_spill] sm:$0xff] %v7468_v24  ;;  %12024 = vst [vmem:[#allocation398_spill] sm:$0xff] %v7474_v21  ;;  %v7482_v63 = vld [vmem:[#allocation3 + $0x2b4] sm:$0xff]  ;;  %v7488_v0 = vld [vmem:[#allocation3 + $0x2c0] sm:$0xff] }
 0x213   :  { %12025 = vst [vmem:[#allocation399_spill] sm:$0xff] %v7476_v35  ;;  %12026 = vst [vmem:[#allocation400_spill] sm:$0xff] %v7482_v63  ;;  %v7490_v37 = vld [vmem:[#allocation3 + $0x2c8] sm:$0xff]  ;;  %v7496_v8 = vld [vmem:[#allocation3 + $0x2d0] sm:$0xff] }
 0x214   :  { %12027 = vst [vmem:[#allocation401_spill] sm:$0xff] %v7488_v0  ;;  %12028 = vst [vmem:[#allocation402_spill] sm:$0xff] %v7490_v37  ;;  %v7498_v23 = vld [vmem:[#allocation3 + $0x2d8] sm:$0xff]  ;;  %v7504_v34 = vld [vmem:[#allocation3 + $0x2e0] sm:$0xff] }
 0x215   :  { %12029 = vst [vmem:[#allocation403_spill] sm:$0xff] %v7496_v8  ;;  %12030 = vst [vmem:[#allocation404_spill] sm:$0xff] %v7498_v23  ;;  %v7506_v25 = vld [vmem:[#allocation3 + $0x2e8] ss:$44 sps:$4 sm:$0xff]   ;;  %v7508_v62 = vld [vmem:[#allocation3 + $0x2ec] sm:$0xff] }
 0x216   :  { %12031 = vst [vmem:[#allocation405_spill] sm:$0xff] %v7504_v34  ;;  %12032 = vst [vmem:[#allocation406_spill] sm:$0xff] %v7506_v25  ;;  %v7514_v24 = vld [vmem:[#allocation3 + $0x2f4] sm:$0xff]  ;;  %v7516_v47 = vld [vmem:[#allocation3 + $0x2fc] sm:$0xff] }
 0x217   :  { %12033 = vst [vmem:[#allocation407_spill] sm:$0xff] %v7508_v62  ;;  %12034 = vst [vmem:[#allocation408_spill] sm:$0xff] %v7514_v24  ;;  %v7522_v45 = vld [vmem:[#allocation3 + $0x304] sm:$0xff]  ;;  %v7524_v15 = vld [vmem:[#allocation3 + $0x30c] sm:$0xff] }
 0x218   :  { %12035 = vst [vmem:[#allocation409_spill] sm:$0xff] %v7516_v47  ;;  %12036 = vst [vmem:[#allocation410_spill] sm:$0xff] %v7522_v45  ;;  %v7530_v35 = vld [vmem:[#allocation3 + $0x318] sm:$0xff]  ;;  %v7536_v37 = vld [vmem:[#allocation3 + $0x320] sm:$0xff] }
 0x219   :  { %12037 = vst [vmem:[#allocation411_spill] sm:$0xff] %v7524_v15  ;;  %12038 = vst [vmem:[#allocation412_spill] sm:$0xff] %v7530_v35  ;;  %v7538_v0 = vld [vmem:[#allocation3 + $0x328] sm:$0xff]  ;;  %v7544_v23 = vld [vmem:[#allocation3 + $0x330] sm:$0xff] }
 0x21a   :  { %12039 = vst [vmem:[#allocation413_spill] sm:$0xff] %v7536_v37  ;;  %12040 = vst [vmem:[#allocation414_spill] sm:$0xff] %v7538_v0  ;;  %v7546_v60 = vld [vmem:[#allocation3 + $0x338] sm:$0xff]  ;;  %v7552_v8 = vld [vmem:[#allocation3 + $0x340] ss:$44 sps:$4 sm:$0xff]  }
 0x21b   :  { %12041 = vst [vmem:[#allocation415_spill] sm:$0xff] %v7544_v23  ;;  %12042 = vst [vmem:[#allocation416_spill] sm:$0xff] %v7546_v60  ;;  %v7554_v14 = vld [vmem:[#allocation3 + $0x344] sm:$0xff]  ;;  %v7556_v2 = vld [vmem:[#allocation3 + $0x34c] sm:$0xff] }
 0x21c   :  { %12043 = vst [vmem:[#allocation417_spill] sm:$0xff] %v7552_v8  ;;  %12044 = vst [vmem:[#allocation418_spill] sm:$0xff] %v7554_v14  ;;  %v7562_v47 = vld [vmem:[#allocation3 + $0x354] sm:$0xff]  ;;  %v7564_v32 = vld [vmem:[#allocation3 + $0x35c] sm:$0xff] }
 0x21d   :  { %12045 = vst [vmem:[#allocation419_spill] sm:$0xff] %v7556_v2  ;;  %12046 = vst [vmem:[#allocation420_spill] sm:$0xff] %v7562_v47  ;;  %v7570_v36 = vld [vmem:[#allocation3 + $0x364] sm:$0xff]  ;;  %v7576_v35 = vld [vmem:[#allocation3 + $0x370] sm:$0xff] }
 0x21e   :  { %12047 = vst [vmem:[#allocation421_spill] sm:$0xff] %v7564_v32  ;;  %12048 = vst [vmem:[#allocation422_spill] sm:$0xff] %v7570_v36  ;;  %v7578_v15 = vld [vmem:[#allocation3 + $0x378] sm:$0xff]  ;;  %v7584_v0 = vld [vmem:[#allocation3 + $0x380] sm:$0xff] }
 0x21f   :  { %12049 = vst [vmem:[#allocation423_spill] sm:$0xff] %v7576_v35  ;;  %12050 = vst [vmem:[#allocation424_spill] sm:$0xff] %v7578_v15  ;;  %v7586_v63 = vld [vmem:[#allocation3 + $0x388] sm:$0xff]  ;;  %v7592_v23 = vld [vmem:[#allocation3 + $0x390] sm:$0xff] }
 0x220   :  { %12051 = vst [vmem:[#allocation425_spill] sm:$0xff] %v7584_v0  ;;  %12052 = vst [vmem:[#allocation426_spill] sm:$0xff] %v7586_v63  ;;  %v7594_v21 = vld [vmem:[#allocation3 + $0x398] ss:$44 sps:$4 sm:$0xff]   ;;  %v7596_v45 = vld [vmem:[#allocation3 + $0x39c] sm:$0xff] }
 0x221   :  { %12053 = vst [vmem:[#allocation427_spill] sm:$0xff] %v7592_v23  ;;  %12054 = vst [vmem:[#allocation428_spill] sm:$0xff] %v7594_v21  ;;  %v7602_v2 = vld [vmem:[#allocation3 + $0x3a4] sm:$0xff]  ;;  %v7604_v51 = vld [vmem:[#allocation3 + $0x3ac] sm:$0xff] }
 0x222   :  { %12055 = vst [vmem:[#allocation429_spill] sm:$0xff] %v7596_v45  ;;  %12056 = vst [vmem:[#allocation430_spill] sm:$0xff] %v7602_v2  ;;  %v7610_v25 = vld [vmem:[#allocation3 + $0x3b4] sm:$0xff]  ;;  %v7612_v34 = vld [vmem:[#allocation3 + $0x3bc] sm:$0xff] }
 0x223   :  { %12057 = vst [vmem:[#allocation431_spill] sm:$0xff] %v7604_v51  ;;  %12058 = vst [vmem:[#allocation432_spill] sm:$0xff] %v7610_v25  ;;  %v7618_v32 = vld [vmem:[#allocation3 + $0x3c8] sm:$0xff]  ;;  %v7624_v15 = vld [vmem:[#allocation3 + $0x3d0] sm:$0xff] }
 0x224   :  { %12059 = vst [vmem:[#allocation433_spill] sm:$0xff] %v7612_v34  ;;  %12060 = vst [vmem:[#allocation434_spill] sm:$0xff] %v7618_v32  ;;  %v7626_v35 = vld [vmem:[#allocation3 + $0x3d8] sm:$0xff]  ;;  %v7632_v63 = vld [vmem:[#allocation3 + $0x3e0] sm:$0xff] }
 0x225   :  { %12061 = vst [vmem:[#allocation435_spill] sm:$0xff] %v7624_v15  ;;  %12062 = vst [vmem:[#allocation436_spill] sm:$0xff] %v7626_v35  ;;  %v7634_v24 = vld [vmem:[#allocation3 + $0x3e8] sm:$0xff]  ;;  %v7640_v0 = vld [vmem:[#allocation3 + $0x3f0] ss:$44 sps:$4 sm:$0xff]  }
 0x226   :  { %12063 = vst [vmem:[#allocation437_spill] sm:$0xff] %v7632_v63  ;;  %12064 = vst [vmem:[#allocation438_spill] sm:$0xff] %v7634_v24  ;;  %v7642_v57 = vld [vmem:[#allocation3 + $0x3f4] sm:$0xff]  ;;  %v7644_v62 = vld [vmem:[#allocation3 + $0x3fc] sm:$0xff] }
 0x227   :  { %12065 = vst [vmem:[#allocation439_spill] sm:$0xff] %v7640_v0  ;;  %12066 = vst [vmem:[#allocation440_spill] sm:$0xff] %v7642_v57  ;;  %v7650_v51 = vld [vmem:[#allocation3 + $0x404] sm:$0xff]  ;;  %v7652_v60 = vld [vmem:[#allocation3 + $0x40c] sm:$0xff]  ;;  %v12086_v57 = vunpack.c.h.bf16 %v7138_v54 }
 0x228   :  { %12067 = vst [vmem:[#allocation441_spill] sm:$0xff] %v7644_v62  ;;  %12068 = vst [vmem:[#allocation442_spill] sm:$0xff] %v7650_v51  ;;  %v7658_v8 = vld [vmem:[#allocation3 + $0x414] sm:$0xff]  ;;  %v7664_v32 = vld [vmem:[#allocation3 + $0x420] sm:$0xff]  ;;  %v12082_v51 = vunpack.c.l.bf16 %v7136_v11 }
 0x229   :  { %12069 = vst [vmem:[#allocation443_spill] sm:$0xff] %v7652_v60  ;;  %12070 = vst [vmem:[#allocation444_spill] sm:$0xff] %v7658_v8  ;;  %v7666_v34 = vld [vmem:[#allocation3 + $0x428] sm:$0xff]  ;;  %v7672_v35 = vld [vmem:[#allocation3 + $0x430] sm:$0xff]  ;;  %v12092_v8 = vunpack.c.l.bf16 %v7154_v29 }
 0x22a   :  { %12071 = vst [vmem:[#allocation445_spill] sm:$0xff] %v7664_v32  ;;  %12072 = vst [vmem:[#allocation446_spill] sm:$0xff] %v7666_v34  ;;  %v7674_v36 = vld [vmem:[#allocation3 + $0x438] sm:$0xff]  ;;  %v7680_v63 = vld [vmem:[#allocation3 + $0x440] sm:$0xff] }
 0x22b   :  { %12073 = vst [vmem:[#allocation447_spill] sm:$0xff] %v7672_v35  ;;  %12074 = vst [vmem:[#allocation448_spill] sm:$0xff] %v7674_v36  ;;  %v7682_v47 = vld [vmem:[#allocation3 + $0x448] ss:$44 sps:$4 sm:$0xff]   ;;  %v7684_v25 = vld [vmem:[#allocation3 + $0x44c] sm:$0xff] }
 0x22c   :  { %12075 = vst [vmem:[#allocation449_spill] sm:$0xff] %v7680_v63  ;;  %12076 = vst [vmem:[#allocation450_spill] sm:$0xff] %v7684_v25  ;;  %v7690_v62 = vld [vmem:[#allocation3 + $0x454] sm:$0xff]  ;;  %v7692_v14 = vld [vmem:[#allocation3 + $0x45c] sm:$0xff]  ;;  %v12083_v25 = vunpack.c.h.bf16 %v7136_v11  ;;  %v12088_v63 = vunpack.c.l.bf16 %v7140_v9  ;;  %v12090_v11 = vunpack.c.h.bf16 %v7140_v9  ;;  %v12098_v9 = vunpack.c.h.bf16 %v7156_v44 }
 0x22d   :  { %12077 = vst [vmem:[#allocation451_spill] sm:$0xff] %v7690_v62  ;;  %12078 = vst [vmem:[#allocation452_spill] sm:$0xff] %v7692_v14  ;;  %v7698_v21 = vld [vmem:[#allocation3 + $0x464] sm:$0xff]  ;;  %v7700_v23 = vld [vmem:[#allocation3 + $0x46c] sm:$0xff]  ;;  %v12084_v62 = vunpack.c.l.bf16 %v7138_v54  ;;  %v12094_v54 = vunpack.c.h.bf16 %v7154_v29  ;;  %v12102_v29 = vunpack.c.l.bf16 %v7164_v41 }
 0x22e   :  { %12079 = vst [vmem:[#allocation453_spill] sm:$0xff] %v7698_v21  ;;  %v7706_v60 = vld [vmem:[#allocation3 + $0x478] sm:$0xff]  ;;  %v7712_v34 = vld [vmem:[#allocation3 + $0x480] sm:$0xff]  ;;  %v7714_v32 = vld [vmem:[#allocation3 + $0x488] sm:$0xff]  ;;  %v7767_v21 = vmul.f32 %v7116_v40, %v12082_v51  ;;  %v7787_v51 = vmul.f32 %v7128_v42, %v12088_v63 }
 0x22f   :  { %12080 = vst [vmem:[#allocation454_spill] sm:$0xff] %v7706_v60  ;;  %12081 = vst [vmem:[#allocation455_spill] sm:$0xff] %v7714_v32  ;;  %v7720_v36 = vld [vmem:[#allocation3 + $0x490] sm:$0xff]  ;;  %v7722_v2 = vld [vmem:[#allocation3 + $0x498] sm:$0xff]  ;;  %v7772_v32 = vmul.f32 %v7119_v12, %v12083_v25  ;;  %v7777_v15 = vmul.f32 %v7122_v46, %v12084_v62  ;;  %v7782_v60 = vmul.f32 %v7125_v48, %v12086_v57 }
 0x230   :  { %v7728_v35 = vld [vmem:[#allocation3 + $0x4a0] ss:$44 sps:$4 sm:$0xff]   ;;  %v7730_v37 = vld [vmem:[#allocation3 + $0x4a4] sm:$0xff]  ;;  %v7738_v14 = vld [vmem:[#allocation3 + $0x4b4] sm:$0xff]  ;;  %12089 = vst [vmem:[#allocation458_spill] sm:$0xff] %v7787_v51  ;;  %v7792_v25 = vmul.f32 %v7131_v30, %v12090_v11  ;;  %v7797_v62 = vmul.f32 %v7134_v56, %v12092_v8  ;;  %v7802_v57 = vmul.f32 %v7143_v22, %v12094_v54  ;;  %v7812_v11 = vmul.f32 %v7149_v26, %v12098_v9 }
 0x231   :  { %v7732_v45 = vld [vmem:[#allocation3 + $0x4ac] sm:$0xff]  ;;  %v7740_v24 = vld [vmem:[#allocation3 + $0x4bc] sm:$0xff]  ;;  %v7746_v0 = vld [vmem:[#allocation3 + $0x4c4] sm:$0xff]  ;;  %12085 = vst [vmem:[#allocation456_spill] sm:$0xff] %v7777_v15  ;;  %v7822_v54 = vmul.f32 %v7116_v40, %v12102_v29 }
 0x232   :  { %12087 = vst [vmem:[#allocation457_spill] sm:$0xff] %v7782_v60  ;;  %12091 = vst [vmem:[#allocation459_spill] sm:$0xff] %v7792_v25  ;;  %v12096_v60 = vunpack.c.l.bf16 %v7156_v44  ;;  %v12100_v25 = vunpack.c.l.bf16 %v7158_v58  ;;  %v12104_v44 = vunpack.c.l.bf16 %v7166_v4  ;;  %v13040_v15 = vld [vmem:[#allocation40_spill] sm:$0xff] }
 0x233   :  { %12093 = vst [vmem:[#allocation460_spill] sm:$0xff] %v7797_v62  ;;  %12095 = vst [vmem:[#allocation461_spill] sm:$0xff] %v7802_v57  ;;  %v12103_v57 = vunpack.c.h.bf16 %v7164_v41  ;;  %v12109_v41 = vunpack.c.h.bf16 %v7168_v33  ;;  %v12115_v62 = vunpack.c.l.bf16 %v7176_v55 }
 0x234   :  { %v7807_v63 = vmul.f32 %v7146_v13, %v12096_v60  ;;  %12099 = vst [vmem:[#allocation463_spill] sm:$0xff] %v7812_v11  ;;  %v7817_v8 = vmul.f32 %v7152_v3, %v12100_v25  ;;  %v7832_v9 = vmul.f32 %v7122_v46, %v12104_v44  ;;  %v12106_v11 = vunpack.c.h.bf16 %v7166_v4 }
 0x235   :  { %v7827_v60 = vmul.f32 %v7119_v12, %v12103_v57  ;;  %v7847_v57 = vmul.f32 %v7131_v30, %v12109_v41  ;;  %v12113_v4 = vunpack.c.h.bf16 %v7174_v53 }
 0x236   :  { %12097 = vst [vmem:[#allocation462_spill] sm:$0xff] %v7807_v63  ;;  %12101 = vst [vmem:[#allocation464_spill] sm:$0xff] %v7817_v8  ;;  %v7837_v25 = vmul.f32 %v7125_v48, %v12106_v11  ;;  %v12107_v8 = vunpack.c.l.bf16 %v7168_v33  ;;  %v12111_v63 = vunpack.c.l.bf16 %v7174_v53  ;;  %v12117_v33 = vunpack.c.h.bf16 %v7176_v55 }
 0x237   :  { %12105 = vst [vmem:[#allocation465_spill] sm:$0xff] %v7832_v9  ;;  %12110 = vst [vmem:[#allocation467_spill] sm:$0xff] %v7847_v57  ;;  %v7857_v11 = vmul.f32 %v7143_v22, %v12113_v4  ;;  %v12119_v57 = vunpack.c.h.bf16 %v7158_v58  ;;  %v12121_v53 = vunpack.c.l.bf16 %v7178_v16  ;;  %v12124_v55 = vunpack.c.l.bf16 %v7184_v1 }
 0x238   :  { %v7842_v29 = vmul.f32 %v7128_v42, %v12107_v8  ;;  %v7852_v44 = vmul.f32 %v7134_v56, %v12111_v63  ;;  %v7862_v8 = vmul.f32 %v7146_v13, %v12115_v62  ;;  %v7867_v41 = vmul.f32 %v7149_v26, %v12117_v33 }
 0x239   :  { %12114 = vst [vmem:[#allocation469_spill] sm:$0xff] %v7857_v11  ;;  %v7872_v63 = vmul.f32 %v7152_v3, %v12119_v57  ;;  %v7877_v4 = vmul.f32 %v7116_v40, %v12121_v53  ;;  %v12122_v11 = vunpack.c.h.bf16 %v7178_v16  ;;  %v7887_v33 = vmul.f32 %v7122_v46, %v12124_v55 }
 0x23a   :  { %12108 = vst [vmem:[#allocation466_spill] sm:$0xff] %v7842_v29  ;;  %12112 = vst [vmem:[#allocation468_spill] sm:$0xff] %v7852_v44  ;;  %v12125_v58 = vunpack.c.h.bf16 %v7184_v1  ;;  %v12129_v16 = vunpack.c.h.bf16 %v7186_v43  ;;  %v12133_v1 = vunpack.c.h.bf16 %v7192_v20 }
 0x23b   :  { %12116 = vst [vmem:[#allocation470_spill] sm:$0xff] %v7862_v8  ;;  %12118 = vst [vmem:[#allocation471_spill] sm:$0xff] %v7867_v41  ;;  %v7882_v62 = vmul.f32 %v7119_v12, %v12122_v11  ;;  %v13046_v41 = vld [vmem:[#allocation103_spill] sm:$0xff] }
 0x23c   :  { %12120 = vst [vmem:[#allocation472_spill] sm:$0xff] %v7872_v63  ;;  %v7892_v57 = vmul.f32 %v7125_v48, %v12125_v58  ;;  %v12127_v63 = vunpack.c.l.bf16 %v7186_v43  ;;  %v7902_v11 = vmul.f32 %v7131_v30, %v12129_v16  ;;  %v7912_v58 = vmul.f32 %v7143_v22, %v12133_v1 }
 0x23d   :  { %12123 = vst [vmem:[#allocation473_spill] sm:$0xff] %v7882_v62  ;;  %v12131_v62 = vunpack.c.l.bf16 %v7192_v20  ;;  %v12137_v43 = vunpack.c.h.bf16 %v7194_v28  ;;  %v12141_v20 = vunpack.c.l.bf16 %v7202_v59 }
 0x23e   :  { %12126 = vst [vmem:[#allocation474_spill] sm:$0xff] %v7892_v57  ;;  %v7897_v53 = vmul.f32 %v7128_v42, %v12127_v63  ;;  %12130 = vst [vmem:[#allocation476_spill] sm:$0xff] %v7902_v11  ;;  %v12135_v57 = vunpack.c.l.bf16 %v7194_v28  ;;  %v12139_v11 = vunpack.c.l.bf16 %v7200_v39  ;;  %v12143_v28 = vunpack.c.l.bf16 %v7204_v17 }
 0x23f   :  { %v7907_v55 = vmul.f32 %v7134_v56, %v12131_v62  ;;  %12134 = vst [vmem:[#allocation478_spill] sm:$0xff] %v7912_v58  ;;  %v7922_v16 = vmul.f32 %v7149_v26, %v12137_v43  ;;  %v7932_v1 = vmul.f32 %v7116_v40, %v12141_v20  ;;  %v12142_v58 = vunpack.c.h.bf16 %v7202_v59 }
 0x240   :  { %12128 = vst [vmem:[#allocation475_spill] sm:$0xff] %v7897_v53  ;;  %v7917_v63 = vmul.f32 %v7146_v13, %v12135_v57  ;;  %v7927_v62 = vmul.f32 %v7152_v3, %v12139_v11  ;;  %v7942_v43 = vmul.f32 %v7122_v46, %v12143_v28  ;;  %v12147_v59 = vunpack.c.h.bf16 %v7210_v19 }
 0x241   :  { %12132 = vst [vmem:[#allocation477_spill] sm:$0xff] %v7907_v55  ;;  %12138 = vst [vmem:[#allocation480_spill] sm:$0xff] %v7922_v16  ;;  %v7937_v57 = vmul.f32 %v7119_v12, %v12142_v58  ;;  %v12144_v16 = vunpack.c.h.bf16 %v7204_v17  ;;  %v12151_v17 = vunpack.c.h.bf16 %v7212_v52  ;;  %v12153_v55 = vunpack.c.l.bf16 %v7218_v31 }
 0x242   :  { %12136 = vst [vmem:[#allocation479_spill] sm:$0xff] %v7917_v63  ;;  %12140 = vst [vmem:[#allocation481_spill] sm:$0xff] %v7927_v62  ;;  %v12145_v62 = vunpack.c.l.bf16 %v7210_v19  ;;  %v7957_v58 = vmul.f32 %v7131_v30, %v12147_v59  ;;  %v12149_v63 = vunpack.c.l.bf16 %v7212_v52  ;;  %v12155_v19 = vunpack.c.h.bf16 %v7218_v31 }
 0x243   :  { %v7947_v11 = vmul.f32 %v7125_v48, %v12144_v16  ;;  %v7967_v16 = vmul.f32 %v7143_v22, %v12151_v17  ;;  %v12159_v52 = vunpack.c.l.bf16 %v7224_v18  ;;  %v12162_v31 = vunpack.c.l.bf16 %v7226_v7 }
 0x244   :  { %v7952_v20 = vmul.f32 %v7128_v42, %v12145_v62  ;;  %12148 = vst [vmem:[#allocation483_spill] sm:$0xff] %v7957_v58  ;;  %v7962_v28 = vmul.f32 %v7134_v56, %v12149_v63  ;;  %v7972_v62 = vmul.f32 %v7146_v13, %v12153_v55  ;;  %v7977_v59 = vmul.f32 %v7149_v26, %v12155_v19  ;;  %v12790_v51 = vld [vmem:[#allocation473_spill] sm:$0xff] }
 0x245   :  { %12152 = vst [vmem:[#allocation485_spill] sm:$0xff] %v7967_v16  ;;  %v12157_v58 = vunpack.c.h.bf16 %v7200_v39  ;;  %v7987_v17 = vmul.f32 %v7116_v40, %v12159_v52  ;;  %v12160_v16 = vunpack.c.h.bf16 %v7224_v18  ;;  %v7997_v19 = vmul.f32 %v7122_v46, %v12162_v31 }
 0x246   :  { %12146 = vst [vmem:[#allocation482_spill] sm:$0xff] %v7952_v20  ;;  %12150 = vst [vmem:[#allocation484_spill] sm:$0xff] %v7962_v28  ;;  %v12163_v39 = vunpack.c.h.bf16 %v7226_v7  ;;  %v12167_v18 = vunpack.c.h.bf16 %v7232_v61  ;;  %v12171_v7 = vunpack.c.h.bf16 %v7234_v50  ;;  %v13039_v20 = vld [vmem:[#allocation38_spill] sm:$0xff]  ;;  %v13043_v28 = vld [vmem:[#allocation37_spill] sm:$0xff] }
 0x247   :  { %12154 = vst [vmem:[#allocation486_spill] sm:$0xff] %v7972_v62  ;;  %12156 = vst [vmem:[#allocation487_spill] sm:$0xff] %v7977_v59  ;;  %v7982_v63 = vmul.f32 %v7152_v3, %v12157_v58  ;;  %v7992_v55 = vmul.f32 %v7119_v12, %v12160_v16  ;;  %v13047_v62 = vpack.c.bf16 %v7827_v60, %v7772_v32 }
 0x248   :  { %v8002_v58 = vmul.f32 %v7125_v48, %v12163_v39  ;;  %v8012_v16 = vmul.f32 %v7131_v30, %v12167_v18  ;;  %v8022_v39 = vmul.f32 %v7143_v22, %v12171_v7 }
 0x249   :  { %12158 = vst [vmem:[#allocation488_spill] sm:$0xff] %v7982_v63  ;;  %12161 = vst [vmem:[#allocation489_spill] sm:$0xff] %v7992_v55  ;;  %v12165_v63 = vunpack.c.l.bf16 %v7232_v61  ;;  %v12169_v55 = vunpack.c.l.bf16 %v7234_v50  ;;  %v12175_v61 = vunpack.c.h.bf16 %v7240_v10  ;;  %v12179_v50 = vunpack.c.l.bf16 %v7244_v5  ;;  %3162 = vmatprep.mubr.bf16.mxu0 %v13047_v62 }
 0x24a   :  { %12164 = vst [vmem:[#allocation490_spill] sm:$0xff] %v8002_v58  ;;  %12168 = vst [vmem:[#allocation492_spill] sm:$0xff] %v8012_v16  ;;  %v12173_v58 = vunpack.c.l.bf16 %v7240_v10  ;;  %v12177_v16 = vunpack.c.l.bf16 %v7242_v49  ;;  %v12181_v10 = vunpack.c.l.bf16 %v7250_v6 }
 0x24b   :  { %v8007_v52 = vmul.f32 %v7128_v42, %v12165_v63  ;;  %v8017_v31 = vmul.f32 %v7134_v56, %v12169_v55  ;;  %12172 = vst [vmem:[#allocation494_spill] sm:$0xff] %v8022_v39  ;;  %v8032_v18 = vmul.f32 %v7149_v26, %v12175_v61  ;;  %v8042_v7 = vmul.f32 %v7116_v40, %v12179_v50 }
 0x24c   :  { %v8027_v63 = vmul.f32 %v7146_v13, %v12173_v58  ;;  %v8037_v55 = vmul.f32 %v7152_v3, %v12177_v16  ;;  %v12180_v39 = vunpack.c.h.bf16 %v7244_v5  ;;  %v8052_v61 = vmul.f32 %v7122_v46, %v12181_v10 }
 0x24d   :  { %12166 = vst [vmem:[#allocation491_spill] sm:$0xff] %v8007_v52  ;;  %12170 = vst [vmem:[#allocation493_spill] sm:$0xff] %v8017_v31  ;;  %v12185_v5 = vunpack.c.h.bf16 %v7252_v38  ;;  %v12191_v31 = vld [vmem:[#allocation347_spill] sm:$0xff] }
 0x24e   :  { %12174 = vst [vmem:[#allocation495_spill] sm:$0xff] %v8027_v63  ;;  %12176 = vst [vmem:[#allocation496_spill] sm:$0xff] %v8032_v18  ;;  %v8047_v58 = vmul.f32 %v7119_v12, %v12180_v39  ;;  %v12182_v18 = vunpack.c.h.bf16 %v7250_v6  ;;  %v12187_v63 = vunpack.c.l.bf16 %v7258_v27  ;;  %v12189_v6 = vunpack.c.h.bf16 %v7258_v27 }
 0x24f   :  { %12178 = vst [vmem:[#allocation497_spill] sm:$0xff] %v8037_v55  ;;  %v12183_v55 = vunpack.c.l.bf16 %v7252_v38  ;;  %v8067_v39 = vmul.f32 %v7131_v30, %v12185_v5  ;;  %v12192_v52 = vunpack.c.l.bf16 %v12191_v31  ;;  %v12194_v38 = vunpack.c.h.bf16 %v12191_v31 }
 0x250   :  { %v8057_v16 = vmul.f32 %v7125_v48, %v12182_v18  ;;  %v8072_v10 = vmul.f32 %v7134_v56, %v12187_v63  ;;  %v8077_v18 = vmul.f32 %v7143_v22, %v12189_v6  ;;  %v12801_v53 = vld [vmem:[#allocation489_spill] sm:$0xff] }
 0x251   :  { %v8062_v50 = vmul.f32 %v7128_v42, %v12183_v55  ;;  %12186 = vst [vmem:[#allocation499_spill] sm:$0xff] %v8067_v39  ;;  %v8082_v55 = vmul.f32 %v7146_v13, %v12192_v52  ;;  %v8087_v5 = vmul.f32 %v7149_v26, %v12194_v38  ;;  %v12196_v39 = vunpack.c.h.bf16 %v7242_v49 }
 0x252   :  { %12188 = vst [vmem:[#allocation500_spill] sm:$0xff] %v8072_v10  ;;  %12190 = vst [vmem:[#allocation501_spill] sm:$0xff] %v8077_v18  ;;  %v12198_v10 = vld [vmem:[#allocation348_spill] sm:$0xff] }
 0x253   :  { %12184 = vst [vmem:[#allocation498_spill] sm:$0xff] %v8062_v50  ;;  %12193 = vst [vmem:[#allocation347_spill] sm:$0xff] %v8082_v55  ;;  %v8092_v63 = vmul.f32 %v7152_v3, %v12196_v39  ;;  %v12199_v27 = vunpack.c.l.bf16 %v12198_v10  ;;  %v12201_v18 = vunpack.c.h.bf16 %v12198_v10  ;;  %v12203_v55 = vld [vmem:[#allocation351_spill] sm:$0xff] }
 0x254   :  { %12195 = vst [vmem:[#allocation502_spill] sm:$0xff] %v8087_v5  ;;  %v12204_v31 = vunpack.c.l.bf16 %v12203_v55  ;;  %v12206_v49 = vunpack.c.h.bf16 %v12203_v55 }
 0x255   :  { %12197 = vst [vmem:[#allocation503_spill] sm:$0xff] %v8092_v63  ;;  %v8097_v6 = vmul.f32 %v7116_v40, %v12199_v27  ;;  %v8102_v52 = vmul.f32 %v7119_v12, %v12201_v18  ;;  %v12208_v63 = vld [vmem:[#allocation352_spill] sm:$0xff] }
 0x256   :  { %v8107_v38 = vmul.f32 %v7122_v46, %v12204_v31  ;;  %v8112_v39 = vmul.f32 %v7125_v48, %v12206_v49  ;;  %v12209_v5 = vunpack.c.l.bf16 %v12208_v63  ;;  %v12211_v10 = vunpack.c.h.bf16 %v12208_v63 }
 0x257   :  { %12200 = vst [vmem:[#allocation348_spill] sm:$0xff] %v8097_v6  ;;  %12202 = vst [vmem:[#allocation504_spill] sm:$0xff] %v8102_v52  ;;  %v12213_v52 = vld [vmem:[#allocation353_spill] sm:$0xff] }
 0x258   :  { %12205 = vst [vmem:[#allocation351_spill] sm:$0xff] %v8107_v38  ;;  %12207 = vst [vmem:[#allocation505_spill] sm:$0xff] %v8112_v39  ;;  %v8117_v27 = vmul.f32 %v7128_v42, %v12209_v5  ;;  %v8122_v18 = vmul.f32 %v7131_v30, %v12211_v10  ;;  %v12214_v6 = vunpack.c.l.bf16 %v12213_v52  ;;  %v12216_v55 = vunpack.c.h.bf16 %v12213_v52  ;;  %v12218_v39 = vld [vmem:[#allocation361_spill] sm:$0xff] }
 0x259   :  { %v12219_v38 = vunpack.c.l.bf16 %v12218_v39  ;;  %v12221_v63 = vunpack.c.h.bf16 %v12218_v39 }
 0x25a   :  { %12210 = vst [vmem:[#allocation352_spill] sm:$0xff] %v8117_v27  ;;  %12212 = vst [vmem:[#allocation506_spill] sm:$0xff] %v8122_v18  ;;  %v8127_v31 = vmul.f32 %v7134_v56, %v12214_v6  ;;  %v8132_v49 = vmul.f32 %v7143_v22, %v12216_v55  ;;  %v12223_v18 = vld [vmem:[#allocation362_spill] sm:$0xff] }
 0x25b   :  { %v8137_v5 = vmul.f32 %v7146_v13, %v12219_v38  ;;  %v8142_v10 = vmul.f32 %v7149_v26, %v12221_v63  ;;  %v12224_v27 = vunpack.c.l.bf16 %v12223_v18 }
 0x25c   :  { %12215 = vst [vmem:[#allocation353_spill] sm:$0xff] %v8127_v31  ;;  %12217 = vst [vmem:[#allocation507_spill] sm:$0xff] %v8132_v49  ;;  %v12226_v31 = vld [vmem:[#allocation363_spill] sm:$0xff] }
 0x25d   :  { %12220 = vst [vmem:[#allocation361_spill] sm:$0xff] %v8137_v5  ;;  %12222 = vst [vmem:[#allocation508_spill] sm:$0xff] %v8142_v10  ;;  %v8147_v6 = vmul.f32 %v7152_v3, %v12224_v27  ;;  %v12227_v52 = vunpack.c.l.bf16 %v12226_v31  ;;  %v12229_v49 = vunpack.c.h.bf16 %v12226_v31  ;;  %v12231_v5 = vld [vmem:[#allocation364_spill] sm:$0xff] }
 0x25e   :  { %v12232_v39 = vunpack.c.l.bf16 %v12231_v5  ;;  %v12234_v10 = vunpack.c.h.bf16 %v12231_v5 }
 0x25f   :  { %12225 = vst [vmem:[#allocation362_spill] sm:$0xff] %v8147_v6  ;;  %v8152_v55 = vmul.f32 %v7116_v40, %v12227_v52  ;;  %v8157_v38 = vmul.f32 %v7119_v12, %v12229_v49  ;;  %v12236_v6 = vld [vmem:[#allocation365_spill] sm:$0xff] }
 0x260   :  { %v8162_v63 = vmul.f32 %v7122_v46, %v12232_v39  ;;  %v8167_v27 = vmul.f32 %v7125_v48, %v12234_v10  ;;  %v12237_v50 = vunpack.c.l.bf16 %v12236_v6  ;;  %v12239_v31 = vunpack.c.h.bf16 %v12236_v6 }
 0x261   :  { %12228 = vst [vmem:[#allocation363_spill] sm:$0xff] %v8152_v55  ;;  %12230 = vst [vmem:[#allocation509_spill] sm:$0xff] %v8157_v38  ;;  %v12241_v38 = vld [vmem:[#allocation366_spill] sm:$0xff] }
 0x262   :  { %12233 = vst [vmem:[#allocation364_spill] sm:$0xff] %v8162_v63  ;;  %12235 = vst [vmem:[#allocation510_spill] sm:$0xff] %v8167_v27  ;;  %v8172_v52 = vmul.f32 %v7128_v42, %v12237_v50  ;;  %v8177_v49 = vmul.f32 %v7131_v30, %v12239_v31  ;;  %v12242_v55 = vunpack.c.l.bf16 %v12241_v38  ;;  %v12244_v5 = vunpack.c.h.bf16 %v12241_v38  ;;  %v12246_v27 = vld [vmem:[#allocation367_spill] sm:$0xff] }
 0x263   :  { %v12247_v63 = vunpack.c.l.bf16 %v12246_v27  ;;  %v12249_v6 = vunpack.c.h.bf16 %v12246_v27 }
 0x264   :  { %12238 = vst [vmem:[#allocation365_spill] sm:$0xff] %v8172_v52  ;;  %12240 = vst [vmem:[#allocation511_spill] sm:$0xff] %v8177_v49  ;;  %v8182_v39 = vmul.f32 %v7134_v56, %v12242_v55  ;;  %v8187_v10 = vmul.f32 %v7143_v22, %v12244_v5  ;;  %v12251_v49 = vunpack.c.h.bf16 %v12223_v18 }
 0x265   :  { %v8192_v50 = vmul.f32 %v7146_v13, %v12247_v63  ;;  %v8197_v31 = vmul.f32 %v7149_v26, %v12249_v6 }
 0x266   :  { %12243 = vst [vmem:[#allocation366_spill] sm:$0xff] %v8182_v39  ;;  %12245 = vst [vmem:[#allocation512_spill] sm:$0xff] %v8187_v10  ;;  %v8202_v55 = vmul.f32 %v7152_v3, %v12251_v49  ;;  %v12253_v39 = vld [vmem:[#allocation368_spill] sm:$0xff] }
 0x267   :  { %12248 = vst [vmem:[#allocation367_spill] sm:$0xff] %v8192_v50  ;;  %12250 = vst [vmem:[#allocation513_spill] sm:$0xff] %v8197_v31  ;;  %v12254_v38 = vunpack.c.l.bf16 %v12253_v39  ;;  %v12256_v10 = vunpack.c.h.bf16 %v12253_v39  ;;  %v12258_v50 = vld [vmem:[#allocation369_spill] sm:$0xff] }
 0x268   :  { %12252 = vst [vmem:[#allocation514_spill] sm:$0xff] %v8202_v55  ;;  %v12259_v27 = vunpack.c.l.bf16 %v12258_v50  ;;  %v12261_v18 = vunpack.c.h.bf16 %v12258_v50  ;;  %v12263_v55 = vld [vmem:[#allocation370_spill] sm:$0xff] }
 0x269   :  { %v8207_v5 = vmul.f32 %v7116_v40, %v12254_v38  ;;  %v8212_v63 = vmul.f32 %v7119_v12, %v12256_v10  ;;  %v12264_v31 = vunpack.c.l.bf16 %v12263_v55  ;;  %v12266_v39 = vunpack.c.h.bf16 %v12263_v55 }
 0x26a   :  { %v8217_v6 = vmul.f32 %v7122_v46, %v12259_v27  ;;  %v8222_v49 = vmul.f32 %v7125_v48, %v12261_v18 }
 0x26b   :  { %12255 = vst [vmem:[#allocation368_spill] sm:$0xff] %v8207_v5  ;;  %12257 = vst [vmem:[#allocation515_spill] sm:$0xff] %v8212_v63  ;;  %v8227_v38 = vmul.f32 %v7128_v42, %v12264_v31  ;;  %v8232_v10 = vmul.f32 %v7131_v30, %v12266_v39  ;;  %v12268_v63 = vld [vmem:[#allocation349_spill] sm:$0xff] }
 0x26c   :  { %12260 = vst [vmem:[#allocation369_spill] sm:$0xff] %v8217_v6  ;;  %12262 = vst [vmem:[#allocation516_spill] sm:$0xff] %v8222_v49  ;;  %v12269_v5 = vunpack.c.l.bf16 %v12268_v63  ;;  %v12271_v50 = vunpack.c.h.bf16 %v12268_v63  ;;  %v12273_v49 = vld [vmem:[#allocation350_spill] sm:$0xff] }
 0x26d   :  { %12265 = vst [vmem:[#allocation370_spill] sm:$0xff] %v8227_v38  ;;  %12267 = vst [vmem:[#allocation517_spill] sm:$0xff] %v8232_v10  ;;  %v12274_v6 = vunpack.c.l.bf16 %v12273_v49  ;;  %v12276_v55 = vunpack.c.h.bf16 %v12273_v49  ;;  %v12278_v10 = vld [vmem:[#allocation354_spill] sm:$0xff] }
 0x26e   :  { %v8237_v27 = vmul.f32 %v7134_v56, %v12269_v5  ;;  %v8242_v18 = vmul.f32 %v7143_v22, %v12271_v50  ;;  %v12279_v38 = vunpack.c.l.bf16 %v12278_v10 }
 0x26f   :  { %v8247_v31 = vmul.f32 %v7146_v13, %v12274_v6  ;;  %v8252_v39 = vmul.f32 %v7149_v26, %v12276_v55 }
 0x270   :  { %12270 = vst [vmem:[#allocation349_spill] sm:$0xff] %v8237_v27  ;;  %12272 = vst [vmem:[#allocation518_spill] sm:$0xff] %v8242_v18  ;;  %v8257_v5 = vmul.f32 %v7152_v3, %v12279_v38  ;;  %v12281_v27 = vld [vmem:[#allocation355_spill] sm:$0xff] }
 0x271   :  { %12275 = vst [vmem:[#allocation350_spill] sm:$0xff] %v8247_v31  ;;  %12277 = vst [vmem:[#allocation519_spill] sm:$0xff] %v8252_v39  ;;  %v12282_v63 = vunpack.c.l.bf16 %v12281_v27  ;;  %v12284_v18 = vunpack.c.h.bf16 %v12281_v27  ;;  %v12286_v31 = vld [vmem:[#allocation356_spill] sm:$0xff] }
 0x272   :  { %12280 = vst [vmem:[#allocation354_spill] sm:$0xff] %v8257_v5  ;;  %v12287_v49 = vunpack.c.l.bf16 %v12286_v31  ;;  %v12289_v39 = vunpack.c.h.bf16 %v12286_v31  ;;  %v12291_v5 = vld [vmem:[#allocation357_spill] sm:$0xff] }
 0x273   :  { %v8262_v50 = vmul.f32 %v7116_v40, %v12282_v63  ;;  %v8267_v6 = vmul.f32 %v7119_v12, %v12284_v18  ;;  %v12292_v52 = vunpack.c.l.bf16 %v12291_v5  ;;  %v12294_v27 = vunpack.c.h.bf16 %v12291_v5 }
 0x274   :  { %v8272_v55 = vmul.f32 %v7122_v46, %v12287_v49  ;;  %v8277_v38 = vmul.f32 %v7125_v48, %v12289_v39 }
 0x275   :  { %12283 = vst [vmem:[#allocation355_spill] sm:$0xff] %v8262_v50  ;;  %12285 = vst [vmem:[#allocation520_spill] sm:$0xff] %v8267_v6  ;;  %v8282_v63 = vmul.f32 %v7128_v42, %v12292_v52  ;;  %v8287_v18 = vmul.f32 %v7131_v30, %v12294_v27  ;;  %v12296_v6 = vld [vmem:[#allocation358_spill] sm:$0xff] }
 0x276   :  { %12288 = vst [vmem:[#allocation356_spill] sm:$0xff] %v8272_v55  ;;  %12290 = vst [vmem:[#allocation521_spill] sm:$0xff] %v8277_v38  ;;  %v12297_v50 = vunpack.c.l.bf16 %v12296_v6  ;;  %v12299_v31 = vunpack.c.h.bf16 %v12296_v6  ;;  %v12301_v38 = vld [vmem:[#allocation359_spill] sm:$0xff] }
 0x277   :  { %12293 = vst [vmem:[#allocation357_spill] sm:$0xff] %v8282_v63  ;;  %12295 = vst [vmem:[#allocation522_spill] sm:$0xff] %v8287_v18  ;;  %v12302_v55 = vunpack.c.l.bf16 %v12301_v38  ;;  %v12304_v5 = vunpack.c.h.bf16 %v12301_v38  ;;  %v12306_v18 = vunpack.c.h.bf16 %v12278_v10 }
 0x278   :  { %v8292_v49 = vmul.f32 %v7134_v56, %v12297_v50  ;;  %v8297_v39 = vmul.f32 %v7143_v22, %v12299_v31 }
 0x279   :  { %v8302_v52 = vmul.f32 %v7146_v13, %v12302_v55  ;;  %v8307_v27 = vmul.f32 %v7149_v26, %v12304_v5  ;;  %v8312_v50 = vmul.f32 %v7152_v3, %v12306_v18 }
 0x27a   :  { %12298 = vst [vmem:[#allocation358_spill] sm:$0xff] %v8292_v49  ;;  %12300 = vst [vmem:[#allocation523_spill] sm:$0xff] %v8297_v39  ;;  %v12308_v49 = vld [vmem:[#allocation371_spill] sm:$0xff] }
 0x27b   :  { %12303 = vst [vmem:[#allocation359_spill] sm:$0xff] %v8302_v52  ;;  %12305 = vst [vmem:[#allocation524_spill] sm:$0xff] %v8307_v27  ;;  %v12309_v6 = vunpack.c.l.bf16 %v12308_v49  ;;  %v12311_v39 = vunpack.c.h.bf16 %v12308_v49  ;;  %v12313_v52 = vld [vmem:[#allocation372_spill] sm:$0xff] }
 0x27c   :  { %12307 = vst [vmem:[#allocation525_spill] sm:$0xff] %v8312_v50  ;;  %v12314_v38 = vunpack.c.l.bf16 %v12313_v52  ;;  %v12316_v10 = vunpack.c.h.bf16 %v12313_v52  ;;  %v12318_v50 = vld [vmem:[#allocation360_spill] sm:$0xff] }
 0x27d   :  { %v8317_v31 = vmul.f32 %v7116_v40, %v12309_v6  ;;  %v8322_v55 = vmul.f32 %v7119_v12, %v12311_v39  ;;  %v12319_v27 = vunpack.c.l.bf16 %v12318_v50  ;;  %v12321_v49 = vunpack.c.h.bf16 %v12318_v50 }
 0x27e   :  { %v8327_v5 = vmul.f32 %v7122_v46, %v12314_v38  ;;  %v8332_v18 = vmul.f32 %v7125_v48, %v12316_v10 }
 0x27f   :  { %12310 = vst [vmem:[#allocation371_spill] sm:$0xff] %v8317_v31  ;;  %12312 = vst [vmem:[#allocation526_spill] sm:$0xff] %v8322_v55  ;;  %v8337_v6 = vmul.f32 %v7128_v42, %v12319_v27  ;;  %v8342_v39 = vmul.f32 %v7131_v30, %v12321_v49  ;;  %v12323_v55 = vld [vmem:[#allocation346_spill] sm:$0xff] }
 0x280   :  { %12315 = vst [vmem:[#allocation372_spill] sm:$0xff] %v8327_v5  ;;  %12317 = vst [vmem:[#allocation527_spill] sm:$0xff] %v8332_v18  ;;  %v12324_v31 = vunpack.c.l.bf16 %v12323_v55  ;;  %v12326_v52 = vunpack.c.h.bf16 %v12323_v55  ;;  %v12328_v18 = vld [vmem:[#allocation345_spill] sm:$0xff] }
 0x281   :  { %12320 = vst [vmem:[#allocation360_spill] sm:$0xff] %v8337_v6  ;;  %12322 = vst [vmem:[#allocation528_spill] sm:$0xff] %v8342_v39  ;;  %v12329_v5 = vunpack.c.l.bf16 %v12328_v18  ;;  %v12331_v50 = vunpack.c.h.bf16 %v12328_v18  ;;  %v12333_v39 = vld [vmem:[#allocation373_spill] sm:$0xff] }
 0x282   :  { %v8347_v38 = vmul.f32 %v7134_v56, %v12324_v31  ;;  %v8352_v10 = vmul.f32 %v7143_v22, %v12326_v52  ;;  %v12334_v6 = vunpack.c.l.bf16 %v12333_v39 }
 0x283   :  { %v8357_v27 = vmul.f32 %v7146_v13, %v12329_v5  ;;  %v8362_v49 = vmul.f32 %v7149_v26, %v12331_v50 }
 0x284   :  { %12325 = vst [vmem:[#allocation346_spill] sm:$0xff] %v8347_v38  ;;  %12327 = vst [vmem:[#allocation529_spill] sm:$0xff] %v8352_v10  ;;  %v8367_v31 = vmul.f32 %v7152_v3, %v12334_v6  ;;  %v12336_v38 = vld [vmem:[#allocation374_spill] sm:$0xff] }
 0x285   :  { %12330 = vst [vmem:[#allocation345_spill] sm:$0xff] %v8357_v27  ;;  %12332 = vst [vmem:[#allocation530_spill] sm:$0xff] %v8362_v49  ;;  %v12337_v55 = vunpack.c.l.bf16 %v12336_v38  ;;  %v12339_v10 = vunpack.c.h.bf16 %v12336_v38  ;;  %v12341_v27 = vld [vmem:[#allocation375_spill] sm:$0xff] }
 0x286   :  { %12335 = vst [vmem:[#allocation373_spill] sm:$0xff] %v8367_v31  ;;  %v12342_v18 = vunpack.c.l.bf16 %v12341_v27  ;;  %v12344_v49 = vunpack.c.h.bf16 %v12341_v27  ;;  %v12346_v31 = vld [vmem:[#allocation376_spill] sm:$0xff] }
 0x287   :  { %v8372_v52 = vmul.f32 %v7116_v40, %v12337_v55  ;;  %v8377_v5 = vmul.f32 %v7119_v12, %v12339_v10  ;;  %v12347_v63 = vunpack.c.l.bf16 %v12346_v31  ;;  %v12349_v38 = vunpack.c.h.bf16 %v12346_v31 }
 0x288   :  { %v8382_v50 = vmul.f32 %v7122_v46, %v12342_v18  ;;  %v8387_v6 = vmul.f32 %v7125_v48, %v12344_v49 }
 0x289   :  { %12338 = vst [vmem:[#allocation374_spill] sm:$0xff] %v8372_v52  ;;  %12340 = vst [vmem:[#allocation531_spill] sm:$0xff] %v8377_v5  ;;  %v8392_v55 = vmul.f32 %v7128_v42, %v12347_v63  ;;  %v8397_v10 = vmul.f32 %v7131_v30, %v12349_v38  ;;  %v12351_v5 = vld [vmem:[#allocation377_spill] sm:$0xff] }
 0x28a   :  { %12343 = vst [vmem:[#allocation375_spill] sm:$0xff] %v8382_v50  ;;  %12345 = vst [vmem:[#allocation532_spill] sm:$0xff] %v8387_v6  ;;  %v12352_v52 = vunpack.c.l.bf16 %v12351_v5  ;;  %v12354_v27 = vunpack.c.h.bf16 %v12351_v5  ;;  %v12356_v6 = vld [vmem:[#allocation378_spill] sm:$0xff] }
 0x28b   :  { %12348 = vst [vmem:[#allocation376_spill] sm:$0xff] %v8392_v55  ;;  %12350 = vst [vmem:[#allocation533_spill] sm:$0xff] %v8397_v10  ;;  %v12357_v50 = vunpack.c.l.bf16 %v12356_v6  ;;  %v12359_v31 = vunpack.c.h.bf16 %v12356_v6  ;;  %v12361_v10 = vunpack.c.h.bf16 %v12333_v39 }
 0x28c   :  { %v8402_v18 = vmul.f32 %v7134_v56, %v12352_v52  ;;  %v8407_v49 = vmul.f32 %v7143_v22, %v12354_v27 }
 0x28d   :  { %v8412_v63 = vmul.f32 %v7146_v13, %v12357_v50  ;;  %v8417_v38 = vmul.f32 %v7149_v26, %v12359_v31  ;;  %v8422_v52 = vmul.f32 %v7152_v3, %v12361_v10 }
 0x28e   :  { %12353 = vst [vmem:[#allocation377_spill] sm:$0xff] %v8402_v18  ;;  %12355 = vst [vmem:[#allocation534_spill] sm:$0xff] %v8407_v49  ;;  %v12363_v18 = vld [vmem:[#allocation379_spill] sm:$0xff] }
 0x28f   :  { %12358 = vst [vmem:[#allocation378_spill] sm:$0xff] %v8412_v63  ;;  %12360 = vst [vmem:[#allocation535_spill] sm:$0xff] %v8417_v38  ;;  %v12364_v5 = vunpack.c.l.bf16 %v12363_v18  ;;  %v12366_v49 = vunpack.c.h.bf16 %v12363_v18  ;;  %v12368_v63 = vld [vmem:[#allocation380_spill] sm:$0xff] }
 0x290   :  { %12362 = vst [vmem:[#allocation536_spill] sm:$0xff] %v8422_v52  ;;  %v12369_v6 = vunpack.c.l.bf16 %v12368_v63  ;;  %v12371_v39 = vunpack.c.h.bf16 %v12368_v63  ;;  %v12373_v52 = vld [vmem:[#allocation381_spill] sm:$0xff] }
 0x291   :  { %v8427_v27 = vmul.f32 %v7116_v40, %v12364_v5  ;;  %v8432_v50 = vmul.f32 %v7119_v12, %v12366_v49  ;;  %v12374_v38 = vunpack.c.l.bf16 %v12373_v52  ;;  %v12376_v18 = vunpack.c.h.bf16 %v12373_v52 }
 0x292   :  { %v8437_v31 = vmul.f32 %v7122_v46, %v12369_v6  ;;  %v8442_v10 = vmul.f32 %v7125_v48, %v12371_v39 }
 0x293   :  { %12365 = vst [vmem:[#allocation379_spill] sm:$0xff] %v8427_v27  ;;  %12367 = vst [vmem:[#allocation537_spill] sm:$0xff] %v8432_v50  ;;  %v8447_v5 = vmul.f32 %v7128_v42, %v12374_v38  ;;  %v8452_v49 = vmul.f32 %v7131_v30, %v12376_v18  ;;  %v12378_v50 = vld [vmem:[#allocation382_spill] sm:$0xff] }
 0x294   :  { %12370 = vst [vmem:[#allocation380_spill] sm:$0xff] %v8437_v31  ;;  %12372 = vst [vmem:[#allocation538_spill] sm:$0xff] %v8442_v10  ;;  %v12379_v27 = vunpack.c.l.bf16 %v12378_v50  ;;  %v12381_v63 = vunpack.c.h.bf16 %v12378_v50  ;;  %v12383_v10 = vld [vmem:[#allocation383_spill] sm:$0xff] }
 0x295   :  { %12375 = vst [vmem:[#allocation381_spill] sm:$0xff] %v8447_v5  ;;  %12377 = vst [vmem:[#allocation539_spill] sm:$0xff] %v8452_v49  ;;  %v12384_v31 = vunpack.c.l.bf16 %v12383_v10  ;;  %v12386_v52 = vunpack.c.h.bf16 %v12383_v10  ;;  %v12388_v49 = vld [vmem:[#allocation384_spill] sm:$0xff] }
 0x296   :  { %v8457_v6 = vmul.f32 %v7134_v56, %v12379_v27  ;;  %v8462_v39 = vmul.f32 %v7143_v22, %v12381_v63  ;;  %v12389_v5 = vunpack.c.l.bf16 %v12388_v49 }
 0x297   :  { %v8467_v38 = vmul.f32 %v7146_v13, %v12384_v31  ;;  %v8472_v18 = vmul.f32 %v7149_v26, %v12386_v52 }
 0x298   :  { %12380 = vst [vmem:[#allocation382_spill] sm:$0xff] %v8457_v6  ;;  %12382 = vst [vmem:[#allocation540_spill] sm:$0xff] %v8462_v39  ;;  %v8477_v27 = vmul.f32 %v7152_v3, %v12389_v5  ;;  %v12391_v6 = vld [vmem:[#allocation385_spill] sm:$0xff] }
 0x299   :  { %12385 = vst [vmem:[#allocation383_spill] sm:$0xff] %v8467_v38  ;;  %12387 = vst [vmem:[#allocation541_spill] sm:$0xff] %v8472_v18  ;;  %v12392_v50 = vunpack.c.l.bf16 %v12391_v6  ;;  %v12394_v39 = vunpack.c.h.bf16 %v12391_v6  ;;  %v12396_v38 = vld [vmem:[#allocation386_spill] sm:$0xff] }
 0x29a   :  { %12390 = vst [vmem:[#allocation384_spill] sm:$0xff] %v8477_v27  ;;  %v12397_v10 = vunpack.c.l.bf16 %v12396_v38  ;;  %v12399_v18 = vunpack.c.h.bf16 %v12396_v38  ;;  %v12401_v27 = vld [vmem:[#allocation387_spill] sm:$0xff] }
 0x29b   :  { %v8482_v63 = vmul.f32 %v7116_v40, %v12392_v50  ;;  %v8487_v31 = vmul.f32 %v7119_v12, %v12394_v39  ;;  %v12402_v55 = vunpack.c.l.bf16 %v12401_v27  ;;  %v12404_v6 = vunpack.c.h.bf16 %v12401_v27 }
 0x29c   :  { %v8492_v52 = vmul.f32 %v7122_v46, %v12397_v10  ;;  %v8497_v5 = vmul.f32 %v7125_v48, %v12399_v18 }
 0x29d   :  { %12393 = vst [vmem:[#allocation385_spill] sm:$0xff] %v8482_v63  ;;  %12395 = vst [vmem:[#allocation542_spill] sm:$0xff] %v8487_v31  ;;  %v8502_v50 = vmul.f32 %v7128_v42, %v12402_v55  ;;  %v8507_v39 = vmul.f32 %v7131_v30, %v12404_v6  ;;  %v12406_v31 = vld [vmem:[#allocation388_spill] sm:$0xff] }
 0x29e   :  { %12398 = vst [vmem:[#allocation386_spill] sm:$0xff] %v8492_v52  ;;  %12400 = vst [vmem:[#allocation543_spill] sm:$0xff] %v8497_v5  ;;  %v12407_v63 = vunpack.c.l.bf16 %v12406_v31  ;;  %v12409_v38 = vunpack.c.h.bf16 %v12406_v31  ;;  %v12411_v5 = vld [vmem:[#allocation389_spill] sm:$0xff] }
 0x29f   :  { %12403 = vst [vmem:[#allocation387_spill] sm:$0xff] %v8502_v50  ;;  %12405 = vst [vmem:[#allocation544_spill] sm:$0xff] %v8507_v39  ;;  %v12412_v52 = vunpack.c.l.bf16 %v12411_v5  ;;  %v12414_v27 = vunpack.c.h.bf16 %v12411_v5  ;;  %v12416_v39 = vunpack.c.h.bf16 %v12388_v49 }
 0x2a0   :  { %v8512_v10 = vmul.f32 %v7134_v56, %v12407_v63  ;;  %v8517_v18 = vmul.f32 %v7143_v22, %v12409_v38 }
 0x2a1   :  { %v8522_v55 = vmul.f32 %v7146_v13, %v12412_v52  ;;  %v8527_v6 = vmul.f32 %v7149_v26, %v12414_v27  ;;  %v8532_v63 = vmul.f32 %v7152_v3, %v12416_v39 }
 0x2a2   :  { %12408 = vst [vmem:[#allocation388_spill] sm:$0xff] %v8512_v10  ;;  %12410 = vst [vmem:[#allocation545_spill] sm:$0xff] %v8517_v18  ;;  %v12418_v10 = vld [vmem:[#allocation390_spill] sm:$0xff] }
 0x2a3   :  { %12413 = vst [vmem:[#allocation389_spill] sm:$0xff] %v8522_v55  ;;  %12415 = vst [vmem:[#allocation546_spill] sm:$0xff] %v8527_v6  ;;  %v12419_v31 = vunpack.c.l.bf16 %v12418_v10  ;;  %v12421_v18 = vunpack.c.h.bf16 %v12418_v10  ;;  %v12423_v55 = vld [vmem:[#allocation391_spill] sm:$0xff] }
 0x2a4   :  { %12417 = vst [vmem:[#allocation547_spill] sm:$0xff] %v8532_v63  ;;  %v12424_v5 = vunpack.c.l.bf16 %v12423_v55  ;;  %v12426_v49 = vunpack.c.h.bf16 %v12423_v55  ;;  %v12428_v63 = vld [vmem:[#allocation392_spill] sm:$0xff] }
 0x2a5   :  { %v8537_v38 = vmul.f32 %v7116_v40, %v12419_v31  ;;  %v8542_v52 = vmul.f32 %v7119_v12, %v12421_v18  ;;  %v12429_v6 = vunpack.c.l.bf16 %v12428_v63  ;;  %v12431_v10 = vunpack.c.h.bf16 %v12428_v63 }
 0x2a6   :  { %v8547_v27 = vmul.f32 %v7122_v46, %v12424_v5  ;;  %v8552_v39 = vmul.f32 %v7125_v48, %v12426_v49 }
 0x2a7   :  { %12420 = vst [vmem:[#allocation390_spill] sm:$0xff] %v8537_v38  ;;  %12422 = vst [vmem:[#allocation548_spill] sm:$0xff] %v8542_v52  ;;  %v8557_v31 = vmul.f32 %v7128_v42, %v12429_v6  ;;  %v8562_v18 = vmul.f32 %v7131_v30, %v12431_v10  ;;  %v12433_v52 = vld [vmem:[#allocation393_spill] sm:$0xff] }
 0x2a8   :  { %12425 = vst [vmem:[#allocation391_spill] sm:$0xff] %v8547_v27  ;;  %12427 = vst [vmem:[#allocation549_spill] sm:$0xff] %v8552_v39  ;;  %v12434_v38 = vunpack.c.l.bf16 %v12433_v52  ;;  %v12436_v55 = vunpack.c.h.bf16 %v12433_v52  ;;  %v12438_v39 = vld [vmem:[#allocation394_spill] sm:$0xff] }
 0x2a9   :  { %12430 = vst [vmem:[#allocation392_spill] sm:$0xff] %v8557_v31  ;;  %12432 = vst [vmem:[#allocation550_spill] sm:$0xff] %v8562_v18  ;;  %v12439_v27 = vunpack.c.l.bf16 %v12438_v39  ;;  %v12441_v63 = vunpack.c.h.bf16 %v12438_v39  ;;  %v12443_v18 = vld [vmem:[#allocation395_spill] sm:$0xff] }
 0x2aa   :  { %v8567_v5 = vmul.f32 %v7134_v56, %v12434_v38  ;;  %v8572_v49 = vmul.f32 %v7143_v22, %v12436_v55  ;;  %v12444_v31 = vunpack.c.l.bf16 %v12443_v18 }
 0x2ab   :  { %v8577_v6 = vmul.f32 %v7146_v13, %v12439_v27  ;;  %v8582_v10 = vmul.f32 %v7149_v26, %v12441_v63 }
 0x2ac   :  { %12435 = vst [vmem:[#allocation393_spill] sm:$0xff] %v8567_v5  ;;  %12437 = vst [vmem:[#allocation551_spill] sm:$0xff] %v8572_v49  ;;  %v8587_v38 = vmul.f32 %v7152_v3, %v12444_v31  ;;  %v12446_v5 = vld [vmem:[#allocation396_spill] sm:$0xff] }
 0x2ad   :  { %12440 = vst [vmem:[#allocation394_spill] sm:$0xff] %v8577_v6  ;;  %12442 = vst [vmem:[#allocation552_spill] sm:$0xff] %v8582_v10  ;;  %v12447_v52 = vunpack.c.l.bf16 %v12446_v5  ;;  %v12449_v49 = vunpack.c.h.bf16 %v12446_v5  ;;  %v12451_v6 = vld [vmem:[#allocation397_spill] sm:$0xff] }
 0x2ae   :  { %12445 = vst [vmem:[#allocation395_spill] sm:$0xff] %v8587_v38  ;;  %v12452_v39 = vunpack.c.l.bf16 %v12451_v6  ;;  %v12454_v10 = vunpack.c.h.bf16 %v12451_v6  ;;  %v12456_v38 = vld [vmem:[#allocation398_spill] sm:$0xff] }
 0x2af   :  { %v8592_v55 = vmul.f32 %v7116_v40, %v12447_v52  ;;  %v8597_v27 = vmul.f32 %v7119_v12, %v12449_v49  ;;  %v12457_v50 = vunpack.c.l.bf16 %v12456_v38  ;;  %v12459_v5 = vunpack.c.h.bf16 %v12456_v38 }
 0x2b0   :  { %v8602_v63 = vmul.f32 %v7122_v46, %v12452_v39  ;;  %v8607_v31 = vmul.f32 %v7125_v48, %v12454_v10 }
 0x2b1   :  { %12448 = vst [vmem:[#allocation396_spill] sm:$0xff] %v8592_v55  ;;  %12450 = vst [vmem:[#allocation553_spill] sm:$0xff] %v8597_v27  ;;  %v8612_v52 = vmul.f32 %v7128_v42, %v12457_v50  ;;  %v8617_v49 = vmul.f32 %v7131_v30, %v12459_v5  ;;  %v12461_v27 = vld [vmem:[#allocation399_spill] sm:$0xff] }
 0x2b2   :  { %12453 = vst [vmem:[#allocation397_spill] sm:$0xff] %v8602_v63  ;;  %12455 = vst [vmem:[#allocation554_spill] sm:$0xff] %v8607_v31  ;;  %v12462_v55 = vunpack.c.l.bf16 %v12461_v27  ;;  %v12464_v6 = vunpack.c.h.bf16 %v12461_v27  ;;  %v12466_v31 = vld [vmem:[#allocation400_spill] sm:$0xff] }
 0x2b3   :  { %12458 = vst [vmem:[#allocation398_spill] sm:$0xff] %v8612_v52  ;;  %12460 = vst [vmem:[#allocation555_spill] sm:$0xff] %v8617_v49  ;;  %v12467_v63 = vunpack.c.l.bf16 %v12466_v31  ;;  %v12469_v38 = vunpack.c.h.bf16 %v12466_v31  ;;  %v12471_v49 = vunpack.c.h.bf16 %v12443_v18 }
 0x2b4   :  { %v8622_v39 = vmul.f32 %v7134_v56, %v12462_v55  ;;  %v8627_v10 = vmul.f32 %v7143_v22, %v12464_v6 }
 0x2b5   :  { %v8632_v50 = vmul.f32 %v7146_v13, %v12467_v63  ;;  %v8637_v5 = vmul.f32 %v7149_v26, %v12469_v38  ;;  %v8642_v55 = vmul.f32 %v7152_v3, %v12471_v49 }
 0x2b6   :  { %12463 = vst [vmem:[#allocation399_spill] sm:$0xff] %v8622_v39  ;;  %12465 = vst [vmem:[#allocation556_spill] sm:$0xff] %v8627_v10  ;;  %v12473_v39 = vld [vmem:[#allocation401_spill] sm:$0xff] }
 0x2b7   :  { %12468 = vst [vmem:[#allocation400_spill] sm:$0xff] %v8632_v50  ;;  %12470 = vst [vmem:[#allocation557_spill] sm:$0xff] %v8637_v5  ;;  %v12474_v27 = vunpack.c.l.bf16 %v12473_v39  ;;  %v12476_v10 = vunpack.c.h.bf16 %v12473_v39  ;;  %v12478_v50 = vld [vmem:[#allocation402_spill] sm:$0xff] }
 0x2b8   :  { %12472 = vst [vmem:[#allocation558_spill] sm:$0xff] %v8642_v55  ;;  %v12479_v31 = vunpack.c.l.bf16 %v12478_v50  ;;  %v12481_v18 = vunpack.c.h.bf16 %v12478_v50  ;;  %v12483_v55 = vld [vmem:[#allocation403_spill] sm:$0xff] }
 0x2b9   :  { %v8647_v6 = vmul.f32 %v7116_v40, %v12474_v27  ;;  %v8652_v63 = vmul.f32 %v7119_v12, %v12476_v10  ;;  %v12484_v5 = vunpack.c.l.bf16 %v12483_v55  ;;  %v12486_v39 = vunpack.c.h.bf16 %v12483_v55 }
 0x2ba   :  { %v8657_v38 = vmul.f32 %v7122_v46, %v12479_v31  ;;  %v8662_v49 = vmul.f32 %v7125_v48, %v12481_v18 }
 0x2bb   :  { %12475 = vst [vmem:[#allocation401_spill] sm:$0xff] %v8647_v6  ;;  %12477 = vst [vmem:[#allocation559_spill] sm:$0xff] %v8652_v63  ;;  %v8667_v27 = vmul.f32 %v7128_v42, %v12484_v5  ;;  %v8672_v10 = vmul.f32 %v7131_v30, %v12486_v39  ;;  %v12488_v63 = vld [vmem:[#allocation404_spill] sm:$0xff] }
 0x2bc   :  { %12480 = vst [vmem:[#allocation402_spill] sm:$0xff] %v8657_v38  ;;  %12482 = vst [vmem:[#allocation560_spill] sm:$0xff] %v8662_v49  ;;  %v12489_v6 = vunpack.c.l.bf16 %v12488_v63  ;;  %v12491_v50 = vunpack.c.h.bf16 %v12488_v63  ;;  %v12493_v49 = vld [vmem:[#allocation405_spill] sm:$0xff] }
 0x2bd   :  { %12485 = vst [vmem:[#allocation403_spill] sm:$0xff] %v8667_v27  ;;  %12487 = vst [vmem:[#allocation561_spill] sm:$0xff] %v8672_v10  ;;  %v12494_v38 = vunpack.c.l.bf16 %v12493_v49  ;;  %v12496_v55 = vunpack.c.h.bf16 %v12493_v49  ;;  %v12498_v10 = vld [vmem:[#allocation406_spill] sm:$0xff] }
 0x2be   :  { %v8677_v31 = vmul.f32 %v7134_v56, %v12489_v6  ;;  %v8682_v18 = vmul.f32 %v7143_v22, %v12491_v50  ;;  %v12499_v27 = vunpack.c.l.bf16 %v12498_v10 }
 0x2bf   :  { %v8687_v5 = vmul.f32 %v7146_v13, %v12494_v38  ;;  %v8692_v39 = vmul.f32 %v7149_v26, %v12496_v55 }
 0x2c0   :  { %12490 = vst [vmem:[#allocation404_spill] sm:$0xff] %v8677_v31  ;;  %12492 = vst [vmem:[#allocation562_spill] sm:$0xff] %v8682_v18  ;;  %v8697_v6 = vmul.f32 %v7152_v3, %v12499_v27  ;;  %v12501_v31 = vld [vmem:[#allocation407_spill] sm:$0xff] }
 0x2c1   :  { %12495 = vst [vmem:[#allocation405_spill] sm:$0xff] %v8687_v5  ;;  %12497 = vst [vmem:[#allocation563_spill] sm:$0xff] %v8692_v39  ;;  %v12502_v63 = vunpack.c.l.bf16 %v12501_v31  ;;  %v12504_v18 = vunpack.c.h.bf16 %v12501_v31  ;;  %v12506_v5 = vld [vmem:[#allocation408_spill] sm:$0xff] }
 0x2c2   :  { %12500 = vst [vmem:[#allocation406_spill] sm:$0xff] %v8697_v6  ;;  %v12507_v49 = vunpack.c.l.bf16 %v12506_v5  ;;  %v12509_v39 = vunpack.c.h.bf16 %v12506_v5  ;;  %v12511_v6 = vld [vmem:[#allocation409_spill] sm:$0xff] }
 0x2c3   :  { %v8702_v50 = vmul.f32 %v7116_v40, %v12502_v63  ;;  %v8707_v38 = vmul.f32 %v7119_v12, %v12504_v18  ;;  %v12512_v52 = vunpack.c.l.bf16 %v12511_v6  ;;  %v12514_v31 = vunpack.c.h.bf16 %v12511_v6 }
 0x2c4   :  { %v8712_v55 = vmul.f32 %v7122_v46, %v12507_v49  ;;  %v8717_v27 = vmul.f32 %v7125_v48, %v12509_v39 }
 0x2c5   :  { %12503 = vst [vmem:[#allocation407_spill] sm:$0xff] %v8702_v50  ;;  %12505 = vst [vmem:[#allocation564_spill] sm:$0xff] %v8707_v38  ;;  %v8722_v63 = vmul.f32 %v7128_v42, %v12512_v52  ;;  %v8727_v18 = vmul.f32 %v7131_v30, %v12514_v31  ;;  %v12516_v38 = vld [vmem:[#allocation410_spill] sm:$0xff] }
 0x2c6   :  { %12508 = vst [vmem:[#allocation408_spill] sm:$0xff] %v8712_v55  ;;  %12510 = vst [vmem:[#allocation565_spill] sm:$0xff] %v8717_v27  ;;  %v12517_v50 = vunpack.c.l.bf16 %v12516_v38  ;;  %v12519_v5 = vunpack.c.h.bf16 %v12516_v38  ;;  %v12521_v27 = vld [vmem:[#allocation411_spill] sm:$0xff] }
 0x2c7   :  { %12513 = vst [vmem:[#allocation409_spill] sm:$0xff] %v8722_v63  ;;  %12515 = vst [vmem:[#allocation566_spill] sm:$0xff] %v8727_v18  ;;  %v12522_v55 = vunpack.c.l.bf16 %v12521_v27  ;;  %v12524_v6 = vunpack.c.h.bf16 %v12521_v27  ;;  %v12526_v18 = vunpack.c.h.bf16 %v12498_v10 }
 0x2c8   :  { %v8732_v49 = vmul.f32 %v7134_v56, %v12517_v50  ;;  %v8737_v39 = vmul.f32 %v7143_v22, %v12519_v5 }
 0x2c9   :  { %v8742_v52 = vmul.f32 %v7146_v13, %v12522_v55  ;;  %v8747_v31 = vmul.f32 %v7149_v26, %v12524_v6  ;;  %v8752_v50 = vmul.f32 %v7152_v3, %v12526_v18 }
 0x2ca   :  { %12518 = vst [vmem:[#allocation410_spill] sm:$0xff] %v8732_v49  ;;  %12520 = vst [vmem:[#allocation567_spill] sm:$0xff] %v8737_v39  ;;  %v12528_v49 = vld [vmem:[#allocation412_spill] sm:$0xff] }
 0x2cb   :  { %12523 = vst [vmem:[#allocation411_spill] sm:$0xff] %v8742_v52  ;;  %12525 = vst [vmem:[#allocation568_spill] sm:$0xff] %v8747_v31  ;;  %v12529_v38 = vunpack.c.l.bf16 %v12528_v49  ;;  %v12531_v39 = vunpack.c.h.bf16 %v12528_v49  ;;  %v12533_v52 = vld [vmem:[#allocation413_spill] sm:$0xff] }
 0x2cc   :  { %12527 = vst [vmem:[#allocation569_spill] sm:$0xff] %v8752_v50  ;;  %v12534_v27 = vunpack.c.l.bf16 %v12533_v52  ;;  %v12536_v10 = vunpack.c.h.bf16 %v12533_v52  ;;  %v12538_v50 = vld [vmem:[#allocation414_spill] sm:$0xff] }
 0x2cd   :  { %v8757_v5 = vmul.f32 %v7116_v40, %v12529_v38  ;;  %v8762_v55 = vmul.f32 %v7119_v12, %v12531_v39  ;;  %v12539_v31 = vunpack.c.l.bf16 %v12538_v50  ;;  %v12541_v49 = vunpack.c.h.bf16 %v12538_v50 }
 0x2ce   :  { %v8767_v6 = vmul.f32 %v7122_v46, %v12534_v27  ;;  %v8772_v18 = vmul.f32 %v7125_v48, %v12536_v10 }
 0x2cf   :  { %12530 = vst [vmem:[#allocation412_spill] sm:$0xff] %v8757_v5  ;;  %12532 = vst [vmem:[#allocation570_spill] sm:$0xff] %v8762_v55  ;;  %v8777_v38 = vmul.f32 %v7128_v42, %v12539_v31  ;;  %v8782_v39 = vmul.f32 %v7131_v30, %v12541_v49  ;;  %v12543_v55 = vld [vmem:[#allocation415_spill] sm:$0xff] }
 0x2d0   :  { %12535 = vst [vmem:[#allocation413_spill] sm:$0xff] %v8767_v6  ;;  %12537 = vst [vmem:[#allocation571_spill] sm:$0xff] %v8772_v18  ;;  %v12544_v5 = vunpack.c.l.bf16 %v12543_v55  ;;  %v12546_v52 = vunpack.c.h.bf16 %v12543_v55  ;;  %v12548_v18 = vld [vmem:[#allocation416_spill] sm:$0xff] }
 0x2d1   :  { %12540 = vst [vmem:[#allocation414_spill] sm:$0xff] %v8777_v38  ;;  %12542 = vst [vmem:[#allocation572_spill] sm:$0xff] %v8782_v39  ;;  %v12549_v6 = vunpack.c.l.bf16 %v12548_v18  ;;  %v12551_v50 = vunpack.c.h.bf16 %v12548_v18  ;;  %v12553_v39 = vld [vmem:[#allocation417_spill] sm:$0xff] }
 0x2d2   :  { %v8787_v27 = vmul.f32 %v7134_v56, %v12544_v5  ;;  %v8792_v10 = vmul.f32 %v7143_v22, %v12546_v52  ;;  %v12554_v38 = vunpack.c.l.bf16 %v12553_v39 }
 0x2d3   :  { %v8797_v31 = vmul.f32 %v7146_v13, %v12549_v6  ;;  %v8802_v49 = vmul.f32 %v7149_v26, %v12551_v50 }
 0x2d4   :  { %12545 = vst [vmem:[#allocation415_spill] sm:$0xff] %v8787_v27  ;;  %12547 = vst [vmem:[#allocation573_spill] sm:$0xff] %v8792_v10  ;;  %v8807_v5 = vmul.f32 %v7152_v3, %v12554_v38  ;;  %v12556_v27 = vld [vmem:[#allocation418_spill] sm:$0xff] }
 0x2d5   :  { %12550 = vst [vmem:[#allocation416_spill] sm:$0xff] %v8797_v31  ;;  %12552 = vst [vmem:[#allocation574_spill] sm:$0xff] %v8802_v49  ;;  %v12557_v55 = vunpack.c.l.bf16 %v12556_v27  ;;  %v12559_v10 = vunpack.c.h.bf16 %v12556_v27  ;;  %v12561_v31 = vld [vmem:[#allocation419_spill] sm:$0xff] }
 0x2d6   :  { %12555 = vst [vmem:[#allocation417_spill] sm:$0xff] %v8807_v5  ;;  %v12562_v18 = vunpack.c.l.bf16 %v12561_v31  ;;  %v12564_v49 = vunpack.c.h.bf16 %v12561_v31  ;;  %v12566_v5 = vld [vmem:[#allocation420_spill] sm:$0xff] }
 0x2d7   :  { %v8812_v52 = vmul.f32 %v7116_v40, %v12557_v55  ;;  %v8817_v6 = vmul.f32 %v7119_v12, %v12559_v10  ;;  %v12567_v63 = vunpack.c.l.bf16 %v12566_v5  ;;  %v12569_v27 = vunpack.c.h.bf16 %v12566_v5 }
 0x2d8   :  { %v8822_v50 = vmul.f32 %v7122_v46, %v12562_v18  ;;  %v8827_v38 = vmul.f32 %v7125_v48, %v12564_v49 }
 0x2d9   :  { %12558 = vst [vmem:[#allocation418_spill] sm:$0xff] %v8812_v52  ;;  %12560 = vst [vmem:[#allocation575_spill] sm:$0xff] %v8817_v6  ;;  %v8832_v55 = vmul.f32 %v7128_v42, %v12567_v63  ;;  %v8837_v10 = vmul.f32 %v7131_v30, %v12569_v27  ;;  %v12571_v6 = vld [vmem:[#allocation421_spill] sm:$0xff] }
 0x2da   :  { %12563 = vst [vmem:[#allocation419_spill] sm:$0xff] %v8822_v50  ;;  %12565 = vst [vmem:[#allocation576_spill] sm:$0xff] %v8827_v38  ;;  %v12572_v52 = vunpack.c.l.bf16 %v12571_v6  ;;  %v12574_v31 = vunpack.c.h.bf16 %v12571_v6  ;;  %v12576_v38 = vld [vmem:[#allocation422_spill] sm:$0xff] }
 0x2db   :  { %12568 = vst [vmem:[#allocation420_spill] sm:$0xff] %v8832_v55  ;;  %12570 = vst [vmem:[#allocation577_spill] sm:$0xff] %v8837_v10  ;;  %v12577_v50 = vunpack.c.l.bf16 %v12576_v38  ;;  %v12579_v5 = vunpack.c.h.bf16 %v12576_v38  ;;  %v12581_v10 = vunpack.c.h.bf16 %v12553_v39 }
 0x2dc   :  { %v8842_v18 = vmul.f32 %v7134_v56, %v12572_v52  ;;  %v8847_v49 = vmul.f32 %v7143_v22, %v12574_v31 }
 0x2dd   :  { %v8852_v63 = vmul.f32 %v7146_v13, %v12577_v50  ;;  %v8857_v27 = vmul.f32 %v7149_v26, %v12579_v5  ;;  %v8862_v52 = vmul.f32 %v7152_v3, %v12581_v10 }
 0x2de   :  { %12573 = vst [vmem:[#allocation421_spill] sm:$0xff] %v8842_v18  ;;  %12575 = vst [vmem:[#allocation578_spill] sm:$0xff] %v8847_v49  ;;  %v12583_v18 = vld [vmem:[#allocation423_spill] sm:$0xff] }
 0x2df   :  { %12578 = vst [vmem:[#allocation422_spill] sm:$0xff] %v8852_v63  ;;  %12580 = vst [vmem:[#allocation579_spill] sm:$0xff] %v8857_v27  ;;  %v12584_v6 = vunpack.c.l.bf16 %v12583_v18  ;;  %v12586_v49 = vunpack.c.h.bf16 %v12583_v18  ;;  %v12588_v63 = vld [vmem:[#allocation424_spill] sm:$0xff] }
 0x2e0   :  { %12582 = vst [vmem:[#allocation580_spill] sm:$0xff] %v8862_v52  ;;  %v12589_v38 = vunpack.c.l.bf16 %v12588_v63  ;;  %v12591_v39 = vunpack.c.h.bf16 %v12588_v63  ;;  %v12593_v52 = vld [vmem:[#allocation425_spill] sm:$0xff] }
 0x2e1   :  { %v8867_v31 = vmul.f32 %v7116_v40, %v12584_v6  ;;  %v8872_v50 = vmul.f32 %v7119_v12, %v12586_v49  ;;  %v12594_v27 = vunpack.c.l.bf16 %v12593_v52  ;;  %v12596_v18 = vunpack.c.h.bf16 %v12593_v52 }
 0x2e2   :  { %v8877_v5 = vmul.f32 %v7122_v46, %v12589_v38  ;;  %v8882_v10 = vmul.f32 %v7125_v48, %v12591_v39 }
 0x2e3   :  { %12585 = vst [vmem:[#allocation423_spill] sm:$0xff] %v8867_v31  ;;  %12587 = vst [vmem:[#allocation581_spill] sm:$0xff] %v8872_v50  ;;  %v8887_v6 = vmul.f32 %v7128_v42, %v12594_v27  ;;  %v8892_v49 = vmul.f32 %v7131_v30, %v12596_v18  ;;  %v12598_v50 = vld [vmem:[#allocation426_spill] sm:$0xff] }
 0x2e4   :  { %12590 = vst [vmem:[#allocation424_spill] sm:$0xff] %v8877_v5  ;;  %12592 = vst [vmem:[#allocation582_spill] sm:$0xff] %v8882_v10  ;;  %v12599_v31 = vunpack.c.l.bf16 %v12598_v50  ;;  %v12601_v63 = vunpack.c.h.bf16 %v12598_v50  ;;  %v12603_v10 = vld [vmem:[#allocation427_spill] sm:$0xff] }
 0x2e5   :  { %12595 = vst [vmem:[#allocation425_spill] sm:$0xff] %v8887_v6  ;;  %12597 = vst [vmem:[#allocation583_spill] sm:$0xff] %v8892_v49  ;;  %v12604_v5 = vunpack.c.l.bf16 %v12603_v10  ;;  %v12606_v52 = vunpack.c.h.bf16 %v12603_v10  ;;  %v12608_v49 = vld [vmem:[#allocation428_spill] sm:$0xff] }
 0x2e6   :  { %v8897_v38 = vmul.f32 %v7134_v56, %v12599_v31  ;;  %v8902_v39 = vmul.f32 %v7143_v22, %v12601_v63  ;;  %v12609_v6 = vunpack.c.l.bf16 %v12608_v49 }
 0x2e7   :  { %v8907_v27 = vmul.f32 %v7146_v13, %v12604_v5  ;;  %v8912_v18 = vmul.f32 %v7149_v26, %v12606_v52 }
 0x2e8   :  { %12600 = vst [vmem:[#allocation426_spill] sm:$0xff] %v8897_v38  ;;  %12602 = vst [vmem:[#allocation584_spill] sm:$0xff] %v8902_v39  ;;  %v8917_v31 = vmul.f32 %v7152_v3, %v12609_v6  ;;  %v12611_v38 = vld [vmem:[#allocation429_spill] sm:$0xff] }
 0x2e9   :  { %12605 = vst [vmem:[#allocation427_spill] sm:$0xff] %v8907_v27  ;;  %12607 = vst [vmem:[#allocation585_spill] sm:$0xff] %v8912_v18  ;;  %v12612_v50 = vunpack.c.l.bf16 %v12611_v38  ;;  %v12614_v39 = vunpack.c.h.bf16 %v12611_v38  ;;  %v12616_v27 = vld [vmem:[#allocation430_spill] sm:$0xff] }
 0x2ea   :  { %12610 = vst [vmem:[#allocation428_spill] sm:$0xff] %v8917_v31  ;;  %v12617_v10 = vunpack.c.l.bf16 %v12616_v27  ;;  %v12619_v18 = vunpack.c.h.bf16 %v12616_v27  ;;  %v12621_v31 = vld [vmem:[#allocation431_spill] sm:$0xff] }
 0x2eb   :  { %v8922_v63 = vmul.f32 %v7116_v40, %v12612_v50  ;;  %v8927_v5 = vmul.f32 %v7119_v12, %v12614_v39  ;;  %v12622_v55 = vunpack.c.l.bf16 %v12621_v31  ;;  %v12624_v38 = vunpack.c.h.bf16 %v12621_v31 }
 0x2ec   :  { %v8932_v52 = vmul.f32 %v7122_v46, %v12617_v10  ;;  %v8937_v6 = vmul.f32 %v7125_v48, %v12619_v18 }
 0x2ed   :  { %12613 = vst [vmem:[#allocation429_spill] sm:$0xff] %v8922_v63  ;;  %12615 = vst [vmem:[#allocation586_spill] sm:$0xff] %v8927_v5  ;;  %v8942_v50 = vmul.f32 %v7128_v42, %v12622_v55  ;;  %v8947_v39 = vmul.f32 %v7131_v30, %v12624_v38  ;;  %v12626_v5 = vld [vmem:[#allocation432_spill] sm:$0xff] }
 0x2ee   :  { %12618 = vst [vmem:[#allocation430_spill] sm:$0xff] %v8932_v52  ;;  %12620 = vst [vmem:[#allocation587_spill] sm:$0xff] %v8937_v6  ;;  %v12627_v63 = vunpack.c.l.bf16 %v12626_v5  ;;  %v12629_v27 = vunpack.c.h.bf16 %v12626_v5  ;;  %v12631_v6 = vld [vmem:[#allocation433_spill] sm:$0xff] }
 0x2ef   :  { %12623 = vst [vmem:[#allocation431_spill] sm:$0xff] %v8942_v50  ;;  %12625 = vst [vmem:[#allocation588_spill] sm:$0xff] %v8947_v39  ;;  %v12632_v52 = vunpack.c.l.bf16 %v12631_v6  ;;  %v12634_v31 = vunpack.c.h.bf16 %v12631_v6  ;;  %v12636_v39 = vunpack.c.h.bf16 %v12608_v49 }
 0x2f0   :  { %v8952_v10 = vmul.f32 %v7134_v56, %v12627_v63  ;;  %v8957_v18 = vmul.f32 %v7143_v22, %v12629_v27 }
 0x2f1   :  { %v8962_v55 = vmul.f32 %v7146_v13, %v12632_v52  ;;  %v8967_v38 = vmul.f32 %v7149_v26, %v12634_v31  ;;  %v8972_v63 = vmul.f32 %v7152_v3, %v12636_v39 }
 0x2f2   :  { %12628 = vst [vmem:[#allocation432_spill] sm:$0xff] %v8952_v10  ;;  %12630 = vst [vmem:[#allocation589_spill] sm:$0xff] %v8957_v18  ;;  %v12638_v10 = vld [vmem:[#allocation434_spill] sm:$0xff] }
 0x2f3   :  { %12633 = vst [vmem:[#allocation433_spill] sm:$0xff] %v8962_v55  ;;  %12635 = vst [vmem:[#allocation590_spill] sm:$0xff] %v8967_v38  ;;  %v12639_v5 = vunpack.c.l.bf16 %v12638_v10  ;;  %v12641_v18 = vunpack.c.h.bf16 %v12638_v10  ;;  %v12643_v55 = vld [vmem:[#allocation435_spill] sm:$0xff] }
 0x2f4   :  { %12637 = vst [vmem:[#allocation591_spill] sm:$0xff] %v8972_v63  ;;  %v12644_v6 = vunpack.c.l.bf16 %v12643_v55  ;;  %v12646_v49 = vunpack.c.h.bf16 %v12643_v55  ;;  %v12648_v63 = vld [vmem:[#allocation436_spill] sm:$0xff] }
 0x2f5   :  { %v8977_v27 = vmul.f32 %v7116_v40, %v12639_v5  ;;  %v8982_v52 = vmul.f32 %v7119_v12, %v12641_v18  ;;  %v12649_v38 = vunpack.c.l.bf16 %v12648_v63  ;;  %v12651_v10 = vunpack.c.h.bf16 %v12648_v63 }
 0x2f6   :  { %v8987_v31 = vmul.f32 %v7122_v46, %v12644_v6  ;;  %v8992_v39 = vmul.f32 %v7125_v48, %v12646_v49 }
 0x2f7   :  { %12640 = vst [vmem:[#allocation434_spill] sm:$0xff] %v8977_v27  ;;  %12642 = vst [vmem:[#allocation592_spill] sm:$0xff] %v8982_v52  ;;  %v8997_v5 = vmul.f32 %v7128_v42, %v12649_v38  ;;  %v9002_v18 = vmul.f32 %v7131_v30, %v12651_v10  ;;  %v12653_v52 = vld [vmem:[#allocation437_spill] sm:$0xff] }
 0x2f8   :  { %12645 = vst [vmem:[#allocation435_spill] sm:$0xff] %v8987_v31  ;;  %12647 = vst [vmem:[#allocation593_spill] sm:$0xff] %v8992_v39  ;;  %v12654_v27 = vunpack.c.l.bf16 %v12653_v52  ;;  %v12656_v55 = vunpack.c.h.bf16 %v12653_v52  ;;  %v12658_v39 = vld [vmem:[#allocation438_spill] sm:$0xff] }
 0x2f9   :  { %12650 = vst [vmem:[#allocation436_spill] sm:$0xff] %v8997_v5  ;;  %12652 = vst [vmem:[#allocation594_spill] sm:$0xff] %v9002_v18  ;;  %v12659_v31 = vunpack.c.l.bf16 %v12658_v39  ;;  %v12661_v63 = vunpack.c.h.bf16 %v12658_v39  ;;  %v12663_v18 = vld [vmem:[#allocation439_spill] sm:$0xff] }
 0x2fa   :  { %v9007_v6 = vmul.f32 %v7134_v56, %v12654_v27  ;;  %v9012_v49 = vmul.f32 %v7143_v22, %v12656_v55  ;;  %v12664_v5 = vunpack.c.l.bf16 %v12663_v18 }
 0x2fb   :  { %v9017_v38 = vmul.f32 %v7146_v13, %v12659_v31  ;;  %v9022_v10 = vmul.f32 %v7149_v26, %v12661_v63 }
 0x2fc   :  { %12655 = vst [vmem:[#allocation437_spill] sm:$0xff] %v9007_v6  ;;  %12657 = vst [vmem:[#allocation595_spill] sm:$0xff] %v9012_v49  ;;  %v9027_v27 = vmul.f32 %v7152_v3, %v12664_v5  ;;  %v12666_v6 = vld [vmem:[#allocation440_spill] sm:$0xff] }
 0x2fd   :  { %12660 = vst [vmem:[#allocation438_spill] sm:$0xff] %v9017_v38  ;;  %12662 = vst [vmem:[#allocation596_spill] sm:$0xff] %v9022_v10  ;;  %v12667_v52 = vunpack.c.l.bf16 %v12666_v6  ;;  %v12669_v49 = vunpack.c.h.bf16 %v12666_v6  ;;  %v12671_v38 = vld [vmem:[#allocation441_spill] sm:$0xff] }
 0x2fe   :  { %12665 = vst [vmem:[#allocation439_spill] sm:$0xff] %v9027_v27  ;;  %v12672_v39 = vunpack.c.l.bf16 %v12671_v38  ;;  %v12674_v10 = vunpack.c.h.bf16 %v12671_v38  ;;  %v12676_v27 = vld [vmem:[#allocation442_spill] sm:$0xff] }
 0x2ff   :  { %v9032_v55 = vmul.f32 %v7116_v40, %v12667_v52  ;;  %v9037_v31 = vmul.f32 %v7119_v12, %v12669_v49  ;;  %v12677_v50 = vunpack.c.l.bf16 %v12676_v27  ;;  %v12679_v6 = vunpack.c.h.bf16 %v12676_v27 }
 0x300   :  { %v9042_v63 = vmul.f32 %v7122_v46, %v12672_v39  ;;  %v9047_v5 = vmul.f32 %v7125_v48, %v12674_v10 }
 0x301   :  { %12668 = vst [vmem:[#allocation440_spill] sm:$0xff] %v9032_v55  ;;  %12670 = vst [vmem:[#allocation597_spill] sm:$0xff] %v9037_v31  ;;  %v9052_v52 = vmul.f32 %v7128_v42, %v12677_v50  ;;  %v9057_v49 = vmul.f32 %v7131_v30, %v12679_v6  ;;  %v12681_v31 = vld [vmem:[#allocation443_spill] sm:$0xff] }
 0x302   :  { %12673 = vst [vmem:[#allocation441_spill] sm:$0xff] %v9042_v63  ;;  %12675 = vst [vmem:[#allocation598_spill] sm:$0xff] %v9047_v5  ;;  %v12682_v55 = vunpack.c.l.bf16 %v12681_v31  ;;  %v12684_v38 = vunpack.c.h.bf16 %v12681_v31  ;;  %v12686_v5 = vld [vmem:[#allocation444_spill] sm:$0xff] }
 0x303   :  { %12678 = vst [vmem:[#allocation442_spill] sm:$0xff] %v9052_v52  ;;  %12680 = vst [vmem:[#allocation599_spill] sm:$0xff] %v9057_v49  ;;  %v12687_v63 = vunpack.c.l.bf16 %v12686_v5  ;;  %v12689_v27 = vunpack.c.h.bf16 %v12686_v5  ;;  %v12691_v49 = vunpack.c.h.bf16 %v12663_v18 }
 0x304   :  { %v9062_v39 = vmul.f32 %v7134_v56, %v12682_v55  ;;  %v9067_v10 = vmul.f32 %v7143_v22, %v12684_v38 }
 0x305   :  { %v9072_v50 = vmul.f32 %v7146_v13, %v12687_v63  ;;  %v9077_v6 = vmul.f32 %v7149_v26, %v12689_v27  ;;  %v9082_v55 = vmul.f32 %v7152_v3, %v12691_v49 }
 0x306   :  { %12683 = vst [vmem:[#allocation443_spill] sm:$0xff] %v9062_v39  ;;  %12685 = vst [vmem:[#allocation600_spill] sm:$0xff] %v9067_v10  ;;  %v12693_v39 = vld [vmem:[#allocation445_spill] sm:$0xff] }
 0x307   :  { %12688 = vst [vmem:[#allocation444_spill] sm:$0xff] %v9072_v50  ;;  %12690 = vst [vmem:[#allocation601_spill] sm:$0xff] %v9077_v6  ;;  %v12694_v31 = vunpack.c.l.bf16 %v12693_v39  ;;  %v12696_v10 = vunpack.c.h.bf16 %v12693_v39  ;;  %v12698_v50 = vld [vmem:[#allocation446_spill] sm:$0xff] }
 0x308   :  { %12692 = vst [vmem:[#allocation602_spill] sm:$0xff] %v9082_v55  ;;  %v12699_v5 = vunpack.c.l.bf16 %v12698_v50  ;;  %v12701_v18 = vunpack.c.h.bf16 %v12698_v50  ;;  %v12703_v55 = vld [vmem:[#allocation447_spill] sm:$0xff]  ;;  %v12996_v44 = vld [vmem:[#allocation597_spill] sm:$0xff] }
 0x309   :  { %v9087_v38 = vmul.f32 %v7116_v40, %v12694_v31  ;;  %v9092_v63 = vmul.f32 %v7119_v12, %v12696_v10  ;;  %v12704_v6 = vunpack.c.l.bf16 %v12703_v55  ;;  %v12706_v39 = vunpack.c.h.bf16 %v12703_v55 }
 0x30a   :  { %v9097_v27 = vmul.f32 %v7122_v46, %v12699_v5  ;;  %v9102_v49 = vmul.f32 %v7125_v48, %v12701_v18 }
 0x30b   :  { %12695 = vst [vmem:[#allocation445_spill] sm:$0xff] %v9087_v38  ;;  %12697 = vst [vmem:[#allocation603_spill] sm:$0xff] %v9092_v63  ;;  %v9107_v31 = vmul.f32 %v7128_v42, %v12704_v6  ;;  %v9112_v10 = vmul.f32 %v7131_v30, %v12706_v39  ;;  %v12708_v63 = vld [vmem:[#allocation448_spill] sm:$0xff] }
 0x30c   :  { %12700 = vst [vmem:[#allocation446_spill] sm:$0xff] %v9097_v27  ;;  %12702 = vst [vmem:[#allocation604_spill] sm:$0xff] %v9102_v49  ;;  %v12709_v38 = vunpack.c.l.bf16 %v12708_v63  ;;  %v12711_v50 = vunpack.c.h.bf16 %v12708_v63  ;;  %v12713_v49 = vld [vmem:[#allocation449_spill] sm:$0xff] }
 0x30d   :  { %12705 = vst [vmem:[#allocation447_spill] sm:$0xff] %v9107_v31  ;;  %12707 = vst [vmem:[#allocation605_spill] sm:$0xff] %v9112_v10  ;;  %v12714_v27 = vunpack.c.l.bf16 %v12713_v49  ;;  %v12716_v55 = vunpack.c.h.bf16 %v12713_v49  ;;  %v12718_v10 = vunpack.c.l.bf16 %v7682_v47 }
 0x30e   :  { %v9117_v5 = vmul.f32 %v7134_v56, %v12709_v38  ;;  %v9122_v18 = vmul.f32 %v7143_v22, %v12711_v50 }
 0x30f   :  { %v9127_v6 = vmul.f32 %v7146_v13, %v12714_v27  ;;  %v9132_v39 = vmul.f32 %v7149_v26, %v12716_v55  ;;  %v9137_v38 = vmul.f32 %v7152_v3, %v12718_v10 }
 0x310   :  { %12710 = vst [vmem:[#allocation448_spill] sm:$0xff] %v9117_v5  ;;  %12712 = vst [vmem:[#allocation606_spill] sm:$0xff] %v9122_v18  ;;  %v12720_v5 = vld [vmem:[#allocation450_spill] sm:$0xff] }
 0x311   :  { %12715 = vst [vmem:[#allocation449_spill] sm:$0xff] %v9127_v6  ;;  %12717 = vst [vmem:[#allocation607_spill] sm:$0xff] %v9132_v39  ;;  %v12721_v63 = vunpack.c.l.bf16 %v12720_v5  ;;  %v12723_v18 = vunpack.c.h.bf16 %v12720_v5  ;;  %v12725_v6 = vld [vmem:[#allocation451_spill] sm:$0xff] }
 0x312   :  { %12719 = vst [vmem:[#allocation608_spill] sm:$0xff] %v9137_v38  ;;  %v12726_v49 = vunpack.c.l.bf16 %v12725_v6  ;;  %v12728_v39 = vunpack.c.h.bf16 %v12725_v6  ;;  %v12730_v38 = vld [vmem:[#allocation452_spill] sm:$0xff]  ;;  %v13016_v52 = vld [vmem:[#allocation603_spill] sm:$0xff] }
 0x313   :  { %v9142_v50 = vmul.f32 %v7116_v40, %v12721_v63  ;;  %v9147_v27 = vmul.f32 %v7119_v12, %v12723_v18  ;;  %v12731_v31 = vunpack.c.l.bf16 %v12730_v38  ;;  %v12732_v5 = vunpack.c.h.bf16 %v12730_v38 }
 0x314   :  { %v9152_v55 = vmul.f32 %v7122_v46, %v12726_v49  ;;  %v9157_v10 = vmul.f32 %v7125_v48, %v12728_v39  ;;  %v12741_v38 = vunpack.c.h.bf16 %v7700_v23 }
 0x315   :  { %12722 = vst [vmem:[#allocation450_spill] sm:$0xff] %v9142_v50  ;;  %12724 = vst [vmem:[#allocation609_spill] sm:$0xff] %v9147_v27  ;;  %v9162_v63 = vmul.f32 %v7128_v42, %v12731_v31  ;;  %v9167_v18 = vmul.f32 %v7131_v30, %v12732_v5  ;;  %v12734_v27 = vld [vmem:[#allocation453_spill] sm:$0xff] }
 0x316   :  { %12727 = vst [vmem:[#allocation451_spill] sm:$0xff] %v9152_v55  ;;  %12729 = vst [vmem:[#allocation610_spill] sm:$0xff] %v9157_v10  ;;  %v12735_v50 = vunpack.c.l.bf16 %v12734_v27  ;;  %v12737_v6 = vunpack.c.h.bf16 %v12734_v27  ;;  %v12739_v10 = vunpack.c.l.bf16 %v7700_v23  ;;  %v9187_v5 = vmul.f32 %v7149_v26, %v12741_v38 }
 0x317   :  { %12733 = vst [vmem:[#allocation452_spill] sm:$0xff] %v9167_v18  ;;  %v12743_v18 = vunpack.c.h.bf16 %v7682_v47  ;;  %v12749_v23 = vunpack.c.l.bf16 %v7712_v34  ;;  %v12750_v47 = vunpack.c.h.bf16 %v7712_v34  ;;  %v12759_v34 = vunpack.c.h.bf16 %v7720_v36 }
 0x318   :  { %v9172_v49 = vmul.f32 %v7134_v56, %v12735_v50  ;;  %v9177_v39 = vmul.f32 %v7143_v22, %v12737_v6  ;;  %v9182_v31 = vmul.f32 %v7146_v13, %v12739_v10  ;;  %12742 = vst [vmem:[#allocation613_spill] sm:$0xff] %v9187_v5 }
 0x319   :  { %v9192_v50 = vmul.f32 %v7152_v3, %v12743_v18  ;;  %v9207_v38 = vmul.f32 %v7122_v46, %v12749_v23  ;;  %v9212_v18 = vmul.f32 %v7125_v48, %v12750_v47  ;;  %v9232_v47 = vmul.f32 %v7143_v22, %v12759_v34 }
 0x31a   :  { %12736 = vst [vmem:[#allocation453_spill] sm:$0xff] %v9172_v49  ;;  %12738 = vst [vmem:[#allocation611_spill] sm:$0xff] %v9177_v39  ;;  %v12745_v49 = vld [vmem:[#allocation454_spill] sm:$0xff] }
 0x31b   :  { %12740 = vst [vmem:[#allocation612_spill] sm:$0xff] %v9182_v31  ;;  %12744 = vst [vmem:[#allocation614_spill] sm:$0xff] %v9192_v50  ;;  %v12746_v27 = vunpack.c.l.bf16 %v12745_v49  ;;  %v12747_v39 = vunpack.c.h.bf16 %v12745_v49  ;;  %v12752_v50 = vld [vmem:[#allocation455_spill] sm:$0xff] }
 0x31c   :  { %12751 = vst [vmem:[#allocation615_spill] sm:$0xff] %v9212_v18  ;;  %v12753_v5 = vunpack.c.l.bf16 %v12752_v50  ;;  %v12755_v49 = vunpack.c.h.bf16 %v12752_v50  ;;  %12760 = vst [vmem:[#allocation618_spill] sm:$0xff] %v9232_v47  ;;  %v12761_v18 = vunpack.c.l.bf16 %v7722_v2  ;;  %v12762_v50 = vunpack.c.h.bf16 %v7722_v2  ;;  %v13017_v8 = vld [vmem:[#allocation609_spill] sm:$0xff] }
 0x31d   :  { %v9197_v6 = vmul.f32 %v7116_v40, %v12746_v27  ;;  %v9202_v10 = vmul.f32 %v7119_v12, %v12747_v39  ;;  %v12767_v47 = vunpack.c.h.bf16 %v7730_v37  ;;  %v12768_v2 = vunpack.c.l.bf16 %v7732_v45  ;;  %v13020_v9 = vld [vmem:[#allocation610_spill] sm:$0xff] }
 0x31e   :  { %v9217_v27 = vmul.f32 %v7128_v42, %v12753_v5  ;;  %v9222_v39 = vmul.f32 %v7131_v30, %v12755_v49  ;;  %v9237_v5 = vmul.f32 %v7146_v13, %v12761_v18  ;;  %v9242_v49 = vmul.f32 %v7149_v26, %v12762_v50 }
 0x31f   :  { %12748 = vst [vmem:[#allocation454_spill] sm:$0xff] %v9202_v10  ;;  %v12757_v10 = vunpack.c.l.bf16 %v7720_v36  ;;  %v12766_v36 = vunpack.c.l.bf16 %v7730_v37  ;;  %v9257_v18 = vmul.f32 %v7119_v12, %v12767_v47  ;;  %v9262_v50 = vmul.f32 %v7122_v46, %v12768_v2 }
 0x320   :  { %12754 = vst [vmem:[#allocation455_spill] sm:$0xff] %v9217_v27  ;;  %12756 = vst [vmem:[#allocation616_spill] sm:$0xff] %v9222_v39  ;;  %v12764_v39 = vunpack.c.l.bf16 %v7728_v35  ;;  %v12772_v37 = vunpack.c.h.bf16 %v7738_v14  ;;  %v12773_v47 = vunpack.c.l.bf16 %v7740_v24  ;;  %v13041_v27 = vld [vmem:[#allocation102_spill] sm:$0xff] }
 0x321   :  { %v9227_v23 = vmul.f32 %v7134_v56, %v12757_v10  ;;  %12763 = vst [vmem:[#allocation619_spill] sm:$0xff] %v9242_v49  ;;  %v9252_v34 = vmul.f32 %v7116_v40, %v12766_v36  ;;  %v12769_v49 = vunpack.c.h.bf16 %v7732_v45  ;;  %v12775_v45 = vunpack.c.h.bf16 %v7740_v24  ;;  %v12780_v36 = vld [vmem:[#allocation457_spill] sm:$0xff]  ;;  %v13027_v24 = vld [vmem:[#allocation611_spill] sm:$0xff] }
 0x322   :  { %v9247_v10 = vmul.f32 %v7152_v3, %v12764_v39  ;;  %v9277_v12 = vmul.f32 %v7131_v30, %v12772_v37  ;;  %v9282_v46 = vmul.f32 %v7134_v56, %v12773_v47  ;;  %v13023_v47 = vld [vmem:[#allocation452_spill] sm:$0xff] }
 0x323   :  { %12758 = vst [vmem:[#allocation617_spill] sm:$0xff] %v9227_v23  ;;  %v9267_v39 = vmul.f32 %v7125_v48, %v12769_v49  ;;  %v9287_v48 = vmul.f32 %v7143_v22, %v12775_v45  ;;  %v12776_v49 = vunpack.c.l.bf16 %v7746_v0  ;;  %v12802_v22 = vld [vmem:[#allocation490_spill] sm:$0xff]  ;;  %v13025_v45 = vld [vmem:[#allocation453_spill] sm:$0xff]  ;;  %v13034_v37 = vld [vmem:[#allocation615_spill] sm:$0xff] }
 0x324   :  { %12765 = vst [vmem:[#allocation620_spill] sm:$0xff] %v9247_v10  ;;  %v12770_v10 = vunpack.c.l.bf16 %v7738_v14  ;;  %12774 = vst [vmem:[#allocation622_spill] sm:$0xff] %v9282_v46  ;;  %v12777_v14 = vunpack.c.h.bf16 %v7746_v0  ;;  %v13045_v46 = vld [vmem:[#allocation101_spill] sm:$0xff] }
 0x325   :  { %v2966_v55 = vpack.c.bf16 %v13046_v41, %v13045_v46 }
 0x326   :  { %v9272_v40 = vmul.f32 %v7128_v42, %v12770_v10  ;;  %v9292_v42 = vmul.f32 %v7146_v13, %v12776_v49  ;;  %v9297_v30 = vmul.f32 %v7149_v26, %v12777_v14  ;;  %v12778_v10 = vunpack.c.h.bf16 %v7728_v35  ;;  %v13022_v35 = vld [vmem:[#allocation605_spill] sm:$0xff]  ;;  %v13026_v14 = vld [vmem:[#allocation606_spill] sm:$0xff]  ;;  %v13042_v13 = vld [vmem:[#allocation104_spill] sm:$0xff] }
 0x327   :  { %v13033_v0 = vld [vmem:[#allocation454_spill] sm:$0xff]  ;;  %v2935_v49 = vpack.c.bf16 %v13040_v15, %v13039_v20  ;;  %v13044_v26 = vld [vmem:[#allocation39_spill] sm:$0xff] }
 0x328   :  { %12771 = vst [vmem:[#allocation621_spill] sm:$0xff] %v9272_v40  ;;  %v9302_v56 = vmul.f32 %v7152_v3, %v12778_v10  ;;  %v12791_v3 = vld [vmem:[#allocation474_spill] sm:$0xff]  ;;  %v13019_v10 = vld [vmem:[#allocation604_spill] sm:$0xff]  ;;  %v13037_v2 = vld [vmem:[#allocation619_spill] sm:$0xff]  ;;  %v2967_v40 = vpack.c.bf16 %v13042_v13, %v13041_v27  ;;  %v2934_v23 = vpack.c.bf16 %v13044_v26, %v13043_v28 }
 0x32a   :  { %12779 = vst [vmem:[#allocation623_spill] sm:$0xff] %v9302_v56 }
 0x32b   :  { %4334 = dma.done.wait [#allocation4 + $0x1], 43008 }
 0x32c   :  { %4335 = vsyncadd [#allocation4 + $0x1], 4294924288  ;;  %v13048_v29 = vld [vmem:[#allocation34_spill] sm:$0xff]  ;;  %v13049_v59 = vld [vmem:[#allocation36_spill] sm:$0xff]  ;;  %v13052_v27 = vpack.c.bf16 %v7837_v25, %v12780_v36  ;;  %3130 = vmatprep.subr.bf16.mxu0 %v2935_v49  ;;  %3303 = vmatprep.subr.bf16.mxu1 %v2967_v40  ;;  %vm4169_vm1 = vcmask 556032  }
 0x32d   :  { %v2933_v31 = vpack.c.bf16 %v13049_v59, %v13048_v29  ;;  %v13050_v56 = vld [vmem:[#allocation98_spill] sm:$0xff]  ;;  %v13051_v15 = vld [vmem:[#allocation100_spill] sm:$0xff]  ;;  %3131 = vmatpush1.bf16.msra.mxu0 %v2934_v23  ;;  %3304 = vmatpush1.bf16.msra.mxu1 %v2966_v55  ;;  %v13053_v41 = vld [vmem:[#allocation33_spill] sm:$0xff] }
 0x32e   :  { %v2965_v20 = vpack.c.bf16 %v13051_v15, %v13050_v56  ;;  %3335 = vmatprep.mubr.bf16.mxu1 %v13052_v27  ;;  %v13054_v28 = vld [vmem:[#allocation35_spill] sm:$0xff]  ;;  %v13055_v60 = vld [vmem:[#allocation97_spill] sm:$0xff]  ;;  %v13057_v29 = vld [vmem:[#allocation30_spill] sm:$0xff] }
 0x32f   :  { %v2932_v32 = vpack.c.bf16 %v13054_v28, %v13053_v41  ;;  %v13056_v62 = vld [vmem:[#allocation99_spill] sm:$0xff]  ;;  %3132 = vmatprep.subr.bf16.mxu0 %v2933_v31  ;;  %v13058_v59 = vld [vmem:[#allocation32_spill] sm:$0xff]  ;;  %v13059_v56 = vld [vmem:[#allocation94_spill] sm:$0xff] }
 0x330   :  { %v2964_v46 = vpack.c.bf16 %v13056_v62, %v13055_v60  ;;  %3305 = vmatprep.subr.bf16.mxu1 %v2965_v20  ;;  %v2931_v13 = vpack.c.bf16 %v13058_v59, %v13057_v29  ;;  %v13060_v26 = vld [vmem:[#allocation96_spill] sm:$0xff]  ;;  %v13061_v25 = vld [vmem:[#allocation29_spill] sm:$0xff]  ;;  %v13062_v40 = vld [vmem:[#allocation31_spill] sm:$0xff] }
 0x331   :  { %v2963_v15 = vpack.c.bf16 %v13060_v26, %v13059_v56  ;;  %3133 = vmatpush1.bf16.msra.mxu0 %v2932_v32  ;;  %v2930_v23 = vpack.c.bf16 %v13062_v40, %v13061_v25  ;;  %v13063_v55 = vld [vmem:[#allocation93_spill] sm:$0xff]  ;;  %v13064_v36 = vld [vmem:[#allocation95_spill] sm:$0xff]  ;;  %v13065_v27 = vld [vmem:[#allocation26_spill] sm:$0xff] }
 0x332   :  { %3306 = vmatpush1.bf16.msra.mxu1 %v2964_v46  ;;  %v2962_v49 = vpack.c.bf16 %v13064_v36, %v13063_v55  ;;  %3134 = vmatprep.subr.bf16.mxu0 %v2931_v13  ;;  %v13066_v41 = vld [vmem:[#allocation28_spill] sm:$0xff]  ;;  %v13067_v20 = vld [vmem:[#allocation90_spill] sm:$0xff]  ;;  %v13069_v62 = vld [vmem:[#allocation25_spill] sm:$0xff] }
 0x333   :  { %3307 = vmatprep.subr.bf16.mxu1 %v2963_v15  ;;  %v2929_v31 = vpack.c.bf16 %v13066_v41, %v13065_v27  ;;  %v13068_v28 = vld [vmem:[#allocation92_spill] sm:$0xff]  ;;  %v13070_v29 = vld [vmem:[#allocation27_spill] sm:$0xff]  ;;  %v13071_v46 = vld [vmem:[#allocation89_spill] sm:$0xff] }
 0x334   :  { %v2961_v60 = vpack.c.bf16 %v13068_v28, %v13067_v20  ;;  %v2928_v32 = vpack.c.bf16 %v13070_v29, %v13069_v62  ;;  %v13072_v59 = vld [vmem:[#allocation91_spill] sm:$0xff]  ;;  %v13073_v26 = vld [vmem:[#allocation22_spill] sm:$0xff]  ;;  %v13074_v25 = vld [vmem:[#allocation24_spill] sm:$0xff] }
 0x335   :  { %3135 = vmatpush1.bf16.msra.mxu0 %v2930_v23  ;;  %v2960_v56 = vpack.c.bf16 %v13072_v59, %v13071_v46  ;;  %v2927_v13 = vpack.c.bf16 %v13074_v25, %v13073_v26  ;;  %v13075_v15 = vld [vmem:[#allocation86_spill] sm:$0xff]  ;;  %v13076_v40 = vld [vmem:[#allocation88_spill] sm:$0xff]  ;;  %v13077_v36 = vld [vmem:[#allocation21_spill] sm:$0xff] }
 0x336   :  { %3308 = vmatpush1.bf16.msra.mxu1 %v2962_v49  ;;  %3136 = vmatprep.subr.bf16.mxu0 %v2929_v31  ;;  %v2959_v55 = vpack.c.bf16 %v13076_v40, %v13075_v15  ;;  %v13078_v27 = vld [vmem:[#allocation23_spill] sm:$0xff]  ;;  %v13079_v49 = vld [vmem:[#allocation85_spill] sm:$0xff]  ;;  %v13081_v28 = vld [vmem:[#allocation18_spill] sm:$0xff] }
 0x337   :  { %3309 = vmatprep.subr.bf16.mxu1 %v2961_v60  ;;  %v2926_v23 = vpack.c.bf16 %v13078_v27, %v13077_v36  ;;  %v13080_v41 = vld [vmem:[#allocation87_spill] sm:$0xff]  ;;  %v13082_v62 = vld [vmem:[#allocation20_spill] sm:$0xff]  ;;  %v13083_v60 = vld [vmem:[#allocation82_spill] sm:$0xff] }
 0x338   :  { %v2958_v20 = vpack.c.bf16 %v13080_v41, %v13079_v49  ;;  %v2925_v31 = vpack.c.bf16 %v13082_v62, %v13081_v28  ;;  %v13084_v29 = vld [vmem:[#allocation84_spill] sm:$0xff]  ;;  %v13085_v59 = vld [vmem:[#allocation17_spill] sm:$0xff]  ;;  %v13086_v26 = vld [vmem:[#allocation19_spill] sm:$0xff] }
 0x339   :  { %3137 = vmatpush1.bf16.msra.mxu0 %v2928_v32  ;;  %v2957_v46 = vpack.c.bf16 %v13084_v29, %v13083_v60  ;;  %v2924_v32 = vpack.c.bf16 %v13086_v26, %v13085_v59  ;;  %v13088_v25 = vld [vmem:[#allocation83_spill] sm:$0xff]  ;;  %v13089_v40 = vld [vmem:[#allocation14_spill] sm:$0xff]  ;;  %v13090_v36 = vld [vmem:[#allocation16_spill] sm:$0xff] }
 0x33a   :  { %3310 = vmatpush1.bf16.msra.mxu1 %v2960_v56  ;;  %3138 = vmatprep.subr.bf16.mxu0 %v2927_v13  ;;  %v13087_v56 = vld [vmem:[#allocation81_spill] sm:$0xff]  ;;  %v2923_v13 = vpack.c.bf16 %v13090_v36, %v13089_v40  ;;  %v13092_v27 = vld [vmem:[#allocation80_spill] sm:$0xff]  ;;  %v13094_v28 = vld [vmem:[#allocation15_spill] sm:$0xff] }
 0x33b   :  { %3311 = vmatprep.subr.bf16.mxu1 %v2959_v55  ;;  %v2956_v15 = vpack.c.bf16 %v13088_v25, %v13087_v56  ;;  %v13091_v55 = vld [vmem:[#allocation78_spill] sm:$0xff]  ;;  %v13093_v41 = vld [vmem:[#allocation13_spill] sm:$0xff]  ;;  %v13096_v62 = vld [vmem:[#allocation79_spill] sm:$0xff] }
 0x33c   :  { %v2955_v49 = vpack.c.bf16 %v13092_v27, %v13091_v55  ;;  %v13097_v29 = vld [vmem:[#allocation10_spill] sm:$0xff]  ;;  %v13098_v59 = vld [vmem:[#allocation12_spill] sm:$0xff]  ;;  %v13101_v25 = vld [vmem:[#allocation9_spill] sm:$0xff] }
 0x33d   :  { %3139 = vmatpush1.bf16.msra.mxu0 %v2926_v23  ;;  %v2922_v23 = vpack.c.bf16 %v13094_v28, %v13093_v41  ;;  %v13100_v26 = vld [vmem:[#allocation76_spill] sm:$0xff]  ;;  %v13102_v40 = vld [vmem:[#allocation11_spill] sm:$0xff]  ;;  %v13105_v27 = vld [vmem:[#allocation70_spill] sm:$0xff] }
 0x33e   :  { %3312 = vmatpush1.bf16.msra.mxu1 %v2958_v20  ;;  %3140 = vmatprep.subr.bf16.mxu0 %v2925_v31  ;;  %v13095_v20 = vld [vmem:[#allocation77_spill] sm:$0xff]  ;;  %v2921_v31 = vpack.c.bf16 %v13098_v59, %v13097_v29  ;;  %v13104_v36 = vld [vmem:[#allocation75_spill] sm:$0xff]  ;;  %v13106_v41 = vld [vmem:[#allocation72_spill] sm:$0xff] }
 0x33f   :  { %3313 = vmatprep.subr.bf16.mxu1 %v2957_v46  ;;  %v2954_v60 = vpack.c.bf16 %v13096_v62, %v13095_v20  ;;  %v13099_v46 = vld [vmem:[#allocation74_spill] sm:$0xff]  ;;  %v13108_v28 = vld [vmem:[#allocation136_spill] sm:$0xff]  ;;  %v13109_v62 = vld [vmem:[#allocation69_spill] sm:$0xff] }
 0x340   :  { %v2953_v56 = vpack.c.bf16 %v13100_v26, %v13099_v46  ;;  %v13110_v29 = vld [vmem:[#allocation71_spill] sm:$0xff]  ;;  %v13113_v26 = vld [vmem:[#allocation66_spill] sm:$0xff] }
 0x341   :  { %3141 = vmatpush1.bf16.msra.mxu0 %v2924_v32  ;;  %v2920_v32 = vpack.c.bf16 %v13102_v40, %v13101_v25  ;;  %v13112_v59 = vld [vmem:[#allocation135_spill] sm:$0xff]  ;;  %v13114_v25 = vld [vmem:[#allocation68_spill] sm:$0xff] }
 0x342   :  { %3314 = vmatpush1.bf16.msra.mxu1 %v2956_v15  ;;  %3142 = vmatprep.subr.bf16.mxu0 %v2923_v13  ;;  %v13103_v15 = vld [vmem:[#allocation73_spill] sm:$0xff]  ;;  %v2951_v13 = vpack.c.bf16 %v13106_v41, %v13105_v27  ;;  %v13116_v40 = vld [vmem:[#allocation132_spill] sm:$0xff]  ;;  %v13118_v27 = vld [vmem:[#allocation67_spill] sm:$0xff] }
 0x343   :  { %3315 = vmatprep.subr.bf16.mxu1 %v2955_v49  ;;  %v2952_v55 = vpack.c.bf16 %v13104_v36, %v13103_v15  ;;  %v13107_v49 = vld [vmem:[#allocation134_spill] sm:$0xff]  ;;  %v13117_v36 = vld [vmem:[#allocation65_spill] sm:$0xff]  ;;  %v13120_v41 = vld [vmem:[#allocation131_spill] sm:$0xff] }
 0x344   :  { %v2983_v20 = vpack.c.bf16 %v13108_v28, %v13107_v49  ;;  %v13121_v28 = vld [vmem:[#allocation62_spill] sm:$0xff] }
 0x345   :  { %3143 = vmatpush1.bf16.msra.mxu0 %v2922_v23  ;;  %v2950_v23 = vpack.c.bf16 %v13110_v29, %v13109_v62  ;;  %v13122_v62 = vld [vmem:[#allocation64_spill] sm:$0xff] }
 0x346   :  { %3316 = vmatpush1.bf16.msra.mxu1 %v2954_v60  ;;  %3144 = vmatprep.subr.bf16.mxu0 %v2921_v31  ;;  %v13111_v60 = vld [vmem:[#allocation133_spill] sm:$0xff]  ;;  %v2949_v31 = vpack.c.bf16 %v13114_v25, %v13113_v26  ;;  %v13124_v29 = vld [vmem:[#allocation128_spill] sm:$0xff]  ;;  %v13126_v26 = vld [vmem:[#allocation63_spill] sm:$0xff] }
 0x347   :  { %3317 = vmatprep.subr.bf16.mxu1 %v2953_v56  ;;  %v2982_v46 = vpack.c.bf16 %v13112_v59, %v13111_v60  ;;  %v13115_v56 = vld [vmem:[#allocation130_spill] sm:$0xff]  ;;  %v13125_v59 = vld [vmem:[#allocation61_spill] sm:$0xff]  ;;  %v13128_v25 = vld [vmem:[#allocation127_spill] sm:$0xff] }
 0x348   :  { %v2981_v15 = vpack.c.bf16 %v13116_v40, %v13115_v56  ;;  %v13129_v40 = vld [vmem:[#allocation58_spill] sm:$0xff] }
 0x349   :  { %3145 = vmatpush1.bf16.msra.mxu0 %v2920_v32  ;;  %v2948_v32 = vpack.c.bf16 %v13118_v27, %v13117_v36  ;;  %v13130_v36 = vld [vmem:[#allocation60_spill] sm:$0xff] }
 0x34a   :  { %3318 = vmatpush1.bf16.msra.mxu1 %v2952_v55  ;;  %3146 = vmatprep.subr.bf16.mxu0 %v2951_v13  ;;  %v13119_v55 = vld [vmem:[#allocation129_spill] sm:$0xff]  ;;  %v2947_v13 = vpack.c.bf16 %v13122_v62, %v13121_v28  ;;  %v13132_v27 = vld [vmem:[#allocation124_spill] sm:$0xff]  ;;  %v13134_v28 = vld [vmem:[#allocation59_spill] sm:$0xff] }
 0x34b   :  { %3319 = vmatprep.subr.bf16.mxu1 %v2983_v20  ;;  %v2980_v49 = vpack.c.bf16 %v13120_v41, %v13119_v55  ;;  %v13123_v20 = vld [vmem:[#allocation126_spill] sm:$0xff]  ;;  %v13133_v41 = vld [vmem:[#allocation57_spill] sm:$0xff]  ;;  %v13136_v62 = vld [vmem:[#allocation123_spill] sm:$0xff] }
 0x34c   :  { %v2979_v60 = vpack.c.bf16 %v13124_v29, %v13123_v20  ;;  %v13137_v29 = vld [vmem:[#allocation54_spill] sm:$0xff] }
 0x34d   :  { %3147 = vmatpush2.bf16.msra.mxu0 %v2950_v23  ;;  %v2946_v23 = vpack.c.bf16 %v13126_v26, %v13125_v59  ;;  %v13138_v59 = vld [vmem:[#allocation56_spill] sm:$0xff] }
 0x34e   :  { %3320 = vmatpush2.bf16.msra.mxu1 %v2982_v46  ;;  %3148 = vmatprep.subr.bf16.mxu0 %v2949_v31  ;;  %v13127_v46 = vld [vmem:[#allocation125_spill] sm:$0xff]  ;;  %v2945_v31 = vpack.c.bf16 %v13130_v36, %v13129_v40  ;;  %v13140_v26 = vld [vmem:[#allocation120_spill] sm:$0xff]  ;;  %v13142_v40 = vld [vmem:[#allocation55_spill] sm:$0xff] }
 0x34f   :  { %3321 = vmatprep.subr.bf16.mxu1 %v2981_v15  ;;  %v2978_v56 = vpack.c.bf16 %v13128_v25, %v13127_v46  ;;  %v13131_v15 = vld [vmem:[#allocation122_spill] sm:$0xff]  ;;  %v13141_v25 = vld [vmem:[#allocation53_spill] sm:$0xff]  ;;  %v13144_v36 = vld [vmem:[#allocation119_spill] sm:$0xff] }
 0x350   :  { %v2977_v55 = vpack.c.bf16 %v13132_v27, %v13131_v15  ;;  %v13145_v27 = vld [vmem:[#allocation50_spill] sm:$0xff] }
 0x351   :  { %3149 = vmatpush2.bf16.msra.mxu0 %v2948_v32  ;;  %v2944_v32 = vpack.c.bf16 %v13134_v28, %v13133_v41  ;;  %v13146_v41 = vld [vmem:[#allocation52_spill] sm:$0xff] }
 0x352   :  { %3322 = vmatpush2.bf16.msra.mxu1 %v2980_v49  ;;  %3150 = vmatprep.subr.bf16.mxu0 %v2947_v13  ;;  %v13135_v49 = vld [vmem:[#allocation121_spill] sm:$0xff]  ;;  %v2943_v13 = vpack.c.bf16 %v13138_v59, %v13137_v29  ;;  %v13148_v28 = vld [vmem:[#allocation116_spill] sm:$0xff]  ;;  %v13150_v29 = vld [vmem:[#allocation51_spill] sm:$0xff] }
 0x353   :  { %3323 = vmatprep.subr.bf16.mxu1 %v2979_v60  ;;  %v2976_v20 = vpack.c.bf16 %v13136_v62, %v13135_v49  ;;  %v13139_v60 = vld [vmem:[#allocation118_spill] sm:$0xff]  ;;  %v13149_v62 = vld [vmem:[#allocation49_spill] sm:$0xff]  ;;  %v13152_v59 = vld [vmem:[#allocation115_spill] sm:$0xff] }
 0x354   :  { %v2975_v46 = vpack.c.bf16 %v13140_v26, %v13139_v60  ;;  %v13153_v26 = vld [vmem:[#allocation46_spill] sm:$0xff] }
 0x355   :  { %3151 = vmatpush2.bf16.msra.mxu0 %v2946_v23  ;;  %v2942_v23 = vpack.c.bf16 %v13142_v40, %v13141_v25  ;;  %v13154_v25 = vld [vmem:[#allocation48_spill] sm:$0xff] }
 0x356   :  { %3324 = vmatpush2.bf16.msra.mxu1 %v2978_v56  ;;  %3152 = vmatprep.subr.bf16.mxu0 %v2945_v31  ;;  %v13143_v56 = vld [vmem:[#allocation117_spill] sm:$0xff]  ;;  %v2941_v31 = vpack.c.bf16 %v13146_v41, %v13145_v27  ;;  %v13156_v40 = vld [vmem:[#allocation112_spill] sm:$0xff]  ;;  %v13158_v27 = vld [vmem:[#allocation47_spill] sm:$0xff] }
 0x357   :  { %3325 = vmatprep.subr.bf16.mxu1 %v2977_v55  ;;  %v2974_v15 = vpack.c.bf16 %v13144_v36, %v13143_v56  ;;  %v13147_v55 = vld [vmem:[#allocation114_spill] sm:$0xff]  ;;  %v13157_v36 = vld [vmem:[#allocation45_spill] sm:$0xff]  ;;  %v13160_v41 = vld [vmem:[#allocation111_spill] sm:$0xff] }
 0x358   :  { %v2973_v49 = vpack.c.bf16 %v13148_v28, %v13147_v55  ;;  %v13161_v28 = vld [vmem:[#allocation42_spill] sm:$0xff] }
 0x359   :  { %3153 = vmatpush2.bf16.msra.mxu0 %v2944_v32  ;;  %v2940_v32 = vpack.c.bf16 %v13150_v29, %v13149_v62  ;;  %v13162_v62 = vld [vmem:[#allocation44_spill] sm:$0xff] }
 0x35a   :  { %3326 = vmatpush2.bf16.msra.mxu1 %v2976_v20  ;;  %3154 = vmatprep.subr.bf16.mxu0 %v2943_v13  ;;  %v13151_v20 = vld [vmem:[#allocation113_spill] sm:$0xff]  ;;  %v2939_v13 = vpack.c.bf16 %v13154_v25, %v13153_v26  ;;  %v13164_v29 = vld [vmem:[#allocation108_spill] sm:$0xff]  ;;  %v13166_v26 = vld [vmem:[#allocation43_spill] sm:$0xff] }
 0x35b   :  { %3327 = vmatprep.subr.bf16.mxu1 %v2975_v46  ;;  %v2972_v60 = vpack.c.bf16 %v13152_v59, %v13151_v20  ;;  %v13155_v46 = vld [vmem:[#allocation110_spill] sm:$0xff]  ;;  %v13165_v59 = vld [vmem:[#allocation41_spill] sm:$0xff]  ;;  %v13168_v25 = vld [vmem:[#allocation107_spill] sm:$0xff] }
 0x35c   :  { %v2971_v56 = vpack.c.bf16 %v13156_v40, %v13155_v46  ;;  %v13169_v40 = vld [vmem:[#allocation166_spill] sm:$0xff] }
 0x35d   :  { %3155 = vmatpush2.bf16.msra.mxu0 %v2942_v23  ;;  %v2938_v23 = vpack.c.bf16 %v13158_v27, %v13157_v36  ;;  %v13170_v36 = vld [vmem:[#allocation168_spill] sm:$0xff] }
 0x35e   :  { %3328 = vmatpush2.bf16.msra.mxu1 %v2974_v15  ;;  %3156 = vmatprep.subr.bf16.mxu0 %v2941_v31  ;;  %v13159_v15 = vld [vmem:[#allocation109_spill] sm:$0xff]  ;;  %v2937_v31 = vpack.c.bf16 %v13162_v62, %v13161_v28  ;;  %v13172_v27 = vld [vmem:[#allocation232_spill] sm:$0xff]  ;;  %v13174_v28 = vld [vmem:[#allocation167_spill] sm:$0xff] }
 0x35f   :  { %3329 = vmatprep.subr.bf16.mxu1 %v2973_v49  ;;  %v2970_v55 = vpack.c.bf16 %v13160_v41, %v13159_v15  ;;  %v13163_v49 = vld [vmem:[#allocation106_spill] sm:$0xff]  ;;  %v13173_v41 = vld [vmem:[#allocation165_spill] sm:$0xff]  ;;  %v13176_v62 = vld [vmem:[#allocation231_spill] sm:$0xff] }
 0x360   :  { %v2969_v20 = vpack.c.bf16 %v13164_v29, %v13163_v49  ;;  %v13177_v29 = vld [vmem:[#allocation162_spill] sm:$0xff] }
 0x361   :  { %3157 = vmatpush2.bf16.msra.mxu0 %v2940_v32  ;;  %v2936_v32 = vpack.c.bf16 %v13166_v26, %v13165_v59  ;;  %v13178_v59 = vld [vmem:[#allocation164_spill] sm:$0xff] }
 0x362   :  { %3330 = vmatpush2.bf16.msra.mxu1 %v2972_v60  ;;  %3158 = vmatprep.subr.bf16.mxu0 %v2939_v13  ;;  %v13167_v60 = vld [vmem:[#allocation105_spill] sm:$0xff]  ;;  %v2999_v13 = vpack.c.bf16 %v13170_v36, %v13169_v40  ;;  %v13180_v26 = vld [vmem:[#allocation228_spill] sm:$0xff] }
 0x363   :  { %3331 = vmatprep.subr.bf16.mxu1 %v2971_v56  ;;  %v2968_v46 = vpack.c.bf16 %v13168_v25, %v13167_v60  ;;  %v13171_v56 = vld [vmem:[#allocation230_spill] sm:$0xff]  ;;  %v13181_v25 = vpack.c.bf16 %v7822_v54, %v7767_v21  ;;  %v13185_v36 = vld [vmem:[#allocation161_spill] sm:$0xff]  ;;  %v13190_v21 = vpack.c.bf16 %v7947_v11, %v12791_v3  ;;  %v13200_v3 = vld [vmem:[#allocation156_spill] sm:$0xff] }
 0x364   :  { %v3031_v15 = vpack.c.bf16 %v13172_v27, %v13171_v56  ;;  %v13186_v56 = vld [vmem:[#allocation163_spill] sm:$0xff]  ;;  %v13187_v27 = vld [vmem:[#allocation225_spill] sm:$0xff]  ;;  %v13191_v54 = vld [vmem:[#allocation158_spill] sm:$0xff] }
 0x365   :  { %3159 = vmatpush2.bf16.msra.mxu0 %v2938_v23  ;;  %v2998_v23 = vpack.c.bf16 %v13174_v28, %v13173_v41  ;;  %v13189_v28 = vpack.c.bf16 %v7937_v57, %v12790_v51  ;;  %v13197_v51 = vld [vmem:[#allocation221_spill] sm:$0xff]  ;;  %v13198_v57 = vld [vmem:[#allocation223_spill] sm:$0xff]  ;;  %v13199_v11 = vld [vmem:[#allocation154_spill] sm:$0xff] }
 0x366   :  { %3332 = vmatpush2.bf16.msra.mxu1 %v2970_v55  ;;  %3160 = vmatprep.subr.bf16.mxu0 %v2937_v31  ;;  %v13175_v55 = vld [vmem:[#allocation229_spill] sm:$0xff]  ;;  %v2997_v31 = vpack.c.bf16 %v13178_v59, %v13177_v29  ;;  %v13193_v29 = vld [vmem:[#allocation222_spill] sm:$0xff] }
 0x367   :  { %3333 = vmatprep.subr.bf16.mxu1 %v2969_v20  ;;  %v3030_v49 = vpack.c.bf16 %v13176_v62, %v13175_v55  ;;  %v13179_v20 = vld [vmem:[#allocation226_spill] sm:$0xff]  ;;  %v13192_v55 = vld [vmem:[#allocation160_spill] sm:$0xff]  ;;  %v13195_v59 = vld [vmem:[#allocation157_spill] sm:$0xff] }
 0x368   :  { %v3029_v60 = vpack.c.bf16 %v13180_v26, %v13179_v20  ;;  %v2995_v62 = vpack.c.bf16 %v13192_v55, %v13191_v54  ;;  %v13196_v20 = vld [vmem:[#allocation159_spill] sm:$0xff]  ;;  %v13213_v54 = vld [vmem:[#allocation214_spill] sm:$0xff] }
 0x369   :  { %3161 = vmatpush2.bf16.msra.mxu0 %v2936_v32  ;;  %v13182_v32 = vld [vmem:[#allocation465_spill] sm:$0xff]  ;;  %v2994_v26 = vpack.c.bf16 %v13196_v20, %v13195_v59  ;;  %v13220_v59 = vld [vmem:[#allocation148_spill] sm:$0xff] }
 0x36a   :  { %3334 = vmatpush2.bf16.msra.mxu1 %v2968_v46  ;;  %3476 = vmatprep.subr.bf16.mxu0 %v2999_v13  ;;  %v13183_v46 = vld [vmem:[#allocation456_spill] sm:$0xff]  ;;  %v2996_v13 = vpack.c.bf16 %v13186_v56, %v13185_v36  ;;  %v13205_v56 = vpack.c.bf16 %v8047_v58, %v12801_v53 }
 0x36b   :  { %3649 = vmatprep.subr.bf16.mxu1 %v3031_v15  ;;  %v13184_v40 = vpack.c.bf16 %v13182_v32, %v13183_v46  ;;  %v13188_v15 = vld [vmem:[#allocation227_spill] sm:$0xff]  ;;  %v2993_v32 = vpack.c.bf16 %v13200_v3, %v13199_v11  ;;  %v13201_v46 = vld [vmem:[#allocation218_spill] sm:$0xff]  ;;  %v13214_v53 = vld [vmem:[#allocation216_spill] sm:$0xff]  ;;  %v13224_v11 = vpack.c.bf16 %v8052_v61, %v7997_v19 }
 0x36c   :  { %3163 = vmatmul.mubr.bf16.vlgmr.msra.gmra.mxu0 %v13181_v25  ;;  %v3028_v41 = vpack.c.bf16 %v13188_v15, %v13187_v27  ;;  %v3026_v25 = vpack.c.bf16 %v13198_v57, %v13197_v51  ;;  %v13207_v27 = vld [vmem:[#allocation153_spill] sm:$0xff]  ;;  %v13208_v15 = vld [vmem:[#allocation155_spill] sm:$0xff]  ;;  %v3023_v58 = vpack.c.bf16 %v13214_v53, %v13213_v54  ;;  %v13222_v51 = vld [vmem:[#allocation212_spill] sm:$0xff] }
 0x36d   :  { %3336 = vmatmul.mubr.bf16.vlgmr.msra.gmra.mxu1 %v13184_v40  ;;  %3477 = vmatpush1.bf16.msra.mxu0 %v2998_v23  ;;  %v13194_v23 = vld [vmem:[#allocation224_spill] sm:$0xff]  ;;  %v13225_v3 = vld [vmem:[#allocation509_spill] sm:$0xff]  ;;  %v13235_v19 = vld [vmem:[#allocation142_spill] sm:$0xff] }
 0x36e   :  { %3650 = vmatpush1.bf16.msra.mxu1 %v3030_v49  ;;  %3172 = vmatprep.mubr.bf16.mxu0 %v13189_v28  ;;  %v3027_v49 = vpack.c.bf16 %v13194_v23, %v13193_v29  ;;  %v13202_v40 = vld [vmem:[#allocation220_spill] sm:$0xff]  ;;  %v13209_v28 = vld [vmem:[#allocation217_spill] sm:$0xff]  ;;  %v13218_v29 = vld [vmem:[#allocation215_spill] sm:$0xff] }
 0x36f   :  { %3345 = vmatprep.mubr.bf16.mxu1 %v13190_v21  ;;  %3478 = vmatprep.subr.bf16.mxu0 %v2997_v31  ;;  %v3025_v36 = vpack.c.bf16 %v13202_v40, %v13201_v46  ;;  %v13203_v31 = vpack.c.bf16 %v7932_v1, %v7877_v4  ;;  %v13210_v4 = vld [vmem:[#allocation219_spill] sm:$0xff]  ;;  %v13228_v40 = vld [vmem:[#allocation510_spill] sm:$0xff]  ;;  %v13236_v61 = vld [vmem:[#allocation144_spill] sm:$0xff] }
 0x370   :  { %3651 = vmatprep.subr.bf16.mxu1 %v3029_v60  ;;  %v13204_v60 = vpack.c.bf16 %v7942_v43, %v7887_v33  ;;  %v3024_v1 = vpack.c.bf16 %v13210_v4, %v13209_v28  ;;  %v13211_v33 = vld [vmem:[#allocation150_spill] sm:$0xff]  ;;  %v13212_v43 = vld [vmem:[#allocation152_spill] sm:$0xff]  ;;  %v13242_v54 = vld [vmem:[#allocation207_spill] sm:$0xff] }
 0x371   :  { %3479 = vmatpush1.bf16.msra.mxu0 %v2996_v13  ;;  %v13206_v13 = vpack.c.bf16 %v8057_v16, %v12802_v22  ;;  %v2991_v21 = vpack.c.bf16 %v13212_v43, %v13211_v33  ;;  %v13215_v16 = vld [vmem:[#allocation149_spill] sm:$0xff]  ;;  %v13216_v22 = vld [vmem:[#allocation151_spill] sm:$0xff]  ;;  %v13238_v28 = vld [vmem:[#allocation208_spill] sm:$0xff] }
 0x372   :  { %3652 = vmatpush1.bf16.msra.mxu1 %v3028_v41  ;;  %3480 = vmatprep.subr.bf16.mxu0 %v2995_v62  ;;  %v2992_v41 = vpack.c.bf16 %v13208_v15, %v13207_v27  ;;  %v2990_v55 = vpack.c.bf16 %v13216_v22, %v13215_v16  ;;  %v13217_v62 = vld [vmem:[#allocation213_spill] sm:$0xff]  ;;  %v2987_v15 = vpack.c.bf16 %v13236_v61, %v13235_v19  ;;  %v13240_v33 = vld [vmem:[#allocation143_spill] sm:$0xff]  ;;  %v13244_v16 = vld [vmem:[#allocation140_spill] sm:$0xff] }
 0x373   :  { %3653 = vmatprep.subr.bf16.mxu1 %v3027_v49  ;;  %v3022_v23 = vpack.c.bf16 %v13218_v29, %v13217_v62  ;;  %v13219_v49 = vld [vmem:[#allocation146_spill] sm:$0xff]  ;;  %v13233_v27 = vld [vmem:[#allocation209_spill] sm:$0xff]  ;;  %v13246_v62 = vld [vmem:[#allocation204_spill] sm:$0xff] }
 0x374   :  { %3173 = vmatmul.mubr.bf16.gmra.mxu0 %v13203_v31  ;;  %v2989_v20 = vpack.c.bf16 %v13220_v59, %v13219_v49  ;;  %v13248_v49 = vld [vmem:[#allocation348_spill] sm:$0xff]  ;;  %v13265_v19 = vld [vmem:[#allocation262_spill] sm:$0xff] }
 0x375   :  { %3346 = vmatmul.mubr.bf16.gmra.mxu1 %v13204_v60  ;;  %3182 = vmatprep.mubr.bf16.mxu0 %v13205_v56  ;;  %v13231_v60 = vld [vmem:[#allocation145_spill] sm:$0xff]  ;;  %v13232_v56 = vld [vmem:[#allocation147_spill] sm:$0xff]  ;;  %v13266_v61 = vld [vmem:[#allocation264_spill] sm:$0xff] }
 0x376   :  { %3355 = vmatprep.mubr.bf16.mxu1 %v13206_v13  ;;  %3481 = vmatpush1.bf16.msra.mxu0 %v2994_v26  ;;  %v13221_v26 = vld [vmem:[#allocation210_spill] sm:$0xff]  ;;  %v2988_v13 = vpack.c.bf16 %v13232_v56, %v13231_v60  ;;  %v13261_v60 = vld [vmem:[#allocation201_spill] sm:$0xff]  ;;  %v13262_v56 = vld [vmem:[#allocation203_spill] sm:$0xff] }
 0x377   :  { %3654 = vmatpush1.bf16.msra.mxu1 %v3026_v25  ;;  %3482 = vmatprep.subr.bf16.mxu0 %v2993_v32  ;;  %v3021_v57 = vpack.c.bf16 %v13222_v51, %v13221_v26  ;;  %v13223_v25 = vpack.c.bf16 %v8042_v7, %v7987_v17  ;;  %v13226_v32 = vld [vmem:[#allocation504_spill] sm:$0xff]  ;;  %v13234_v17 = vld [vmem:[#allocation211_spill] sm:$0xff] }
 0x378   :  { %3655 = vmatprep.subr.bf16.mxu1 %v3025_v36  ;;  %v13227_v46 = vpack.c.bf16 %v13225_v3, %v13226_v32  ;;  %v13229_v36 = vld [vmem:[#allocation505_spill] sm:$0xff]  ;;  %v3020_v7 = vpack.c.bf16 %v13234_v17, %v13233_v27  ;;  %v13251_v26 = vld [vmem:[#allocation351_spill] sm:$0xff]  ;;  %v13257_v32 = vld [vmem:[#allocation516_spill] sm:$0xff] }
 0x379   :  { %v13230_v31 = vpack.c.bf16 %v13228_v40, %v13229_v36  ;;  %v13256_v3 = vld [vmem:[#allocation521_spill] sm:$0xff]  ;;  %v13260_v36 = vld [vmem:[#allocation139_spill] sm:$0xff]  ;;  %v13263_v27 = vld [vmem:[#allocation198_spill] sm:$0xff] }
 0x37a   :  { %3483 = vmatpush1.bf16.msra.mxu0 %v2992_v41  ;;  %v13237_v41 = vld [vmem:[#allocation206_spill] sm:$0xff]  ;;  %v13259_v40 = vld [vmem:[#allocation137_spill] sm:$0xff]  ;;  %v13264_v17 = vld [vmem:[#allocation200_spill] sm:$0xff] }
 0x37b   :  { %3656 = vmatpush1.bf16.msra.mxu1 %v3024_v1  ;;  %3484 = vmatprep.subr.bf16.mxu0 %v2991_v21  ;;  %v3019_v4 = vpack.c.bf16 %v13238_v28, %v13237_v41  ;;  %v13239_v1 = vld [vmem:[#allocation141_spill] sm:$0xff]  ;;  %v13268_v28 = vld [vmem:[#allocation199_spill] sm:$0xff] }
 0x37c   :  { %3657 = vmatprep.subr.bf16.mxu1 %v3023_v58  ;;  %3183 = vmatmul.mubr.bf16.gmra.mxu0 %v13223_v25  ;;  %v2986_v43 = vpack.c.bf16 %v13240_v33, %v13239_v1  ;;  %v13241_v21 = vld [vmem:[#allocation205_spill] sm:$0xff]  ;;  %v13243_v58 = vld [vmem:[#allocation138_spill] sm:$0xff]  ;;  %v13254_v25 = vld [vmem:[#allocation515_spill] sm:$0xff] }
 0x37d   :  { %3356 = vmatmul.mubr.bf16.gmra.mxu1 %v13224_v11  ;;  %3192 = vmatprep.mubr.bf16.mxu0 %v13227_v46  ;;  %v3018_v53 = vpack.c.bf16 %v13242_v54, %v13241_v21  ;;  %v2985_v22 = vpack.c.bf16 %v13244_v16, %v13243_v58  ;;  %v13258_v46 = vpack.c.bf16 %v13256_v3, %v13257_v32  ;;  %v13267_v41 = vld [vmem:[#allocation197_spill] sm:$0xff]  ;;  %v13270_v33 = vld [vmem:[#allocation263_spill] sm:$0xff]  ;;  %v13271_v21 = vld [vmem:[#allocation194_spill] sm:$0xff] }
 0x37e   :  { %3365 = vmatprep.mubr.bf16.mxu1 %v13230_v31  ;;  %3485 = vmatpush1.bf16.msra.mxu0 %v2990_v55  ;;  %v13245_v55 = vld [vmem:[#allocation202_spill] sm:$0xff]  ;;  %v2984_v31 = vpack.c.bf16 %v13260_v36, %v13259_v40  ;;  %v13269_v1 = vld [vmem:[#allocation261_spill] sm:$0xff]  ;;  %v13272_v54 = vld [vmem:[#allocation196_spill] sm:$0xff] }
 0x37f   :  { %3658 = vmatpush1.bf16.msra.mxu1 %v3022_v23  ;;  %3486 = vmatprep.subr.bf16.mxu0 %v2989_v20  ;;  %v3017_v29 = vpack.c.bf16 %v13246_v62, %v13245_v55  ;;  %v13247_v23 = vld [vmem:[#allocation363_spill] sm:$0xff]  ;;  %v13250_v20 = vld [vmem:[#allocation364_spill] sm:$0xff]  ;;  %v13273_v58 = vld [vmem:[#allocation258_spill] sm:$0xff] }
 0x380   :  { %3659 = vmatprep.subr.bf16.mxu1 %v3021_v57  ;;  %v13249_v59 = vpack.c.bf16 %v13247_v23, %v13248_v49  ;;  %v13252_v51 = vpack.c.bf16 %v13250_v20, %v13251_v26  ;;  %v13253_v57 = vld [vmem:[#allocation520_spill] sm:$0xff]  ;;  %v13275_v55 = vld [vmem:[#allocation355_spill] sm:$0xff]  ;;  %v13279_v49 = vld [vmem:[#allocation369_spill] sm:$0xff] }
 0x381   :  { %v13255_v11 = vpack.c.bf16 %v13253_v57, %v13254_v25  ;;  %v13274_v16 = vld [vmem:[#allocation260_spill] sm:$0xff]  ;;  %v13281_v20 = vld [vmem:[#allocation531_spill] sm:$0xff]  ;;  %v13282_v26 = vld [vmem:[#allocation526_spill] sm:$0xff] }
 0x382   :  { %3487 = vmatpush1.bf16.msra.mxu0 %v2988_v13  ;;  %v3016_v13 = vpack.c.bf16 %v13262_v56, %v13261_v60  ;;  %v13276_v62 = vld [vmem:[#allocation368_spill] sm:$0xff]  ;;  %v13285_v25 = vld [vmem:[#allocation527_spill] sm:$0xff]  ;;  %v13287_v3 = vld [vmem:[#allocation193_spill] sm:$0xff] }
 0x383   :  { %3660 = vmatpush1.bf16.msra.mxu1 %v3020_v7  ;;  %3488 = vmatprep.subr.bf16.mxu0 %v2987_v15  ;;  %v3015_v7 = vpack.c.bf16 %v13264_v17, %v13263_v27  ;;  %v3047_v15 = vpack.c.bf16 %v13266_v61, %v13265_v19  ;;  %v13278_v23 = vld [vmem:[#allocation356_spill] sm:$0xff]  ;;  %v13288_v32 = vld [vmem:[#allocation195_spill] sm:$0xff]  ;;  %v13289_v40 = vld [vmem:[#allocation257_spill] sm:$0xff] }
 0x384   :  { %3661 = vmatprep.subr.bf16.mxu1 %v3019_v4  ;;  %3193 = vmatmul.mubr.bf16.gmra.mxu0 %v13249_v59  ;;  %v3014_v4 = vpack.c.bf16 %v13268_v28, %v13267_v41  ;;  %v13280_v59 = vpack.c.bf16 %v13278_v23, %v13279_v49  ;;  %v13284_v57 = vld [vmem:[#allocation532_spill] sm:$0xff]  ;;  %v13290_v36 = vld [vmem:[#allocation259_spill] sm:$0xff]  ;;  %v13291_v60 = vld [vmem:[#allocation190_spill] sm:$0xff] }
 0x385   :  { %3366 = vmatmul.mubr.bf16.gmra.mxu1 %v13252_v51  ;;  %3202 = vmatprep.mubr.bf16.mxu0 %v13255_v11  ;;  %v13283_v51 = vpack.c.bf16 %v13281_v20, %v13282_v26  ;;  %v13286_v11 = vpack.c.bf16 %v13284_v57, %v13285_v25  ;;  %v13292_v56 = vld [vmem:[#allocation192_spill] sm:$0xff]  ;;  %v13293_v27 = vld [vmem:[#allocation254_spill] sm:$0xff]  ;;  %v13295_v19 = vld [vmem:[#allocation189_spill] sm:$0xff] }
 0x386   :  { %3375 = vmatprep.mubr.bf16.mxu1 %v13258_v46  ;;  %3489 = vmatpush1.bf16.msra.mxu0 %v2986_v43  ;;  %v3046_v43 = vpack.c.bf16 %v13270_v33, %v13269_v1  ;;  %v3012_v46 = vpack.c.bf16 %v13288_v32, %v13287_v3  ;;  %v13294_v17 = vld [vmem:[#allocation256_spill] sm:$0xff]  ;;  %v13296_v61 = vld [vmem:[#allocation191_spill] sm:$0xff]  ;;  %v13297_v41 = vld [vmem:[#allocation253_spill] sm:$0xff] }
 0x387   :  { %3662 = vmatpush1.bf16.msra.mxu1 %v3018_v53  ;;  %3490 = vmatprep.subr.bf16.mxu0 %v2985_v22  ;;  %v3013_v53 = vpack.c.bf16 %v13272_v54, %v13271_v21  ;;  %v3045_v22 = vpack.c.bf16 %v13274_v16, %v13273_v58  ;;  %v13298_v28 = vld [vmem:[#allocation255_spill] sm:$0xff]  ;;  %v13299_v1 = vld [vmem:[#allocation186_spill] sm:$0xff]  ;;  %v13300_v33 = vld [vmem:[#allocation188_spill] sm:$0xff] }
 0x388   :  { %3663 = vmatprep.subr.bf16.mxu1 %v3017_v29  ;;  %v13277_v29 = vpack.c.bf16 %v13275_v55, %v13276_v62  ;;  %v13301_v21 = vld [vmem:[#allocation250_spill] sm:$0xff]  ;;  %v13302_v54 = vld [vmem:[#allocation252_spill] sm:$0xff]  ;;  %v13304_v16 = vld [vmem:[#allocation371_spill] sm:$0xff] }
 0x389   :  { %v13303_v58 = vld [vmem:[#allocation374_spill] sm:$0xff]  ;;  %v13306_v55 = vld [vmem:[#allocation375_spill] sm:$0xff]  ;;  %v13307_v62 = vld [vmem:[#allocation372_spill] sm:$0xff] }
 0x38a   :  { %3491 = vmatpush1.bf16.msra.mxu0 %v2984_v31  ;;  %v3044_v31 = vpack.c.bf16 %v13290_v36, %v13289_v40  ;;  %v13309_v23 = vld [vmem:[#allocation542_spill] sm:$0xff]  ;;  %v13310_v49 = vld [vmem:[#allocation537_spill] sm:$0xff]  ;;  %v13312_v20 = vld [vmem:[#allocation543_spill] sm:$0xff] }
 0x38b   :  { %3664 = vmatpush1.bf16.msra.mxu1 %v3016_v13  ;;  %3492 = vmatprep.subr.bf16.mxu0 %v3015_v7  ;;  %v3011_v13 = vpack.c.bf16 %v13292_v56, %v13291_v60  ;;  %v3043_v7 = vpack.c.bf16 %v13294_v17, %v13293_v27  ;;  %v13313_v26 = vld [vmem:[#allocation538_spill] sm:$0xff]  ;;  %v13315_v57 = vld [vmem:[#allocation185_spill] sm:$0xff]  ;;  %v13316_v25 = vld [vmem:[#allocation187_spill] sm:$0xff] }
 0x38c   :  { %3665 = vmatprep.subr.bf16.mxu1 %v3047_v15  ;;  %3203 = vmatmul.mubr.bf16.gmra.mxu0 %v13277_v29  ;;  %v3010_v15 = vpack.c.bf16 %v13296_v61, %v13295_v19  ;;  %v13308_v29 = vpack.c.bf16 %v13306_v55, %v13307_v62  ;;  %v13317_v3 = vld [vmem:[#allocation249_spill] sm:$0xff]  ;;  %v13318_v32 = vld [vmem:[#allocation251_spill] sm:$0xff]  ;;  %v13319_v40 = vld [vmem:[#allocation182_spill] sm:$0xff] }
 0x38d   :  { %3376 = vmatmul.mubr.bf16.gmra.mxu1 %v13280_v59  ;;  %3212 = vmatprep.mubr.bf16.mxu0 %v13283_v51  ;;  %v13311_v59 = vpack.c.bf16 %v13309_v23, %v13310_v49  ;;  %v13314_v51 = vpack.c.bf16 %v13312_v20, %v13313_v26  ;;  %v13320_v36 = vld [vmem:[#allocation184_spill] sm:$0xff]  ;;  %v13321_v60 = vld [vmem:[#allocation246_spill] sm:$0xff]  ;;  %v13323_v27 = vld [vmem:[#allocation181_spill] sm:$0xff] }
 0x38e   :  { %3385 = vmatprep.mubr.bf16.mxu1 %v13286_v11  ;;  %3493 = vmatpush2.bf16.msra.mxu0 %v3014_v4  ;;  %v3042_v4 = vpack.c.bf16 %v13298_v28, %v13297_v41  ;;  %v3008_v11 = vpack.c.bf16 %v13316_v25, %v13315_v57  ;;  %v13322_v56 = vld [vmem:[#allocation248_spill] sm:$0xff]  ;;  %v13324_v17 = vld [vmem:[#allocation183_spill] sm:$0xff]  ;;  %v13325_v19 = vld [vmem:[#allocation245_spill] sm:$0xff] }
 0x38f   :  { %3666 = vmatpush2.bf16.msra.mxu1 %v3046_v43  ;;  %3494 = vmatprep.subr.bf16.mxu0 %v3013_v53  ;;  %v3009_v43 = vpack.c.bf16 %v13300_v33, %v13299_v1  ;;  %v3041_v53 = vpack.c.bf16 %v13302_v54, %v13301_v21  ;;  %v13326_v61 = vld [vmem:[#allocation247_spill] sm:$0xff]  ;;  %v13327_v41 = vld [vmem:[#allocation178_spill] sm:$0xff]  ;;  %v13328_v28 = vld [vmem:[#allocation180_spill] sm:$0xff] }
 0x390   :  { %3667 = vmatprep.subr.bf16.mxu1 %v3045_v22  ;;  %v13305_v22 = vpack.c.bf16 %v13303_v58, %v13304_v16  ;;  %v13329_v1 = vld [vmem:[#allocation242_spill] sm:$0xff]  ;;  %v13330_v33 = vld [vmem:[#allocation244_spill] sm:$0xff]  ;;  %v13331_v21 = vld [vmem:[#allocation385_spill] sm:$0xff] }
 0x391   :  { %v13332_v54 = vld [vmem:[#allocation379_spill] sm:$0xff]  ;;  %v13334_v58 = vld [vmem:[#allocation386_spill] sm:$0xff]  ;;  %v13335_v16 = vld [vmem:[#allocation380_spill] sm:$0xff] }
 0x392   :  { %3495 = vmatpush2.bf16.msra.mxu0 %v3012_v46  ;;  %v3040_v46 = vpack.c.bf16 %v13318_v32, %v13317_v3  ;;  %v13337_v55 = vld [vmem:[#allocation553_spill] sm:$0xff]  ;;  %v13338_v62 = vld [vmem:[#allocation548_spill] sm:$0xff]  ;;  %v13340_v23 = vld [vmem:[#allocation554_spill] sm:$0xff] }
 0x393   :  { %3668 = vmatpush2.bf16.msra.mxu1 %v3044_v31  ;;  %3496 = vmatprep.subr.bf16.mxu0 %v3011_v13  ;;  %v3007_v31 = vpack.c.bf16 %v13320_v36, %v13319_v40  ;;  %v3039_v13 = vpack.c.bf16 %v13322_v56, %v13321_v60  ;;  %v13341_v49 = vld [vmem:[#allocation549_spill] sm:$0xff]  ;;  %v13344_v26 = vld [vmem:[#allocation179_spill] sm:$0xff]  ;;  %v13347_v3 = vld [vmem:[#allocation174_spill] sm:$0xff] }
 0x394   :  { %3669 = vmatprep.subr.bf16.mxu1 %v3043_v7  ;;  %3213 = vmatmul.mubr.bf16.gmra.mxu0 %v13305_v22  ;;  %v3006_v7 = vpack.c.bf16 %v13324_v17, %v13323_v27  ;;  %v13336_v22 = vpack.c.bf16 %v13334_v58, %v13335_v16  ;;  %v13343_v20 = vld [vmem:[#allocation177_spill] sm:$0xff]  ;;  %v13346_v25 = vld [vmem:[#allocation243_spill] sm:$0xff]  ;;  %v13348_v32 = vld [vmem:[#allocation176_spill] sm:$0xff] }
 0x395   :  { %3386 = vmatmul.mubr.bf16.gmra.mxu1 %v13308_v29  ;;  %3222 = vmatprep.mubr.bf16.mxu0 %v13311_v59  ;;  %v13339_v29 = vpack.c.bf16 %v13337_v55, %v13338_v62  ;;  %v13342_v59 = vpack.c.bf16 %v13340_v23, %v13341_v49  ;;  %v13345_v57 = vld [vmem:[#allocation241_spill] sm:$0xff]  ;;  %v13349_v40 = vld [vmem:[#allocation238_spill] sm:$0xff]  ;;  %v13350_v36 = vld [vmem:[#allocation240_spill] sm:$0xff] }
 0x396   :  { %3395 = vmatprep.mubr.bf16.mxu1 %v13314_v51  ;;  %3497 = vmatpush2.bf16.msra.mxu0 %v3010_v15  ;;  %v3038_v15 = vpack.c.bf16 %v13326_v61, %v13325_v19  ;;  %v3004_v51 = vpack.c.bf16 %v13344_v26, %v13343_v20  ;;  %v13351_v60 = vld [vmem:[#allocation173_spill] sm:$0xff]  ;;  %v13352_v56 = vld [vmem:[#allocation175_spill] sm:$0xff]  ;;  %v13355_v19 = vld [vmem:[#allocation170_spill] sm:$0xff] }
 0x397   :  { %3670 = vmatpush2.bf16.msra.mxu1 %v3042_v4  ;;  %3498 = vmatprep.subr.bf16.mxu0 %v3009_v43  ;;  %v3005_v4 = vpack.c.bf16 %v13328_v28, %v13327_v41  ;;  %v3037_v43 = vpack.c.bf16 %v13330_v33, %v13329_v1  ;;  %v13353_v27 = vld [vmem:[#allocation237_spill] sm:$0xff]  ;;  %v13354_v17 = vld [vmem:[#allocation239_spill] sm:$0xff]  ;;  %v13356_v61 = vld [vmem:[#allocation172_spill] sm:$0xff] }
 0x398   :  { %3671 = vmatprep.subr.bf16.mxu1 %v3041_v53  ;;  %v13333_v53 = vpack.c.bf16 %v13331_v21, %v13332_v54  ;;  %v13357_v41 = vld [vmem:[#allocation234_spill] sm:$0xff]  ;;  %v13358_v28 = vld [vmem:[#allocation236_spill] sm:$0xff]  ;;  %v13362_v21 = vld [vmem:[#allocation397_spill] sm:$0xff] }
 0x399   :  { %v13359_v1 = vld [vmem:[#allocation396_spill] sm:$0xff]  ;;  %v13360_v33 = vld [vmem:[#allocation390_spill] sm:$0xff]  ;;  %v13363_v54 = vld [vmem:[#allocation391_spill] sm:$0xff] }
 0x39a   :  { %3499 = vmatpush2.bf16.msra.mxu0 %v3008_v11  ;;  %v3036_v11 = vpack.c.bf16 %v13346_v25, %v13345_v57  ;;  %v13365_v58 = vld [vmem:[#allocation564_spill] sm:$0xff]  ;;  %v13366_v16 = vld [vmem:[#allocation559_spill] sm:$0xff]  ;;  %v13368_v55 = vld [vmem:[#allocation565_spill] sm:$0xff] }
 0x39b   :  { %3672 = vmatpush2.bf16.msra.mxu1 %v3040_v46  ;;  %3500 = vmatprep.subr.bf16.mxu0 %v3007_v31  ;;  %v3003_v46 = vpack.c.bf16 %v13348_v32, %v13347_v3  ;;  %v3035_v31 = vpack.c.bf16 %v13350_v36, %v13349_v40  ;;  %v13369_v62 = vld [vmem:[#allocation560_spill] sm:$0xff]  ;;  %v13371_v23 = vld [vmem:[#allocation169_spill] sm:$0xff]  ;;  %v13372_v49 = vld [vmem:[#allocation171_spill] sm:$0xff] }
 0x39c   :  { %3673 = vmatprep.subr.bf16.mxu1 %v3039_v13  ;;  %3223 = vmatmul.mubr.bf16.gmra.mxu0 %v13333_v53  ;;  %v3002_v13 = vpack.c.bf16 %v13352_v56, %v13351_v60  ;;  %v13364_v53 = vpack.c.bf16 %v13362_v21, %v13363_v54  ;;  %v13373_v20 = vld [vmem:[#allocation233_spill] sm:$0xff]  ;;  %v13374_v26 = vld [vmem:[#allocation235_spill] sm:$0xff]  ;;  %v13375_v57 = vld [vmem:[#allocation294_spill] sm:$0xff] }
 0x39d   :  { %3396 = vmatmul.mubr.bf16.gmra.mxu1 %v13336_v22  ;;  %3232 = vmatprep.mubr.bf16.mxu0 %v13339_v29  ;;  %v13367_v22 = vpack.c.bf16 %v13365_v58, %v13366_v16  ;;  %v13370_v29 = vpack.c.bf16 %v13368_v55, %v13369_v62  ;;  %v13376_v25 = vld [vmem:[#allocation296_spill] sm:$0xff]  ;;  %v13377_v3 = vld [vmem:[#allocation342_spill] sm:$0xff]  ;;  %v13379_v40 = vld [vmem:[#allocation407_spill] sm:$0xff] }
 0x39e   :  { %3405 = vmatprep.mubr.bf16.mxu1 %v13342_v59  ;;  %3501 = vmatpush2.bf16.msra.mxu0 %v3006_v7  ;;  %v3034_v7 = vpack.c.bf16 %v13354_v17, %v13353_v27  ;;  %v3000_v59 = vpack.c.bf16 %v13372_v49, %v13371_v23  ;;  %v13378_v32 = vld [vmem:[#allocation344_spill] sm:$0xff]  ;;  %v13380_v36 = vld [vmem:[#allocation401_spill] sm:$0xff]  ;;  %v13383_v56 = vld [vmem:[#allocation402_spill] sm:$0xff] }
 0x39f   :  { %3674 = vmatpush2.bf16.msra.mxu1 %v3038_v15  ;;  %3502 = vmatprep.subr.bf16.mxu0 %v3005_v4  ;;  %v3001_v15 = vpack.c.bf16 %v13356_v61, %v13355_v19  ;;  %v3033_v4 = vpack.c.bf16 %v13358_v28, %v13357_v41  ;;  %v13382_v60 = vld [vmem:[#allocation408_spill] sm:$0xff]  ;;  %v13385_v27 = vld [vmem:[#allocation575_spill] sm:$0xff]  ;;  %v13386_v17 = vld [vmem:[#allocation570_spill] sm:$0xff] }
 0x3a0   :  { %3675 = vmatprep.subr.bf16.mxu1 %v3037_v43  ;;  %v13361_v43 = vpack.c.bf16 %v13359_v1, %v13360_v33  ;;  %v13388_v19 = vld [vmem:[#allocation576_spill] sm:$0xff]  ;;  %v13389_v61 = vld [vmem:[#allocation571_spill] sm:$0xff]  ;;  %v13391_v41 = vld [vmem:[#allocation418_spill] sm:$0xff] }
 0x3a1   :  { %v13392_v28 = vld [vmem:[#allocation412_spill] sm:$0xff]  ;;  %v13394_v1 = vld [vmem:[#allocation419_spill] sm:$0xff]  ;;  %v13395_v33 = vld [vmem:[#allocation413_spill] sm:$0xff] }
 0x3a2   :  { %3503 = vmatpush2.bf16.msra.mxu0 %v3004_v51  ;;  %v3032_v51 = vpack.c.bf16 %v13374_v26, %v13373_v20  ;;  %v13397_v21 = vld [vmem:[#allocation586_spill] sm:$0xff]  ;;  %v13398_v54 = vld [vmem:[#allocation581_spill] sm:$0xff]  ;;  %v13400_v58 = vld [vmem:[#allocation587_spill] sm:$0xff] }
 0x3a3   :  { %3676 = vmatpush2.bf16.msra.mxu1 %v3036_v11  ;;  %3504 = vmatprep.subr.bf16.mxu0 %v3003_v46  ;;  %v3063_v11 = vpack.c.bf16 %v13376_v25, %v13375_v57  ;;  %v3087_v46 = vpack.c.bf16 %v13378_v32, %v13377_v3  ;;  %v13401_v16 = vld [vmem:[#allocation582_spill] sm:$0xff]  ;;  %v13403_v55 = vld [vmem:[#allocation429_spill] sm:$0xff]  ;;  %v13404_v62 = vld [vmem:[#allocation423_spill] sm:$0xff] }
 0x3a4   :  { %3677 = vmatprep.subr.bf16.mxu1 %v3035_v31  ;;  %3233 = vmatmul.mubr.bf16.gmra.mxu0 %v13361_v43  ;;  %v13381_v31 = vpack.c.bf16 %v13379_v40, %v13380_v36  ;;  %v13396_v43 = vpack.c.bf16 %v13394_v1, %v13395_v33  ;;  %v13406_v23 = vld [vmem:[#allocation430_spill] sm:$0xff]  ;;  %v13407_v49 = vld [vmem:[#allocation424_spill] sm:$0xff]  ;;  %v13412_v57 = vld [vmem:[#allocation593_spill] sm:$0xff] }
 0x3a5   :  { %3406 = vmatmul.mubr.bf16.gmra.mxu1 %v13364_v53  ;;  %3242 = vmatprep.mubr.bf16.mxu0 %v13367_v22  ;;  %v13399_v53 = vpack.c.bf16 %v13397_v21, %v13398_v54  ;;  %v13402_v22 = vpack.c.bf16 %v13400_v58, %v13401_v16  ;;  %v13409_v20 = vld [vmem:[#allocation592_spill] sm:$0xff]  ;;  %v13415_v3 = vld [vmem:[#allocation434_spill] sm:$0xff]  ;;  %v13418_v40 = vld [vmem:[#allocation435_spill] sm:$0xff] }
 0x3a6   :  { %3415 = vmatprep.mubr.bf16.mxu1 %v13370_v29  ;;  %3505 = vmatpush2.bf16.msra.mxu0 %v3002_v13  ;;  %v13384_v13 = vpack.c.bf16 %v13382_v60, %v13383_v56  ;;  %v13405_v29 = vpack.c.bf16 %v13403_v55, %v13404_v62  ;;  %v13410_v26 = vpack.c.bf16 %v12996_v44, %v13409_v20  ;;  %v13422_v60 = vld [vmem:[#allocation450_spill] sm:$0xff]  ;;  %v13423_v56 = vld [vmem:[#allocation445_spill] sm:$0xff]  ;;  %v13441_v1 = vld [vmem:[#allocation343_spill] sm:$0xff] }
 0x3a7   :  { %3678 = vmatpush2.bf16.msra.mxu1 %v3034_v7  ;;  %3506 = vmatprep.subr.bf16.mxu0 %v3001_v15  ;;  %v13387_v7 = vpack.c.bf16 %v13385_v27, %v13386_v17  ;;  %v13390_v15 = vpack.c.bf16 %v13388_v19, %v13389_v61  ;;  %v13421_v44 = vpack.c.bf16 %v13020_v9, %v13019_v10  ;;  %v13425_v27 = vld [vmem:[#allocation451_spill] sm:$0xff]  ;;  %v13426_v17 = vld [vmem:[#allocation446_spill] sm:$0xff]  ;;  %v13449_v16 = vld [vmem:[#allocation468_spill] sm:$0xff] }
 0x3a8   :  { %3679 = vmatprep.subr.bf16.mxu1 %v3033_v4  ;;  %v13393_v4 = vpack.c.bf16 %v13391_v41, %v13392_v28  ;;  %v13428_v19 = vpack.c.bf16 %v9257_v18, %v13033_v0  ;;  %v13430_v9 = vpack.c.bf16 %v9252_v34, %v9197_v6  ;;  %v13432_v10 = vld [vmem:[#allocation467_spill] sm:$0xff]  ;;  %v13435_v41 = vld [vmem:[#allocation469_spill] sm:$0xff]  ;;  %v13442_v6 = vld [vmem:[#allocation290_spill] sm:$0xff] }
 0x3a9   :  { %v13433_v61 = vld [vmem:[#allocation459_spill] sm:$0xff]  ;;  %v13436_v28 = vld [vmem:[#allocation461_spill] sm:$0xff]  ;;  %v13443_v34 = vld [vmem:[#allocation292_spill] sm:$0xff] }
 0x3aa   :  { %3507 = vmatpush2.bf16.msra.mxu0 %v3000_v59  ;;  %v13408_v59 = vpack.c.bf16 %v13406_v23, %v13407_v49  ;;  %v13437_v18 = vpack.c.bf16 %v13435_v41, %v13436_v28  ;;  %v13438_v0 = vld [vmem:[#allocation293_spill] sm:$0xff]  ;;  %v13444_v21 = vld [vmem:[#allocation338_spill] sm:$0xff]  ;;  %v13475_v41 = vld [vmem:[#allocation475_spill] sm:$0xff] }
 0x3ab   :  { %3680 = vmatpush2.bf16.msra.mxu1 %v3032_v51  ;;  %3822 = vmatprep.subr.bf16.mxu0 %v3063_v11  ;;  %v13411_v51 = vld [vmem:[#allocation598_spill] sm:$0xff]  ;;  %v13414_v11 = vld [vmem:[#allocation440_spill] sm:$0xff]  ;;  %v13452_v62 = vld [vmem:[#allocation289_spill] sm:$0xff] }
 0x3ac   :  { %4003 = vmatprep.subr.bf16.mxu1 %v3087_v46  ;;  %3243 = vmatmul.mubr.bf16.gmra.mxu0 %v13381_v31  ;;  %v13413_v25 = vpack.c.bf16 %v13411_v51, %v13412_v57  ;;  %v13416_v32 = vpack.c.bf16 %v13414_v11, %v13415_v3  ;;  %v13417_v46 = vld [vmem:[#allocation441_spill] sm:$0xff]  ;;  %v13420_v31 = vpack.c.bf16 %v13017_v8, %v13016_v52  ;;  %v13446_v54 = vld [vmem:[#allocation466_spill] sm:$0xff]  ;;  %v13457_v51 = vld [vmem:[#allocation476_spill] sm:$0xff] }
 0x3ad   :  { %3416 = vmatmul.mubr.bf16.gmra.mxu1 %v13384_v13  ;;  %3252 = vmatprep.mubr.bf16.mxu0 %v13387_v7  ;;  %v13419_v36 = vpack.c.bf16 %v13417_v46, %v13418_v40  ;;  %v13424_v13 = vpack.c.bf16 %v13422_v60, %v13423_v56  ;;  %v13427_v7 = vpack.c.bf16 %v13425_v27, %v13426_v17  ;;  %v13454_v49 = vld [vmem:[#allocation337_spill] sm:$0xff]  ;;  %v13460_v11 = vld [vmem:[#allocation478_spill] sm:$0xff]  ;;  %v13463_v46 = vld [vmem:[#allocation288_spill] sm:$0xff] }
 0x3ae   :  { %3425 = vmatprep.mubr.bf16.mxu1 %v13390_v15  ;;  %v13429_v8 = vpack.c.bf16 %v9267_v39, %v13034_v37  ;;  %v13431_v52 = vpack.c.bf16 %v9262_v50, %v9207_v38  ;;  %v13434_v15 = vpack.c.bf16 %v13432_v10, %v13433_v61  ;;  %v13440_v37 = vld [vmem:[#allocation341_spill] sm:$0xff]  ;;  %v13445_v38 = vld [vmem:[#allocation340_spill] sm:$0xff]  ;;  %v13467_v56 = vld [vmem:[#allocation287_spill] sm:$0xff] }
 0x3af   :  { %v3086_v33 = vpack.c.bf16 %v13441_v1, %v13440_v37  ;;  %v3085_v50 = vpack.c.bf16 %v13445_v38, %v13444_v21  ;;  %v13466_v60 = vld [vmem:[#allocation285_spill] sm:$0xff]  ;;  %v13469_v17 = vld [vmem:[#allocation335_spill] sm:$0xff]  ;;  %v13473_v10 = vld [vmem:[#allocation332_spill] sm:$0xff] }
 0x3b0   :  { %v13468_v27 = vld [vmem:[#allocation333_spill] sm:$0xff]  ;;  %v13481_v37 = vld [vmem:[#allocation492_spill] sm:$0xff]  ;;  %v13487_v21 = vld [vmem:[#allocation283_spill] sm:$0xff] }
 0x3b4   :  { %3253 = vmatmul.mubr.bf16.gmra.mxu0 %v13393_v4  ;;  %v13439_v4 = vld [vmem:[#allocation295_spill] sm:$0xff] }
 0x3b5   :  { %3426 = vmatmul.mubr.bf16.gmra.mxu1 %v13396_v43  ;;  %3262 = vmatprep.mubr.bf16.mxu0 %v13399_v53  ;;  %v3062_v39 = vpack.c.bf16 %v13439_v4, %v13438_v0  ;;  %v3061_v43 = vpack.c.bf16 %v13443_v34, %v13442_v6  ;;  %v13447_v53 = vld [vmem:[#allocation458_spill] sm:$0xff]  ;;  %v13478_v0 = vld [vmem:[#allocation477_spill] sm:$0xff] }
 0x3b6   :  { %3435 = vmatprep.mubr.bf16.mxu1 %v13402_v22  ;;  %v13448_v58 = vpack.c.bf16 %v13446_v54, %v13447_v53  ;;  %v13450_v22 = vld [vmem:[#allocation460_spill] sm:$0xff]  ;;  %v13484_v6 = vld [vmem:[#allocation494_spill] sm:$0xff]  ;;  %v13489_v54 = vld [vmem:[#allocation331_spill] sm:$0xff] }
 0x3b7   :  { %v13451_v55 = vpack.c.bf16 %v13449_v16, %v13450_v22  ;;  %v13491_v16 = vld [vmem:[#allocation280_spill] sm:$0xff] }
 0x3bc   :  { %3263 = vmatmul.mubr.bf16.gmra.mxu0 %v13405_v29  ;;  %v13453_v29 = vld [vmem:[#allocation291_spill] sm:$0xff] }
 0x3bd   :  { %3436 = vmatmul.mubr.bf16.gmra.mxu1 %v13408_v59  ;;  %3272 = vmatprep.mubr.bf16.mxu0 %v13410_v26  ;;  %v3060_v23 = vpack.c.bf16 %v13453_v29, %v13452_v62  ;;  %v13455_v59 = vld [vmem:[#allocation339_spill] sm:$0xff] }
 0x3be   :  { %3445 = vmatprep.mubr.bf16.mxu1 %v13413_v25  ;;  %v3084_v20 = vpack.c.bf16 %v13455_v59, %v13454_v49  ;;  %v13456_v26 = vld [vmem:[#allocation483_spill] sm:$0xff]  ;;  %v13459_v25 = vld [vmem:[#allocation485_spill] sm:$0xff]  ;;  %v13495_v49 = vld [vmem:[#allocation276_spill] sm:$0xff] }
 0x3bf   :  { %v13458_v57 = vpack.c.bf16 %v13456_v26, %v13457_v51  ;;  %v13461_v3 = vpack.c.bf16 %v13459_v25, %v13460_v11  ;;  %v13493_v62 = vld [vmem:[#allocation279_spill] sm:$0xff]  ;;  %v13500_v25 = vld [vmem:[#allocation493_spill] sm:$0xff] }
 0x3c0   :  { %v13497_v26 = vld [vmem:[#allocation491_spill] sm:$0xff] }
 0x3c4   :  { %3273 = vmatmul.mubr.bf16.gmra.mxu0 %v13416_v32  ;;  %v13462_v32 = vld [vmem:[#allocation286_spill] sm:$0xff] }
 0x3c5   :  { %3446 = vmatmul.mubr.bf16.gmra.mxu1 %v13419_v36  ;;  %3282 = vmatprep.mubr.bf16.mxu0 %v13420_v31  ;;  %v3059_v40 = vpack.c.bf16 %v13463_v46, %v13462_v32  ;;  %v13464_v36 = vld [vmem:[#allocation334_spill] sm:$0xff]  ;;  %v13465_v31 = vld [vmem:[#allocation336_spill] sm:$0xff] }
 0x3c6   :  { %3455 = vmatprep.mubr.bf16.mxu1 %v13421_v44  ;;  %v3083_v44 = vpack.c.bf16 %v13465_v31, %v13464_v36  ;;  %v13503_v32 = vld [vmem:[#allocation506_spill] sm:$0xff]  ;;  %v13506_v36 = vld [vmem:[#allocation507_spill] sm:$0xff] }
 0x3cc   :  { %3283 = vmatmul.mubr.bf16.gmra.mxu0 %v13424_v13  ;;  %v3058_v13 = vpack.c.bf16 %v13467_v56, %v13466_v60  ;;  %v13509_v60 = vld [vmem:[#allocation275_spill] sm:$0xff] }
 0x3cd   :  { %3456 = vmatmul.mubr.bf16.gmra.mxu1 %v13427_v7  ;;  %3292 = vmatprep.mubr.bf16.mxu0 %v13428_v19  ;;  %v3082_v7 = vpack.c.bf16 %v13469_v17, %v13468_v27  ;;  %v13470_v19 = vld [vmem:[#allocation282_spill] sm:$0xff]  ;;  %v13511_v27 = vld [vmem:[#allocation272_spill] sm:$0xff] }
 0x3ce   :  { %3465 = vmatprep.mubr.bf16.mxu1 %v13429_v8  ;;  %v13471_v8 = vld [vmem:[#allocation284_spill] sm:$0xff] }
 0x3d4   :  { %3293 = vmatmul.mubr.bf16.gmra.mxu0 %v13430_v9  ;;  %v3057_v9 = vpack.c.bf16 %v13471_v8, %v13470_v19  ;;  %v13513_v19 = vld [vmem:[#allocation271_spill] sm:$0xff] }
 0x3d5   :  { %3466 = vmatmul.mubr.bf16.gmra.mxu1 %v13431_v52  ;;  %3508 = vmatprep.mubr.bf16.mxu0 %v13434_v15  ;;  %v13472_v52 = vld [vmem:[#allocation330_spill] sm:$0xff] }
 0x3d6   :  { %3681 = vmatprep.mubr.bf16.mxu1 %v13437_v18  ;;  %v3081_v61 = vpack.c.bf16 %v13473_v10, %v13472_v52  ;;  %v13474_v15 = vld [vmem:[#allocation482_spill] sm:$0xff]  ;;  %v13477_v18 = vld [vmem:[#allocation484_spill] sm:$0xff] }
 0x3d7   :  { %v13476_v28 = vpack.c.bf16 %v13474_v15, %v13475_v41  ;;  %v13479_v4 = vpack.c.bf16 %v13477_v18, %v13478_v0  ;;  %v13515_v52 = vld [vmem:[#allocation268_spill] sm:$0xff]  ;;  %v13520_v18 = vld [vmem:[#allocation353_spill] sm:$0xff] }
 0x3d8   :  { %v13517_v15 = vld [vmem:[#allocation352_spill] sm:$0xff] }
 0x3dc   :  { %3509 = vmatmul.mubr.bf16.vlgmr.msra.gmra.mxu0 %v13448_v58  ;;  %v13490_v58 = vld [vmem:[#allocation278_spill] sm:$0xff] }
 0x3dd   :  { %3682 = vmatmul.mubr.bf16.vlgmr.msra.gmra.mxu1 %v13451_v55  ;;  %3823 = vmatpush1.bf16.msra.mxu0 %v3062_v39  ;;  %v13480_v39 = vld [vmem:[#allocation499_spill] sm:$0xff]  ;;  %v3055_v22 = vpack.c.bf16 %v13491_v16, %v13490_v58  ;;  %v13492_v55 = vld [vmem:[#allocation277_spill] sm:$0xff] }
 0x3de   :  { %4004 = vmatpush1.bf16.msra.mxu1 %v3086_v33  ;;  %3518 = vmatprep.mubr.bf16.mxu0 %v13458_v57  ;;  %v13482_v1 = vpack.c.bf16 %v13480_v39, %v13481_v37  ;;  %v13483_v33 = vld [vmem:[#allocation501_spill] sm:$0xff]  ;;  %v3054_v29 = vpack.c.bf16 %v13493_v62, %v13492_v55  ;;  %v13499_v57 = vld [vmem:[#allocation500_spill] sm:$0xff]  ;;  %v13533_v58 = vld [vmem:[#allocation327_spill] sm:$0xff] }
 0x3df   :  { %3691 = vmatprep.mubr.bf16.mxu1 %v13461_v3  ;;  %3824 = vmatprep.subr.bf16.mxu0 %v3061_v43  ;;  %v13485_v34 = vpack.c.bf16 %v13483_v33, %v13484_v6  ;;  %v13486_v43 = vld [vmem:[#allocation281_spill] sm:$0xff]  ;;  %v13501_v11 = vpack.c.bf16 %v13499_v57, %v13500_v25  ;;  %v13502_v3 = vld [vmem:[#allocation511_spill] sm:$0xff]  ;;  %v13526_v33 = vld [vmem:[#allocation518_spill] sm:$0xff] }
 0x3e0   :  { %4005 = vmatprep.subr.bf16.mxu1 %v3085_v50  ;;  %v3056_v38 = vpack.c.bf16 %v13487_v21, %v13486_v43  ;;  %v13488_v50 = vld [vmem:[#allocation329_spill] sm:$0xff]  ;;  %v13504_v46 = vpack.c.bf16 %v13502_v3, %v13503_v32  ;;  %v13529_v43 = vld [vmem:[#allocation267_spill] sm:$0xff]  ;;  %v13535_v55 = vld [vmem:[#allocation324_spill] sm:$0xff] }
 0x3e1   :  { %3825 = vmatpush1.bf16.msra.mxu0 %v3060_v23  ;;  %v3080_v53 = vpack.c.bf16 %v13489_v54, %v13488_v50  ;;  %v13494_v23 = vld [vmem:[#allocation274_spill] sm:$0xff]  ;;  %v13523_v39 = vld [vmem:[#allocation517_spill] sm:$0xff]  ;;  %v13531_v50 = vld [vmem:[#allocation328_spill] sm:$0xff] }
 0x3e2   :  { %4006 = vmatpush1.bf16.msra.mxu1 %v3084_v20  ;;  %3826 = vmatprep.subr.bf16.mxu0 %v3059_v40  ;;  %v3053_v59 = vpack.c.bf16 %v13495_v49, %v13494_v23  ;;  %v13496_v20 = vld [vmem:[#allocation498_spill] sm:$0xff]  ;;  %v13505_v40 = vld [vmem:[#allocation512_spill] sm:$0xff]  ;;  %v13546_v3 = vld [vmem:[#allocation529_spill] sm:$0xff] }
 0x3e3   :  { %4007 = vmatprep.subr.bf16.mxu1 %v3083_v44  ;;  %v13498_v51 = vpack.c.bf16 %v13496_v20, %v13497_v26  ;;  %v13507_v31 = vpack.c.bf16 %v13505_v40, %v13506_v36  ;;  %v13508_v44 = vld [vmem:[#allocation273_spill] sm:$0xff]  ;;  %v13537_v23 = vld [vmem:[#allocation370_spill] sm:$0xff]  ;;  %v13543_v57 = vld [vmem:[#allocation528_spill] sm:$0xff] }
 0x3e4   :  { %3519 = vmatmul.mubr.bf16.gmra.mxu0 %v13476_v28  ;;  %v3052_v56 = vpack.c.bf16 %v13509_v60, %v13508_v44  ;;  %v13519_v28 = vld [vmem:[#allocation366_spill] sm:$0xff]  ;;  %v13540_v20 = vld [vmem:[#allocation349_spill] sm:$0xff]  ;;  %v13549_v40 = vld [vmem:[#allocation323_spill] sm:$0xff] }
 0x3e5   :  { %3692 = vmatmul.mubr.bf16.gmra.mxu1 %v13479_v4  ;;  %3528 = vmatprep.mubr.bf16.mxu0 %v13482_v1  ;;  %v13521_v0 = vpack.c.bf16 %v13519_v28, %v13520_v18  ;;  %v13522_v4 = vld [vmem:[#allocation522_spill] sm:$0xff]  ;;  %v13525_v1 = vld [vmem:[#allocation523_spill] sm:$0xff]  ;;  %v13551_v44 = vld [vmem:[#allocation320_spill] sm:$0xff] }
 0x3e6   :  { %3701 = vmatprep.mubr.bf16.mxu1 %v13485_v34  ;;  %3827 = vmatpush1.bf16.msra.mxu0 %v3058_v13  ;;  %v13510_v13 = vld [vmem:[#allocation270_spill] sm:$0xff]  ;;  %v13524_v37 = vpack.c.bf16 %v13522_v4, %v13523_v39  ;;  %v13527_v6 = vpack.c.bf16 %v13525_v1, %v13526_v33  ;;  %v13528_v34 = vld [vmem:[#allocation265_spill] sm:$0xff]  ;;  %v13563_v28 = vld [vmem:[#allocation539_spill] sm:$0xff] }
 0x3e7   :  { %4008 = vmatpush1.bf16.msra.mxu1 %v3082_v7  ;;  %3828 = vmatprep.subr.bf16.mxu0 %v3057_v9  ;;  %v3051_v17 = vpack.c.bf16 %v13511_v27, %v13510_v13  ;;  %v13512_v7 = vld [vmem:[#allocation269_spill] sm:$0xff]  ;;  %v13514_v9 = vld [vmem:[#allocation266_spill] sm:$0xff]  ;;  %v3048_v21 = vpack.c.bf16 %v13529_v43, %v13528_v34  ;;  %v13553_v13 = vld [vmem:[#allocation319_spill] sm:$0xff] }
 0x3e8   :  { %4009 = vmatprep.subr.bf16.mxu1 %v3081_v61  ;;  %v3050_v8 = vpack.c.bf16 %v13513_v19, %v13512_v7  ;;  %v3049_v10 = vpack.c.bf16 %v13515_v52, %v13514_v9  ;;  %v13516_v61 = vld [vmem:[#allocation365_spill] sm:$0xff]  ;;  %v13555_v7 = vld [vmem:[#allocation316_spill] sm:$0xff]  ;;  %v13569_v1 = vld [vmem:[#allocation315_spill] sm:$0xff] }
 0x3e9   :  { %v13518_v41 = vpack.c.bf16 %v13516_v61, %v13517_v15  ;;  %v13557_v9 = vld [vmem:[#allocation360_spill] sm:$0xff]  ;;  %v13560_v61 = vld [vmem:[#allocation346_spill] sm:$0xff] }
 0x3ea   :  { %3829 = vmatpush1.bf16.msra.mxu0 %v3056_v38  ;;  %v13530_v38 = vld [vmem:[#allocation326_spill] sm:$0xff]  ;;  %v13566_v4 = vld [vmem:[#allocation540_spill] sm:$0xff] }
 0x3eb   :  { %4010 = vmatpush1.bf16.msra.mxu1 %v3080_v53  ;;  %3830 = vmatprep.subr.bf16.mxu0 %v3055_v22  ;;  %v3079_v54 = vpack.c.bf16 %v13531_v50, %v13530_v38  ;;  %v13532_v53 = vld [vmem:[#allocation325_spill] sm:$0xff]  ;;  %v13534_v22 = vld [vmem:[#allocation322_spill] sm:$0xff]  ;;  %v13571_v34 = vld [vmem:[#allocation312_spill] sm:$0xff] }
 0x3ec   :  { %3529 = vmatmul.mubr.bf16.gmra.mxu0 %v13498_v51  ;;  %v3078_v16 = vpack.c.bf16 %v13533_v58, %v13532_v53  ;;  %v3077_v62 = vpack.c.bf16 %v13535_v55, %v13534_v22  ;;  %v13542_v51 = vld [vmem:[#allocation533_spill] sm:$0xff]  ;;  %v13573_v38 = vld [vmem:[#allocation311_spill] sm:$0xff]  ;;  %v13575_v53 = vld [vmem:[#allocation308_spill] sm:$0xff] }
 0x3ed   :  { %3702 = vmatmul.mubr.bf16.gmra.mxu1 %v13501_v11  ;;  %3538 = vmatprep.mubr.bf16.mxu0 %v13504_v46  ;;  %v13544_v25 = vpack.c.bf16 %v13542_v51, %v13543_v57  ;;  %v13545_v11 = vld [vmem:[#allocation534_spill] sm:$0xff]  ;;  %v13548_v46 = vld [vmem:[#allocation321_spill] sm:$0xff]  ;;  %v13586_v51 = vld [vmem:[#allocation551_spill] sm:$0xff] }
 0x3ee   :  { %3711 = vmatprep.mubr.bf16.mxu1 %v13507_v31  ;;  %3831 = vmatpush1.bf16.msra.mxu0 %v3054_v29  ;;  %v13536_v29 = vld [vmem:[#allocation357_spill] sm:$0xff]  ;;  %v13547_v32 = vpack.c.bf16 %v13545_v11, %v13546_v3  ;;  %v3076_v36 = vpack.c.bf16 %v13549_v40, %v13548_v46  ;;  %v13550_v31 = vld [vmem:[#allocation318_spill] sm:$0xff]  ;;  %v13589_v11 = vld [vmem:[#allocation307_spill] sm:$0xff] }
 0x3ef   :  { %3832 = vmatprep.subr.bf16.mxu0 %v3053_v59  ;;  %v13538_v49 = vpack.c.bf16 %v13536_v29, %v13537_v23  ;;  %v13539_v59 = vld [vmem:[#allocation358_spill] sm:$0xff]  ;;  %v3075_v60 = vpack.c.bf16 %v13551_v44, %v13550_v31  ;;  %v13577_v22 = vld [vmem:[#allocation381_spill] sm:$0xff]  ;;  %v13591_v46 = vld [vmem:[#allocation304_spill] sm:$0xff] }
 0x3f0   :  { %v13541_v26 = vpack.c.bf16 %v13539_v59, %v13540_v20  ;;  %v13580_v29 = vld [vmem:[#allocation382_spill] sm:$0xff]  ;;  %v13593_v31 = vld [vmem:[#allocation303_spill] sm:$0xff] }
 0x3f1   :  { %v13583_v59 = vld [vmem:[#allocation550_spill] sm:$0xff] }
 0x3f2   :  { %3833 = vmatpush1.bf16.msra.mxu0 %v3052_v56  ;;  %v13552_v56 = vld [vmem:[#allocation317_spill] sm:$0xff] }
 0x3f3   :  { %3834 = vmatprep.subr.bf16.mxu0 %v3051_v17  ;;  %v3074_v27 = vpack.c.bf16 %v13553_v13, %v13552_v56  ;;  %v13554_v17 = vld [vmem:[#allocation314_spill] sm:$0xff]  ;;  %v13595_v56 = vld [vmem:[#allocation300_spill] sm:$0xff] }
 0x3f4   :  { %3539 = vmatmul.mubr.bf16.gmra.mxu0 %v13518_v41  ;;  %v3073_v19 = vpack.c.bf16 %v13555_v7, %v13554_v17  ;;  %v13562_v41 = vld [vmem:[#allocation544_spill] sm:$0xff] }
 0x3f5   :  { %3712 = vmatmul.mubr.bf16.gmra.mxu1 %v13521_v0  ;;  %3548 = vmatprep.mubr.bf16.mxu0 %v13524_v37  ;;  %v13564_v18 = vpack.c.bf16 %v13562_v41, %v13563_v28  ;;  %v13565_v0 = vld [vmem:[#allocation545_spill] sm:$0xff]  ;;  %v13597_v17 = vld [vmem:[#allocation392_spill] sm:$0xff]  ;;  %v13606_v41 = vld [vmem:[#allocation562_spill] sm:$0xff] }
 0x3f6   :  { %3721 = vmatprep.mubr.bf16.mxu1 %v13527_v6  ;;  %3835 = vmatpush1.bf16.msra.mxu0 %v3050_v8  ;;  %v13556_v8 = vld [vmem:[#allocation376_spill] sm:$0xff]  ;;  %v13567_v39 = vpack.c.bf16 %v13565_v0, %v13566_v4  ;;  %v13568_v37 = vld [vmem:[#allocation313_spill] sm:$0xff]  ;;  %v13570_v6 = vld [vmem:[#allocation310_spill] sm:$0xff] }
 0x3f7   :  { %3836 = vmatprep.subr.bf16.mxu0 %v3049_v10  ;;  %v13558_v52 = vpack.c.bf16 %v13556_v8, %v13557_v9  ;;  %v13559_v10 = vld [vmem:[#allocation377_spill] sm:$0xff]  ;;  %v3072_v33 = vpack.c.bf16 %v13569_v1, %v13568_v37  ;;  %v3071_v43 = vpack.c.bf16 %v13571_v34, %v13570_v6  ;;  %v13609_v0 = vld [vmem:[#allocation299_spill] sm:$0xff]  ;;  %v13614_v6 = vld [vmem:[#allocation404_spill] sm:$0xff] }
 0x3f8   :  { %v13561_v15 = vpack.c.bf16 %v13559_v10, %v13560_v61  ;;  %v13600_v8 = vld [vmem:[#allocation393_spill] sm:$0xff]  ;;  %v13611_v37 = vld [vmem:[#allocation403_spill] sm:$0xff] }
 0x3f9   :  { %v13603_v10 = vld [vmem:[#allocation561_spill] sm:$0xff] }
 0x3fa   :  { %3837 = vmatpush1.bf16.msra.mxu0 %v3048_v21  ;;  %v13572_v21 = vld [vmem:[#allocation309_spill] sm:$0xff] }
 0x3fb   :  { %3838 = vmatprep.subr.bf16.mxu0 %v3079_v54  ;;  %v3070_v50 = vpack.c.bf16 %v13573_v38, %v13572_v21  ;;  %v13574_v54 = vld [vmem:[#allocation306_spill] sm:$0xff]  ;;  %v13617_v21 = vld [vmem:[#allocation572_spill] sm:$0xff] }
 0x3fc   :  { %3549 = vmatmul.mubr.bf16.gmra.mxu0 %v13538_v49  ;;  %v3069_v58 = vpack.c.bf16 %v13575_v53, %v13574_v54  ;;  %v13582_v49 = vld [vmem:[#allocation555_spill] sm:$0xff]  ;;  %v13620_v54 = vld [vmem:[#allocation573_spill] sm:$0xff] }
 0x3fd   :  { %3722 = vmatmul.mubr.bf16.gmra.mxu1 %v13541_v26  ;;  %3558 = vmatprep.mubr.bf16.mxu0 %v13544_v25  ;;  %v13584_v20 = vpack.c.bf16 %v13582_v49, %v13583_v59  ;;  %v13585_v26 = vld [vmem:[#allocation556_spill] sm:$0xff]  ;;  %v13588_v25 = vld [vmem:[#allocation305_spill] sm:$0xff]  ;;  %v13629_v49 = vld [vmem:[#allocation583_spill] sm:$0xff] }
 0x3fe   :  { %3731 = vmatprep.mubr.bf16.mxu1 %v13547_v32  ;;  %3839 = vmatpush2.bf16.msra.mxu0 %v3078_v16  ;;  %v13576_v16 = vld [vmem:[#allocation387_spill] sm:$0xff]  ;;  %v13587_v57 = vpack.c.bf16 %v13585_v26, %v13586_v51  ;;  %v3068_v3 = vpack.c.bf16 %v13589_v11, %v13588_v25  ;;  %v13590_v32 = vld [vmem:[#allocation302_spill] sm:$0xff]  ;;  %v13632_v26 = vld [vmem:[#allocation584_spill] sm:$0xff] }
 0x3ff   :  { %3840 = vmatprep.subr.bf16.mxu0 %v3077_v62  ;;  %v13578_v55 = vpack.c.bf16 %v13576_v16, %v13577_v22  ;;  %v13579_v62 = vld [vmem:[#allocation388_spill] sm:$0xff]  ;;  %v3067_v40 = vpack.c.bf16 %v13591_v46, %v13590_v32  ;;  %v13623_v16 = vld [vmem:[#allocation414_spill] sm:$0xff]  ;;  %v13634_v11 = vld [vmem:[#allocation431_spill] sm:$0xff] }
 0x400   :  { %v13581_v23 = vpack.c.bf16 %v13579_v62, %v13580_v29  ;;  %v13626_v62 = vld [vmem:[#allocation415_spill] sm:$0xff]  ;;  %v13637_v46 = vld [vmem:[#allocation432_spill] sm:$0xff] }
 0x402   :  { %3841 = vmatpush2.bf16.msra.mxu0 %v3076_v36  ;;  %v13592_v36 = vld [vmem:[#allocation301_spill] sm:$0xff] }
 0x403   :  { %3842 = vmatprep.subr.bf16.mxu0 %v3075_v60  ;;  %v3066_v44 = vpack.c.bf16 %v13593_v31, %v13592_v36  ;;  %v13594_v60 = vld [vmem:[#allocation298_spill] sm:$0xff] }
 0x404   :  { %3559 = vmatmul.mubr.bf16.gmra.mxu0 %v13558_v52  ;;  %v3065_v13 = vpack.c.bf16 %v13595_v56, %v13594_v60  ;;  %v13602_v52 = vld [vmem:[#allocation566_spill] sm:$0xff] }
 0x405   :  { %3732 = vmatmul.mubr.bf16.gmra.mxu1 %v13561_v15  ;;  %3568 = vmatprep.mubr.bf16.mxu0 %v13564_v18  ;;  %v13604_v61 = vpack.c.bf16 %v13602_v52, %v13603_v10  ;;  %v13605_v15 = vld [vmem:[#allocation567_spill] sm:$0xff]  ;;  %v13608_v18 = vld [vmem:[#allocation297_spill] sm:$0xff]  ;;  %v13641_v60 = vld [vmem:[#allocation594_spill] sm:$0xff] }
 0x406   :  { %3741 = vmatprep.mubr.bf16.mxu1 %v13567_v39  ;;  %3843 = vmatpush2.bf16.msra.mxu0 %v3074_v27  ;;  %v13596_v27 = vld [vmem:[#allocation398_spill] sm:$0xff]  ;;  %v13607_v28 = vpack.c.bf16 %v13605_v15, %v13606_v41  ;;  %v3064_v4 = vpack.c.bf16 %v13609_v0, %v13608_v18  ;;  %v13610_v39 = vld [vmem:[#allocation409_spill] sm:$0xff] }
 0x407   :  { %3844 = vmatprep.subr.bf16.mxu0 %v3073_v19  ;;  %v13598_v7 = vpack.c.bf16 %v13596_v27, %v13597_v17  ;;  %v13599_v19 = vld [vmem:[#allocation399_spill] sm:$0xff]  ;;  %v13612_v1 = vpack.c.bf16 %v13610_v39, %v13611_v37  ;;  %v13646_v0 = vld [vmem:[#allocation442_spill] sm:$0xff] }
 0x408   :  { %v13601_v9 = vpack.c.bf16 %v13599_v19, %v13600_v8  ;;  %v13644_v27 = vld [vmem:[#allocation595_spill] sm:$0xff] }
 0x409   :  { %v13649_v37 = vld [vmem:[#allocation443_spill] sm:$0xff] }
 0x40a   :  { %3845 = vmatpush2.bf16.msra.mxu0 %v3072_v33  ;;  %v13613_v33 = vld [vmem:[#allocation410_spill] sm:$0xff] }
 0x40b   :  { %3846 = vmatprep.subr.bf16.mxu0 %v3071_v43  ;;  %v13615_v34 = vpack.c.bf16 %v13613_v33, %v13614_v6  ;;  %v13616_v43 = vld [vmem:[#allocation577_spill] sm:$0xff] }
 0x40c   :  { %3569 = vmatmul.mubr.bf16.gmra.mxu0 %v13578_v55  ;;  %v13618_v38 = vpack.c.bf16 %v13616_v43, %v13617_v21  ;;  %v13625_v55 = vld [vmem:[#allocation421_spill] sm:$0xff]  ;;  %v13653_v43 = vpack.c.bf16 %v13027_v24, %v13026_v14  ;;  %v13656_v24 = vld [vmem:[#allocation448_spill] sm:$0xff] }
 0x40d   :  { %3742 = vmatmul.mubr.bf16.gmra.mxu1 %v13581_v23  ;;  %3578 = vmatprep.mubr.bf16.mxu0 %v13584_v20  ;;  %v13627_v29 = vpack.c.bf16 %v13625_v55, %v13626_v62  ;;  %v13628_v23 = vld [vmem:[#allocation588_spill] sm:$0xff]  ;;  %v13631_v20 = vld [vmem:[#allocation589_spill] sm:$0xff]  ;;  %v13657_v14 = vpack.c.bf16 %v13025_v45, %v13656_v24 }
 0x40e   :  { %3751 = vmatprep.mubr.bf16.mxu1 %v13587_v57  ;;  %3847 = vmatpush2.bf16.msra.mxu0 %v3070_v50  ;;  %v13619_v50 = vld [vmem:[#allocation578_spill] sm:$0xff]  ;;  %v13630_v59 = vpack.c.bf16 %v13628_v23, %v13629_v49  ;;  %v13633_v51 = vpack.c.bf16 %v13631_v20, %v13632_v26  ;;  %v13658_v49 = vld [vmem:[#allocation616_spill] sm:$0xff] }
 0x40f   :  { %3848 = vmatprep.subr.bf16.mxu0 %v3069_v58  ;;  %v13621_v53 = vpack.c.bf16 %v13619_v50, %v13620_v54  ;;  %v13622_v58 = vld [vmem:[#allocation420_spill] sm:$0xff]  ;;  %v13660_v20 = vld [vmem:[#allocation618_spill] sm:$0xff] }
 0x410   :  { %v13624_v22 = vpack.c.bf16 %v13622_v58, %v13623_v16  ;;  %v13661_v26 = vpack.c.bf16 %v9287_v48, %v13660_v20  ;;  %v13665_v48 = vld [vmem:[#allocation622_spill] sm:$0xff] }
 0x412   :  { %3849 = vmatpush2.bf16.msra.mxu0 %v3068_v3  ;;  %v13635_v3 = vld [vmem:[#allocation425_spill] sm:$0xff] }
 0x413   :  { %3850 = vmatprep.subr.bf16.mxu0 %v3067_v40  ;;  %v13636_v32 = vpack.c.bf16 %v13634_v11, %v13635_v3  ;;  %v13638_v40 = vld [vmem:[#allocation426_spill] sm:$0xff] }
 0x414   :  { %3579 = vmatmul.mubr.bf16.gmra.mxu0 %v13598_v7  ;;  %v13639_v36 = vpack.c.bf16 %v13637_v46, %v13638_v40 }
 0x415   :  { %3752 = vmatmul.mubr.bf16.gmra.mxu1 %v13601_v9  ;;  %3588 = vmatprep.mubr.bf16.mxu0 %v13604_v61 }
 0x416   :  { %3761 = vmatprep.mubr.bf16.mxu1 %v13607_v28  ;;  %3851 = vmatpush2.bf16.msra.mxu0 %v3066_v44  ;;  %v13640_v44 = vld [vmem:[#allocation599_spill] sm:$0xff] }
 0x417   :  { %3852 = vmatprep.subr.bf16.mxu0 %v3065_v13  ;;  %v13642_v56 = vpack.c.bf16 %v13640_v44, %v13641_v60  ;;  %v13643_v13 = vld [vmem:[#allocation600_spill] sm:$0xff]  ;;  %v13663_v44 = vld [vmem:[#allocation455_spill] sm:$0xff] }
 0x418   :  { %v13645_v17 = vpack.c.bf16 %v13643_v13, %v13644_v27 }
 0x41a   :  { %3853 = vmatpush2.bf16.msra.mxu0 %v3064_v4  ;;  %v13647_v4 = vld [vmem:[#allocation436_spill] sm:$0xff] }
 0x41b   :  { %v13648_v39 = vpack.c.bf16 %v13646_v0, %v13647_v4 }
 0x41c   :  { %3589 = vmatmul.mubr.bf16.gmra.mxu0 %v13612_v1  ;;  %v13650_v1 = vld [vmem:[#allocation437_spill] sm:$0xff] }
 0x41d   :  { %3762 = vmatmul.mubr.bf16.gmra.mxu1 %v13615_v34  ;;  %3598 = vmatprep.mubr.bf16.mxu0 %v13618_v38  ;;  %v13651_v33 = vpack.c.bf16 %v13649_v37, %v13650_v1  ;;  %v13652_v34 = vpack.c.bf16 %v13023_v47, %v13022_v35  ;;  %v13654_v35 = vld [vmem:[#allocation447_spill] sm:$0xff] }
 0x41e   :  { %3771 = vmatprep.mubr.bf16.mxu1 %v13621_v53  ;;  %v13655_v47 = vpack.c.bf16 %v9162_v63, %v13654_v35 }
 0x424   :  { %3599 = vmatmul.mubr.bf16.gmra.mxu0 %v13624_v22 }
 0x425   :  { %3772 = vmatmul.mubr.bf16.gmra.mxu1 %v13627_v29  ;;  %3608 = vmatprep.mubr.bf16.mxu0 %v13630_v59  ;;  %v13659_v59 = vpack.c.bf16 %v9277_v12, %v13658_v49  ;;  %v13662_v12 = vld [vmem:[#allocation621_spill] sm:$0xff] }
 0x426   :  { %3781 = vmatprep.mubr.bf16.mxu1 %v13633_v51  ;;  %v13664_v60 = vpack.c.bf16 %v13662_v12, %v13663_v44 }
 0x42c   :  { %v3164_v57 = vpop.f32.mrf.mxu0  ;;  %3609 = vmatmul.mubr.bf16.gmra.mxu0 %v13636_v32 }
 0x42d   :  { %v3337_v25 = vpop.f32.mrf.mxu1  ;;  %3782 = vmatmul.mubr.bf16.gmra.mxu1 %v13639_v36  ;;  %3618 = vmatprep.mubr.bf16.mxu0 %v13642_v56  ;;  %v13666_v56 = vld [vmem:[#allocation617_spill] sm:$0xff] }
 0x42e   :  { %v10248_v31 = vadd.f32 %v3337_v25, %v3164_v57  ;;  %3791 = vmatprep.mubr.bf16.mxu1 %v13645_v17  ;;  %v3166_v7 = vpop.f32.mrf.mxu0  ;;  %v13667_v13 = vpack.c.bf16 %v13665_v48, %v13666_v56  ;;  %v13668_v17 = vld [vmem:[#allocation471_spill] sm:$0xff]  ;;  %v13688_v48 = vld [vmem:[#allocation496_spill] sm:$0xff] }
 0x42f   :  { %v3339_v19 = vpop.f32.mrf.mxu1 }
 0x430   :  { %v10256_v8 = vadd.f32 %v3339_v19, %v3166_v7  ;;  %v3168_v9 = vpop.f32.mrf.mxu0  ;;  %v13669_v7 = vld [vmem:[#allocation463_spill] sm:$0xff] }
 0x431   :  { %v3341_v52 = vpop.f32.mrf.mxu1  ;;  %v13670_v19 = vpack.c.bf16 %v13668_v17, %v13669_v7 }
 0x432   :  { %v10258_v10 = vadd.f32 %v3341_v52, %v3168_v9  ;;  %v3170_v61 = vpop.f32.mrf.mxu0  ;;  %v13671_v9 = vmov 0  }
 0x433   :  { %v3343_v15 = vpop.f32.mrf.mxu1 }
 0x434   :  { %v10260_v41 = vadd.f32 %v3343_v15, %v3170_v61  ;;  %v3174_v28 = vpop.f32.mrf.mxu0  ;;  %3619 = vmatmul.mubr.bf16.gmra.mxu0 %v13648_v39 }
 0x435   :  { %v3347_v18 = vpop.f32.mrf.mxu1  ;;  %3792 = vmatmul.mubr.bf16.gmra.mxu1 %v13651_v33  ;;  %3628 = vmatprep.mubr.bf16.mxu0 %v13652_v34  ;;  %v13672_v34 = vld [vmem:[#allocation470_spill] sm:$0xff] }
 0x436   :  { %v10268_v6 = vadd.f32 %v3347_v18, %v3174_v28  ;;  %3801 = vmatprep.mubr.bf16.mxu1 %v13653_v43  ;;  %v3176_v21 = vpop.f32.mrf.mxu0  ;;  %v13673_v43 = vld [vmem:[#allocation462_spill] sm:$0xff] }
 0x437   :  { %v3349_v38 = vpop.f32.mrf.mxu1 }
 0x438   :  { %v10276_v50 = vadd.f32 %v3349_v38, %v3176_v21  ;;  %v3178_v54 = vpop.f32.mrf.mxu0  ;;  %v13674_v21 = vpack.c.bf16 %v13672_v34, %v13673_v43  ;;  %v13675_v38 = vld [vmem:[#allocation472_spill] sm:$0xff]  ;;  %v13691_v34 = vld [vmem:[#allocation495_spill] sm:$0xff] }
 0x439   :  { %v3351_v53 = vpop.f32.mrf.mxu1 }
 0x43a   :  { %v10278_v58 = vadd.f32 %v3351_v53, %v3178_v54  ;;  %v3180_v16 = vpop.f32.mrf.mxu0  ;;  %v13676_v54 = vld [vmem:[#allocation464_spill] sm:$0xff] }
 0x43b   :  { %v3353_v22 = vpop.f32.mrf.mxu1  ;;  %v13677_v53 = vpack.c.bf16 %v13675_v38, %v13676_v54  ;;  %v13694_v38 = vld [vmem:[#allocation497_spill] sm:$0xff] }
 0x43c   :  { %v10280_v55 = vadd.f32 %v3353_v22, %v3180_v16  ;;  %v3184_v62 = vpop.f32.mrf.mxu0  ;;  %3629 = vmatmul.mubr.bf16.gmra.mxu0 %v13655_v47  ;;  %v13678_v22 = vld [vmem:[#allocation487_spill] sm:$0xff] }
 0x43d   :  { %v3357_v29 = vpop.f32.mrf.mxu1  ;;  %3802 = vmatmul.mubr.bf16.gmra.mxu1 %v13657_v14  ;;  %3638 = vmatprep.mubr.bf16.mxu0 %v13659_v59 }
 0x43e   :  { %v10288_v23 = vadd.f32 %v3357_v29, %v3184_v62  ;;  %3811 = vmatprep.mubr.bf16.mxu1 %v13661_v26  ;;  %v3186_v51 = vpop.f32.mrf.mxu0  ;;  %v13679_v62 = vld [vmem:[#allocation480_spill] sm:$0xff] }
 0x43f   :  { %v3359_v57 = vpop.f32.mrf.mxu1  ;;  %v13680_v29 = vpack.c.bf16 %v13678_v22, %v13679_v62  ;;  %v13696_v22 = vld [vmem:[#allocation513_spill] sm:$0xff]  ;;  %v13697_v62 = vld [vmem:[#allocation508_spill] sm:$0xff] }
 0x440   :  { %v10296_v25 = vadd.f32 %v3359_v57, %v3186_v51  ;;  %v3188_v63 = vpop.f32.mrf.mxu0 }
 0x441   :  { %v3361_v11 = vpop.f32.mrf.mxu1 }
 0x442   :  { %v10298_v3 = vadd.f32 %v3361_v11, %v3188_v63  ;;  %v3190_v45 = vpop.f32.mrf.mxu0  ;;  %v13681_v11 = vld [vmem:[#allocation486_spill] sm:$0xff] }
 0x443   :  { %v3363_v32 = vpop.f32.mrf.mxu1 }
 0x444   :  { %v10300_v46 = vadd.f32 %v3363_v32, %v3190_v45  ;;  %v3194_v40 = vpop.f32.mrf.mxu0  ;;  %3639 = vmatmul.mubr.bf16.gmra.mxu0 %v13664_v60  ;;  %v13682_v45 = vld [vmem:[#allocation479_spill] sm:$0xff]  ;;  %v13687_v60 = vld [vmem:[#allocation502_spill] sm:$0xff] }
 0x445   :  { %v3367_v36 = vpop.f32.mrf.mxu1  ;;  %3812 = vmatmul.mubr.bf16.gmra.mxu1 %v13667_v13  ;;  %3854 = vmatprep.mubr.bf16.mxu0 %v13670_v19  ;;  %v13683_v32 = vpack.c.bf16 %v13681_v11, %v13682_v45  ;;  %v13689_v56 = vpack.c.bf16 %v13687_v60, %v13688_v48  ;;  %v13702_v60 = vld [vmem:[#allocation514_spill] sm:$0xff] }
 0x446   :  { %v10308_v27 = vadd.f32 %v3367_v36, %v3194_v40  ;;  %4027 = vmatprep.mubr.bf16.mxu1 %v13671_v9  ;;  %v3196_v52 = vpop.f32.mrf.mxu0  ;;  %v13684_v40 = vld [vmem:[#allocation488_spill] sm:$0xff]  ;;  %v13685_v36 = vld [vmem:[#allocation481_spill] sm:$0xff]  ;;  %v13703_v48 = vld [vmem:[#allocation362_spill] sm:$0xff] }
 0x447   :  { %v3369_v61 = vpop.f32.mrf.mxu1  ;;  %v13686_v12 = vpack.c.bf16 %v13684_v40, %v13685_v36  ;;  %v13699_v40 = vld [vmem:[#allocation367_spill] sm:$0xff]  ;;  %v13700_v36 = vld [vmem:[#allocation361_spill] sm:$0xff] }
 0x448   :  { %v10314_v15 = vadd.f32 %v3369_v61, %v3196_v52  ;;  %v3198_v28 = vpop.f32.mrf.mxu0 }
 0x449   :  { %v3371_v18 = vpop.f32.mrf.mxu1 }
 0x44a   :  { %v10316_v0 = vadd.f32 %v3371_v18, %v3198_v28  ;;  %v3200_v4 = vpop.f32.mrf.mxu0 }
 0x44b   :  { %v3373_v39 = vpop.f32.mrf.mxu1 }
 0x44c   :  { %v10318_v37 = vadd.f32 %v3373_v39, %v3200_v4  ;;  %v3204_v1 = vpop.f32.mrf.mxu0  ;;  %3855 = vmatmul.mubr.bf16.vlgmr.msra.gmra.mxu0 %v13674_v21  ;;  %v13693_v21 = vld [vmem:[#allocation503_spill] sm:$0xff] }
 0x44d   :  { %v3377_v33 = vpop.f32.mrf.mxu1  ;;  %4269 = vmatmul.mubr.msk.bf16.vlgmr.msra.gmra.mxu1 %vm1438_vm0, %v13677_v53  ;;  %3864 = vmatprep.mubr.bf16.mxu0 %v13680_v29  ;;  %v13695_v54 = vpack.c.bf16 %v13693_v21, %v13694_v38  ;;  %v13698_v29 = vpack.c.bf16 %v13696_v22, %v13697_v62  ;;  %v13708_v62 = vld [vmem:[#allocation359_spill] sm:$0xff] }
 0x44e   :  { %v10327_v16 = vadd.f32 %v3377_v33, %v3204_v1  ;;  %4037 = vmatprep.mubr.bf16.mxu1 %v13671_v9  ;;  %v3206_v35 = vpop.f32.mrf.mxu0  ;;  %v13690_v33 = vld [vmem:[#allocation347_spill] sm:$0xff] }
 0x44f   :  { %v3379_v47 = vpop.f32.mrf.mxu1  ;;  %v13692_v43 = vpack.c.bf16 %v13690_v33, %v13691_v34 }
 0x450   :  { %v10333_v24 = vadd.f32 %v3379_v47, %v3206_v35  ;;  %v3208_v14 = vpop.f32.mrf.mxu0 }
 0x451   :  { %v3381_v49 = vpop.f32.mrf.mxu1 }
 0x452   :  { %v10335_v59 = vadd.f32 %v3381_v49, %v3208_v14  ;;  %v3210_v20 = vpop.f32.mrf.mxu0 }
 0x453   :  { %v3383_v26 = vpop.f32.mrf.mxu1 }
 0x454   :  { %v10337_v51 = vadd.f32 %v3383_v26, %v3210_v20  ;;  %v3214_v57 = vpop.f32.mrf.mxu0  ;;  %3865 = vmatmul.mubr.bf16.gmra.mxu0 %v13683_v32 }
 0x455   :  { %v3387_v63 = vpop.f32.mrf.mxu1  ;;  %4270 = vmatmul.mubr.msk.bf16.gmra.mxu1 %vm1438_vm0, %v13686_v12  ;;  %3874 = vmatprep.mubr.bf16.mxu0 %v13689_v56  ;;  %v13701_v12 = vpack.c.bf16 %v13699_v40, %v13700_v36  ;;  %v13704_v56 = vpack.c.bf16 %v13702_v60, %v13703_v48 }
 0x456   :  { %v10346_v44 = vadd.f32 %v3387_v63, %v3214_v57  ;;  %4047 = vmatprep.mubr.bf16.mxu1 %v13671_v9  ;;  %v3216_v13 = vpop.f32.mrf.mxu0 }
 0x457   :  { %v3389_v17 = vpop.f32.mrf.mxu1 }
 0x458   :  { %v10352_v7 = vadd.f32 %v3389_v17, %v3216_v13  ;;  %v3218_v19 = vpop.f32.mrf.mxu0  ;;  %v13705_v17 = vld [vmem:[#allocation524_spill] sm:$0xff] }
 0x459   :  { %v3391_v52 = vpop.f32.mrf.mxu1 }
 0x45a   :  { %v10354_v61 = vadd.f32 %v3391_v52, %v3218_v19  ;;  %v3220_v28 = vpop.f32.mrf.mxu0  ;;  %v13706_v19 = vld [vmem:[#allocation519_spill] sm:$0xff] }
 0x45b   :  { %v3393_v18 = vpop.f32.mrf.mxu1  ;;  %v13707_v52 = vpack.c.bf16 %v13705_v17, %v13706_v19 }
 0x45c   :  { %v10356_v4 = vadd.f32 %v3393_v18, %v3220_v28  ;;  %v3224_v39 = vpop.f32.mrf.mxu0  ;;  %3875 = vmatmul.mubr.bf16.gmra.mxu0 %v13692_v43 }
 0x45d   :  { %v3397_v1 = vpop.f32.mrf.mxu1  ;;  %4271 = vmatmul.mubr.msk.bf16.gmra.mxu1 %vm1438_vm0, %v13695_v54  ;;  %3884 = vmatprep.mubr.bf16.mxu0 %v13698_v29  ;;  %v13709_v29 = vld [vmem:[#allocation350_spill] sm:$0xff] }
 0x45e   :  { %v10365_v53 = vadd.f32 %v3397_v1, %v3224_v39  ;;  %4057 = vmatprep.mubr.bf16.mxu1 %v13671_v9  ;;  %v3226_v35 = vpop.f32.mrf.mxu0 }
 0x45f   :  { %v3399_v47 = vpop.f32.mrf.mxu1 }
 0x460   :  { %v10371_v14 = vadd.f32 %v3399_v47, %v3226_v35  ;;  %v3228_v49 = vpop.f32.mrf.mxu0  ;;  %v13710_v35 = vpack.c.bf16 %v13708_v62, %v13709_v29  ;;  %v13711_v47 = vld [vmem:[#allocation525_spill] sm:$0xff]  ;;  %v13723_v29 = vld [vmem:[#allocation546_spill] sm:$0xff] }
 0x461   :  { %v3401_v20 = vpop.f32.mrf.mxu1 }
 0x462   :  { %v10373_v26 = vadd.f32 %v3401_v20, %v3228_v49  ;;  %v3230_v57 = vpop.f32.mrf.mxu0  ;;  %v13712_v49 = vld [vmem:[#allocation354_spill] sm:$0xff] }
 0x463   :  { %v3403_v63 = vpop.f32.mrf.mxu1  ;;  %v13713_v20 = vpack.c.bf16 %v13711_v47, %v13712_v49 }
 0x464   :  { %v10375_v11 = vadd.f32 %v3403_v63, %v3230_v57  ;;  %v3234_v45 = vpop.f32.mrf.mxu0  ;;  %3885 = vmatmul.mubr.bf16.gmra.mxu0 %v13701_v12  ;;  %v13714_v63 = vld [vmem:[#allocation535_spill] sm:$0xff] }
 0x465   :  { %v3407_v32 = vpop.f32.mrf.mxu1  ;;  %4272 = vmatmul.mubr.msk.bf16.gmra.mxu1 %vm1438_vm0, %v13704_v56  ;;  %3894 = vmatprep.mubr.bf16.mxu0 %v13707_v52 }
 0x466   :  { %v10384_v13 = vadd.f32 %v3407_v32, %v3234_v45  ;;  %4067 = vmatprep.mubr.bf16.mxu1 %v13671_v9  ;;  %v3236_v28 = vpop.f32.mrf.mxu0  ;;  %v13715_v45 = vld [vmem:[#allocation530_spill] sm:$0xff] }
 0x467   :  { %v3409_v18 = vpop.f32.mrf.mxu1  ;;  %v13716_v32 = vpack.c.bf16 %v13714_v63, %v13715_v45 }
 0x468   :  { %v10390_v39 = vadd.f32 %v3409_v18, %v3236_v28  ;;  %v3238_v1 = vpop.f32.mrf.mxu0 }
 0x469   :  { %v3411_v33 = vpop.f32.mrf.mxu1 }
 0x46a   :  { %v10392_v34 = vadd.f32 %v3411_v33, %v3238_v1  ;;  %v3240_v43 = vpop.f32.mrf.mxu0  ;;  %v13717_v1 = vld [vmem:[#allocation378_spill] sm:$0xff]  ;;  %v13718_v33 = vld [vmem:[#allocation345_spill] sm:$0xff] }
 0x46b   :  { %v3413_v21 = vpop.f32.mrf.mxu1 }
 0x46c   :  { %v10394_v38 = vadd.f32 %v3413_v21, %v3240_v43  ;;  %v3244_v54 = vpop.f32.mrf.mxu0  ;;  %3895 = vmatmul.mubr.bf16.gmra.mxu0 %v13710_v35  ;;  %v13719_v43 = vpack.c.bf16 %v13717_v1, %v13718_v33  ;;  %v13720_v21 = vld [vmem:[#allocation536_spill] sm:$0xff]  ;;  %v13724_v35 = vld [vmem:[#allocation541_spill] sm:$0xff]  ;;  %v13729_v33 = vld [vmem:[#allocation547_spill] sm:$0xff] }
 0x46d   :  { %v3417_v22 = vpop.f32.mrf.mxu1  ;;  %4273 = vmatmul.mubr.msk.bf16.gmra.mxu1 %vm1438_vm0, %v13713_v20  ;;  %3904 = vmatprep.mubr.bf16.mxu0 %v13716_v32  ;;  %v13725_v47 = vpack.c.bf16 %v13723_v29, %v13724_v35  ;;  %v13733_v29 = vld [vmem:[#allocation552_spill] sm:$0xff] }
 0x46e   :  { %v10403_v57 = vadd.f32 %v3417_v22, %v3244_v54  ;;  %4077 = vmatprep.mubr.bf16.mxu1 %v13671_v9  ;;  %v3246_v40 = vpop.f32.mrf.mxu0  ;;  %v13721_v54 = vld [vmem:[#allocation373_spill] sm:$0xff] }
 0x46f   :  { %v3419_v36 = vpop.f32.mrf.mxu1  ;;  %v13722_v22 = vpack.c.bf16 %v13720_v21, %v13721_v54 }
 0x470   :  { %v10409_v12 = vadd.f32 %v3419_v36, %v3246_v40  ;;  %v3248_v60 = vpop.f32.mrf.mxu0 }
 0x471   :  { %v3421_v48 = vpop.f32.mrf.mxu1 }
 0x472   :  { %v10411_v56 = vadd.f32 %v3421_v48, %v3248_v60  ;;  %v3250_v17 = vpop.f32.mrf.mxu0 }
 0x473   :  { %v3423_v19 = vpop.f32.mrf.mxu1 }
 0x474   :  { %v10413_v52 = vadd.f32 %v3423_v19, %v3250_v17  ;;  %v3254_v28 = vpop.f32.mrf.mxu0  ;;  %3905 = vmatmul.mubr.bf16.gmra.mxu0 %v13719_v43  ;;  %v13730_v43 = vld [vmem:[#allocation384_spill] sm:$0xff] }
 0x475   :  { %v3427_v18 = vpop.f32.mrf.mxu1  ;;  %4274 = vmatmul.mubr.msk.bf16.gmra.mxu1 %vm1438_vm0, %v13722_v22  ;;  %3914 = vmatprep.mubr.bf16.mxu0 %v13725_v47  ;;  %v13731_v21 = vpack.c.bf16 %v13729_v33, %v13730_v43  ;;  %v13732_v22 = vld [vmem:[#allocation557_spill] sm:$0xff]  ;;  %v13738_v33 = vld [vmem:[#allocation394_spill] sm:$0xff] }
 0x476   :  { %v10422_v62 = vadd.f32 %v3427_v18, %v3254_v28  ;;  %4087 = vmatprep.mubr.bf16.mxu1 %v13671_v9  ;;  %v3256_v49 = vpop.f32.mrf.mxu0  ;;  %v13726_v28 = vld [vmem:[#allocation389_spill] sm:$0xff]  ;;  %v13727_v18 = vld [vmem:[#allocation383_spill] sm:$0xff]  ;;  %v13734_v35 = vpack.c.bf16 %v13732_v22, %v13733_v29 }
 0x477   :  { %v3429_v20 = vpop.f32.mrf.mxu1  ;;  %v13728_v1 = vpack.c.bf16 %v13726_v28, %v13727_v18  ;;  %v13741_v22 = vld [vmem:[#allocation395_spill] sm:$0xff] }
 0x478   :  { %v10428_v63 = vadd.f32 %v3429_v20, %v3256_v49  ;;  %v3258_v45 = vpop.f32.mrf.mxu0 }
 0x479   :  { %v3431_v32 = vpop.f32.mrf.mxu1 }
 0x47a   :  { %v10430_v40 = vadd.f32 %v3431_v32, %v3258_v45  ;;  %v3260_v36 = vpop.f32.mrf.mxu0 }
 0x47b   :  { %v3433_v60 = vpop.f32.mrf.mxu1 }
 0x47c   :  { %v10432_v48 = vadd.f32 %v3433_v60, %v3260_v36  ;;  %v3264_v17 = vpop.f32.mrf.mxu0  ;;  %3915 = vmatmul.mubr.bf16.gmra.mxu0 %v13728_v1  ;;  %v13737_v1 = vld [vmem:[#allocation400_spill] sm:$0xff] }
 0x47d   :  { %v3437_v19 = vpop.f32.mrf.mxu1  ;;  %4275 = vmatmul.mubr.msk.bf16.gmra.mxu1 %vm1438_vm0, %v13731_v21  ;;  %3924 = vmatprep.mubr.bf16.mxu0 %v13734_v35  ;;  %v13739_v43 = vpack.c.bf16 %v13737_v1, %v13738_v33  ;;  %v13740_v21 = vld [vmem:[#allocation558_spill] sm:$0xff] }
 0x47e   :  { %v10441_v54 = vadd.f32 %v3437_v19, %v3264_v17  ;;  %4097 = vmatprep.mubr.bf16.mxu1 %v13671_v9  ;;  %v3266_v47 = vpop.f32.mrf.mxu0  ;;  %v13742_v29 = vpack.c.bf16 %v13740_v21, %v13741_v22 }
 0x47f   :  { %v3439_v49 = vpop.f32.mrf.mxu1 }
 0x480   :  { %v10447_v20 = vadd.f32 %v3439_v49, %v3266_v47  ;;  %v3268_v45 = vpop.f32.mrf.mxu0  ;;  %v13744_v47 = vld [vmem:[#allocation568_spill] sm:$0xff]  ;;  %v13745_v49 = vld [vmem:[#allocation563_spill] sm:$0xff] }
 0x481   :  { %v3441_v32 = vpop.f32.mrf.mxu1 }
 0x482   :  { %v10449_v36 = vadd.f32 %v3441_v32, %v3268_v45  ;;  %v3270_v60 = vpop.f32.mrf.mxu0  ;;  %v13746_v45 = vpack.c.bf16 %v13744_v47, %v13745_v49  ;;  %v13753_v49 = vld [vmem:[#allocation569_spill] sm:$0xff] }
 0x483   :  { %v3443_v28 = vpop.f32.mrf.mxu1 }
 0x484   :  { %13735 = vst [vmem:[#allocation457_spill] sm:$0xff] %v10449_v36  ;;  %v10451_v18 = vadd.f32 %v3443_v28, %v3270_v60  ;;  %v3274_v17 = vpop.f32.mrf.mxu0  ;;  %3925 = vmatmul.mubr.bf16.gmra.mxu0 %v13739_v43 }
 0x485   :  { %v3447_v19 = vpop.f32.mrf.mxu1  ;;  %4276 = vmatmul.mubr.msk.bf16.gmra.mxu1 %vm1438_vm0, %v13742_v29  ;;  %3934 = vmatprep.mubr.bf16.mxu0 %v13746_v45  ;;  %v13750_v29 = vld [vmem:[#allocation411_spill] sm:$0xff]  ;;  %v13754_v45 = vld [vmem:[#allocation406_spill] sm:$0xff] }
 0x486   :  { %13736 = vst [vmem:[#allocation473_spill] sm:$0xff] %v10451_v18  ;;  %v10460_v35 = vadd.f32 %v3447_v19, %v3274_v17  ;;  %4107 = vmatprep.mubr.bf16.mxu1 %v13671_v9  ;;  %v3276_v32 = vpop.f32.mrf.mxu0  ;;  %v13755_v36 = vpack.c.bf16 %v13753_v49, %v13754_v45 }
 0x487   :  { %v3449_v60 = vpop.f32.mrf.mxu1 }
 0x488   :  { %13743 = vst [vmem:[#allocation474_spill] sm:$0xff] %v10460_v35  ;;  %v10466_v28 = vadd.f32 %v3449_v60, %v3276_v32  ;;  %v3278_v18 = vpop.f32.mrf.mxu0  ;;  %v13751_v35 = vld [vmem:[#allocation405_spill] sm:$0xff]  ;;  %v13757_v60 = vld [vmem:[#allocation579_spill] sm:$0xff] }
 0x489   :  { %v3451_v1 = vpop.f32.mrf.mxu1  ;;  %v13752_v47 = vpack.c.bf16 %v13750_v29, %v13751_v35 }
 0x48a   :  { %13747 = vst [vmem:[#allocation489_spill] sm:$0xff] %v10466_v28  ;;  %v10468_v33 = vadd.f32 %v3451_v1, %v3278_v18  ;;  %v3280_v43 = vpop.f32.mrf.mxu0  ;;  %v13758_v18 = vld [vmem:[#allocation574_spill] sm:$0xff] }
 0x48b   :  { %v3453_v21 = vpop.f32.mrf.mxu1  ;;  %v13759_v1 = vpack.c.bf16 %v13757_v60, %v13758_v18  ;;  %v13766_v18 = vld [vmem:[#allocation580_spill] sm:$0xff] }
 0x48c   :  { %13748 = vst [vmem:[#allocation490_spill] sm:$0xff] %v10468_v33  ;;  %v10470_v22 = vadd.f32 %v3453_v21, %v3280_v43  ;;  %v3284_v17 = vpop.f32.mrf.mxu0  ;;  %3935 = vmatmul.mubr.bf16.gmra.mxu0 %v13752_v47 }
 0x48d   :  { %v3457_v19 = vpop.f32.mrf.mxu1  ;;  %4277 = vmatmul.mubr.msk.bf16.gmra.mxu1 %vm1438_vm0, %v13755_v36  ;;  %3944 = vmatprep.mubr.bf16.mxu0 %v13759_v1  ;;  %v13767_v1 = vld [vmem:[#allocation417_spill] sm:$0xff] }
 0x48e   :  { %13749 = vst [vmem:[#allocation597_spill] sm:$0xff] %v10470_v22  ;;  %v10479_v32 = vadd.f32 %v3457_v19, %v3284_v17  ;;  %4117 = vmatprep.mubr.bf16.mxu1 %v13671_v9  ;;  %v3286_v43 = vpop.f32.mrf.mxu0  ;;  %v13763_v19 = vld [vmem:[#allocation422_spill] sm:$0xff]  ;;  %v13768_v28 = vpack.c.bf16 %v13766_v18, %v13767_v1 }
 0x48f   :  { %v3459_v21 = vpop.f32.mrf.mxu1 }
 0x490   :  { %13756 = vst [vmem:[#allocation603_spill] sm:$0xff] %v10479_v32  ;;  %v10485_v22 = vadd.f32 %v3459_v21, %v3286_v43  ;;  %v3288_v33 = vpop.f32.mrf.mxu0  ;;  %v13764_v32 = vld [vmem:[#allocation416_spill] sm:$0xff]  ;;  %v13770_v21 = vld [vmem:[#allocation590_spill] sm:$0xff] }
 0x491   :  { %v3461_v35 = vpop.f32.mrf.mxu1  ;;  %v13765_v60 = vpack.c.bf16 %v13763_v19, %v13764_v32 }
 0x492   :  { %13760 = vst [vmem:[#allocation609_spill] sm:$0xff] %v10485_v22  ;;  %v10487_v29 = vadd.f32 %v3461_v35, %v3288_v33  ;;  %v3290_v47 = vpop.f32.mrf.mxu0  ;;  %v13771_v33 = vld [vmem:[#allocation585_spill] sm:$0xff] }
 0x493   :  { %v3463_v49 = vpop.f32.mrf.mxu1  ;;  %v13772_v35 = vpack.c.bf16 %v13770_v21, %v13771_v33  ;;  %v13779_v33 = vld [vmem:[#allocation591_spill] sm:$0xff] }
 0x494   :  { %13761 = vst [vmem:[#allocation604_spill] sm:$0xff] %v10487_v29  ;;  %v10489_v45 = vadd.f32 %v3463_v49, %v3290_v47  ;;  %v3294_v36 = vpop.f32.mrf.mxu0  ;;  %3945 = vmatmul.mubr.bf16.gmra.mxu0 %v13765_v60 }
 0x495   :  { %v3467_v17 = vpop.f32.mrf.mxu1  ;;  %4278 = vmatmul.mubr.msk.bf16.gmra.mxu1 %vm1438_vm0, %v13768_v28  ;;  %3954 = vmatprep.mubr.bf16.mxu0 %v13772_v35  ;;  %v13780_v35 = vld [vmem:[#allocation428_spill] sm:$0xff] }
 0x496   :  { %13762 = vst [vmem:[#allocation610_spill] sm:$0xff] %v10489_v45  ;;  %v10498_v43 = vadd.f32 %v3467_v17, %v3294_v36  ;;  %4127 = vmatprep.mubr.bf16.mxu1 %v13671_v9  ;;  %v3296_v47 = vpop.f32.mrf.mxu0  ;;  %v13776_v17 = vld [vmem:[#allocation433_spill] sm:$0xff]  ;;  %v13781_v22 = vpack.c.bf16 %v13779_v33, %v13780_v35 }
 0x497   :  { %v3469_v49 = vpop.f32.mrf.mxu1 }
 0x498   :  { %13769 = vst [vmem:[#allocation605_spill] sm:$0xff] %v10498_v43  ;;  %v10504_v45 = vadd.f32 %v3469_v49, %v3296_v47  ;;  %v3298_v29 = vpop.f32.mrf.mxu0  ;;  %v13777_v43 = vld [vmem:[#allocation427_spill] sm:$0xff]  ;;  %v13782_v49 = vld [vmem:[#allocation601_spill] sm:$0xff] }
 0x499   :  { %v3471_v32 = vpop.f32.mrf.mxu1  ;;  %v13778_v21 = vpack.c.bf16 %v13776_v17, %v13777_v43 }
 0x49a   :  { %13773 = vst [vmem:[#allocation452_spill] sm:$0xff] %v10504_v45  ;;  %v10506_v19 = vadd.f32 %v3471_v32, %v3298_v29  ;;  %v3300_v60 = vpop.f32.mrf.mxu0  ;;  %v13783_v29 = vld [vmem:[#allocation596_spill] sm:$0xff]  ;;  %v13786_v45 = vld [vmem:[#allocation438_spill] sm:$0xff] }
 0x49b   :  { %v3473_v18 = vpop.f32.mrf.mxu1  ;;  %v13784_v32 = vpack.c.bf16 %v13782_v49, %v13783_v29 }
 0x49c   :  { %13774 = vst [vmem:[#allocation453_spill] sm:$0xff] %v10506_v19  ;;  %v10508_v1 = vadd.f32 %v3473_v18, %v3300_v60  ;;  %v3510_v28 = vpop.f32.mrf.mxu0  ;;  %3955 = vmatmul.mubr.bf16.gmra.mxu0 %v13778_v21 }
 0x49d   :  { %v3683_v36 = vpop.f32.mrf.mxu1  ;;  %4279 = vmatmul.mubr.msk.bf16.gmra.mxu1 %vm1438_vm0, %v13781_v22  ;;  %v3511_v47 = vadd.f32 %v3510_v28, %v10248_v31  ;;  %3964 = vmatprep.mubr.bf16.mxu0 %v13784_v32  ;;  %v13785_v32 = vld [vmem:[#allocation444_spill] sm:$0xff] }
 0x49e   :  { %13775 = vst [vmem:[#allocation606_spill] sm:$0xff] %v10508_v1  ;;  %4137 = vmatprep.mubr.bf16.mxu1 %v13671_v9  ;;  %v3512_v60 = vpop.f32.mrf.mxu0 }
 0x49f   :  { %v3685_v18 = vpop.f32.mrf.mxu1  ;;  %v10522_v1 = vadd.f32 %v3683_v36, %v3511_v47  ;;  %v3513_v43 = vadd.f32 %v3512_v60, %v10256_v8  ;;  %v13787_v36 = vpack.c.bf16 %v13785_v32, %v13786_v45  ;;  %v13788_v47 = vld [vmem:[#allocation602_spill] sm:$0xff]  ;;  %v13789_v8 = vld [vmem:[#allocation439_spill] sm:$0xff] }
 0x4a0   :  { %v3514_v17 = vpop.f32.mrf.mxu0  ;;  %v13790_v60 = vpack.c.bf16 %v13788_v47, %v13789_v8 }
 0x4a1   :  { %v3687_v21 = vpop.f32.mrf.mxu1  ;;  %v10525_v19 = vadd.f32 %v3685_v18, %v3513_v43  ;;  %v3515_v22 = vadd.f32 %v3514_v17, %v10258_v10  ;;  %v13791_v43 = vld [vmem:[#allocation613_spill] sm:$0xff]  ;;  %v13792_v17 = vld [vmem:[#allocation607_spill] sm:$0xff] }
 0x4a2   :  { %v3516_v33 = vpop.f32.mrf.mxu0 }
 0x4a3   :  { %v3689_v31 = vpop.f32.mrf.mxu1  ;;  %v10528_v28 = vadd.f32 %v3687_v21, %v3515_v22  ;;  %v3517_v35 = vadd.f32 %v3516_v33, %v10260_v41  ;;  %v13793_v21 = vpack.c.bf16 %v13791_v43, %v13792_v17  ;;  %v13794_v17 = vld [vmem:[#allocation612_spill] sm:$0xff] }
 0x4a4   :  { %v3520_v49 = vpop.f32.mrf.mxu0  ;;  %3965 = vmatmul.mubr.bf16.gmra.mxu0 %v13787_v36 }
 0x4a5   :  { %v3693_v29 = vpop.f32.mrf.mxu1  ;;  %4280 = vmatmul.mubr.msk.bf16.gmra.mxu1 %vm1438_vm0, %v13790_v60  ;;  %v10538_v18 = vadd.f32 %v3689_v31, %v3517_v35  ;;  %v3521_v10 = vadd.f32 %v3520_v49, %v10268_v6  ;;  %3974 = vmatprep.mubr.bf16.mxu0 %v13793_v21  ;;  %v13795_v21 = vld [vmem:[#allocation449_spill] sm:$0xff] }
 0x4a6   :  { %4147 = vmatprep.mubr.bf16.mxu1 %v13671_v9  ;;  %v3522_v41 = vpop.f32.mrf.mxu0 }
 0x4a7   :  { %v3695_v22 = vpop.f32.mrf.mxu1  ;;  %v10545_v33 = vadd.f32 %v3693_v29, %v3521_v10  ;;  %v3523_v45 = vadd.f32 %v3522_v41, %v10276_v50  ;;  %v13796_v29 = vpack.c.bf16 %v13794_v17, %v13795_v21  ;;  %v13797_v10 = vld [vmem:[#allocation614_spill] sm:$0xff]  ;;  %v13798_v50 = vld [vmem:[#allocation608_spill] sm:$0xff] }
 0x4a8   :  { %v3524_v32 = vpop.f32.mrf.mxu0  ;;  %v13799_v41 = vpack.c.bf16 %v13797_v10, %v13798_v50 }
 0x4a9   :  { %v3697_v36 = vpop.f32.mrf.mxu1  ;;  %v10548_v47 = vadd.f32 %v3695_v22, %v3523_v45  ;;  %v3525_v31 = vadd.f32 %v3524_v32, %v10278_v58  ;;  %v13800_v45 = vpack.c.bf16 %v9297_v30, %v13037_v2 }
 0x4aa   :  { %v3526_v35 = vpop.f32.mrf.mxu0 }
 0x4ab   :  { %v3699_v6 = vpop.f32.mrf.mxu1  ;;  %v10551_v49 = vadd.f32 %v3697_v36, %v3525_v31  ;;  %v3527_v8 = vadd.f32 %v3526_v35, %v10280_v55 }
 0x4ac   :  { %v3530_v60 = vpop.f32.mrf.mxu0  ;;  %3975 = vmatmul.mubr.bf16.gmra.mxu0 %v13796_v29  ;;  %v13802_v29 = vld [vmem:[#allocation623_spill] sm:$0xff] }
 0x4ad   :  { %v3703_v43 = vpop.f32.mrf.mxu1  ;;  %4281 = vmatmul.mubr.msk.bf16.gmra.mxu1 %vm1438_vm0, %v13799_v41  ;;  %v10561_v22 = vadd.f32 %v3699_v6, %v3527_v8  ;;  %v3531_v58 = vadd.f32 %v3530_v60, %v10288_v23  ;;  %3984 = vmatprep.mubr.bf16.mxu0 %v13800_v45 }
 0x4ae   :  { %4157 = vmatprep.mubr.bf16.mxu1 %v13671_v9  ;;  %v3532_v55 = vpop.f32.mrf.mxu0 }
 0x4af   :  { %v3705_v32 = vpop.f32.mrf.mxu1  ;;  %v10568_v36 = vadd.f32 %v3703_v43, %v3531_v58  ;;  %v3533_v31 = vadd.f32 %v3532_v55, %v10296_v25  ;;  %v13801_v43 = vpack.c.bf16 %v9292_v42, %v9237_v5  ;;  %v13803_v25 = vld [vmem:[#allocation620_spill] sm:$0xff] }
 0x4b0   :  { %v3534_v35 = vpop.f32.mrf.mxu0  ;;  %v13804_v10 = vpack.c.bf16 %v13802_v29, %v13803_v25 }
 0x4b1   :  { %v3707_v17 = vpop.f32.mrf.mxu1  ;;  %v10571_v21 = vadd.f32 %v3705_v32, %v3533_v31  ;;  %v3535_v6 = vadd.f32 %v3534_v35, %v10298_v3 }
 0x4b2   :  { %v3536_v8 = vpop.f32.mrf.mxu0 }
 0x4b3   :  { %v3709_v23 = vpop.f32.mrf.mxu1  ;;  %v10574_v60 = vadd.f32 %v3707_v17, %v3535_v6  ;;  %v3537_v30 = vadd.f32 %v3536_v8, %v10300_v46 }
 0x4b4   :  { %v3540_v2 = vpop.f32.mrf.mxu0  ;;  %3985 = vmatmul.mubr.bf16.gmra.mxu0 %v13801_v43 }
 0x4b5   :  { %v3713_v9 = vpop.f32.mrf.mxu1  ;;  %4282 = vmatmul.mubr.msk.bf16.gmra.mxu1 %vm1438_vm0, %v13804_v10  ;;  %v10584_v50 = vadd.f32 %v3709_v23, %v3537_v30  ;;  %v3541_v3 = vadd.f32 %v3540_v2, %v10308_v27 }
 0x4b6   :  { %v3542_v41 = vpop.f32.mrf.mxu0 }
 0x4b7   :  { %v3715_v58 = vpop.f32.mrf.mxu1  ;;  %v10587_v45 = vadd.f32 %v3713_v9, %v3541_v3  ;;  %v3543_v46 = vadd.f32 %v3542_v41, %v10314_v15 }
 0x4b8   :  { %v3544_v55 = vpop.f32.mrf.mxu0 }
 0x4b9   :  { %v3717_v32 = vpop.f32.mrf.mxu1  ;;  %v10590_v31 = vadd.f32 %v3715_v58, %v3543_v46  ;;  %v3545_v5 = vadd.f32 %v3544_v55, %v10316_v0 }
 0x4ba   :  { %v3546_v42 = vpop.f32.mrf.mxu0 }
 0x4bb   :  { %v3719_v35 = vpop.f32.mrf.mxu1  ;;  %v10593_v17 = vadd.f32 %v3717_v32, %v3545_v5  ;;  %v3547_v6 = vadd.f32 %v3546_v42, %v10318_v37 }
 0x4bc   :  { %v3550_v8 = vpop.f32.mrf.mxu0 }
 0x4bd   :  { %v3723_v27 = vpop.f32.mrf.mxu1  ;;  %v10596_v23 = vadd.f32 %v3719_v35, %v3547_v6  ;;  %v3551_v30 = vadd.f32 %v3550_v8, %v10327_v16 }
 0x4be   :  { %v3552_v2 = vpop.f32.mrf.mxu0 }
 0x4bf   :  { %v3725_v15 = vpop.f32.mrf.mxu1  ;;  %v10599_v9 = vadd.f32 %v3723_v27, %v3551_v30  ;;  %v3553_v43 = vadd.f32 %v3552_v2, %v10333_v24 }
 0x4c0   :  { %v3554_v29 = vpop.f32.mrf.mxu0 }
 0x4c1   :  { %v3727_v0 = vpop.f32.mrf.mxu1  ;;  %v10602_v25 = vadd.f32 %v3725_v15, %v3553_v43  ;;  %v3555_v10 = vadd.f32 %v3554_v29, %v10335_v59 }
 0x4c2   :  { %v3556_v3 = vpop.f32.mrf.mxu0 }
 0x4c3   :  { %v3729_v37 = vpop.f32.mrf.mxu1  ;;  %v10605_v41 = vadd.f32 %v3727_v0, %v3555_v10  ;;  %v3557_v58 = vadd.f32 %v3556_v3, %v10337_v51 }
 0x4c4   :  { %v3560_v46 = vpop.f32.mrf.mxu0 }
 0x4c5   :  { %v3733_v16 = vpop.f32.mrf.mxu1  ;;  %v10608_v55 = vadd.f32 %v3729_v37, %v3557_v58  ;;  %v3561_v32 = vadd.f32 %v3560_v46, %v10346_v44 }
 0x4c6   :  { %v3562_v5 = vpop.f32.mrf.mxu0 }
 0x4c7   :  { %v3735_v24 = vpop.f32.mrf.mxu1  ;;  %v10611_v42 = vadd.f32 %v3733_v16, %v3561_v32  ;;  %v3563_v35 = vadd.f32 %v3562_v5, %v10352_v7 }
 0x4c8   :  { %v3564_v6 = vpop.f32.mrf.mxu0 }
 0x4c9   :  { %v3737_v59 = vpop.f32.mrf.mxu1  ;;  %v10614_v8 = vadd.f32 %v3735_v24, %v3563_v35  ;;  %v3565_v27 = vadd.f32 %v3564_v6, %v10354_v61 }
 0x4ca   :  { %v3566_v30 = vpop.f32.mrf.mxu0 }
 0x4cb   :  { %v3739_v51 = vpop.f32.mrf.mxu1  ;;  %v10617_v2 = vadd.f32 %v3737_v59, %v3565_v27  ;;  %v3567_v15 = vadd.f32 %v3566_v30, %v10356_v4 }
 0x4cc   :  { %v3570_v43 = vpop.f32.mrf.mxu0 }
 0x4cd   :  { %v3743_v44 = vpop.f32.mrf.mxu1  ;;  %v10620_v29 = vadd.f32 %v3739_v51, %v3567_v15  ;;  %v3571_v0 = vadd.f32 %v3570_v43, %v10365_v53 }
 0x4ce   :  { %v3572_v10 = vpop.f32.mrf.mxu0 }
 0x4cf   :  { %v3745_v7 = vpop.f32.mrf.mxu1  ;;  %v10623_v3 = vadd.f32 %v3743_v44, %v3571_v0  ;;  %v3573_v37 = vadd.f32 %v3572_v10, %v10371_v14 }
 0x4d0   :  { %v3574_v58 = vpop.f32.mrf.mxu0 }
 0x4d1   :  { %v3747_v61 = vpop.f32.mrf.mxu1  ;;  %v10626_v46 = vadd.f32 %v3745_v7, %v3573_v37  ;;  %v3575_v16 = vadd.f32 %v3574_v58, %v10373_v26 }
 0x4d2   :  { %v3576_v32 = vpop.f32.mrf.mxu0 }
 0x4d3   :  { %v3749_v4 = vpop.f32.mrf.mxu1  ;;  %v10629_v5 = vadd.f32 %v3747_v61, %v3575_v16  ;;  %v3577_v24 = vadd.f32 %v3576_v32, %v10375_v11 }
 0x4d4   :  { %v3580_v35 = vpop.f32.mrf.mxu0 }
 0x4d5   :  { %v3753_v53 = vpop.f32.mrf.mxu1  ;;  %v10632_v6 = vadd.f32 %v3749_v4, %v3577_v24  ;;  %v3581_v59 = vadd.f32 %v3580_v35, %v10384_v13 }
 0x4d6   :  { %v3582_v27 = vpop.f32.mrf.mxu0 }
 0x4d7   :  { %v3755_v14 = vpop.f32.mrf.mxu1  ;;  %v10635_v30 = vadd.f32 %v3753_v53, %v3581_v59  ;;  %v3583_v51 = vadd.f32 %v3582_v27, %v10390_v39 }
 0x4d8   :  { %v3584_v15 = vpop.f32.mrf.mxu0 }
 0x4d9   :  { %v3757_v26 = vpop.f32.mrf.mxu1  ;;  %v10638_v43 = vadd.f32 %v3755_v14, %v3583_v51  ;;  %v3585_v44 = vadd.f32 %v3584_v15, %v10392_v34 }
 0x4da   :  { %v3586_v0 = vpop.f32.mrf.mxu0 }
 0x4db   :  { %v3759_v11 = vpop.f32.mrf.mxu1  ;;  %v10641_v10 = vadd.f32 %v3757_v26, %v3585_v44  ;;  %v3587_v7 = vadd.f32 %v3586_v0, %v10394_v38 }
 0x4dc   :  { %v3590_v37 = vpop.f32.mrf.mxu0 }
 0x4dd   :  { %v3763_v13 = vpop.f32.mrf.mxu1  ;;  %v10644_v58 = vadd.f32 %v3759_v11, %v3587_v7  ;;  %v3591_v61 = vadd.f32 %v3590_v37, %v10403_v57 }
 0x4de   :  { %v3592_v16 = vpop.f32.mrf.mxu0 }
 0x4df   :  { %v3765_v39 = vpop.f32.mrf.mxu1  ;;  %v10647_v32 = vadd.f32 %v3763_v13, %v3591_v61  ;;  %v3593_v4 = vadd.f32 %v3592_v16, %v10409_v12 }
 0x4e0   :  { %v3594_v24 = vpop.f32.mrf.mxu0 }
 0x4e1   :  { %v3767_v34 = vpop.f32.mrf.mxu1  ;;  %v10650_v35 = vadd.f32 %v3765_v39, %v3593_v4  ;;  %v3595_v53 = vadd.f32 %v3594_v24, %v10411_v56 }
 0x4e2   :  { %v3596_v59 = vpop.f32.mrf.mxu0 }
 0x4e3   :  { %v3769_v38 = vpop.f32.mrf.mxu1  ;;  %v10653_v27 = vadd.f32 %v3767_v34, %v3595_v53  ;;  %v3597_v14 = vadd.f32 %v3596_v59, %v10413_v52 }
 0x4e4   :  { %v3600_v51 = vpop.f32.mrf.mxu0 }
 0x4e5   :  { %v3773_v57 = vpop.f32.mrf.mxu1  ;;  %v10656_v15 = vadd.f32 %v3769_v38, %v3597_v14  ;;  %v3601_v26 = vadd.f32 %v3600_v51, %v10422_v62 }
 0x4e6   :  { %v3602_v44 = vpop.f32.mrf.mxu0 }
 0x4e7   :  { %v3775_v12 = vpop.f32.mrf.mxu1  ;;  %v10659_v0 = vadd.f32 %v3773_v57, %v3601_v26  ;;  %v3603_v11 = vadd.f32 %v3602_v44, %v10428_v63  ;;  %v13805_v57 = vld [vmem:[#allocation457_spill] sm:$0xff] }
 0x4e8   :  { %v3604_v7 = vpop.f32.mrf.mxu0 }
 0x4e9   :  { %v3777_v56 = vpop.f32.mrf.mxu1  ;;  %v10662_v37 = vadd.f32 %v3775_v12, %v3603_v11  ;;  %v3605_v13 = vadd.f32 %v3604_v7, %v10430_v40  ;;  %v13806_v11 = vld [vmem:[#allocation473_spill] sm:$0xff] }
 0x4ea   :  { %v3606_v61 = vpop.f32.mrf.mxu0 }
 0x4eb   :  { %v3779_v52 = vpop.f32.mrf.mxu1  ;;  %v10665_v16 = vadd.f32 %v3777_v56, %v3605_v13  ;;  %v3607_v39 = vadd.f32 %v3606_v61, %v10432_v48  ;;  %v13807_v61 = vld [vmem:[#allocation474_spill] sm:$0xff] }
 0x4ec   :  { %v3610_v4 = vpop.f32.mrf.mxu0 }
 0x4ed   :  { %v3783_v62 = vpop.f32.mrf.mxu1  ;;  %v10668_v24 = vadd.f32 %v3779_v52, %v3607_v39  ;;  %v3611_v34 = vadd.f32 %v3610_v4, %v10441_v54 }
 0x4ee   :  { %v3612_v53 = vpop.f32.mrf.mxu0 }
 0x4ef   :  { %v3785_v63 = vpop.f32.mrf.mxu1  ;;  %v10671_v59 = vadd.f32 %v3783_v62, %v3611_v34  ;;  %v3613_v38 = vadd.f32 %v3612_v53, %v10447_v20  ;;  %v13809_v62 = vld [vmem:[#allocation489_spill] sm:$0xff] }
 0x4f0   :  { %v3614_v14 = vpop.f32.mrf.mxu0 }
 0x4f1   :  { %v3787_v40 = vpop.f32.mrf.mxu1  ;;  %v10674_v51 = vadd.f32 %v3785_v63, %v3613_v38  ;;  %v3615_v26 = vadd.f32 %v3614_v14, %v13805_v57  ;;  %v13811_v14 = vld [vmem:[#allocation490_spill] sm:$0xff] }
 0x4f2   :  { %v3616_v44 = vpop.f32.mrf.mxu0 }
 0x4f3   :  { %v3789_v48 = vpop.f32.mrf.mxu1  ;;  %v10677_v12 = vadd.f32 %v3787_v40, %v3615_v26  ;;  %v3617_v7 = vadd.f32 %v3616_v44, %v13806_v11 }
 0x4f4   :  { %v3620_v56 = vpop.f32.mrf.mxu0 }
 0x4f5   :  { %v3793_v54 = vpop.f32.mrf.mxu1  ;;  %v10680_v13 = vadd.f32 %v3789_v48, %v3617_v7  ;;  %v3621_v52 = vadd.f32 %v3620_v56, %v13807_v61  ;;  %v13813_v48 = vld [vmem:[#allocation597_spill] sm:$0xff] }
 0x4f6   :  { %v3622_v39 = vpop.f32.mrf.mxu0 }
 0x4f7   :  { %v3795_v20 = vpop.f32.mrf.mxu1  ;;  %v10683_v4 = vadd.f32 %v3793_v54, %v3621_v52  ;;  %v3623_v34 = vadd.f32 %v3622_v39, %v13809_v62  ;;  %v13815_v54 = vld [vmem:[#allocation603_spill] sm:$0xff] }
 0x4f8   :  { %v3624_v53 = vpop.f32.mrf.mxu0 }
 0x4f9   :  { %13808 = vst [vmem:[#allocation611_spill] sm:$0xff] %v10683_v4  ;;  %v3797_v63 = vpop.f32.mrf.mxu1  ;;  %v10686_v38 = vadd.f32 %v3795_v20, %v3623_v34  ;;  %v3625_v40 = vadd.f32 %v3624_v53, %v13811_v14  ;;  %v13817_v20 = vld [vmem:[#allocation609_spill] sm:$0xff] }
 0x4fa   :  { %v3626_v57 = vpop.f32.mrf.mxu0 }
 0x4fb   :  { %13810 = vst [vmem:[#allocation454_spill] sm:$0xff] %v10686_v38  ;;  %v3799_v26 = vpop.f32.mrf.mxu1  ;;  %v10689_v44 = vadd.f32 %v3797_v63, %v3625_v40  ;;  %v3627_v11 = vadd.f32 %v3626_v57, %v13813_v48  ;;  %v13819_v63 = vld [vmem:[#allocation604_spill] sm:$0xff] }
 0x4fc   :  { %v3630_v7 = vpop.f32.mrf.mxu0 }
 0x4fd   :  { %13812 = vst [vmem:[#allocation615_spill] sm:$0xff] %v10689_v44  ;;  %v3803_v56 = vpop.f32.mrf.mxu1  ;;  %v10692_v61 = vadd.f32 %v3799_v26, %v3627_v11  ;;  %v3631_v52 = vadd.f32 %v3630_v7, %v13815_v54  ;;  %v13821_v26 = vld [vmem:[#allocation610_spill] sm:$0xff] }
 0x4fe   :  { %v3632_v4 = vpop.f32.mrf.mxu0 }
 0x4ff   :  { %13814 = vst [vmem:[#allocation619_spill] sm:$0xff] %v10692_v61  ;;  %v3805_v39 = vpop.f32.mrf.mxu1  ;;  %v10695_v62 = vadd.f32 %v3803_v56, %v3631_v52  ;;  %v3633_v34 = vadd.f32 %v3632_v4, %v13817_v20  ;;  %v13823_v56 = vld [vmem:[#allocation605_spill] sm:$0xff] }
 0x500   :  { %v3634_v38 = vpop.f32.mrf.mxu0 }
 0x501   :  { %13816 = vst [vmem:[#allocation38_spill] sm:$0xff] %v10695_v62  ;;  %v3807_v53 = vpop.f32.mrf.mxu1  ;;  %v10698_v14 = vadd.f32 %v3805_v39, %v3633_v34  ;;  %v3635_v40 = vadd.f32 %v3634_v38, %v13819_v63  ;;  %v13824_v39 = vld [vmem:[#allocation452_spill] sm:$0xff] }
 0x502   :  { %v3636_v44 = vpop.f32.mrf.mxu0 }
 0x503   :  { %13818 = vst [vmem:[#allocation40_spill] sm:$0xff] %v10698_v14  ;;  %v3809_v57 = vpop.f32.mrf.mxu1  ;;  %v10701_v48 = vadd.f32 %v3807_v53, %v3635_v40  ;;  %v3637_v11 = vadd.f32 %v3636_v44, %v13821_v26  ;;  %v13826_v53 = vld [vmem:[#allocation453_spill] sm:$0xff] }
 0x504   :  { %v3640_v61 = vpop.f32.mrf.mxu0 }
 0x505   :  { %13820 = vst [vmem:[#allocation102_spill] sm:$0xff] %v10701_v48  ;;  %v3813_v7 = vpop.f32.mrf.mxu1  ;;  %v10704_v54 = vadd.f32 %v3809_v57, %v3637_v11  ;;  %v3641_v52 = vadd.f32 %v3640_v61, %v13823_v56  ;;  %v13827_v57 = vld [vmem:[#allocation606_spill] sm:$0xff] }
 0x506   :  { %v3642_v62 = vpop.f32.mrf.mxu0 }
 0x507   :  { %13822 = vst [vmem:[#allocation104_spill] sm:$0xff] %v10704_v54  ;;  %v3815_v4 = vpop.f32.mrf.mxu1  ;;  %v10707_v20 = vadd.f32 %v3813_v7, %v3641_v52  ;;  %v3643_v34 = vadd.f32 %v3642_v62, %v13824_v39 }
 0x508   :  { %v3644_v14 = vpop.f32.mrf.mxu0 }
 0x509   :  { %v3817_v38 = vpop.f32.mrf.mxu1  ;;  %v10710_v63 = vadd.f32 %v3815_v4, %v3643_v34  ;;  %v3645_v40 = vadd.f32 %v3644_v14, %v13826_v53 }
 0x50a   :  { %v3646_v48 = vpop.f32.mrf.mxu0 }
 0x50b   :  { %13825 = vst [vmem:[#allocation37_spill] sm:$0xff] %v10710_v63  ;;  %v3819_v44 = vpop.f32.mrf.mxu1  ;;  %v10713_v26 = vadd.f32 %v3817_v38, %v3645_v40  ;;  %v3647_v11 = vadd.f32 %v3646_v48, %v13827_v57 }
 0x50c   :  { %v3856_v54 = vpop.f32.mrf.mxu0 }
 0x50d   :  { %v4029_v61 = vpop.f32.mrf.mxu1  ;;  %v10716_v56 = vadd.f32 %v3819_v44, %v3647_v11  ;;  %v3857_v7 = vadd.f32 %v3856_v54, %v10522_v1 }
 0x50e   :  { %v3858_v52 = vpop.f32.mrf.mxu0 }
 0x50f   :  { %v4031_v62 = vpop.f32.mrf.mxu1  ;;  %v4030_v39 = vadd.f32 %v4029_v61, %v3857_v7  ;;  %v3859_v4 = vadd.f32 %v3858_v52, %v10525_v19 }
 0x510   :  { %v3860_v34 = vpop.f32.mrf.mxu0 }
 0x511   :  { %v4033_v63 = vpop.f32.mrf.mxu1  ;;  %v4032_v14 = vadd.f32 %v4031_v62, %v3859_v4  ;;  %4168 = vst [vmem:[%s10975_s5] sm:$0xff] %v4030_v39  ;;  %v3861_v48 = vadd.f32 %v3860_v34, %v10528_v28 }
 0x512   :  { %v3862_v38 = vpop.f32.mrf.mxu0 }
 0x513   :  { %v4035_v53 = vpop.f32.mrf.mxu1  ;;  %v4034_v40 = vadd.f32 %v4033_v63, %v3861_v48  ;;  %v3863_v1 = vadd.f32 %v3862_v38, %v10538_v18  ;;  %4170 = vst.msk [vmem:[%s10975_s5 + $0x8] sm:$0xff] %vm4169_vm1, %v4032_v14 }
 0x514   :  { %v3866_v19 = vpop.f32.mrf.mxu0 }
 0x515   :  { %v4039_v54 = vpop.f32.mrf.mxu1  ;;  %4171 = vst [vmem:[%s10975_s5 + $0x10] sm:$0xff] %v4034_v40  ;;  %v4036_v44 = vadd.f32 %v4035_v53, %v3863_v1  ;;  %v3867_v57 = vadd.f32 %v3866_v19, %v10545_v33 }
 0x516   :  { %v3868_v28 = vpop.f32.mrf.mxu0 }
 0x517   :  { %v4041_v11 = vpop.f32.mrf.mxu1  ;;  %4172 = vst.msk [vmem:[%s10975_s5 + $0x18] sm:$0xff] %vm4169_vm1, %v4036_v44  ;;  %v4040_v18 = vadd.f32 %v4039_v54, %v3867_v57  ;;  %v3869_v63 = vadd.f32 %v3868_v28, %v10548_v47 }
 0x518   :  { %v3870_v61 = vpop.f32.mrf.mxu0 }
 0x519   :  { %v4043_v7 = vpop.f32.mrf.mxu1  ;;  %4173 = vst [vmem:[%s10975_s5 + $0x20] sm:$0xff] %v4040_v18  ;;  %v4042_v52 = vadd.f32 %v4041_v11, %v3869_v63  ;;  %v3871_v62 = vadd.f32 %v3870_v61, %v10551_v49 }
 0x51a   :  { %v3872_v33 = vpop.f32.mrf.mxu0 }
 0x51b   :  { %v4045_v39 = vpop.f32.mrf.mxu1  ;;  %4174 = vst.msk [vmem:[%s10975_s5 + $0x28] sm:$0xff] %vm4169_vm1, %v4042_v52  ;;  %v4044_v4 = vadd.f32 %v4043_v7, %v3871_v62  ;;  %v3873_v34 = vadd.f32 %v3872_v33, %v10561_v22 }
 0x51c   :  { %v3876_v47 = vpop.f32.mrf.mxu0 }
 0x51d   :  { %v4049_v14 = vpop.f32.mrf.mxu1  ;;  %4175 = vst [vmem:[%s10975_s5 + $0x30] sm:$0xff] %v4044_v4  ;;  %v4046_v48 = vadd.f32 %v4045_v39, %v3873_v34  ;;  %v3877_v38 = vadd.f32 %v3876_v47, %v10568_v36 }
 0x51e   :  { %v3878_v49 = vpop.f32.mrf.mxu0 }
 0x51f   :  { %v4051_v53 = vpop.f32.mrf.mxu1  ;;  %4176 = vst.msk [vmem:[%s10975_s5 + $0x38] sm:$0xff] %vm4169_vm1, %v4046_v48  ;;  %v4050_v40 = vadd.f32 %v4049_v14, %v3877_v38  ;;  %v3879_v1 = vadd.f32 %v3878_v49, %v10571_v21 }
 0x520   :  { %v3880_v22 = vpop.f32.mrf.mxu0 }
 0x521   :  { %v4053_v19 = vpop.f32.mrf.mxu1  ;;  %4177 = vst [vmem:[%s10975_s5 + $0x40] sm:$0xff] %v4050_v40  ;;  %v4052_v54 = vadd.f32 %v4051_v53, %v3879_v1  ;;  %v3881_v44 = vadd.f32 %v3880_v22, %v10574_v60 }
 0x522   :  { %v3882_v36 = vpop.f32.mrf.mxu0 }
 0x523   :  { %v4055_v57 = vpop.f32.mrf.mxu1  ;;  %4178 = vst.msk [vmem:[%s10975_s5 + $0x48] sm:$0xff] %vm4169_vm1, %v4052_v54  ;;  %v4054_v28 = vadd.f32 %v4053_v19, %v3881_v44  ;;  %v3883_v11 = vadd.f32 %v3882_v36, %v10584_v50 }
 0x524   :  { %v3886_v21 = vpop.f32.mrf.mxu0 }
 0x525   :  { %v4059_v18 = vpop.f32.mrf.mxu1  ;;  %4179 = vst [vmem:[%s10975_s5 + $0x50] sm:$0xff] %v4054_v28  ;;  %v4056_v63 = vadd.f32 %v4055_v57, %v3883_v11  ;;  %v3887_v61 = vadd.f32 %v3886_v21, %v10587_v45 }
 0x526   :  { %v3888_v60 = vpop.f32.mrf.mxu0 }
 0x527   :  { %v4061_v7 = vpop.f32.mrf.mxu1  ;;  %4180 = vst.msk [vmem:[%s10975_s5 + $0x58] sm:$0xff] %vm4169_vm1, %v4056_v63  ;;  %v4060_v52 = vadd.f32 %v4059_v18, %v3887_v61  ;;  %v3889_v62 = vadd.f32 %v3888_v60, %v10590_v31 }
 0x528   :  { %v3890_v50 = vpop.f32.mrf.mxu0 }
 0x529   :  { %v4063_v33 = vpop.f32.mrf.mxu1  ;;  %4181 = vst [vmem:[%s10975_s5 + $0x60] sm:$0xff] %v4060_v52  ;;  %v4062_v39 = vadd.f32 %v4061_v7, %v3889_v62  ;;  %v3891_v4 = vadd.f32 %v3890_v50, %v10593_v17 }
 0x52a   :  { %v3892_v45 = vpop.f32.mrf.mxu0 }
 0x52b   :  { %v4065_v34 = vpop.f32.mrf.mxu1  ;;  %4182 = vst.msk [vmem:[%s10975_s5 + $0x68] sm:$0xff] %vm4169_vm1, %v4062_v39  ;;  %v4064_v47 = vadd.f32 %v4063_v33, %v3891_v4  ;;  %v3893_v14 = vadd.f32 %v3892_v45, %v10596_v23 }
 0x52c   :  { %v3896_v31 = vpop.f32.mrf.mxu0 }
 0x52d   :  { %v4069_v48 = vpop.f32.mrf.mxu1  ;;  %4183 = vst [vmem:[%s10975_s5 + $0x70] sm:$0xff] %v4064_v47  ;;  %v4066_v38 = vadd.f32 %v4065_v34, %v3893_v14  ;;  %v3897_v49 = vadd.f32 %v3896_v31, %v10599_v9 }
 0x52e   :  { %v3898_v17 = vpop.f32.mrf.mxu0 }
 0x52f   :  { %v4071_v53 = vpop.f32.mrf.mxu1  ;;  %4184 = vst.msk [vmem:[%s10975_s5 + $0x78] sm:$0xff] %vm4169_vm1, %v4066_v38  ;;  %v4070_v40 = vadd.f32 %v4069_v48, %v3897_v49  ;;  %v3899_v1 = vadd.f32 %v3898_v17, %v10602_v25 }
 0x530   :  { %v3900_v23 = vpop.f32.mrf.mxu0 }
 0x531   :  { %v4073_v22 = vpop.f32.mrf.mxu1  ;;  %4185 = vst [vmem:[%s10975_s5 + $0x80] sm:$0xff] %v4070_v40  ;;  %v4072_v19 = vadd.f32 %v4071_v53, %v3899_v1  ;;  %v3901_v54 = vadd.f32 %v3900_v23, %v10605_v41 }
 0x532   :  { %v3902_v9 = vpop.f32.mrf.mxu0 }
 0x533   :  { %v4075_v44 = vpop.f32.mrf.mxu1  ;;  %4186 = vst.msk [vmem:[%s10975_s5 + $0x88] sm:$0xff] %vm4169_vm1, %v4072_v19  ;;  %v4074_v36 = vadd.f32 %v4073_v22, %v3901_v54  ;;  %v3903_v57 = vadd.f32 %v3902_v9, %v10608_v55 }
 0x534   :  { %v3906_v25 = vpop.f32.mrf.mxu0 }
 0x535   :  { %v4079_v28 = vpop.f32.mrf.mxu1  ;;  %4187 = vst [vmem:[%s10975_s5 + $0x90] sm:$0xff] %v4074_v36  ;;  %v4076_v11 = vadd.f32 %v4075_v44, %v3903_v57  ;;  %v3907_v21 = vadd.f32 %v3906_v25, %v10611_v42 }
 0x536   :  { %v3908_v41 = vpop.f32.mrf.mxu0 }
 0x537   :  { %v4081_v18 = vpop.f32.mrf.mxu1  ;;  %4188 = vst.msk [vmem:[%s10975_s5 + $0x98] sm:$0xff] %vm4169_vm1, %v4076_v11  ;;  %v4080_v63 = vadd.f32 %v4079_v28, %v3907_v21  ;;  %v3909_v61 = vadd.f32 %v3908_v41, %v10614_v8 }
 0x538   :  { %v3910_v55 = vpop.f32.mrf.mxu0 }
 0x539   :  { %v4083_v60 = vpop.f32.mrf.mxu1  ;;  %4189 = vst [vmem:[%s10975_s5 + $0xa0] sm:$0xff] %v4080_v63  ;;  %v4082_v7 = vadd.f32 %v4081_v18, %v3909_v61  ;;  %v3911_v52 = vadd.f32 %v3910_v55, %v10617_v2 }
 0x53a   :  { %v3912_v42 = vpop.f32.mrf.mxu0 }
 0x53b   :  { %v4085_v62 = vpop.f32.mrf.mxu1  ;;  %4190 = vst.msk [vmem:[%s10975_s5 + $0xa8] sm:$0xff] %vm4169_vm1, %v4082_v7  ;;  %v4084_v50 = vadd.f32 %v4083_v60, %v3911_v52  ;;  %v3913_v33 = vadd.f32 %v3912_v42, %v10620_v29 }
 0x53c   :  { %v3916_v8 = vpop.f32.mrf.mxu0 }
 0x53d   :  { %v4089_v39 = vpop.f32.mrf.mxu1  ;;  %4191 = vst [vmem:[%s10975_s5 + $0xb0] sm:$0xff] %v4084_v50  ;;  %v4086_v4 = vadd.f32 %v4085_v62, %v3913_v33  ;;  %v3917_v45 = vadd.f32 %v3916_v8, %v10623_v3 }
 0x53e   :  { %v3918_v2 = vpop.f32.mrf.mxu0 }
 0x53f   :  { %v4091_v34 = vpop.f32.mrf.mxu1  ;;  %4192 = vst.msk [vmem:[%s10975_s5 + $0xb8] sm:$0xff] %vm4169_vm1, %v4086_v4  ;;  %v4090_v47 = vadd.f32 %v4089_v39, %v3917_v45  ;;  %v3919_v14 = vadd.f32 %v3918_v2, %v10626_v46 }
 0x540   :  { %v3920_v29 = vpop.f32.mrf.mxu0 }
 0x541   :  { %v4093_v31 = vpop.f32.mrf.mxu1  ;;  %4193 = vst [vmem:[%s10975_s5 + $0xc0] sm:$0xff] %v4090_v47  ;;  %v4092_v48 = vadd.f32 %v4091_v34, %v3919_v14  ;;  %v3921_v38 = vadd.f32 %v3920_v29, %v10629_v5 }
 0x542   :  { %v3922_v3 = vpop.f32.mrf.mxu0 }
 0x543   :  { %v4095_v49 = vpop.f32.mrf.mxu1  ;;  %4194 = vst.msk [vmem:[%s10975_s5 + $0xc8] sm:$0xff] %vm4169_vm1, %v4092_v48  ;;  %v4094_v17 = vadd.f32 %v4093_v31, %v3921_v38  ;;  %v3923_v53 = vadd.f32 %v3922_v3, %v10632_v6 }
 0x544   :  { %v3926_v46 = vpop.f32.mrf.mxu0 }
 0x545   :  { %v4099_v40 = vpop.f32.mrf.mxu1  ;;  %4195 = vst [vmem:[%s10975_s5 + $0xd0] sm:$0xff] %v4094_v17  ;;  %v4096_v1 = vadd.f32 %v4095_v49, %v3923_v53  ;;  %v3927_v23 = vadd.f32 %v3926_v46, %v10635_v30 }
 0x546   :  { %v3928_v5 = vpop.f32.mrf.mxu0 }
 0x547   :  { %v4101_v22 = vpop.f32.mrf.mxu1  ;;  %4196 = vst.msk [vmem:[%s10975_s5 + $0xd8] sm:$0xff] %vm4169_vm1, %v4096_v1  ;;  %v4100_v19 = vadd.f32 %v4099_v40, %v3927_v23  ;;  %v3929_v54 = vadd.f32 %v3928_v5, %v10638_v43 }
 0x548   :  { %v3930_v6 = vpop.f32.mrf.mxu0 }
 0x549   :  { %v4103_v9 = vpop.f32.mrf.mxu1  ;;  %4197 = vst [vmem:[%s10975_s5 + $0xe0] sm:$0xff] %v4100_v19  ;;  %v4102_v44 = vadd.f32 %v4101_v22, %v3929_v54  ;;  %v3931_v36 = vadd.f32 %v3930_v6, %v10641_v10  ;;  %v13828_v6 = vld [vmem:[#allocation611_spill] sm:$0xff] }
 0x54a   :  { %v3932_v30 = vpop.f32.mrf.mxu0 }
 0x54b   :  { %v4105_v57 = vpop.f32.mrf.mxu1  ;;  %4198 = vst.msk [vmem:[%s10975_s5 + $0xe8] sm:$0xff] %vm4169_vm1, %v4102_v44  ;;  %v4104_v25 = vadd.f32 %v4103_v9, %v3931_v36  ;;  %v3933_v28 = vadd.f32 %v3932_v30, %v10644_v58  ;;  %v13829_v30 = vld [vmem:[#allocation454_spill] sm:$0xff] }
 0x54c   :  { %v3936_v43 = vpop.f32.mrf.mxu0 }
 0x54d   :  { %v4109_v11 = vpop.f32.mrf.mxu1  ;;  %4199 = vst [vmem:[%s10975_s5 + $0xf0] sm:$0xff] %v4104_v25  ;;  %v4106_v21 = vadd.f32 %v4105_v57, %v3933_v28  ;;  %v3937_v41 = vadd.f32 %v3936_v43, %v10647_v32  ;;  %v13830_v43 = vld [vmem:[#allocation615_spill] sm:$0xff] }
 0x54e   :  { %v3938_v10 = vpop.f32.mrf.mxu0 }
 0x54f   :  { %v4111_v18 = vpop.f32.mrf.mxu1  ;;  %4200 = vst.msk [vmem:[%s10975_s5 + $0xf8] sm:$0xff] %vm4169_vm1, %v4106_v21  ;;  %v4110_v63 = vadd.f32 %v4109_v11, %v3937_v41  ;;  %v3939_v61 = vadd.f32 %v3938_v10, %v10650_v35 }
 0x550   :  { %v3940_v58 = vpop.f32.mrf.mxu0 }
 0x551   :  { %v4113_v55 = vpop.f32.mrf.mxu1  ;;  %4201 = vst [vmem:[%s10975_s5 + $0x100] sm:$0xff] %v4110_v63  ;;  %v4112_v60 = vadd.f32 %v4111_v18, %v3939_v61  ;;  %v3941_v7 = vadd.f32 %v3940_v58, %v10653_v27  ;;  %v13831_v18 = vld [vmem:[#allocation619_spill] sm:$0xff] }
 0x552   :  { %v3942_v32 = vpop.f32.mrf.mxu0 }
 0x553   :  { %v4115_v52 = vpop.f32.mrf.mxu1  ;;  %4202 = vst.msk [vmem:[%s10975_s5 + $0x108] sm:$0xff] %vm4169_vm1, %v4112_v60  ;;  %v4114_v42 = vadd.f32 %v4113_v55, %v3941_v7  ;;  %v3943_v62 = vadd.f32 %v3942_v32, %v10656_v15  ;;  %v13832_v60 = vld [vmem:[#allocation38_spill] sm:$0xff] }
 0x554   :  { %v3946_v35 = vpop.f32.mrf.mxu0 }
 0x555   :  { %v4119_v50 = vpop.f32.mrf.mxu1  ;;  %4203 = vst [vmem:[%s10975_s5 + $0x110] sm:$0xff] %v4114_v42  ;;  %v4116_v33 = vadd.f32 %v4115_v52, %v3943_v62  ;;  %v3947_v8 = vadd.f32 %v3946_v35, %v10659_v0  ;;  %v13833_v62 = vld [vmem:[#allocation40_spill] sm:$0xff] }
 0x556   :  { %v3948_v27 = vpop.f32.mrf.mxu0 }
 0x557   :  { %v4121_v39 = vpop.f32.mrf.mxu1  ;;  %4204 = vst.msk [vmem:[%s10975_s5 + $0x118] sm:$0xff] %vm4169_vm1, %v4116_v33  ;;  %v4120_v4 = vadd.f32 %v4119_v50, %v3947_v8  ;;  %v3949_v45 = vadd.f32 %v3948_v27, %v10662_v37  ;;  %v13834_v27 = vld [vmem:[#allocation102_spill] sm:$0xff] }
 0x558   :  { %v3950_v15 = vpop.f32.mrf.mxu0 }
 0x559   :  { %v4123_v2 = vpop.f32.mrf.mxu1  ;;  %4205 = vst [vmem:[%s10975_s5 + $0x120] sm:$0xff] %v4120_v4  ;;  %v4122_v34 = vadd.f32 %v4121_v39, %v3949_v45  ;;  %v3951_v47 = vadd.f32 %v3950_v15, %v10665_v16 }
 0x55a   :  { %v3952_v0 = vpop.f32.mrf.mxu0 }
 0x55b   :  { %v4125_v14 = vpop.f32.mrf.mxu1  ;;  %4206 = vst.msk [vmem:[%s10975_s5 + $0x128] sm:$0xff] %vm4169_vm1, %v4122_v34  ;;  %v4124_v29 = vadd.f32 %v4123_v2, %v3951_v47  ;;  %v3953_v31 = vadd.f32 %v3952_v0, %v10668_v24  ;;  %v13835_v2 = vld [vmem:[#allocation104_spill] sm:$0xff] }
 0x55c   :  { %v3956_v37 = vpop.f32.mrf.mxu0 }
 0x55d   :  { %v4129_v48 = vpop.f32.mrf.mxu1  ;;  %4207 = vst [vmem:[%s10975_s5 + $0x130] sm:$0xff] %v4124_v29  ;;  %v4126_v38 = vadd.f32 %v4125_v14, %v3953_v31  ;;  %v3957_v3 = vadd.f32 %v3956_v37, %v10671_v59 }
 0x55e   :  { %v3958_v16 = vpop.f32.mrf.mxu0 }
 0x55f   :  { %v4131_v49 = vpop.f32.mrf.mxu1  ;;  %4208 = vst.msk [vmem:[%s10975_s5 + $0x138] sm:$0xff] %vm4169_vm1, %v4126_v38  ;;  %v4130_v17 = vadd.f32 %v4129_v48, %v3957_v3  ;;  %v3959_v53 = vadd.f32 %v3958_v16, %v10674_v51  ;;  %v13836_v38 = vld [vmem:[#allocation37_spill] sm:$0xff] }
 0x560   :  { %v3960_v24 = vpop.f32.mrf.mxu0 }
 0x561   :  { %v4133_v46 = vpop.f32.mrf.mxu1  ;;  %4209 = vst [vmem:[%s10975_s5 + $0x140] sm:$0xff] %v4130_v17  ;;  %v4132_v40 = vadd.f32 %v4131_v49, %v3959_v53  ;;  %v3961_v1 = vadd.f32 %v3960_v24, %v10677_v12 }
 0x562   :  { %v3962_v59 = vpop.f32.mrf.mxu0 }
 0x563   :  { %v4135_v23 = vpop.f32.mrf.mxu1  ;;  %4210 = vst.msk [vmem:[%s10975_s5 + $0x148] sm:$0xff] %vm4169_vm1, %v4132_v40  ;;  %v4134_v5 = vadd.f32 %v4133_v46, %v3961_v1  ;;  %v3963_v22 = vadd.f32 %v3962_v59, %v10680_v13 }
 0x564   :  { %v3966_v51 = vpop.f32.mrf.mxu0 }
 0x565   :  { %v4139_v19 = vpop.f32.mrf.mxu1  ;;  %4211 = vst [vmem:[%s10975_s5 + $0x150] sm:$0xff] %v4134_v5  ;;  %v4136_v54 = vadd.f32 %v4135_v23, %v3963_v22  ;;  %v3967_v9 = vadd.f32 %v3966_v51, %v13828_v6 }
 0x566   :  { %v3968_v12 = vpop.f32.mrf.mxu0 }
 0x567   :  { %v4141_v44 = vpop.f32.mrf.mxu1  ;;  %4212 = vst.msk [vmem:[%s10975_s5 + $0x158] sm:$0xff] %vm4169_vm1, %v4136_v54  ;;  %v4140_v36 = vadd.f32 %v4139_v19, %v3967_v9  ;;  %v3969_v57 = vadd.f32 %v3968_v12, %v13829_v30 }
 0x568   :  { %v3970_v13 = vpop.f32.mrf.mxu0 }
 0x569   :  { %v4143_v25 = vpop.f32.mrf.mxu1  ;;  %4213 = vst [vmem:[%s10975_s5 + $0x160] sm:$0xff] %v4140_v36  ;;  %v4142_v28 = vadd.f32 %v4141_v44, %v3969_v57  ;;  %v3971_v11 = vadd.f32 %v3970_v13, %v13830_v43 }
 0x56a   :  { %v3972_v21 = vpop.f32.mrf.mxu0 }
 0x56b   :  { %v4145_v41 = vpop.f32.mrf.mxu1  ;;  %4214 = vst.msk [vmem:[%s10975_s5 + $0x168] sm:$0xff] %vm4169_vm1, %v4142_v28  ;;  %v4144_v10 = vadd.f32 %v4143_v25, %v3971_v11  ;;  %v3973_v63 = vadd.f32 %v3972_v21, %v13831_v18 }
 0x56c   :  { %v3976_v61 = vpop.f32.mrf.mxu0 }
 0x56d   :  { %v4149_v58 = vpop.f32.mrf.mxu1  ;;  %4215 = vst [vmem:[%s10975_s5 + $0x170] sm:$0xff] %v4144_v10  ;;  %v4146_v55 = vadd.f32 %v4145_v41, %v3973_v63  ;;  %v3977_v7 = vadd.f32 %v3976_v61, %v13832_v60 }
 0x56e   :  { %v3978_v32 = vpop.f32.mrf.mxu0 }
 0x56f   :  { %v4151_v52 = vpop.f32.mrf.mxu1  ;;  %4216 = vst.msk [vmem:[%s10975_s5 + $0x178] sm:$0xff] %vm4169_vm1, %v4146_v55  ;;  %v4150_v42 = vadd.f32 %v4149_v58, %v3977_v7  ;;  %v3979_v35 = vadd.f32 %v3978_v32, %v13833_v62 }
 0x570   :  { %v3980_v50 = vpop.f32.mrf.mxu0 }
 0x571   :  { %v4153_v33 = vpop.f32.mrf.mxu1  ;;  %4217 = vst [vmem:[%s10975_s5 + $0x180] sm:$0xff] %v4150_v42  ;;  %v4152_v8 = vadd.f32 %v4151_v52, %v3979_v35  ;;  %v3981_v39 = vadd.f32 %v3980_v50, %v13834_v27 }
 0x572   :  { %v3982_v4 = vpop.f32.mrf.mxu0 }
 0x573   :  { %v4155_v45 = vpop.f32.mrf.mxu1  ;;  %4218 = vst.msk [vmem:[%s10975_s5 + $0x188] sm:$0xff] %vm4169_vm1, %v4152_v8  ;;  %v4154_v15 = vadd.f32 %v4153_v33, %v3981_v39  ;;  %v3983_v34 = vadd.f32 %v3982_v4, %v13835_v2 }
 0x574   :  { %v3986_v47 = vpop.f32.mrf.mxu0 }
 0x575   :  { %v4159_v0 = vpop.f32.mrf.mxu1  ;;  %4219 = vst [vmem:[%s10975_s5 + $0x190] sm:$0xff] %v4154_v15  ;;  %v4156_v14 = vadd.f32 %v4155_v45, %v3983_v34  ;;  %v3987_v29 = vadd.f32 %v3986_v47, %v10707_v20 }
 0x576   :  { %v3988_v31 = vpop.f32.mrf.mxu0 }
 0x577   :  { %v4161_v37 = vpop.f32.mrf.mxu1  ;;  %4220 = vst.msk [vmem:[%s10975_s5 + $0x198] sm:$0xff] %vm4169_vm1, %v4156_v14  ;;  %v4160_v48 = vadd.f32 %v4159_v0, %v3987_v29  ;;  %v3989_v3 = vadd.f32 %v3988_v31, %v13836_v38 }
 0x578   :  { %v3990_v16 = vpop.f32.mrf.mxu0 }
 0x579   :  { %v4163_v49 = vpop.f32.mrf.mxu1  ;;  %4221 = vst [vmem:[%s10975_s5 + $0x1a0] sm:$0xff] %v4160_v48  ;;  %v4162_v17 = vadd.f32 %v4161_v37, %v3989_v3  ;;  %v3991_v53 = vadd.f32 %v3990_v16, %v10713_v26 }
 0x57a   :  { %v3992_v20 = vpop.f32.mrf.mxu0 }
 0x57b   :  { %4222 = vst.msk [vmem:[%s10975_s5 + $0x1a8] sm:$0xff] %vm4169_vm1, %v4162_v17  ;;  %v4164_v24 = vadd.f32 %v4163_v49, %v3991_v53  ;;  %v3993_v46 = vadd.f32 %v3992_v20, %v10716_v56  ;;  %v4165_v40 = vpop.f32.mrf.mxu1 }
 0x57d   :  { %4223 = vst [vmem:[%s10975_s5 + $0x1b0] sm:$0xff] %v4164_v24  ;;  %v4166_v1 = vadd.f32 %v4165_v40, %v3993_v46 }
 0x57f   :  { %4224 = vst.msk [vmem:[%s10975_s5 + $0x1b8] sm:$0xff] %vm4169_vm1, %v4166_v1 }
 0x580   :  { %4229 = vsyncmov [#allocation4] }
 0x583   :  { %s4230_s26 = vpop.sfrf %4229 }
 0x584   :  { %p4283_p0 = scmp.ne.s32.totalorder %s4230_s26, 0 }
 0x586   :  { %4234 = shalt.err (%p4283_p0)  }
 0x587   :  { %4236 = vsyncmov [#allocation4 + $0x1] }
 0x58a   :  { %s4237_s27 = vpop.sfrf %4236 }
 0x58b   :  { %p4284_p1 = scmp.ne.s32.totalorder %s4237_s27, 0 }
 0x58d   :  { %4241 = shalt.err (%p4284_p1)  }

</bundles_post_ra>
